<compile_context>
chip_gen: v7x
topology: tpu7x:2x2x1
jax: 0.10.0
libtpu: 0.0.40
codegen_flags: <defaults>
</compile_context>

<pallas_src>
import math

import jax
import jax.numpy as jnp
from jax.experimental import pallas as pl
from jax.experimental.pallas import tpu as pltpu


CFG = [64, "M", 128, "M", 256, "M", 512, "M"]   # small VGG-style ConvNet
N_CLASS = 7
IN_CHANNELS = 3
IN_SPATIAL = 16


def _stage_dims():
    """(H, W, Cin, Cout) of every fused conv+pool stage."""
    dims = []
    h = w = IN_SPATIAL
    c_in = IN_CHANNELS
    i = 0
    while i < len(CFG):
        v = CFG[i]
        assert v != "M" and i + 1 < len(CFG) and CFG[i + 1] == "M", \
            "this kernel fuses each conv with the following maxpool"
        dims.append((h, w, c_in, v))
        c_in = v
        h //= 2
        w //= 2
        i += 2
    return tuple(dims)


STAGE_DIMS = _stage_dims()                       # ((16,16,3,64), (8,8,64,128), ...)
FC_DIMS = ((512, 512), (512, 512), (512, N_CLASS))


# ---------------------------------------------------------------------------
# Pallas kernel (whole network, one image per grid step)
# ---------------------------------------------------------------------------
def _conv_relu_pool(in_ref, w_ref, b_ref, sel_ref, H, W):
    """3x3 same-pad conv + bias + ReLU + 2x2/2 maxpool for one image.

    in_ref : ((H+2)*(W+2), Cin) bf16  zero-padded input, spatially flattened
    w_ref  : (9, Cin, Cout)     bf16  tap index t = ky*3 + kx
    b_ref  : (1, Cout)          f32
    sel_ref: (4, Hh*Wh, L)      bf16  0/1 pooling-corner selection matrices
    returns (Hh*Wh, Cout) f32
    """
    Wp = W + 2
    L = H * Wp - 2          # conv accumulator length in padded flat coordinates
    acc = None
    for t in range(9):
        dy, dx = divmod(t, 3)
        off = dy * Wp + dx
        d = jnp.dot(in_ref[off:off + L, :], w_ref[t],
                    preferred_element_type=jnp.float32)
        acc = d if acc is None else acc + d
    # rows at "pad" flat positions hold junk but are never selected below.
    y = jnp.maximum(acc + b_ref[...], 0.0).astype(jnp.bfloat16)   # (L, Cout)
    out = None
    for q in range(4):      # the 4 corners of each 2x2 pooling window
        pq = jnp.dot(sel_ref[q], y, preferred_element_type=jnp.float32)
        out = pq if out is None else jnp.maximum(out, pq)
    return out


def _vgg_kernel(*refs):
    n_stage = len(STAGE_DIMS)
    n_fc = len(FC_DIMS)
    x_ref = refs[0]
    idx = 1
    conv_refs = []
    for _ in range(n_stage):
        conv_refs.append(refs[idx:idx + 3])
        idx += 3
    pad_refs = refs[idx:idx + n_stage - 1]
    idx += n_stage - 1
    fc_refs = []
    for _ in range(n_fc):
        fc_refs.append(refs[idx:idx + 2])
        idx += 2
    o_ref = refs[idx]
    act_refs = refs[idx + 1:]          # VMEM scratches for inter-stage activations

    cur = x_ref
    feat = None
    for s, (H, W, _, _) in enumerate(STAGE_DIMS):
        w_ref, b_ref, sel_ref = conv_refs[s]
        pooled = _conv_relu_pool(cur, w_ref, b_ref, sel_ref, H, W)
        if s + 1 < n_stage:
            # Scatter + zero-pad the pooled map into the next stage's flattened
            # padded coordinates:  a_next = P @ pooled  (P is a 0/1 matrix).
            nxt = jnp.dot(pad_refs[s][...], pooled.astype(jnp.bfloat16),
                          preferred_element_type=jnp.float32)
            act_refs[s][...] = nxt.astype(jnp.bfloat16)
            cur = act_refs[s]
        else:
            feat = pooled               # (1, 512) f32 == PyTorch's .view(N, -1)

    # classifier (Dropout == identity at inference)
    # TODO(synk): training-mode Dropout (random masking) is not implemented.
    h = feat.astype(jnp.bfloat16)
    for li, (fw_ref, fb_ref) in enumerate(fc_refs):
        z = jnp.dot(h, fw_ref[...], preferred_element_type=jnp.float32) + fb_ref[...]
        if li + 1 < n_fc:
            h = jnp.maximum(z, 0.0).astype(jnp.bfloat16)
        else:
            o_ref[...] = z.astype(o_ref.dtype)


# ---------------------------------------------------------------------------
# Constant helper matrices (built once at init, tiny)
# ---------------------------------------------------------------------------
def _pool_select_matrices(H, W):
    """sel[q, p, i] = 1 iff flat conv row i is corner q of pooling cell p."""
    Hh, Wh = H // 2, W // 2
    Wp = W + 2
    L = H * Wp - 2
    p = jnp.arange(Hh * Wh)
    ph, pw = p // Wh, p % Wh
    cols = jnp.arange(L)
    sels = []
    for q in range(4):
        tgt = (2 * ph + q // 2) * Wp + (2 * pw + q % 2)          # (Hh*Wh,)
        sels.append((cols[None, :] == tgt[:, None]).astype(jnp.bfloat16))
    return jnp.stack(sels, axis=0)                               # (4, Hh*Wh, L)


def _pad_scatter_matrix(Hh, Wh):
    """P[j, p] = 1 iff padded flat position j holds pooled pixel p (else 0)."""
    Wp = Wh + 2
    rows = jnp.arange((Hh + 2) * Wp)
    p = jnp.arange(Hh * Wh)
    tgt = (p // Wh + 1) * Wp + (p % Wh + 1)
    return (rows[:, None] == tgt[None, :]).astype(jnp.bfloat16)  # (Lin_next, Hh*Wh)


# ---------------------------------------------------------------------------
# Parameter construction (deterministic, mirrors the PyTorch __init__)
# ---------------------------------------------------------------------------
def init_params(key):
    params = {"conv": [], "pad": [], "fc": []}
    for (H, W, c_in, c_out) in STAGE_DIMS:
        key, kw = jax.random.split(key)
        # PyTorch VGG.__init__: weight ~ N(0, sqrt(2/(kh*kw*out_ch))), bias = 0.
        std = math.sqrt(2.0 / (3 * 3 * c_out))
        w = std * jax.random.normal(kw, (c_out, c_in, 3, 3), jnp.float32)
        # (Cout, Cin, ky, kx) -> (t=ky*3+kx, Cin, Cout), bf16 for the MXU.
        w_mat = jnp.transpose(w, (2, 3, 1, 0)).reshape(9, c_in, c_out)
        b = jnp.zeros((1, c_out), jnp.float32)
        params["conv"].append((w_mat.astype(jnp.bfloat16), b,
                               _pool_select_matrices(H, W)))
    for (H, W, _, _) in STAGE_DIMS[:-1]:
        params["pad"].append(_pad_scatter_matrix(H // 2, W // 2))
    for (fan_in, fan_out) in FC_DIMS:
        key, kw, kb = jax.random.split(key, 3)
        bound = 1.0 / math.sqrt(fan_in)   # PyTorch Linear default init range
        w = jax.random.uniform(kw, (fan_out, fan_in), jnp.float32, -bound, bound)
        b = jax.random.uniform(kb, (fan_out,), jnp.float32, -bound, bound)
        # stored pre-transposed as (fan_in, fan_out); bias as (1, fan_out).
        params["fc"].append((w.T.astype(jnp.bfloat16), b.reshape(1, fan_out)))
    return params


# ---------------------------------------------------------------------------
# Forward pass wrapper
# ---------------------------------------------------------------------------
def _flat_inputs(params, x_flat):
    inputs = [x_flat]
    for (w, b, sel) in params["conv"]:
        inputs += [w, b, sel]
    inputs += list(params["pad"])
    for (w, b) in params["fc"]:
        inputs += [w, b]
    return inputs


def _full_spec(shape):
    nd = len(shape)
    return pl.BlockSpec(shape, lambda i, _nd=nd: (0,) * _nd)   # weight resident


def _flops_per_image():
    flops = 0
    for (H, W, c_in, c_out) in STAGE_DIMS:
        L = H * (W + 2) - 2
        mh = (H // 2) * (W // 2)
        flops += 2 * (9 * L * c_in * c_out + 4 * mh * L * c_out)
    for (H, W, _, c_out) in STAGE_DIMS[:-1]:
        flops += 2 * (H // 2 + 2) * (W // 2 + 2) * (H // 2) * (W // 2) * c_out
    for (fan_in, fan_out) in FC_DIMS:
        flops += 2 * fan_in * fan_out
    return flops


def vgg_forward(params, x_nchw):
    n = x_nchw.shape[0]
    lin0 = (IN_SPATIAL + 2) * (IN_SPATIAL + 2)

    # NCHW -> NHWC, zero same-pad, flatten spatial, cast to bf16 for the MXU.
    x = jnp.transpose(x_nchw, (0, 2, 3, 1)).astype(jnp.float32)
    x = jnp.pad(x, ((0, 0), (1, 1), (1, 1), (0, 0)))
    x_flat = x.reshape(n, lin0, IN_CHANNELS).astype(jnp.bfloat16)

    inputs = _flat_inputs(params, x_flat)
    in_specs = [pl.BlockSpec((None, lin0, IN_CHANNELS), lambda i: (i, 0, 0))]
    in_specs += [_full_spec(a.shape) for a in inputs[1:]]
    out_spec = pl.BlockSpec((None, 1, N_CLASS), lambda i: (i, 0, 0))

    scratch_shapes = [
        pltpu.VMEM(((H // 2 + 2) * (W // 2 + 2), c_out), jnp.bfloat16)
        for (H, W, _, c_out) in STAGE_DIMS[:-1]
    ]

    bytes_accessed = sum(a.size * a.dtype.itemsize for a in inputs)
    bytes_accessed += n * N_CLASS * 4

    out = pl.pallas_call(
        _vgg_kernel,
        out_shape=jax.ShapeDtypeStruct((n, 1, N_CLASS), jnp.float32),
        grid=(n,),
        in_specs=in_specs,
        out_specs=out_spec,
        scratch_shapes=scratch_shapes,
        compiler_params=pltpu.CompilerParams(
            dimension_semantics=("parallel",),          # batch across TCs (v7x)
            vmem_limit_bytes=48 * 1024 * 1024),         # headroom under 64MiB (v7x)
        cost_estimate=pl.CostEstimate(
            flops=n * _flops_per_image(),
            transcendentals=0,
            bytes_accessed=bytes_accessed),
    )(*inputs)
    return out.reshape(n, N_CLASS)


if __name__ == "__main__":
    key = jax.random.PRNGKey(0)
    key, kx = jax.random.split(key)
    # small shapes: batch=2, channels=3, spatial=16 -> 512x1x1 features
    x = jax.random.normal(kx, (2, IN_CHANNELS, IN_SPATIAL, IN_SPATIAL), jnp.float32)
    params = init_params(key)

    out = vgg_forward(params, x)
    out = jax.block_until_ready(out)
    assert out.shape == (2, N_CLASS), out.shape
    assert bool(jnp.all(jnp.isfinite(out)))
    print("KERNEL_OK")
</pallas_src>

<mosaic_0001>
module attributes {stable_mosaic.version = 11 : i64} {
  func.func @_vgg_kernel(%arg0: i32, %arg1: memref<1x324x3xbf16, #tpu.memory_space<vmem>>, %arg2: memref<9x3x64xbf16, #tpu.memory_space<vmem>>, %arg3: memref<1x64xf32, #tpu.memory_space<vmem>>, %arg4: memref<4x64x286xbf16, #tpu.memory_space<vmem>>, %arg5: memref<9x64x128xbf16, #tpu.memory_space<vmem>>, %arg6: memref<1x128xf32, #tpu.memory_space<vmem>>, %arg7: memref<4x16x78xbf16, #tpu.memory_space<vmem>>, %arg8: memref<9x128x256xbf16, #tpu.memory_space<vmem>>, %arg9: memref<1x256xf32, #tpu.memory_space<vmem>>, %arg10: memref<4x4x22xbf16, #tpu.memory_space<vmem>>, %arg11: memref<9x256x512xbf16, #tpu.memory_space<vmem>>, %arg12: memref<1x512xf32, #tpu.memory_space<vmem>>, %arg13: memref<4x1x6xbf16, #tpu.memory_space<vmem>>, %arg14: memref<100x64xbf16, #tpu.memory_space<vmem>>, %arg15: memref<36x16xbf16, #tpu.memory_space<vmem>>, %arg16: memref<16x4xbf16, #tpu.memory_space<vmem>>, %arg17: memref<512x512xbf16, #tpu.memory_space<vmem>>, %arg18: memref<1x512xf32, #tpu.memory_space<vmem>>, %arg19: memref<512x512xbf16, #tpu.memory_space<vmem>>, %arg20: memref<1x512xf32, #tpu.memory_space<vmem>>, %arg21: memref<512x7xbf16, #tpu.memory_space<vmem>>, %arg22: memref<1x7xf32, #tpu.memory_space<vmem>>, %arg23: memref<1x1x7xf32, #tpu.memory_space<vmem>>, %arg24: memref<100x64xbf16, #tpu.memory_space<vmem>>, %arg25: memref<36x128xbf16, #tpu.memory_space<vmem>>, %arg26: memref<16x256xbf16, #tpu.memory_space<vmem>>) attributes {dimension_semantics = [#tpu.dimension_semantics<parallel>], iteration_bounds = array<i64: 2>, scalar_prefetch = 0 : i64, scratch_operands = 3 : i64, tpu.core_type = #tpu.core_type<tc>, window_params = [{transform_indices = @transform_0, window_bounds = array<i64: 1, 324, 3>}, {pipeline_mode = #tpu.pipeline_mode<synchronous>, transform_indices = @transform_1, window_bounds = array<i64: 9, 3, 64>}, {pipeline_mode = #tpu.pipeline_mode<synchronous>, transform_indices = @transform_2, window_bounds = array<i64: 1, 64>}, {pipeline_mode = #tpu.pipeline_mode<synchronous>, transform_indices = @transform_3, window_bounds = array<i64: 4, 64, 286>}, {pipeline_mode = #tpu.pipeline_mode<synchronous>, transform_indices = @transform_4, window_bounds = array<i64: 9, 64, 128>}, {pipeline_mode = #tpu.pipeline_mode<synchronous>, transform_indices = @transform_5, window_bounds = array<i64: 1, 128>}, {pipeline_mode = #tpu.pipeline_mode<synchronous>, transform_indices = @transform_6, window_bounds = array<i64: 4, 16, 78>}, {pipeline_mode = #tpu.pipeline_mode<synchronous>, transform_indices = @transform_7, window_bounds = array<i64: 9, 128, 256>}, {pipeline_mode = #tpu.pipeline_mode<synchronous>, transform_indices = @transform_8, window_bounds = array<i64: 1, 256>}, {pipeline_mode = #tpu.pipeline_mode<synchronous>, transform_indices = @transform_9, window_bounds = array<i64: 4, 4, 22>}, {pipeline_mode = #tpu.pipeline_mode<synchronous>, transform_indices = @transform_10, window_bounds = array<i64: 9, 256, 512>}, {pipeline_mode = #tpu.pipeline_mode<synchronous>, transform_indices = @transform_11, window_bounds = array<i64: 1, 512>}, {pipeline_mode = #tpu.pipeline_mode<synchronous>, transform_indices = @transform_12, window_bounds = array<i64: 4, 1, 6>}, {pipeline_mode = #tpu.pipeline_mode<synchronous>, transform_indices = @transform_13, window_bounds = array<i64: 100, 64>}, {pipeline_mode = #tpu.pipeline_mode<synchronous>, transform_indices = @transform_14, window_bounds = array<i64: 36, 16>}, {pipeline_mode = #tpu.pipeline_mode<synchronous>, transform_indices = @transform_15, window_bounds = array<i64: 16, 4>}, {pipeline_mode = #tpu.pipeline_mode<synchronous>, transform_indices = @transform_16, window_bounds = array<i64: 512, 512>}, {pipeline_mode = #tpu.pipeline_mode<synchronous>, transform_indices = @transform_17, window_bounds = array<i64: 1, 512>}, {pipeline_mode = #tpu.pipeline_mode<synchronous>, transform_indices = @transform_18, window_bounds = array<i64: 512, 512>}, {pipeline_mode = #tpu.pipeline_mode<synchronous>, transform_indices = @transform_19, window_bounds = array<i64: 1, 512>}, {pipeline_mode = #tpu.pipeline_mode<synchronous>, transform_indices = @transform_20, window_bounds = array<i64: 512, 7>}, {pipeline_mode = #tpu.pipeline_mode<synchronous>, transform_indices = @transform_21, window_bounds = array<i64: 1, 7>}, {transform_indices = @transform_22, window_bounds = array<i64: 1, 1, 7>}]} {
    %c0 = arith.constant 0 : index
    %c0_0 = arith.constant 0 : index
    %c0_1 = arith.constant 0 : index
    %0 = vector.load %arg1[%c0, %c0_0, %c0_1] : memref<1x324x3xbf16, #tpu.memory_space<vmem>>, vector<1x286x3xbf16>
    %1 = vector.shape_cast %0 : vector<1x286x3xbf16> to vector<286x3xbf16>
    %c0_2 = arith.constant 0 : index
    %c0_3 = arith.constant 0 : index
    %c0_4 = arith.constant 0 : index
    %2 = vector.load %arg2[%c0_2, %c0_3, %c0_4] : memref<9x3x64xbf16, #tpu.memory_space<vmem>>, vector<1x3x64xbf16>
    %3 = vector.shape_cast %2 : vector<1x3x64xbf16> to vector<3x64xbf16>
    %cst = arith.constant dense<0.000000e+00> : vector<286x64xf32>
    %4 = tpu.matmul %1, %3, %cst {dimension_numbers = #tpu.dot_dimension_numbers<[1], [0], [0], [1], [0, 0, 1, 1], [], []>} : vector<286x3xbf16>, vector<3x64xbf16>, vector<286x64xf32> -> vector<286x64xf32>
    %c0_5 = arith.constant 0 : index
    %c1 = arith.constant 1 : index
    %c0_6 = arith.constant 0 : index
    %5 = vector.load %arg1[%c0_5, %c1, %c0_6] : memref<1x324x3xbf16, #tpu.memory_space<vmem>>, vector<1x286x3xbf16>
    %6 = vector.shape_cast %5 : vector<1x286x3xbf16> to vector<286x3xbf16>
    %c1_7 = arith.constant 1 : index
    %c0_8 = arith.constant 0 : index
    %c0_9 = arith.constant 0 : index
    %7 = vector.load %arg2[%c1_7, %c0_8, %c0_9] : memref<9x3x64xbf16, #tpu.memory_space<vmem>>, vector<1x3x64xbf16>
    %8 = vector.shape_cast %7 : vector<1x3x64xbf16> to vector<3x64xbf16>
    %cst_10 = arith.constant dense<0.000000e+00> : vector<286x64xf32>
    %9 = tpu.matmul %6, %8, %cst_10 {dimension_numbers = #tpu.dot_dimension_numbers<[1], [0], [0], [1], [0, 0, 1, 1], [], []>} : vector<286x3xbf16>, vector<3x64xbf16>, vector<286x64xf32> -> vector<286x64xf32>
    %10 = arith.addf %4, %9 : vector<286x64xf32>
    %c0_11 = arith.constant 0 : index
    %c2 = arith.constant 2 : index
    %c0_12 = arith.constant 0 : index
    %11 = vector.load %arg1[%c0_11, %c2, %c0_12] : memref<1x324x3xbf16, #tpu.memory_space<vmem>>, vector<1x286x3xbf16>
    %12 = vector.shape_cast %11 : vector<1x286x3xbf16> to vector<286x3xbf16>
    %c2_13 = arith.constant 2 : index
    %c0_14 = arith.constant 0 : index
    %c0_15 = arith.constant 0 : index
    %13 = vector.load %arg2[%c2_13, %c0_14, %c0_15] : memref<9x3x64xbf16, #tpu.memory_space<vmem>>, vector<1x3x64xbf16>
    %14 = vector.shape_cast %13 : vector<1x3x64xbf16> to vector<3x64xbf16>
    %cst_16 = arith.constant dense<0.000000e+00> : vector<286x64xf32>
    %15 = tpu.matmul %12, %14, %cst_16 {dimension_numbers = #tpu.dot_dimension_numbers<[1], [0], [0], [1], [0, 0, 1, 1], [], []>} : vector<286x3xbf16>, vector<3x64xbf16>, vector<286x64xf32> -> vector<286x64xf32>
    %16 = arith.addf %10, %15 : vector<286x64xf32>
    %c0_17 = arith.constant 0 : index
    %c18 = arith.constant 18 : index
    %c0_18 = arith.constant 0 : index
    %17 = vector.load %arg1[%c0_17, %c18, %c0_18] : memref<1x324x3xbf16, #tpu.memory_space<vmem>>, vector<1x286x3xbf16>
    %18 = vector.shape_cast %17 : vector<1x286x3xbf16> to vector<286x3xbf16>
    %c3 = arith.constant 3 : index
    %c0_19 = arith.constant 0 : index
    %c0_20 = arith.constant 0 : index
    %19 = vector.load %arg2[%c3, %c0_19, %c0_20] : memref<9x3x64xbf16, #tpu.memory_space<vmem>>, vector<1x3x64xbf16>
    %20 = vector.shape_cast %19 : vector<1x3x64xbf16> to vector<3x64xbf16>
    %cst_21 = arith.constant dense<0.000000e+00> : vector<286x64xf32>
    %21 = tpu.matmul %18, %20, %cst_21 {dimension_numbers = #tpu.dot_dimension_numbers<[1], [0], [0], [1], [0, 0, 1, 1], [], []>} : vector<286x3xbf16>, vector<3x64xbf16>, vector<286x64xf32> -> vector<286x64xf32>
    %22 = arith.addf %16, %21 : vector<286x64xf32>
    %c0_22 = arith.constant 0 : index
    %c19 = arith.constant 19 : index
    %c0_23 = arith.constant 0 : index
    %23 = vector.load %arg1[%c0_22, %c19, %c0_23] : memref<1x324x3xbf16, #tpu.memory_space<vmem>>, vector<1x286x3xbf16>
    %24 = vector.shape_cast %23 : vector<1x286x3xbf16> to vector<286x3xbf16>
    %c4 = arith.constant 4 : index
    %c0_24 = arith.constant 0 : index
    %c0_25 = arith.constant 0 : index
    %25 = vector.load %arg2[%c4, %c0_24, %c0_25] : memref<9x3x64xbf16, #tpu.memory_space<vmem>>, vector<1x3x64xbf16>
    %26 = vector.shape_cast %25 : vector<1x3x64xbf16> to vector<3x64xbf16>
    %cst_26 = arith.constant dense<0.000000e+00> : vector<286x64xf32>
    %27 = tpu.matmul %24, %26, %cst_26 {dimension_numbers = #tpu.dot_dimension_numbers<[1], [0], [0], [1], [0, 0, 1, 1], [], []>} : vector<286x3xbf16>, vector<3x64xbf16>, vector<286x64xf32> -> vector<286x64xf32>
    %28 = arith.addf %22, %27 : vector<286x64xf32>
    %c0_27 = arith.constant 0 : index
    %c20 = arith.constant 20 : index
    %c0_28 = arith.constant 0 : index
    %29 = vector.load %arg1[%c0_27, %c20, %c0_28] : memref<1x324x3xbf16, #tpu.memory_space<vmem>>, vector<1x286x3xbf16>
    %30 = vector.shape_cast %29 : vector<1x286x3xbf16> to vector<286x3xbf16>
    %c5 = arith.constant 5 : index
    %c0_29 = arith.constant 0 : index
    %c0_30 = arith.constant 0 : index
    %31 = vector.load %arg2[%c5, %c0_29, %c0_30] : memref<9x3x64xbf16, #tpu.memory_space<vmem>>, vector<1x3x64xbf16>
    %32 = vector.shape_cast %31 : vector<1x3x64xbf16> to vector<3x64xbf16>
    %cst_31 = arith.constant dense<0.000000e+00> : vector<286x64xf32>
    %33 = tpu.matmul %30, %32, %cst_31 {dimension_numbers = #tpu.dot_dimension_numbers<[1], [0], [0], [1], [0, 0, 1, 1], [], []>} : vector<286x3xbf16>, vector<3x64xbf16>, vector<286x64xf32> -> vector<286x64xf32>
    %34 = arith.addf %28, %33 : vector<286x64xf32>
    %c0_32 = arith.constant 0 : index
    %c36 = arith.constant 36 : index
    %c0_33 = arith.constant 0 : index
    %35 = vector.load %arg1[%c0_32, %c36, %c0_33] : memref<1x324x3xbf16, #tpu.memory_space<vmem>>, vector<1x286x3xbf16>
    %36 = vector.shape_cast %35 : vector<1x286x3xbf16> to vector<286x3xbf16>
    %c6 = arith.constant 6 : index
    %c0_34 = arith.constant 0 : index
    %c0_35 = arith.constant 0 : index
    %37 = vector.load %arg2[%c6, %c0_34, %c0_35] : memref<9x3x64xbf16, #tpu.memory_space<vmem>>, vector<1x3x64xbf16>
    %38 = vector.shape_cast %37 : vector<1x3x64xbf16> to vector<3x64xbf16>
    %cst_36 = arith.constant dense<0.000000e+00> : vector<286x64xf32>
    %39 = tpu.matmul %36, %38, %cst_36 {dimension_numbers = #tpu.dot_dimension_numbers<[1], [0], [0], [1], [0, 0, 1, 1], [], []>} : vector<286x3xbf16>, vector<3x64xbf16>, vector<286x64xf32> -> vector<286x64xf32>
    %40 = arith.addf %34, %39 : vector<286x64xf32>
    %c0_37 = arith.constant 0 : index
    %c37 = arith.constant 37 : index
    %c0_38 = arith.constant 0 : index
    %41 = vector.load %arg1[%c0_37, %c37, %c0_38] : memref<1x324x3xbf16, #tpu.memory_space<vmem>>, vector<1x286x3xbf16>
    %42 = vector.shape_cast %41 : vector<1x286x3xbf16> to vector<286x3xbf16>
    %c7 = arith.constant 7 : index
    %c0_39 = arith.constant 0 : index
    %c0_40 = arith.constant 0 : index
    %43 = vector.load %arg2[%c7, %c0_39, %c0_40] : memref<9x3x64xbf16, #tpu.memory_space<vmem>>, vector<1x3x64xbf16>
    %44 = vector.shape_cast %43 : vector<1x3x64xbf16> to vector<3x64xbf16>
    %cst_41 = arith.constant dense<0.000000e+00> : vector<286x64xf32>
    %45 = tpu.matmul %42, %44, %cst_41 {dimension_numbers = #tpu.dot_dimension_numbers<[1], [0], [0], [1], [0, 0, 1, 1], [], []>} : vector<286x3xbf16>, vector<3x64xbf16>, vector<286x64xf32> -> vector<286x64xf32>
    %46 = arith.addf %40, %45 : vector<286x64xf32>
    %c0_42 = arith.constant 0 : index
    %c38 = arith.constant 38 : index
    %c0_43 = arith.constant 0 : index
    %47 = vector.load %arg1[%c0_42, %c38, %c0_43] : memref<1x324x3xbf16, #tpu.memory_space<vmem>>, vector<1x286x3xbf16>
    %48 = vector.shape_cast %47 : vector<1x286x3xbf16> to vector<286x3xbf16>
    %c8 = arith.constant 8 : index
    %c0_44 = arith.constant 0 : index
    %c0_45 = arith.constant 0 : index
    %49 = vector.load %arg2[%c8, %c0_44, %c0_45] : memref<9x3x64xbf16, #tpu.memory_space<vmem>>, vector<1x3x64xbf16>
    %50 = vector.shape_cast %49 : vector<1x3x64xbf16> to vector<3x64xbf16>
    %cst_46 = arith.constant dense<0.000000e+00> : vector<286x64xf32>
    %51 = tpu.matmul %48, %50, %cst_46 {dimension_numbers = #tpu.dot_dimension_numbers<[1], [0], [0], [1], [0, 0, 1, 1], [], []>} : vector<286x3xbf16>, vector<3x64xbf16>, vector<286x64xf32> -> vector<286x64xf32>
    %52 = arith.addf %46, %51 : vector<286x64xf32>
    %c0_47 = arith.constant 0 : index
    %c0_48 = arith.constant 0 : index
    %53 = vector.load %arg3[%c0_47, %c0_48] : memref<1x64xf32, #tpu.memory_space<vmem>>, vector<1x64xf32>
    %54 = vector.broadcast %53 : vector<1x64xf32> to vector<286x64xf32>
    %55 = arith.addf %52, %54 : vector<286x64xf32>
    %cst_49 = arith.constant 0.000000e+00 : f32
    %56 = vector.broadcast %cst_49 : f32 to vector<286x64xf32>
    %57 = arith.maximumf %55, %56 : vector<286x64xf32>
    %58 = arith.truncf %57 : vector<286x64xf32> to vector<286x64xbf16>
    %c0_50 = arith.constant 0 : index
    %c0_51 = arith.constant 0 : index
    %c0_52 = arith.constant 0 : index
    %59 = vector.load %arg4[%c0_50, %c0_51, %c0_52] : memref<4x64x286xbf16, #tpu.memory_space<vmem>>, vector<1x64x286xbf16>
    %60 = vector.shape_cast %59 : vector<1x64x286xbf16> to vector<64x286xbf16>
    %cst_53 = arith.constant dense<0.000000e+00> : vector<64x64xf32>
    %61 = tpu.matmul %60, %58, %cst_53 {dimension_numbers = #tpu.dot_dimension_numbers<[1], [0], [0], [1], [0, 0, 1, 1], [], []>} : vector<64x286xbf16>, vector<286x64xbf16>, vector<64x64xf32> -> vector<64x64xf32>
    %c1_54 = arith.constant 1 : index
    %c0_55 = arith.constant 0 : index
    %c0_56 = arith.constant 0 : index
    %62 = vector.load %arg4[%c1_54, %c0_55, %c0_56] : memref<4x64x286xbf16, #tpu.memory_space<vmem>>, vector<1x64x286xbf16>
    %63 = vector.shape_cast %62 : vector<1x64x286xbf16> to vector<64x286xbf16>
    %cst_57 = arith.constant dense<0.000000e+00> : vector<64x64xf32>
    %64 = tpu.matmul %63, %58, %cst_57 {dimension_numbers = #tpu.dot_dimension_numbers<[1], [0], [0], [1], [0, 0, 1, 1], [], []>} : vector<64x286xbf16>, vector<286x64xbf16>, vector<64x64xf32> -> vector<64x64xf32>
    %65 = arith.maximumf %61, %64 : vector<64x64xf32>
    %c2_58 = arith.constant 2 : index
    %c0_59 = arith.constant 0 : index
    %c0_60 = arith.constant 0 : index
    %66 = vector.load %arg4[%c2_58, %c0_59, %c0_60] : memref<4x64x286xbf16, #tpu.memory_space<vmem>>, vector<1x64x286xbf16>
    %67 = vector.shape_cast %66 : vector<1x64x286xbf16> to vector<64x286xbf16>
    %cst_61 = arith.constant dense<0.000000e+00> : vector<64x64xf32>
    %68 = tpu.matmul %67, %58, %cst_61 {dimension_numbers = #tpu.dot_dimension_numbers<[1], [0], [0], [1], [0, 0, 1, 1], [], []>} : vector<64x286xbf16>, vector<286x64xbf16>, vector<64x64xf32> -> vector<64x64xf32>
    %69 = arith.maximumf %65, %68 : vector<64x64xf32>
    %c3_62 = arith.constant 3 : index
    %c0_63 = arith.constant 0 : index
    %c0_64 = arith.constant 0 : index
    %70 = vector.load %arg4[%c3_62, %c0_63, %c0_64] : memref<4x64x286xbf16, #tpu.memory_space<vmem>>, vector<1x64x286xbf16>
    %71 = vector.shape_cast %70 : vector<1x64x286xbf16> to vector<64x286xbf16>
    %cst_65 = arith.constant dense<0.000000e+00> : vector<64x64xf32>
    %72 = tpu.matmul %71, %58, %cst_65 {dimension_numbers = #tpu.dot_dimension_numbers<[1], [0], [0], [1], [0, 0, 1, 1], [], []>} : vector<64x286xbf16>, vector<286x64xbf16>, vector<64x64xf32> -> vector<64x64xf32>
    %73 = arith.maximumf %69, %72 : vector<64x64xf32>
    %c0_66 = arith.constant 0 : index
    %c0_67 = arith.constant 0 : index
    %74 = vector.load %arg14[%c0_66, %c0_67] : memref<100x64xbf16, #tpu.memory_space<vmem>>, vector<100x64xbf16>
    %75 = arith.truncf %73 : vector<64x64xf32> to vector<64x64xbf16>
    %cst_68 = arith.constant dense<0.000000e+00> : vector<100x64xf32>
    %76 = tpu.matmul %74, %75, %cst_68 {dimension_numbers = #tpu.dot_dimension_numbers<[1], [0], [0], [1], [0, 0, 1, 1], [], []>} : vector<100x64xbf16>, vector<64x64xbf16>, vector<100x64xf32> -> vector<100x64xf32>
    %77 = arith.truncf %76 : vector<100x64xf32> to vector<100x64xbf16>
    %c0_69 = arith.constant 0 : index
    %c0_70 = arith.constant 0 : index
    %78 = vector.load %arg24[%c0_69, %c0_70] : memref<100x64xbf16, #tpu.memory_space<vmem>>, vector<100x64xbf16>
    tpu.vector_store %arg24[%c0_69, %c0_70], %77 {strides = array<i32>} : memref<100x64xbf16, #tpu.memory_space<vmem>>, vector<100x64xbf16>,
    %c0_71 = arith.constant 0 : index
    %c0_72 = arith.constant 0 : index
    %79 = vector.load %arg24[%c0_71, %c0_72] : memref<100x64xbf16, #tpu.memory_space<vmem>>, vector<78x64xbf16>
    %c0_73 = arith.constant 0 : index
    %c0_74 = arith.constant 0 : index
    %c0_75 = arith.constant 0 : index
    %80 = vector.load %arg5[%c0_73, %c0_74, %c0_75] : memref<9x64x128xbf16, #tpu.memory_space<vmem>>, vector<1x64x128xbf16>
    %81 = vector.shape_cast %80 : vector<1x64x128xbf16> to vector<64x128xbf16>
    %cst_76 = arith.constant dense<0.000000e+00> : vector<78x128xf32>
    %82 = tpu.matmul %79, %81, %cst_76 {dimension_numbers = #tpu.dot_dimension_numbers<[1], [0], [0], [1], [0, 0, 1, 1], [], []>} : vector<78x64xbf16>, vector<64x128xbf16>, vector<78x128xf32> -> vector<78x128xf32>
    %c1_77 = arith.constant 1 : index
    %c0_78 = arith.constant 0 : index
    %83 = vector.load %arg24[%c1_77, %c0_78] : memref<100x64xbf16, #tpu.memory_space<vmem>>, vector<78x64xbf16>
    %c1_79 = arith.constant 1 : index
    %c0_80 = arith.constant 0 : index
    %c0_81 = arith.constant 0 : index
    %84 = vector.load %arg5[%c1_79, %c0_80, %c0_81] : memref<9x64x128xbf16, #tpu.memory_space<vmem>>, vector<1x64x128xbf16>
    %85 = vector.shape_cast %84 : vector<1x64x128xbf16> to vector<64x128xbf16>
    %cst_82 = arith.constant dense<0.000000e+00> : vector<78x128xf32>
    %86 = tpu.matmul %83, %85, %cst_82 {dimension_numbers = #tpu.dot_dimension_numbers<[1], [0], [0], [1], [0, 0, 1, 1], [], []>} : vector<78x64xbf16>, vector<64x128xbf16>, vector<78x128xf32> -> vector<78x128xf32>
    %87 = arith.addf %82, %86 : vector<78x128xf32>
    %c2_83 = arith.constant 2 : index
    %c0_84 = arith.constant 0 : index
    %88 = vector.load %arg24[%c2_83, %c0_84] : memref<100x64xbf16, #tpu.memory_space<vmem>>, vector<78x64xbf16>
    %c2_85 = arith.constant 2 : index
    %c0_86 = arith.constant 0 : index
    %c0_87 = arith.constant 0 : index
    %89 = vector.load %arg5[%c2_85, %c0_86, %c0_87] : memref<9x64x128xbf16, #tpu.memory_space<vmem>>, vector<1x64x128xbf16>
    %90 = vector.shape_cast %89 : vector<1x64x128xbf16> to vector<64x128xbf16>
    %cst_88 = arith.constant dense<0.000000e+00> : vector<78x128xf32>
    %91 = tpu.matmul %88, %90, %cst_88 {dimension_numbers = #tpu.dot_dimension_numbers<[1], [0], [0], [1], [0, 0, 1, 1], [], []>} : vector<78x64xbf16>, vector<64x128xbf16>, vector<78x128xf32> -> vector<78x128xf32>
    %92 = arith.addf %87, %91 : vector<78x128xf32>
    %c10 = arith.constant 10 : index
    %c0_89 = arith.constant 0 : index
    %93 = vector.load %arg24[%c10, %c0_89] : memref<100x64xbf16, #tpu.memory_space<vmem>>, vector<78x64xbf16>
    %c3_90 = arith.constant 3 : index
    %c0_91 = arith.constant 0 : index
    %c0_92 = arith.constant 0 : index
    %94 = vector.load %arg5[%c3_90, %c0_91, %c0_92] : memref<9x64x128xbf16, #tpu.memory_space<vmem>>, vector<1x64x128xbf16>
    %95 = vector.shape_cast %94 : vector<1x64x128xbf16> to vector<64x128xbf16>
    %cst_93 = arith.constant dense<0.000000e+00> : vector<78x128xf32>
    %96 = tpu.matmul %93, %95, %cst_93 {dimension_numbers = #tpu.dot_dimension_numbers<[1], [0], [0], [1], [0, 0, 1, 1], [], []>} : vector<78x64xbf16>, vector<64x128xbf16>, vector<78x128xf32> -> vector<78x128xf32>
    %97 = arith.addf %92, %96 : vector<78x128xf32>
    %c11 = arith.constant 11 : index
    %c0_94 = arith.constant 0 : index
    %98 = vector.load %arg24[%c11, %c0_94] : memref<100x64xbf16, #tpu.memory_space<vmem>>, vector<78x64xbf16>
    %c4_95 = arith.constant 4 : index
    %c0_96 = arith.constant 0 : index
    %c0_97 = arith.constant 0 : index
    %99 = vector.load %arg5[%c4_95, %c0_96, %c0_97] : memref<9x64x128xbf16, #tpu.memory_space<vmem>>, vector<1x64x128xbf16>
    %100 = vector.shape_cast %99 : vector<1x64x128xbf16> to vector<64x128xbf16>
    %cst_98 = arith.constant dense<0.000000e+00> : vector<78x128xf32>
    %101 = tpu.matmul %98, %100, %cst_98 {dimension_numbers = #tpu.dot_dimension_numbers<[1], [0], [0], [1], [0, 0, 1, 1], [], []>} : vector<78x64xbf16>, vector<64x128xbf16>, vector<78x128xf32> -> vector<78x128xf32>
    %102 = arith.addf %97, %101 : vector<78x128xf32>
    %c12 = arith.constant 12 : index
    %c0_99 = arith.constant 0 : index
    %103 = vector.load %arg24[%c12, %c0_99] : memref<100x64xbf16, #tpu.memory_space<vmem>>, vector<78x64xbf16>
    %c5_100 = arith.constant 5 : index
    %c0_101 = arith.constant 0 : index
    %c0_102 = arith.constant 0 : index
    %104 = vector.load %arg5[%c5_100, %c0_101, %c0_102] : memref<9x64x128xbf16, #tpu.memory_space<vmem>>, vector<1x64x128xbf16>
    %105 = vector.shape_cast %104 : vector<1x64x128xbf16> to vector<64x128xbf16>
    %cst_103 = arith.constant dense<0.000000e+00> : vector<78x128xf32>
    %106 = tpu.matmul %103, %105, %cst_103 {dimension_numbers = #tpu.dot_dimension_numbers<[1], [0], [0], [1], [0, 0, 1, 1], [], []>} : vector<78x64xbf16>, vector<64x128xbf16>, vector<78x128xf32> -> vector<78x128xf32>
    %107 = arith.addf %102, %106 : vector<78x128xf32>
    %c20_104 = arith.constant 20 : index
    %c0_105 = arith.constant 0 : index
    %108 = vector.load %arg24[%c20_104, %c0_105] : memref<100x64xbf16, #tpu.memory_space<vmem>>, vector<78x64xbf16>
    %c6_106 = arith.constant 6 : index
    %c0_107 = arith.constant 0 : index
    %c0_108 = arith.constant 0 : index
    %109 = vector.load %arg5[%c6_106, %c0_107, %c0_108] : memref<9x64x128xbf16, #tpu.memory_space<vmem>>, vector<1x64x128xbf16>
    %110 = vector.shape_cast %109 : vector<1x64x128xbf16> to vector<64x128xbf16>
    %cst_109 = arith.constant dense<0.000000e+00> : vector<78x128xf32>
    %111 = tpu.matmul %108, %110, %cst_109 {dimension_numbers = #tpu.dot_dimension_numbers<[1], [0], [0], [1], [0, 0, 1, 1], [], []>} : vector<78x64xbf16>, vector<64x128xbf16>, vector<78x128xf32> -> vector<78x128xf32>
    %112 = arith.addf %107, %111 : vector<78x128xf32>
    %c21 = arith.constant 21 : index
    %c0_110 = arith.constant 0 : index
    %113 = vector.load %arg24[%c21, %c0_110] : memref<100x64xbf16, #tpu.memory_space<vmem>>, vector<78x64xbf16>
    %c7_111 = arith.constant 7 : index
    %c0_112 = arith.constant 0 : index
    %c0_113 = arith.constant 0 : index
    %114 = vector.load %arg5[%c7_111, %c0_112, %c0_113] : memref<9x64x128xbf16, #tpu.memory_space<vmem>>, vector<1x64x128xbf16>
    %115 = vector.shape_cast %114 : vector<1x64x128xbf16> to vector<64x128xbf16>
    %cst_114 = arith.constant dense<0.000000e+00> : vector<78x128xf32>
    %116 = tpu.matmul %113, %115, %cst_114 {dimension_numbers = #tpu.dot_dimension_numbers<[1], [0], [0], [1], [0, 0, 1, 1], [], []>} : vector<78x64xbf16>, vector<64x128xbf16>, vector<78x128xf32> -> vector<78x128xf32>
    %117 = arith.addf %112, %116 : vector<78x128xf32>
    %c22 = arith.constant 22 : index
    %c0_115 = arith.constant 0 : index
    %118 = vector.load %arg24[%c22, %c0_115] : memref<100x64xbf16, #tpu.memory_space<vmem>>, vector<78x64xbf16>
    %c8_116 = arith.constant 8 : index
    %c0_117 = arith.constant 0 : index
    %c0_118 = arith.constant 0 : index
    %119 = vector.load %arg5[%c8_116, %c0_117, %c0_118] : memref<9x64x128xbf16, #tpu.memory_space<vmem>>, vector<1x64x128xbf16>
    %120 = vector.shape_cast %119 : vector<1x64x128xbf16> to vector<64x128xbf16>
    %cst_119 = arith.constant dense<0.000000e+00> : vector<78x128xf32>
    %121 = tpu.matmul %118, %120, %cst_119 {dimension_numbers = #tpu.dot_dimension_numbers<[1], [0], [0], [1], [0, 0, 1, 1], [], []>} : vector<78x64xbf16>, vector<64x128xbf16>, vector<78x128xf32> -> vector<78x128xf32>
    %122 = arith.addf %117, %121 : vector<78x128xf32>
    %c0_120 = arith.constant 0 : index
    %c0_121 = arith.constant 0 : index
    %123 = vector.load %arg6[%c0_120, %c0_121] : memref<1x128xf32, #tpu.memory_space<vmem>>, vector<1x128xf32>
    %124 = vector.broadcast %123 : vector<1x128xf32> to vector<78x128xf32>
    %125 = arith.addf %122, %124 : vector<78x128xf32>
    %cst_122 = arith.constant 0.000000e+00 : f32
    %126 = vector.broadcast %cst_122 : f32 to vector<78x128xf32>
    %127 = arith.maximumf %125, %126 : vector<78x128xf32>
    %128 = arith.truncf %127 : vector<78x128xf32> to vector<78x128xbf16>
    %c0_123 = arith.constant 0 : index
    %c0_124 = arith.constant 0 : index
    %c0_125 = arith.constant 0 : index
    %129 = vector.load %arg7[%c0_123, %c0_124, %c0_125] : memref<4x16x78xbf16, #tpu.memory_space<vmem>>, vector<1x16x78xbf16>
    %130 = vector.shape_cast %129 : vector<1x16x78xbf16> to vector<16x78xbf16>
    %cst_126 = arith.constant dense<0.000000e+00> : vector<16x128xf32>
    %131 = tpu.matmul %130, %128, %cst_126 {dimension_numbers = #tpu.dot_dimension_numbers<[1], [0], [0], [1], [0, 0, 1, 1], [], []>} : vector<16x78xbf16>, vector<78x128xbf16>, vector<16x128xf32> -> vector<16x128xf32>
    %c1_127 = arith.constant 1 : index
    %c0_128 = arith.constant 0 : index
    %c0_129 = arith.constant 0 : index
    %132 = vector.load %arg7[%c1_127, %c0_128, %c0_129] : memref<4x16x78xbf16, #tpu.memory_space<vmem>>, vector<1x16x78xbf16>
    %133 = vector.shape_cast %132 : vector<1x16x78xbf16> to vector<16x78xbf16>
    %cst_130 = arith.constant dense<0.000000e+00> : vector<16x128xf32>
    %134 = tpu.matmul %133, %128, %cst_130 {dimension_numbers = #tpu.dot_dimension_numbers<[1], [0], [0], [1], [0, 0, 1, 1], [], []>} : vector<16x78xbf16>, vector<78x128xbf16>, vector<16x128xf32> -> vector<16x128xf32>
    %135 = arith.maximumf %131, %134 : vector<16x128xf32>
    %c2_131 = arith.constant 2 : index
    %c0_132 = arith.constant 0 : index
    %c0_133 = arith.constant 0 : index
    %136 = vector.load %arg7[%c2_131, %c0_132, %c0_133] : memref<4x16x78xbf16, #tpu.memory_space<vmem>>, vector<1x16x78xbf16>
    %137 = vector.shape_cast %136 : vector<1x16x78xbf16> to vector<16x78xbf16>
    %cst_134 = arith.constant dense<0.000000e+00> : vector<16x128xf32>
    %138 = tpu.matmul %137, %128, %cst_134 {dimension_numbers = #tpu.dot_dimension_numbers<[1], [0], [0], [1], [0, 0, 1, 1], [], []>} : vector<16x78xbf16>, vector<78x128xbf16>, vector<16x128xf32> -> vector<16x128xf32>
    %139 = arith.maximumf %135, %138 : vector<16x128xf32>
    %c3_135 = arith.constant 3 : index
    %c0_136 = arith.constant 0 : index
    %c0_137 = arith.constant 0 : index
    %140 = vector.load %arg7[%c3_135, %c0_136, %c0_137] : memref<4x16x78xbf16, #tpu.memory_space<vmem>>, vector<1x16x78xbf16>
    %141 = vector.shape_cast %140 : vector<1x16x78xbf16> to vector<16x78xbf16>
    %cst_138 = arith.constant dense<0.000000e+00> : vector<16x128xf32>
    %142 = tpu.matmul %141, %128, %cst_138 {dimension_numbers = #tpu.dot_dimension_numbers<[1], [0], [0], [1], [0, 0, 1, 1], [], []>} : vector<16x78xbf16>, vector<78x128xbf16>, vector<16x128xf32> -> vector<16x128xf32>
    %143 = arith.maximumf %139, %142 : vector<16x128xf32>
    %c0_139 = arith.constant 0 : index
    %c0_140 = arith.constant 0 : index
    %144 = vector.load %arg15[%c0_139, %c0_140] : memref<36x16xbf16, #tpu.memory_space<vmem>>, vector<36x16xbf16>
    %145 = arith.truncf %143 : vector<16x128xf32> to vector<16x128xbf16>
    %cst_141 = arith.constant dense<0.000000e+00> : vector<36x128xf32>
    %146 = tpu.matmul %144, %145, %cst_141 {dimension_numbers = #tpu.dot_dimension_numbers<[1], [0], [0], [1], [0, 0, 1, 1], [], []>} : vector<36x16xbf16>, vector<16x128xbf16>, vector<36x128xf32> -> vector<36x128xf32>
    %147 = arith.truncf %146 : vector<36x128xf32> to vector<36x128xbf16>
    %c0_142 = arith.constant 0 : index
    %c0_143 = arith.constant 0 : index
    %148 = vector.load %arg25[%c0_142, %c0_143] : memref<36x128xbf16, #tpu.memory_space<vmem>>, vector<36x128xbf16>
    tpu.vector_store %arg25[%c0_142, %c0_143], %147 {strides = array<i32>} : memref<36x128xbf16, #tpu.memory_space<vmem>>, vector<36x128xbf16>,
    %c0_144 = arith.constant 0 : index
    %c0_145 = arith.constant 0 : index
    %149 = vector.load %arg25[%c0_144, %c0_145] : memref<36x128xbf16, #tpu.memory_space<vmem>>, vector<22x128xbf16>
    %c0_146 = arith.constant 0 : index
    %c0_147 = arith.constant 0 : index
    %c0_148 = arith.constant 0 : index
    %150 = vector.load %arg8[%c0_146, %c0_147, %c0_148] : memref<9x128x256xbf16, #tpu.memory_space<vmem>>, vector<1x128x256xbf16>
    %151 = vector.shape_cast %150 : vector<1x128x256xbf16> to vector<128x256xbf16>
    %cst_149 = arith.constant dense<0.000000e+00> : vector<22x256xf32>
    %152 = tpu.matmul %149, %151, %cst_149 {dimension_numbers = #tpu.dot_dimension_numbers<[1], [0], [0], [1], [0, 0, 1, 1], [], []>} : vector<22x128xbf16>, vector<128x256xbf16>, vector<22x256xf32> -> vector<22x256xf32>
    %c1_150 = arith.constant 1 : index
    %c0_151 = arith.constant 0 : index
    %153 = vector.load %arg25[%c1_150, %c0_151] : memref<36x128xbf16, #tpu.memory_space<vmem>>, vector<22x128xbf16>
    %c1_152 = arith.constant 1 : index
    %c0_153 = arith.constant 0 : index
    %c0_154 = arith.constant 0 : index
    %154 = vector.load %arg8[%c1_152, %c0_153, %c0_154] : memref<9x128x256xbf16, #tpu.memory_space<vmem>>, vector<1x128x256xbf16>
    %155 = vector.shape_cast %154 : vector<1x128x256xbf16> to vector<128x256xbf16>
    %cst_155 = arith.constant dense<0.000000e+00> : vector<22x256xf32>
    %156 = tpu.matmul %153, %155, %cst_155 {dimension_numbers = #tpu.dot_dimension_numbers<[1], [0], [0], [1], [0, 0, 1, 1], [], []>} : vector<22x128xbf16>, vector<128x256xbf16>, vector<22x256xf32> -> vector<22x256xf32>
    %157 = arith.addf %152, %156 : vector<22x256xf32>
    %c2_156 = arith.constant 2 : index
    %c0_157 = arith.constant 0 : index
    %158 = vector.load %arg25[%c2_156, %c0_157] : memref<36x128xbf16, #tpu.memory_space<vmem>>, vector<22x128xbf16>
    %c2_158 = arith.constant 2 : index
    %c0_159 = arith.constant 0 : index
    %c0_160 = arith.constant 0 : index
    %159 = vector.load %arg8[%c2_158, %c0_159, %c0_160] : memref<9x128x256xbf16, #tpu.memory_space<vmem>>, vector<1x128x256xbf16>
    %160 = vector.shape_cast %159 : vector<1x128x256xbf16> to vector<128x256xbf16>
    %cst_161 = arith.constant dense<0.000000e+00> : vector<22x256xf32>
    %161 = tpu.matmul %158, %160, %cst_161 {dimension_numbers = #tpu.dot_dimension_numbers<[1], [0], [0], [1], [0, 0, 1, 1], [], []>} : vector<22x128xbf16>, vector<128x256xbf16>, vector<22x256xf32> -> vector<22x256xf32>
    %162 = arith.addf %157, %161 : vector<22x256xf32>
    %c6_162 = arith.constant 6 : index
    %c0_163 = arith.constant 0 : index
    %163 = vector.load %arg25[%c6_162, %c0_163] : memref<36x128xbf16, #tpu.memory_space<vmem>>, vector<22x128xbf16>
    %c3_164 = arith.constant 3 : index
    %c0_165 = arith.constant 0 : index
    %c0_166 = arith.constant 0 : index
    %164 = vector.load %arg8[%c3_164, %c0_165, %c0_166] : memref<9x128x256xbf16, #tpu.memory_space<vmem>>, vector<1x128x256xbf16>
    %165 = vector.shape_cast %164 : vector<1x128x256xbf16> to vector<128x256xbf16>
    %cst_167 = arith.constant dense<0.000000e+00> : vector<22x256xf32>
    %166 = tpu.matmul %163, %165, %cst_167 {dimension_numbers = #tpu.dot_dimension_numbers<[1], [0], [0], [1], [0, 0, 1, 1], [], []>} : vector<22x128xbf16>, vector<128x256xbf16>, vector<22x256xf32> -> vector<22x256xf32>
    %167 = arith.addf %162, %166 : vector<22x256xf32>
    %c7_168 = arith.constant 7 : index
    %c0_169 = arith.constant 0 : index
    %168 = vector.load %arg25[%c7_168, %c0_169] : memref<36x128xbf16, #tpu.memory_space<vmem>>, vector<22x128xbf16>
    %c4_170 = arith.constant 4 : index
    %c0_171 = arith.constant 0 : index
    %c0_172 = arith.constant 0 : index
    %169 = vector.load %arg8[%c4_170, %c0_171, %c0_172] : memref<9x128x256xbf16, #tpu.memory_space<vmem>>, vector<1x128x256xbf16>
    %170 = vector.shape_cast %169 : vector<1x128x256xbf16> to vector<128x256xbf16>
    %cst_173 = arith.constant dense<0.000000e+00> : vector<22x256xf32>
    %171 = tpu.matmul %168, %170, %cst_173 {dimension_numbers = #tpu.dot_dimension_numbers<[1], [0], [0], [1], [0, 0, 1, 1], [], []>} : vector<22x128xbf16>, vector<128x256xbf16>, vector<22x256xf32> -> vector<22x256xf32>
    %172 = arith.addf %167, %171 : vector<22x256xf32>
    %c8_174 = arith.constant 8 : index
    %c0_175 = arith.constant 0 : index
    %173 = vector.load %arg25[%c8_174, %c0_175] : memref<36x128xbf16, #tpu.memory_space<vmem>>, vector<22x128xbf16>
    %c5_176 = arith.constant 5 : index
    %c0_177 = arith.constant 0 : index
    %c0_178 = arith.constant 0 : index
    %174 = vector.load %arg8[%c5_176, %c0_177, %c0_178] : memref<9x128x256xbf16, #tpu.memory_space<vmem>>, vector<1x128x256xbf16>
    %175 = vector.shape_cast %174 : vector<1x128x256xbf16> to vector<128x256xbf16>
    %cst_179 = arith.constant dense<0.000000e+00> : vector<22x256xf32>
    %176 = tpu.matmul %173, %175, %cst_179 {dimension_numbers = #tpu.dot_dimension_numbers<[1], [0], [0], [1], [0, 0, 1, 1], [], []>} : vector<22x128xbf16>, vector<128x256xbf16>, vector<22x256xf32> -> vector<22x256xf32>
    %177 = arith.addf %172, %176 : vector<22x256xf32>
    %c12_180 = arith.constant 12 : index
    %c0_181 = arith.constant 0 : index
    %178 = vector.load %arg25[%c12_180, %c0_181] : memref<36x128xbf16, #tpu.memory_space<vmem>>, vector<22x128xbf16>
    %c6_182 = arith.constant 6 : index
    %c0_183 = arith.constant 0 : index
    %c0_184 = arith.constant 0 : index
    %179 = vector.load %arg8[%c6_182, %c0_183, %c0_184] : memref<9x128x256xbf16, #tpu.memory_space<vmem>>, vector<1x128x256xbf16>
    %180 = vector.shape_cast %179 : vector<1x128x256xbf16> to vector<128x256xbf16>
    %cst_185 = arith.constant dense<0.000000e+00> : vector<22x256xf32>
    %181 = tpu.matmul %178, %180, %cst_185 {dimension_numbers = #tpu.dot_dimension_numbers<[1], [0], [0], [1], [0, 0, 1, 1], [], []>} : vector<22x128xbf16>, vector<128x256xbf16>, vector<22x256xf32> -> vector<22x256xf32>
    %182 = arith.addf %177, %181 : vector<22x256xf32>
    %c13 = arith.constant 13 : index
    %c0_186 = arith.constant 0 : index
    %183 = vector.load %arg25[%c13, %c0_186] : memref<36x128xbf16, #tpu.memory_space<vmem>>, vector<22x128xbf16>
    %c7_187 = arith.constant 7 : index
    %c0_188 = arith.constant 0 : index
    %c0_189 = arith.constant 0 : index
    %184 = vector.load %arg8[%c7_187, %c0_188, %c0_189] : memref<9x128x256xbf16, #tpu.memory_space<vmem>>, vector<1x128x256xbf16>
    %185 = vector.shape_cast %184 : vector<1x128x256xbf16> to vector<128x256xbf16>
    %cst_190 = arith.constant dense<0.000000e+00> : vector<22x256xf32>
    %186 = tpu.matmul %183, %185, %cst_190 {dimension_numbers = #tpu.dot_dimension_numbers<[1], [0], [0], [1], [0, 0, 1, 1], [], []>} : vector<22x128xbf16>, vector<128x256xbf16>, vector<22x256xf32> -> vector<22x256xf32>
    %187 = arith.addf %182, %186 : vector<22x256xf32>
    %c14 = arith.constant 14 : index
    %c0_191 = arith.constant 0 : index
    %188 = vector.load %arg25[%c14, %c0_191] : memref<36x128xbf16, #tpu.memory_space<vmem>>, vector<22x128xbf16>
    %c8_192 = arith.constant 8 : index
    %c0_193 = arith.constant 0 : index
    %c0_194 = arith.constant 0 : index
    %189 = vector.load %arg8[%c8_192, %c0_193, %c0_194] : memref<9x128x256xbf16, #tpu.memory_space<vmem>>, vector<1x128x256xbf16>
    %190 = vector.shape_cast %189 : vector<1x128x256xbf16> to vector<128x256xbf16>
    %cst_195 = arith.constant dense<0.000000e+00> : vector<22x256xf32>
    %191 = tpu.matmul %188, %190, %cst_195 {dimension_numbers = #tpu.dot_dimension_numbers<[1], [0], [0], [1], [0, 0, 1, 1], [], []>} : vector<22x128xbf16>, vector<128x256xbf16>, vector<22x256xf32> -> vector<22x256xf32>
    %192 = arith.addf %187, %191 : vector<22x256xf32>
    %c0_196 = arith.constant 0 : index
    %c0_197 = arith.constant 0 : index
    %193 = vector.load %arg9[%c0_196, %c0_197] : memref<1x256xf32, #tpu.memory_space<vmem>>, vector<1x256xf32>
    %194 = vector.broadcast %193 : vector<1x256xf32> to vector<22x256xf32>
    %195 = arith.addf %192, %194 : vector<22x256xf32>
    %cst_198 = arith.constant 0.000000e+00 : f32
    %196 = vector.broadcast %cst_198 : f32 to vector<22x256xf32>
    %197 = arith.maximumf %195, %196 : vector<22x256xf32>
    %198 = arith.truncf %197 : vector<22x256xf32> to vector<22x256xbf16>
    %c0_199 = arith.constant 0 : index
    %c0_200 = arith.constant 0 : index
    %c0_201 = arith.constant 0 : index
    %199 = vector.load %arg10[%c0_199, %c0_200, %c0_201] : memref<4x4x22xbf16, #tpu.memory_space<vmem>>, vector<1x4x22xbf16>
    %200 = vector.shape_cast %199 : vector<1x4x22xbf16> to vector<4x22xbf16>
    %cst_202 = arith.constant dense<0.000000e+00> : vector<4x256xf32>
    %201 = tpu.matmul %200, %198, %cst_202 {dimension_numbers = #tpu.dot_dimension_numbers<[1], [0], [0], [1], [0, 0, 1, 1], [], []>} : vector<4x22xbf16>, vector<22x256xbf16>, vector<4x256xf32> -> vector<4x256xf32>
    %c1_203 = arith.constant 1 : index
    %c0_204 = arith.constant 0 : index
    %c0_205 = arith.constant 0 : index
    %202 = vector.load %arg10[%c1_203, %c0_204, %c0_205] : memref<4x4x22xbf16, #tpu.memory_space<vmem>>, vector<1x4x22xbf16>
    %203 = vector.shape_cast %202 : vector<1x4x22xbf16> to vector<4x22xbf16>
    %cst_206 = arith.constant dense<0.000000e+00> : vector<4x256xf32>
    %204 = tpu.matmul %203, %198, %cst_206 {dimension_numbers = #tpu.dot_dimension_numbers<[1], [0], [0], [1], [0, 0, 1, 1], [], []>} : vector<4x22xbf16>, vector<22x256xbf16>, vector<4x256xf32> -> vector<4x256xf32>
    %205 = arith.maximumf %201, %204 : vector<4x256xf32>
    %c2_207 = arith.constant 2 : index
    %c0_208 = arith.constant 0 : index
    %c0_209 = arith.constant 0 : index
    %206 = vector.load %arg10[%c2_207, %c0_208, %c0_209] : memref<4x4x22xbf16, #tpu.memory_space<vmem>>, vector<1x4x22xbf16>
    %207 = vector.shape_cast %206 : vector<1x4x22xbf16> to vector<4x22xbf16>
    %cst_210 = arith.constant dense<0.000000e+00> : vector<4x256xf32>
    %208 = tpu.matmul %207, %198, %cst_210 {dimension_numbers = #tpu.dot_dimension_numbers<[1], [0], [0], [1], [0, 0, 1, 1], [], []>} : vector<4x22xbf16>, vector<22x256xbf16>, vector<4x256xf32> -> vector<4x256xf32>
    %209 = arith.maximumf %205, %208 : vector<4x256xf32>
    %c3_211 = arith.constant 3 : index
    %c0_212 = arith.constant 0 : index
    %c0_213 = arith.constant 0 : index
    %210 = vector.load %arg10[%c3_211, %c0_212, %c0_213] : memref<4x4x22xbf16, #tpu.memory_space<vmem>>, vector<1x4x22xbf16>
    %211 = vector.shape_cast %210 : vector<1x4x22xbf16> to vector<4x22xbf16>
    %cst_214 = arith.constant dense<0.000000e+00> : vector<4x256xf32>
    %212 = tpu.matmul %211, %198, %cst_214 {dimension_numbers = #tpu.dot_dimension_numbers<[1], [0], [0], [1], [0, 0, 1, 1], [], []>} : vector<4x22xbf16>, vector<22x256xbf16>, vector<4x256xf32> -> vector<4x256xf32>
    %213 = arith.maximumf %209, %212 : vector<4x256xf32>
    %c0_215 = arith.constant 0 : index
    %c0_216 = arith.constant 0 : index
    %214 = vector.load %arg16[%c0_215, %c0_216] : memref<16x4xbf16, #tpu.memory_space<vmem>>, vector<16x4xbf16>
    %215 = arith.truncf %213 : vector<4x256xf32> to vector<4x256xbf16>
    %cst_217 = arith.constant dense<0.000000e+00> : vector<16x256xf32>
    %216 = tpu.matmul %214, %215, %cst_217 {dimension_numbers = #tpu.dot_dimension_numbers<[1], [0], [0], [1], [0, 0, 1, 1], [], []>} : vector<16x4xbf16>, vector<4x256xbf16>, vector<16x256xf32> -> vector<16x256xf32>
    %217 = arith.truncf %216 : vector<16x256xf32> to vector<16x256xbf16>
    %c0_218 = arith.constant 0 : index
    %c0_219 = arith.constant 0 : index
    %218 = vector.load %arg26[%c0_218, %c0_219] : memref<16x256xbf16, #tpu.memory_space<vmem>>, vector<16x256xbf16>
    tpu.vector_store %arg26[%c0_218, %c0_219], %217 {strides = array<i32>} : memref<16x256xbf16, #tpu.memory_space<vmem>>, vector<16x256xbf16>,
    %c0_220 = arith.constant 0 : index
    %c0_221 = arith.constant 0 : index
    %219 = vector.load %arg26[%c0_220, %c0_221] : memref<16x256xbf16, #tpu.memory_space<vmem>>, vector<6x256xbf16>
    %c0_222 = arith.constant 0 : index
    %c0_223 = arith.constant 0 : index
    %c0_224 = arith.constant 0 : index
    %220 = vector.load %arg11[%c0_222, %c0_223, %c0_224] : memref<9x256x512xbf16, #tpu.memory_space<vmem>>, vector<1x256x512xbf16>
    %221 = vector.shape_cast %220 : vector<1x256x512xbf16> to vector<256x512xbf16>
    %cst_225 = arith.constant dense<0.000000e+00> : vector<6x512xf32>
    %222 = tpu.matmul %219, %221, %cst_225 {dimension_numbers = #tpu.dot_dimension_numbers<[1], [0], [0], [1], [0, 0, 1, 1], [], []>} : vector<6x256xbf16>, vector<256x512xbf16>, vector<6x512xf32> -> vector<6x512xf32>
    %c1_226 = arith.constant 1 : index
    %c0_227 = arith.constant 0 : index
    %223 = vector.load %arg26[%c1_226, %c0_227] : memref<16x256xbf16, #tpu.memory_space<vmem>>, vector<6x256xbf16>
    %c1_228 = arith.constant 1 : index
    %c0_229 = arith.constant 0 : index
    %c0_230 = arith.constant 0 : index
    %224 = vector.load %arg11[%c1_228, %c0_229, %c0_230] : memref<9x256x512xbf16, #tpu.memory_space<vmem>>, vector<1x256x512xbf16>
    %225 = vector.shape_cast %224 : vector<1x256x512xbf16> to vector<256x512xbf16>
    %cst_231 = arith.constant dense<0.000000e+00> : vector<6x512xf32>
    %226 = tpu.matmul %223, %225, %cst_231 {dimension_numbers = #tpu.dot_dimension_numbers<[1], [0], [0], [1], [0, 0, 1, 1], [], []>} : vector<6x256xbf16>, vector<256x512xbf16>, vector<6x512xf32> -> vector<6x512xf32>
    %227 = arith.addf %222, %226 : vector<6x512xf32>
    %c2_232 = arith.constant 2 : index
    %c0_233 = arith.constant 0 : index
    %228 = vector.load %arg26[%c2_232, %c0_233] : memref<16x256xbf16, #tpu.memory_space<vmem>>, vector<6x256xbf16>
    %c2_234 = arith.constant 2 : index
    %c0_235 = arith.constant 0 : index
    %c0_236 = arith.constant 0 : index
    %229 = vector.load %arg11[%c2_234, %c0_235, %c0_236] : memref<9x256x512xbf16, #tpu.memory_space<vmem>>, vector<1x256x512xbf16>
    %230 = vector.shape_cast %229 : vector<1x256x512xbf16> to vector<256x512xbf16>
    %cst_237 = arith.constant dense<0.000000e+00> : vector<6x512xf32>
    %231 = tpu.matmul %228, %230, %cst_237 {dimension_numbers = #tpu.dot_dimension_numbers<[1], [0], [0], [1], [0, 0, 1, 1], [], []>} : vector<6x256xbf16>, vector<256x512xbf16>, vector<6x512xf32> -> vector<6x512xf32>
    %232 = arith.addf %227, %231 : vector<6x512xf32>
    %c4_238 = arith.constant 4 : index
    %c0_239 = arith.constant 0 : index
    %233 = vector.load %arg26[%c4_238, %c0_239] : memref<16x256xbf16, #tpu.memory_space<vmem>>, vector<6x256xbf16>
    %c3_240 = arith.constant 3 : index
    %c0_241 = arith.constant 0 : index
    %c0_242 = arith.constant 0 : index
    %234 = vector.load %arg11[%c3_240, %c0_241, %c0_242] : memref<9x256x512xbf16, #tpu.memory_space<vmem>>, vector<1x256x512xbf16>
    %235 = vector.shape_cast %234 : vector<1x256x512xbf16> to vector<256x512xbf16>
    %cst_243 = arith.constant dense<0.000000e+00> : vector<6x512xf32>
    %236 = tpu.matmul %233, %235, %cst_243 {dimension_numbers = #tpu.dot_dimension_numbers<[1], [0], [0], [1], [0, 0, 1, 1], [], []>} : vector<6x256xbf16>, vector<256x512xbf16>, vector<6x512xf32> -> vector<6x512xf32>
    %237 = arith.addf %232, %236 : vector<6x512xf32>
    %c5_244 = arith.constant 5 : index
    %c0_245 = arith.constant 0 : index
    %238 = vector.load %arg26[%c5_244, %c0_245] : memref<16x256xbf16, #tpu.memory_space<vmem>>, vector<6x256xbf16>
    %c4_246 = arith.constant 4 : index
    %c0_247 = arith.constant 0 : index
    %c0_248 = arith.constant 0 : index
    %239 = vector.load %arg11[%c4_246, %c0_247, %c0_248] : memref<9x256x512xbf16, #tpu.memory_space<vmem>>, vector<1x256x512xbf16>
    %240 = vector.shape_cast %239 : vector<1x256x512xbf16> to vector<256x512xbf16>
    %cst_249 = arith.constant dense<0.000000e+00> : vector<6x512xf32>
    %241 = tpu.matmul %238, %240, %cst_249 {dimension_numbers = #tpu.dot_dimension_numbers<[1], [0], [0], [1], [0, 0, 1, 1], [], []>} : vector<6x256xbf16>, vector<256x512xbf16>, vector<6x512xf32> -> vector<6x512xf32>
    %242 = arith.addf %237, %241 : vector<6x512xf32>
    %c6_250 = arith.constant 6 : index
    %c0_251 = arith.constant 0 : index
    %243 = vector.load %arg26[%c6_250, %c0_251] : memref<16x256xbf16, #tpu.memory_space<vmem>>, vector<6x256xbf16>
    %c5_252 = arith.constant 5 : index
    %c0_253 = arith.constant 0 : index
    %c0_254 = arith.constant 0 : index
    %244 = vector.load %arg11[%c5_252, %c0_253, %c0_254] : memref<9x256x512xbf16, #tpu.memory_space<vmem>>, vector<1x256x512xbf16>
    %245 = vector.shape_cast %244 : vector<1x256x512xbf16> to vector<256x512xbf16>
    %cst_255 = arith.constant dense<0.000000e+00> : vector<6x512xf32>
    %246 = tpu.matmul %243, %245, %cst_255 {dimension_numbers = #tpu.dot_dimension_numbers<[1], [0], [0], [1], [0, 0, 1, 1], [], []>} : vector<6x256xbf16>, vector<256x512xbf16>, vector<6x512xf32> -> vector<6x512xf32>
    %247 = arith.addf %242, %246 : vector<6x512xf32>
    %c8_256 = arith.constant 8 : index
    %c0_257 = arith.constant 0 : index
    %248 = vector.load %arg26[%c8_256, %c0_257] : memref<16x256xbf16, #tpu.memory_space<vmem>>, vector<6x256xbf16>
    %c6_258 = arith.constant 6 : index
    %c0_259 = arith.constant 0 : index
    %c0_260 = arith.constant 0 : index
    %249 = vector.load %arg11[%c6_258, %c0_259, %c0_260] : memref<9x256x512xbf16, #tpu.memory_space<vmem>>, vector<1x256x512xbf16>
    %250 = vector.shape_cast %249 : vector<1x256x512xbf16> to vector<256x512xbf16>
    %cst_261 = arith.constant dense<0.000000e+00> : vector<6x512xf32>
    %251 = tpu.matmul %248, %250, %cst_261 {dimension_numbers = #tpu.dot_dimension_numbers<[1], [0], [0], [1], [0, 0, 1, 1], [], []>} : vector<6x256xbf16>, vector<256x512xbf16>, vector<6x512xf32> -> vector<6x512xf32>
    %252 = arith.addf %247, %251 : vector<6x512xf32>
    %c9 = arith.constant 9 : index
    %c0_262 = arith.constant 0 : index
    %253 = vector.load %arg26[%c9, %c0_262] : memref<16x256xbf16, #tpu.memory_space<vmem>>, vector<6x256xbf16>
    %c7_263 = arith.constant 7 : index
    %c0_264 = arith.constant 0 : index
    %c0_265 = arith.constant 0 : index
    %254 = vector.load %arg11[%c7_263, %c0_264, %c0_265] : memref<9x256x512xbf16, #tpu.memory_space<vmem>>, vector<1x256x512xbf16>
    %255 = vector.shape_cast %254 : vector<1x256x512xbf16> to vector<256x512xbf16>
    %cst_266 = arith.constant dense<0.000000e+00> : vector<6x512xf32>
    %256 = tpu.matmul %253, %255, %cst_266 {dimension_numbers = #tpu.dot_dimension_numbers<[1], [0], [0], [1], [0, 0, 1, 1], [], []>} : vector<6x256xbf16>, vector<256x512xbf16>, vector<6x512xf32> -> vector<6x512xf32>
    %257 = arith.addf %252, %256 : vector<6x512xf32>
    %c10_267 = arith.constant 10 : index
    %c0_268 = arith.constant 0 : index
    %258 = vector.load %arg26[%c10_267, %c0_268] : memref<16x256xbf16, #tpu.memory_space<vmem>>, vector<6x256xbf16>
    %c8_269 = arith.constant 8 : index
    %c0_270 = arith.constant 0 : index
    %c0_271 = arith.constant 0 : index
    %259 = vector.load %arg11[%c8_269, %c0_270, %c0_271] : memref<9x256x512xbf16, #tpu.memory_space<vmem>>, vector<1x256x512xbf16>
    %260 = vector.shape_cast %259 : vector<1x256x512xbf16> to vector<256x512xbf16>
    %cst_272 = arith.constant dense<0.000000e+00> : vector<6x512xf32>
    %261 = tpu.matmul %258, %260, %cst_272 {dimension_numbers = #tpu.dot_dimension_numbers<[1], [0], [0], [1], [0, 0, 1, 1], [], []>} : vector<6x256xbf16>, vector<256x512xbf16>, vector<6x512xf32> -> vector<6x512xf32>
    %262 = arith.addf %257, %261 : vector<6x512xf32>
    %c0_273 = arith.constant 0 : index
    %c0_274 = arith.constant 0 : index
    %263 = vector.load %arg12[%c0_273, %c0_274] : memref<1x512xf32, #tpu.memory_space<vmem>>, vector<1x512xf32>
    %264 = vector.broadcast %263 : vector<1x512xf32> to vector<6x512xf32>
    %265 = arith.addf %262, %264 : vector<6x512xf32>
    %cst_275 = arith.constant 0.000000e+00 : f32
    %266 = vector.broadcast %cst_275 : f32 to vector<6x512xf32>
    %267 = arith.maximumf %265, %266 : vector<6x512xf32>
    %268 = arith.truncf %267 : vector<6x512xf32> to vector<6x512xbf16>
    %c0_276 = arith.constant 0 : index
    %c0_277 = arith.constant 0 : index
    %c0_278 = arith.constant 0 : index
    %269 = vector.load %arg13[%c0_276, %c0_277, %c0_278] : memref<4x1x6xbf16, #tpu.memory_space<vmem>>, vector<1x1x6xbf16>
    %270 = vector.shape_cast %269 : vector<1x1x6xbf16> to vector<1x6xbf16>
    %cst_279 = arith.constant dense<0.000000e+00> : vector<1x512xf32>
    %271 = tpu.matmul %270, %268, %cst_279 {dimension_numbers = #tpu.dot_dimension_numbers<[1], [0], [0], [1], [0, 0, 1, 1], [], []>} : vector<1x6xbf16>, vector<6x512xbf16>, vector<1x512xf32> -> vector<1x512xf32>
    %c1_280 = arith.constant 1 : index
    %c0_281 = arith.constant 0 : index
    %c0_282 = arith.constant 0 : index
    %272 = vector.load %arg13[%c1_280, %c0_281, %c0_282] : memref<4x1x6xbf16, #tpu.memory_space<vmem>>, vector<1x1x6xbf16>
    %273 = vector.shape_cast %272 : vector<1x1x6xbf16> to vector<1x6xbf16>
    %cst_283 = arith.constant dense<0.000000e+00> : vector<1x512xf32>
    %274 = tpu.matmul %273, %268, %cst_283 {dimension_numbers = #tpu.dot_dimension_numbers<[1], [0], [0], [1], [0, 0, 1, 1], [], []>} : vector<1x6xbf16>, vector<6x512xbf16>, vector<1x512xf32> -> vector<1x512xf32>
    %275 = arith.maximumf %271, %274 : vector<1x512xf32>
    %c2_284 = arith.constant 2 : index
    %c0_285 = arith.constant 0 : index
    %c0_286 = arith.constant 0 : index
    %276 = vector.load %arg13[%c2_284, %c0_285, %c0_286] : memref<4x1x6xbf16, #tpu.memory_space<vmem>>, vector<1x1x6xbf16>
    %277 = vector.shape_cast %276 : vector<1x1x6xbf16> to vector<1x6xbf16>
    %cst_287 = arith.constant dense<0.000000e+00> : vector<1x512xf32>
    %278 = tpu.matmul %277, %268, %cst_287 {dimension_numbers = #tpu.dot_dimension_numbers<[1], [0], [0], [1], [0, 0, 1, 1], [], []>} : vector<1x6xbf16>, vector<6x512xbf16>, vector<1x512xf32> -> vector<1x512xf32>
    %279 = arith.maximumf %275, %278 : vector<1x512xf32>
    %c3_288 = arith.constant 3 : index
    %c0_289 = arith.constant 0 : index
    %c0_290 = arith.constant 0 : index
    %280 = vector.load %arg13[%c3_288, %c0_289, %c0_290] : memref<4x1x6xbf16, #tpu.memory_space<vmem>>, vector<1x1x6xbf16>
    %281 = vector.shape_cast %280 : vector<1x1x6xbf16> to vector<1x6xbf16>
    %cst_291 = arith.constant dense<0.000000e+00> : vector<1x512xf32>
    %282 = tpu.matmul %281, %268, %cst_291 {dimension_numbers = #tpu.dot_dimension_numbers<[1], [0], [0], [1], [0, 0, 1, 1], [], []>} : vector<1x6xbf16>, vector<6x512xbf16>, vector<1x512xf32> -> vector<1x512xf32>
    %283 = arith.maximumf %279, %282 : vector<1x512xf32>
    %284 = arith.truncf %283 : vector<1x512xf32> to vector<1x512xbf16>
    %c0_292 = arith.constant 0 : index
    %c0_293 = arith.constant 0 : index
    %285 = vector.load %arg17[%c0_292, %c0_293] : memref<512x512xbf16, #tpu.memory_space<vmem>>, vector<512x512xbf16>
    %cst_294 = arith.constant dense<0.000000e+00> : vector<1x512xf32>
    %286 = tpu.matmul %284, %285, %cst_294 {dimension_numbers = #tpu.dot_dimension_numbers<[1], [0], [0], [1], [0, 0, 1, 1], [], []>} : vector<1x512xbf16>, vector<512x512xbf16>, vector<1x512xf32> -> vector<1x512xf32>
    %c0_295 = arith.constant 0 : index
    %c0_296 = arith.constant 0 : index
    %287 = vector.load %arg18[%c0_295, %c0_296] : memref<1x512xf32, #tpu.memory_space<vmem>>, vector<1x512xf32>
    %288 = arith.addf %286, %287 : vector<1x512xf32>
    %cst_297 = arith.constant 0.000000e+00 : f32
    %289 = vector.broadcast %cst_297 : f32 to vector<1x512xf32>
    %290 = arith.maximumf %288, %289 : vector<1x512xf32>
    %291 = arith.truncf %290 : vector<1x512xf32> to vector<1x512xbf16>
    %c0_298 = arith.constant 0 : index
    %c0_299 = arith.constant 0 : index
    %292 = vector.load %arg19[%c0_298, %c0_299] : memref<512x512xbf16, #tpu.memory_space<vmem>>, vector<512x512xbf16>
    %cst_300 = arith.constant dense<0.000000e+00> : vector<1x512xf32>
    %293 = tpu.matmul %291, %292, %cst_300 {dimension_numbers = #tpu.dot_dimension_numbers<[1], [0], [0], [1], [0, 0, 1, 1], [], []>} : vector<1x512xbf16>, vector<512x512xbf16>, vector<1x512xf32> -> vector<1x512xf32>
    %c0_301 = arith.constant 0 : index
    %c0_302 = arith.constant 0 : index
    %294 = vector.load %arg20[%c0_301, %c0_302] : memref<1x512xf32, #tpu.memory_space<vmem>>, vector<1x512xf32>
    %295 = arith.addf %293, %294 : vector<1x512xf32>
    %cst_303 = arith.constant 0.000000e+00 : f32
    %296 = vector.broadcast %cst_303 : f32 to vector<1x512xf32>
    %297 = arith.maximumf %295, %296 : vector<1x512xf32>
    %298 = arith.truncf %297 : vector<1x512xf32> to vector<1x512xbf16>
    %c0_304 = arith.constant 0 : index
    %c0_305 = arith.constant 0 : index
    %299 = vector.load %arg21[%c0_304, %c0_305] : memref<512x7xbf16, #tpu.memory_space<vmem>>, vector<512x7xbf16>
    %cst_306 = arith.constant dense<0.000000e+00> : vector<1x7xf32>
    %300 = tpu.matmul %298, %299, %cst_306 {dimension_numbers = #tpu.dot_dimension_numbers<[1], [0], [0], [1], [0, 0, 1, 1], [], []>} : vector<1x512xbf16>, vector<512x7xbf16>, vector<1x7xf32> -> vector<1x7xf32>
    %c0_307 = arith.constant 0 : index
    %c0_308 = arith.constant 0 : index
    %301 = vector.load %arg22[%c0_307, %c0_308] : memref<1x7xf32, #tpu.memory_space<vmem>>, vector<1x7xf32>
    %302 = arith.addf %300, %301 : vector<1x7xf32>
    %c0_309 = arith.constant 0 : index
    %c0_310 = arith.constant 0 : index
    %c0_311 = arith.constant 0 : index
    %303 = vector.load %arg23[%c0_309, %c0_310, %c0_311] : memref<1x1x7xf32, #tpu.memory_space<vmem>>, vector<1x1x7xf32>
    %304 = vector.shape_cast %303 : vector<1x1x7xf32> to vector<1x7xf32>
    %305 = vector.shape_cast %302 : vector<1x7xf32> to vector<1x1x7xf32>
    tpu.vector_store %arg23[%c0_309, %c0_310, %c0_311], %305 {strides = array<i32>} : memref<1x1x7xf32, #tpu.memory_space<vmem>>, vector<1x1x7xf32>,
    return
  }
  func.func @transform_0(%arg0: i32) -> (i32, i32, i32) {
    %c0_i32 = arith.constant 0 : i32
    %c0_i32_0 = arith.constant 0 : i32
    %c0_i32_1 = arith.constant 0 : i32
    return %arg0, %c0_i32, %c0_i32_0 : i32, i32, i32
  }
  func.func @transform_1(%arg0: i32) -> (i32, i32, i32) {
    %c0_i32 = arith.constant 0 : i32
    %c0_i32_0 = arith.constant 0 : i32
    %c0_i32_1 = arith.constant 0 : i32
    %c0_i32_2 = arith.constant 0 : i32
    return %c0_i32, %c0_i32_0, %c0_i32_1 : i32, i32, i32
  }
  func.func @transform_2(%arg0: i32) -> (i32, i32) {
    %c0_i32 = arith.constant 0 : i32
    %c0_i32_0 = arith.constant 0 : i32
    %c0_i32_1 = arith.constant 0 : i32
    return %c0_i32, %c0_i32_0 : i32, i32
  }
  func.func @transform_3(%arg0: i32) -> (i32, i32, i32) {
    %c0_i32 = arith.constant 0 : i32
    %c0_i32_0 = arith.constant 0 : i32
    %c0_i32_1 = arith.constant 0 : i32
    %c0_i32_2 = arith.constant 0 : i32
    return %c0_i32, %c0_i32_0, %c0_i32_1 : i32, i32, i32
  }
  func.func @transform_4(%arg0: i32) -> (i32, i32, i32) {
    %c0_i32 = arith.constant 0 : i32
    %c0_i32_0 = arith.constant 0 : i32
    %c0_i32_1 = arith.constant 0 : i32
    %c0_i32_2 = arith.constant 0 : i32
    return %c0_i32, %c0_i32_0, %c0_i32_1 : i32, i32, i32
  }
  func.func @transform_5(%arg0: i32) -> (i32, i32) {
    %c0_i32 = arith.constant 0 : i32
    %c0_i32_0 = arith.constant 0 : i32
    %c0_i32_1 = arith.constant 0 : i32
    return %c0_i32, %c0_i32_0 : i32, i32
  }
  func.func @transform_6(%arg0: i32) -> (i32, i32, i32) {
    %c0_i32 = arith.constant 0 : i32
    %c0_i32_0 = arith.constant 0 : i32
    %c0_i32_1 = arith.constant 0 : i32
    %c0_i32_2 = arith.constant 0 : i32
    return %c0_i32, %c0_i32_0, %c0_i32_1 : i32, i32, i32
  }
  func.func @transform_7(%arg0: i32) -> (i32, i32, i32) {
    %c0_i32 = arith.constant 0 : i32
    %c0_i32_0 = arith.constant 0 : i32
    %c0_i32_1 = arith.constant 0 : i32
    %c0_i32_2 = arith.constant 0 : i32
    return %c0_i32, %c0_i32_0, %c0_i32_1 : i32, i32, i32
  }
  func.func @transform_8(%arg0: i32) -> (i32, i32) {
    %c0_i32 = arith.constant 0 : i32
    %c0_i32_0 = arith.constant 0 : i32
    %c0_i32_1 = arith.constant 0 : i32
    return %c0_i32, %c0_i32_0 : i32, i32
  }
  func.func @transform_9(%arg0: i32) -> (i32, i32, i32) {
    %c0_i32 = arith.constant 0 : i32
    %c0_i32_0 = arith.constant 0 : i32
    %c0_i32_1 = arith.constant 0 : i32
    %c0_i32_2 = arith.constant 0 : i32
    return %c0_i32, %c0_i32_0, %c0_i32_1 : i32, i32, i32
  }
  func.func @transform_10(%arg0: i32) -> (i32, i32, i32) {
    %c0_i32 = arith.constant 0 : i32
    %c0_i32_0 = arith.constant 0 : i32
    %c0_i32_1 = arith.constant 0 : i32
    %c0_i32_2 = arith.constant 0 : i32
    return %c0_i32, %c0_i32_0, %c0_i32_1 : i32, i32, i32
  }
  func.func @transform_11(%arg0: i32) -> (i32, i32) {
    %c0_i32 = arith.constant 0 : i32
    %c0_i32_0 = arith.constant 0 : i32
    %c0_i32_1 = arith.constant 0 : i32
    return %c0_i32, %c0_i32_0 : i32, i32
  }
  func.func @transform_12(%arg0: i32) -> (i32, i32, i32) {
    %c0_i32 = arith.constant 0 : i32
    %c0_i32_0 = arith.constant 0 : i32
    %c0_i32_1 = arith.constant 0 : i32
    %c0_i32_2 = arith.constant 0 : i32
    return %c0_i32, %c0_i32_0, %c0_i32_1 : i32, i32, i32
  }
  func.func @transform_13(%arg0: i32) -> (i32, i32) {
    %c0_i32 = arith.constant 0 : i32
    %c0_i32_0 = arith.constant 0 : i32
    %c0_i32_1 = arith.constant 0 : i32
    return %c0_i32, %c0_i32_0 : i32, i32
  }
  func.func @transform_14(%arg0: i32) -> (i32, i32) {
    %c0_i32 = arith.constant 0 : i32
    %c0_i32_0 = arith.constant 0 : i32
    %c0_i32_1 = arith.constant 0 : i32
    return %c0_i32, %c0_i32_0 : i32, i32
  }
  func.func @transform_15(%arg0: i32) -> (i32, i32) {
    %c0_i32 = arith.constant 0 : i32
    %c0_i32_0 = arith.constant 0 : i32
    %c0_i32_1 = arith.constant 0 : i32
    return %c0_i32, %c0_i32_0 : i32, i32
  }
  func.func @transform_16(%arg0: i32) -> (i32, i32) {
    %c0_i32 = arith.constant 0 : i32
    %c0_i32_0 = arith.constant 0 : i32
    %c0_i32_1 = arith.constant 0 : i32
    return %c0_i32, %c0_i32_0 : i32, i32
  }
  func.func @transform_17(%arg0: i32) -> (i32, i32) {
    %c0_i32 = arith.constant 0 : i32
    %c0_i32_0 = arith.constant 0 : i32
    %c0_i32_1 = arith.constant 0 : i32
    return %c0_i32, %c0_i32_0 : i32, i32
  }
  func.func @transform_18(%arg0: i32) -> (i32, i32) {
    %c0_i32 = arith.constant 0 : i32
    %c0_i32_0 = arith.constant 0 : i32
    %c0_i32_1 = arith.constant 0 : i32
    return %c0_i32, %c0_i32_0 : i32, i32
  }
  func.func @transform_19(%arg0: i32) -> (i32, i32) {
    %c0_i32 = arith.constant 0 : i32
    %c0_i32_0 = arith.constant 0 : i32
    %c0_i32_1 = arith.constant 0 : i32
    return %c0_i32, %c0_i32_0 : i32, i32
  }
  func.func @transform_20(%arg0: i32) -> (i32, i32) {
    %c0_i32 = arith.constant 0 : i32
    %c0_i32_0 = arith.constant 0 : i32
    %c0_i32_1 = arith.constant 0 : i32
    return %c0_i32, %c0_i32_0 : i32, i32
  }
  func.func @transform_21(%arg0: i32) -> (i32, i32) {
    %c0_i32 = arith.constant 0 : i32
    %c0_i32_0 = arith.constant 0 : i32
    %c0_i32_1 = arith.constant 0 : i32
    return %c0_i32, %c0_i32_0 : i32, i32
  }
  func.func @transform_22(%arg0: i32) -> (i32, i32, i32) {
    %c0_i32 = arith.constant 0 : i32
    %c0_i32_0 = arith.constant 0 : i32
    %c0_i32_1 = arith.constant 0 : i32
    return %arg0, %c0_i32, %c0_i32_0 : i32, i32, i32
  }
}

</mosaic_0001>

<bundles_post_ra>
// kernel: tpu_custom_call.1
= control target key start
LH: loop header
LB: loop body
LE: loop exit
PB: predicated region body
PF: predicated region fallthrough
CT: control target
= control target key end

     0   :  { %s24828_s0 = inlined_call_operand.vmem [shape: bf16[2,324,3], index: 0, kind: input, shape index: {}]   ;;  %s24829_s1 = inlined_call_operand.hbm [shape: bf16[9,3,64], index: 1, kind: input, shape index: {}]   ;;  %s24830_s2 = inlined_call_operand.hbm [shape: f32[1,64], index: 2, kind: input, shape index: {}]   ;;  %s24831_s3 = inlined_call_operand.hbm [shape: bf16[4,64,286], index: 3, kind: input, shape index: {}]   ;;  %s24832_s4 = inlined_call_operand.hbm [shape: bf16[9,64,128], index: 4, kind: input, shape index: {}]   ;;  %s24833_s5 = inlined_call_operand.hbm [shape: f32[1,128], index: 5, kind: input, shape index: {}]   ;;  %s24834_s6 = inlined_call_operand.hbm [shape: bf16[4,16,78], index: 6, kind: input, shape index: {}]   ;;  %s24835_s7 = inlined_call_operand.hbm [shape: bf16[9,128,256], index: 7, kind: input, shape index: {}]   ;;  %s24836_s8 = inlined_call_operand.hbm [shape: f32[1,256], index: 8, kind: input, shape index: {}]   ;;  %s24837_s9 = inlined_call_operand.hbm [shape: bf16[4,4,22], index: 9, kind: input, shape index: {}]   ;;  %s24838_s10 = inlined_call_operand.hbm [shape: bf16[9,256,512], index: 10, kind: input, shape index: {}]   ;;  %s24839_s11 = inlined_call_operand.hbm [shape: f32[1,512], index: 11, kind: input, shape index: {}]   ;;  %s24840_s12 = inlined_call_operand.vmem [shape: bf16[4,1,6], index: 12, kind: input, shape index: {}]   ;;  %s24841_s13 = inlined_call_operand.vmem [shape: bf16[100,64], index: 13, kind: input, shape index: {}]   ;;  %s24842_s14 = inlined_call_operand.vmem [shape: bf16[36,16], index: 14, kind: input, shape index: {}]   ;;  %s24843_s15 = inlined_call_operand.vmem [shape: bf16[16,4], index: 15, kind: input, shape index: {}]   ;;  %s24844_s16 = inlined_call_operand.hbm [shape: bf16[512,512], index: 16, kind: input, shape index: {}]   ;;  %s24845_s17 = inlined_call_operand.hbm [shape: f32[1,512], index: 17, kind: input, shape index: {}]   ;;  %s24846_s18 = inlined_call_operand.hbm [shape: bf16[512,512], index: 18, kind: input, shape index: {}]   ;;  %s24847_s19 = inlined_call_operand.hbm [shape: f32[1,512], index: 19, kind: input, shape index: {}]   ;;  %s24848_s20 = inlined_call_operand.vmem [shape: bf16[512,7], index: 20, kind: input, shape index: {}]   ;;  %s24849_s21 = inlined_call_operand.hbm [shape: f32[1,7], index: 21, kind: input, shape index: {}]   ;;  %s24850_s22 = inlined_call_operand.hbm [shape: f32[2,1,7], index: 22, kind: output, shape index: {}]  }
   0x1   :  { %24878 = sst [smem:[#allocation50_spill]] %s24828_s0 }
   0x2   :  { %24879 = sst [smem:[#allocation51_spill]] %s24829_s1 }
   0x3   :  { %24880 = sst [smem:[#allocation52_spill]] %s24830_s2 }
   0x4   :  { %24881 = sst [smem:[#allocation53_spill]] %s24831_s3 }
   0x5   :  { %24882 = sst [smem:[#allocation54_spill]] %s24832_s4 }
   0x6   :  { %24883 = sst [smem:[#allocation55_spill]] %s24833_s5 }
   0x7   :  { %24884 = sst [smem:[#allocation56_spill]] %s24834_s6 }
   0x8   :  { %24885 = sst [smem:[#allocation57_spill]] %s24836_s8 }
   0x9   :  { %24886 = sst [smem:[#allocation58_spill]] %s24838_s10 }
   0xa   :  { %24887 = sst [smem:[#allocation59_spill]] %s24840_s12 }
   0xb   :  { %24888 = sst [smem:[#allocation60_spill]] %s24842_s14 }
   0xc   :  { %24889 = sst [smem:[#allocation61_spill]] %s24843_s15 }
   0xd   :  { %24890 = sst [smem:[#allocation62_spill]] %s24844_s16 }
   0xe   :  { %24891 = sst [smem:[#allocation63_spill]] %s24848_s20 }
   0xf   :  { %24892 = sst [smem:[#allocation64_spill]] %s24850_s22 }
  0x10   :  { %27 = vsyncpa [#allocation6], 0 }
  0x11   :  { %28 = vsyncpa [#allocation9], 0 }
  0x12   :  { %29 = vsyncpa [#allocation12], 0 }
  0x13   :  { %30 = vsyncpa [#allocation15], 0 }
  0x14   :  { %31 = vsyncpa [#allocation18], 0 }
  0x15   :  { %32 = vsyncpa [#allocation21], 0 }
  0x16   :  { %33 = vsyncpa [#allocation24], 0 }
  0x17   :  { %34 = vsyncpa [#allocation27], 0 }
  0x18   :  { %35 = vsyncpa [#allocation30], 0 }
  0x19   :  { %36 = vsyncpa [#allocation7], 0 }
  0x1a   :  { %38 = vsyncpa [#allocation7 + $0x1], 0  ;;  %s22446_s3 = smov 0   ;;  %s22448_s28 = smov 0  }
  0x1b   :  { %s22450_s29 = smov 0   ;;  %s22452_s30 = smov 0  }
  0x1c LB: > { %24893 = sst [smem:[#allocation42_spill]] %s22286_s3  ;;  %s22467_s4 = sadd.s32 4294967295, %s22298_s30   ;;  %s22298_s30 = sphi %s22452_s30, %s24950_s30   ;;  %s22294_s29 = sphi %s22450_s29, %s24953_s29   ;;  %s22290_s28 = sphi %s22448_s28, %s24952_s28   ;;  %s22286_s3 = sphi %s22446_s3, %s24951_s3  }
  0x1d   : > { %24894 = sst [smem:[#allocation43_spill]] %s22290_s28  ;;  %s16596_s0 = sadd.s32 4294967294, %s22298_s30  }
  0x1e   : > { %24895 = sst [smem:[#allocation44_spill]] %s22294_s29  ;;  %s22471_s23 = sadd.s32 1, %s22298_s30  }
  0x1f   : > { %24896 = sst [smem:[#allocation45_spill]] %s22298_s30  ;;  %s518_s1 = sadd.s32 1, %s22294_s29 }
  0x20   : > { %24897 = sst [smem:[#allocation46_spill]] %s22471_s23  ;;  %s515_s5 = ssub.s32 %s22298_s30, %s22471_s23 }
  0x21   : > { %p528_p0 = scmp.ne.s32.totalorder %s22294_s29, %s22290_s28  ;;  %p516_p1 = scmp.eq.s32.totalorder %s515_s5, 0 }
  0x22   : > { %p529_p2 = scmp.eq.s32.totalorder %s22467_s4, 1  ;;  %p534_p3 = scmp.ne.s32.totalorder %s22290_s28, %s22286_s3 }
  0x23   : > { %p535_p4 = scmp.eq.s32.totalorder %s16596_s0, 1  ;;  %p16597_p7 = scmp.ge.s32.totalorder %s22298_s30, 1 }
  0x24   : > { %s22482_s24 = scalar_select %p516_p1, %s22294_s29, %s518_s1  }
  0x25   : > { %p22484_p5 = por %p529_p2, %p528_p0  ;;  %p22488_p6 = por %p535_p4, %p534_p3 }
  0x26   : > { %24898 = sst [smem:[#allocation47_spill]] %s22482_s24  ;;  %p542_p8 = scmp.lt.s32.totalorder %s22298_s30, 3 }
  0x27   : > { %s24899_s6 = scalar_select %p22484_p5, 1, 0 }
  0x28   : > { %s24901_s25 = scalar_select %p22488_p6, 1, 0 }
  0x29   : > { %24900 = sst [smem:[#allocation48_spill]] %s24899_s6  ;;  %p24867_p9 = scmp.eq.s32.totalorder %s22467_s4, 0 }
  0x2a   : > { %24902 = sst [smem:[#allocation49_spill]] %s24901_s25  ;;  %p22495_p10 = pnand %p16597_p7, %p542_p8 }
  0x2b   : > { %s22300_s2 = smov [#allocation8]   ;;  %s22301_s0 = smov [#allocation11]  }
  0x2c   : > { %s24903_s26 = scalar_select %p22495_p10, 1, 0 }
  0x2d   : > { %s568_s27 = sshll.u32 %s22300_s2, 4  ;;  %p19859_p11 = pneg %p22495_p10  ;;  %s569_s27 = int_to_ptr.vmem [resolvable:$true] %s568_s27 }
  0x2e   : > { %s591_s1 = sshll.u32 %s22301_s0, 4  ;;  %s22302_s24 = smov [#allocation14]   ;;  %s22507_s1 = int_to_ptr.vmem [resolvable:$true] %s591_s1 }
  0x2f   : > { %p22503_p12 = pnand %p24867_p9, %p19859_p11  ;;  %s22509_s29 = sshll.u32 %s22302_s24, 4  ;;  %s616_s29 = int_to_ptr.vmem [resolvable:$true] %s22509_s29 }
  0x30   : > { %s24905_s3 = sld [smem:[#allocation52_spill]] }
  0x31   : > { %p22519_p0 = pneg %p22503_p12 }
  0x36   : > { %s24906_s22 = smov %s24905_s3  ;;  %s21752_s2 = scalar_lea.hbm %s24905_s3, 16 }
  0x37   : > { %p21753_p13 = scmp.ne.s32.totalorder %s24906_s22, %s21752_s2  ;;  %p21759_p3 = scmp.lt.u32.totalorder %s21752_s2, %s24906_s22 }
  0x39   : > { %p21755_p1 = pnand %p22519_p0, %p21753_p13 }
  0x3b   : > { %p21756_p2 = pneg %p21755_p1 }
  0x3d   : > { %p21761_p4 = pnand %p21759_p3, %p21756_p2 }
  0x3f   : > { %21764 = shalt.err (!%p21761_p4)
}
  0x40   : > { %s21765_s3 = scalar_lea.vmem %s569_s27, 16  ;;  %s21772_s30 = scalar_lea.vmem %s569_s27, 32 }
  0x41   : > { %p21766_p7 = scmp.ne.s32.totalorder %s569_s27, %s21765_s3  ;;  %p21773_p9 = scmp.lt.s32.totalorder %s569_s27, %s569_s27 }
  0x42   : > { %p21774_p6 = scmp.lt.s32.totalorder %s21772_s30, %s21765_s3 }
  0x43   : > { %p21768_p8 = pnand %p21766_p7, %p22519_p0 }
  0x44   : > { %p21775_p5 = por %p21774_p6, %p21773_p9 }
  0x45   : > { %p21769_p11 = pneg %p21768_p8 }
  0x47   : > { %p21776_p10 = pnand %p21775_p5, %p21769_p11 }
  0x49   : > { %21779 = shalt.err (!%p21776_p10)
}
  0x4a   : > { %19865 = dma.hbm_to_vmem [thread:$0]  (!%p22503_p12), %s24906_s22, 16, %s569_s27, [#allocation9]  }
  0x4b   : > { %s24908_s2 = sld [smem:[#allocation54_spill]] }
  0x51   : > { %s21780_s24 = scalar_lea.hbm %s24908_s2, 4608 }
  0x52   : > { %p21781_p13 = scmp.ne.s32.totalorder %s24908_s2, %s21780_s24  ;;  %p21787_p5 = scmp.lt.u32.totalorder %s21780_s24, %s24908_s2 }
  0x54   : > { %p21783_p1 = pnand %p21781_p13, %p22519_p0 }
  0x56   : > { %p21784_p6 = pneg %p21783_p1 }
  0x58   : > { %p21789_p9 = pnand %p21787_p5, %p21784_p6 }
  0x5a   : > { %21792 = shalt.err (!%p21789_p9)
}
  0x5b   : > { %s21793_s27 = scalar_lea.vmem %s22507_s1, 4608  ;;  %p21801_p4 = scmp.lt.s32.totalorder %s22507_s1, %s22507_s1 }
  0x5c   : > { %p21794_p10 = scmp.ne.s32.totalorder %s22507_s1, %s21793_s27  ;;  %p21802_p7 = scmp.lt.s32.totalorder %s21793_s27, %s21793_s27 }
  0x5e   : > { %p21796_p2 = pnand %p21794_p10, %p22519_p0  ;;  %p21803_p8 = por %p21802_p7, %p21801_p4 }
  0x60   : > { %p21797_p3 = pneg %p21796_p2 }
  0x62   : > { %p21804_p11 = pnand %p21803_p8, %p21797_p3 }
  0x64   : > { %21807 = shalt.err (!%p21804_p11)
}
  0x65   : > { %s22303_s12 = smov 64   ;;  %s22304_s20 = smov 4  }
  0x66   : > { %19871 = dma.hbm_to_vmem [thread:$0]  (!%p22503_p12), %s24908_s2, 4608, %s22507_s1, [#allocation12], %s22303_s12, %s22303_s12, %s22304_s20  }
  0x67   : > { %s24909_s24 = sld [smem:[#allocation56_spill]] }
  0x6d   : > { %s21808_s3 = scalar_lea.hbm %s24909_s24, 512 }
  0x6e   : > { %p21809_p13 = scmp.ne.s32.totalorder %s24909_s24, %s21808_s3  ;;  %p21815_p5 = scmp.lt.u32.totalorder %s21808_s3, %s24909_s24 }
  0x70   : > { %p21811_p1 = pnand %p21809_p13, %p22519_p0 }
  0x72   : > { %p21812_p6 = pneg %p21811_p1 }
  0x74   : > { %p21817_p9 = pnand %p21815_p5, %p21812_p6 }
  0x76   : > { %21820 = shalt.err (!%p21817_p9)
}
  0x77   : > { %s21821_s23 = scalar_lea.vmem %s616_s29, 512  ;;  %p21829_p4 = scmp.lt.s32.totalorder %s616_s29, %s616_s29 }
  0x78   : > { %p21822_p10 = scmp.ne.s32.totalorder %s616_s29, %s21821_s23  ;;  %p21830_p7 = scmp.lt.s32.totalorder %s21821_s23, %s21821_s23 }
  0x7a   : > { %p21824_p2 = pnand %p21822_p10, %p22519_p0  ;;  %p21831_p8 = por %p21830_p7, %p21829_p4 }
  0x7c   : > { %p21825_p3 = pneg %p21824_p2 }
  0x7e   : > { %p21832_p11 = pnand %p21831_p8, %p21825_p3 }
  0x80   : > { %21835 = shalt.err (!%p21832_p11)
}
  0x81   : > { %19877 = dma.hbm_to_vmem [thread:$0]  (!%p22503_p12), %s24909_s24, 512, %s616_s29, [#allocation15], %s22303_s12, %s22303_s12, %s22304_s20  }
  0x82   : > { %s22305_s15 = smov [#allocation17]   ;;  %s22306_s28 = smov [#allocation20]  }
  0x83   : > { %s642_s22 = sshll.u32 %s22305_s15, 4  ;;  %s665_s25 = sshll.u32 %s22306_s28, 4  ;;  %s643_s22 = int_to_ptr.vmem [resolvable:$true] %s642_s22  ;;  %s666_s25 = int_to_ptr.vmem [resolvable:$true] %s665_s25 }
  0x84   : > { %s24910_s8 = sld [smem:[#allocation57_spill]] }
  0x8a   : > { %s21836_s27 = scalar_lea.hbm %s24910_s8, 32 }
  0x8b   : > { %p21837_p13 = scmp.ne.s32.totalorder %s24910_s8, %s21836_s27  ;;  %p21843_p5 = scmp.lt.u32.totalorder %s21836_s27, %s24910_s8 }
  0x8d   : > { %p21839_p1 = pnand %p21837_p13, %p22519_p0 }
  0x8f   : > { %p21840_p6 = pneg %p21839_p1 }
  0x91   : > { %p21845_p9 = pnand %p21843_p5, %p21840_p6 }
  0x93   : > { %21848 = shalt.err (!%p21845_p9)
}
  0x94   : > { %s21849_s29 = scalar_lea.vmem %s643_s22, 32  ;;  %p21857_p4 = scmp.lt.s32.totalorder %s643_s22, %s643_s22 }
  0x95   : > { %p21850_p10 = scmp.ne.s32.totalorder %s643_s22, %s21849_s29  ;;  %p21858_p7 = scmp.lt.s32.totalorder %s21849_s29, %s21849_s29 }
  0x97   : > { %p21852_p2 = pnand %p21850_p10, %p22519_p0  ;;  %p21859_p8 = por %p21858_p7, %p21857_p4 }
  0x99   : > { %p21853_p3 = pneg %p21852_p2 }
  0x9b   : > { %p21860_p11 = pnand %p21859_p8, %p21853_p3 }
  0x9d   : > { %21863 = shalt.err (!%p21860_p11)
}
  0x9e   : > { %19883 = dma.hbm_to_vmem [thread:$0]  (!%p22503_p12), %s24910_s8, 32, %s643_s22, [#allocation18]  }
  0x9f   : > { %s24911_s10 = sld [smem:[#allocation58_spill]] }
  0xa5   : > { %s21864_s6 = scalar_lea.hbm %s24911_s10, 73728 }
  0xa6   : > { %p21865_p13 = scmp.ne.s32.totalorder %s24911_s10, %s21864_s6  ;;  %p21871_p5 = scmp.lt.u32.totalorder %s21864_s6, %s24911_s10 }
  0xa8   : > { %p21867_p1 = pnand %p21865_p13, %p22519_p0 }
  0xaa   : > { %p21868_p6 = pneg %p21867_p1 }
  0xac   : > { %p21873_p9 = pnand %p21871_p5, %p21868_p6 }
  0xae   : > { %21876 = shalt.err (!%p21873_p9)
}
  0xaf   : > { %s21877_s27 = scalar_lea.vmem %s666_s25, 73728  ;;  %p21885_p4 = scmp.lt.s32.totalorder %s666_s25, %s666_s25 }
  0xb0   : > { %p21878_p10 = scmp.ne.s32.totalorder %s666_s25, %s21877_s27  ;;  %p21886_p7 = scmp.lt.s32.totalorder %s21877_s27, %s21877_s27 }
  0xb2   : > { %p21880_p2 = pnand %p21878_p10, %p22519_p0  ;;  %p21887_p8 = por %p21886_p7, %p21885_p4 }
  0xb4   : > { %p21881_p3 = pneg %p21880_p2 }
  0xb6   : > { %p21888_p11 = pnand %p21887_p8, %p21881_p3 }
  0xb8   : > { %21891 = shalt.err (!%p21888_p11)
}
  0xb9   : > { %s22307_s22 = smov 256   ;;  %s22308_s23 = smov 16  }
  0xba   : > { %19889 = dma.hbm_to_vmem [thread:$0]  (!%p22503_p12), %s24911_s10, 73728, %s666_s25, [#allocation21], %s22307_s22, %s22307_s22, %s22308_s23  }
  0xbb   : > { %s22309_s2 = smov [#allocation23]   ;;  %s22310_s14 = smov [#allocation26]  }
  0xbc   : > { %s701_s12 = sshll.u32 %s22309_s2, 4  ;;  %s725_s20 = sshll.u32 %s22310_s14, 4  ;;  %s702_s12 = int_to_ptr.vmem [resolvable:$true] %s701_s12  ;;  %s726_s20 = int_to_ptr.vmem [resolvable:$true] %s725_s20 }
  0xbd   : > { %s24912_s16 = sld [smem:[#allocation62_spill]] }
  0xc3   : > { %s21892_s28 = scalar_lea.hbm %s24912_s16, 16384 }
  0xc4   : > { %p21893_p13 = scmp.ne.s32.totalorder %s24912_s16, %s21892_s28  ;;  %p21899_p5 = scmp.lt.u32.totalorder %s21892_s28, %s24912_s16 }
  0xc6   : > { %p21895_p1 = pnand %p21893_p13, %p22519_p0 }
  0xc8   : > { %p21896_p6 = pneg %p21895_p1 }
  0xca   : > { %p21901_p9 = pnand %p21899_p5, %p21896_p6 }
  0xcc   : > { %21904 = shalt.err (!%p21901_p9)
}
  0xcd   : > { %s21905_s25 = scalar_lea.vmem %s702_s12, 16384  ;;  %p21913_p4 = scmp.lt.s32.totalorder %s702_s12, %s702_s12 }
  0xce   : > { %p21906_p10 = scmp.ne.s32.totalorder %s702_s12, %s21905_s25  ;;  %p21914_p7 = scmp.lt.s32.totalorder %s21905_s25, %s21905_s25 }
  0xd0   : > { %p21908_p2 = pnand %p21906_p10, %p22519_p0  ;;  %p21915_p8 = por %p21914_p7, %p21913_p4 }
  0xd2   : > { %p21909_p3 = pneg %p21908_p2 }
  0xd4   : > { %p21916_p11 = pnand %p21915_p8, %p21909_p3 }
  0xd6   : > { %21919 = shalt.err (!%p21916_p11)
}
  0xd7   : > { %19895 = dma.hbm_to_vmem [thread:$0]  (!%p22503_p12), %s24912_s16, 16384, %s702_s12, [#allocation24], %s22307_s22, %s22307_s22, %s22308_s23  }
  0xd8   : > { %s21920_s14 = scalar_lea.hbm %s24846_s18, 16384 }
  0xd9   : > { %p21921_p13 = scmp.ne.s32.totalorder %s24846_s18, %s21920_s14  ;;  %p21927_p5 = scmp.lt.u32.totalorder %s21920_s14, %s24846_s18 }
  0xdb   : > { %p21923_p1 = pnand %p21921_p13, %p22519_p0 }
  0xdd   : > { %p21924_p6 = pneg %p21923_p1 }
  0xdf   : > { %p21929_p9 = pnand %p21927_p5, %p21924_p6 }
  0xe1   : > { %21932 = shalt.err (!%p21929_p9)
}
  0xe2   : > { %s21933_s30 = scalar_lea.vmem %s726_s20, 16384  ;;  %p21941_p4 = scmp.lt.s32.totalorder %s726_s20, %s726_s20 }
  0xe3   : > { %p21934_p10 = scmp.ne.s32.totalorder %s726_s20, %s21933_s30  ;;  %p21942_p7 = scmp.lt.s32.totalorder %s21933_s30, %s21933_s30 }
  0xe5   : > { %p21936_p2 = pnand %p21934_p10, %p22519_p0  ;;  %p21943_p8 = por %p21942_p7, %p21941_p4 }
  0xe7   : > { %p21937_p3 = pneg %p21936_p2 }
  0xe9   : > { %p21944_p11 = pnand %p21943_p8, %p21937_p3 }
  0xeb   : > { %21947 = shalt.err (!%p21944_p11)
}
  0xec   : > { %19901 = dma.hbm_to_vmem [thread:$0]  (!%p22503_p12), %s24846_s18, 16384, %s726_s20, [#allocation27], %s22307_s22, %s22307_s22, %s22308_s23  }
  0xed   : > { %s22311_s25 = smov [#allocation5]   ;;  %s24913_s2 = sld [smem:[#allocation51_spill]] }
  0xee   : > { %s554_s8 = sshll.u32 %s22311_s25, 4  ;;  %s555_s8 = int_to_ptr.vmem [resolvable:$true] %s554_s8 }
  0xf3   : > { %s21948_s14 = scalar_lea.hbm %s24913_s2, 288 }
  0xf4   : > { %p21949_p13 = scmp.ne.s32.totalorder %s24913_s2, %s21948_s14  ;;  %p21955_p5 = scmp.lt.u32.totalorder %s21948_s14, %s24913_s2 }
  0xf6   : > { %p21951_p1 = pnand %p21949_p13, %p22519_p0 }
  0xf8   : > { %p21952_p6 = pneg %p21951_p1 }
  0xfa   : > { %p21957_p9 = pnand %p21955_p5, %p21952_p6 }
  0xfc   : > { %21960 = shalt.err (!%p21957_p9)
}
  0xfd   : > { %s21961_s22 = scalar_lea.vmem %s555_s8, 288  ;;  %p21969_p4 = scmp.lt.s32.totalorder %s555_s8, %s555_s8 }
  0xfe   : > { %p21962_p10 = scmp.ne.s32.totalorder %s555_s8, %s21961_s22  ;;  %p21970_p7 = scmp.lt.s32.totalorder %s21961_s22, %s21961_s22 }
 0x100   : > { %p21964_p2 = pnand %p21962_p10, %p22519_p0  ;;  %p21971_p8 = por %p21970_p7, %p21969_p4 }
 0x102   : > { %p21965_p3 = pneg %p21964_p2 }
 0x104   : > { %p21972_p11 = pnand %p21971_p8, %p21965_p3 }
 0x106   : > { %21975 = shalt.err (!%p21972_p11)
}
 0x107   : > { %s24875_s23 = smov 32   ;;  %s24876_s20 = smov 2  }
 0x108   : > { %19862 = dma.hbm_to_vmem [thread:$0]  (!%p22503_p12), %s24913_s2, 288, %s555_s8, [#allocation6], %s24875_s23, %s24875_s23, %s24876_s20  }
 0x109   : > { %s22314_s27 = smov [#allocation10]   ;;  %s24914_s14 = sld [smem:[#allocation53_spill]] }
 0x10a   : > { %s578_s25 = sshll.u32 %s22314_s27, 4  ;;  %s579_s25 = int_to_ptr.vmem [resolvable:$true] %s578_s25 }
 0x10f   : > { %s21976_s6 = scalar_lea.hbm %s24914_s14, 6144 }
 0x110   : > { %p21977_p13 = scmp.ne.s32.totalorder %s24914_s14, %s21976_s6  ;;  %p21983_p5 = scmp.lt.u32.totalorder %s21976_s6, %s24914_s14 }
 0x112   : > { %p21979_p1 = pnand %p21977_p13, %p22519_p0 }
 0x114   : > { %p21980_p6 = pneg %p21979_p1 }
 0x116   : > { %p21985_p9 = pnand %p21983_p5, %p21980_p6 }
 0x118   : > { %21988 = shalt.err (!%p21985_p9)
}
 0x119   : > { %s21989_s8 = scalar_lea.vmem %s579_s25, 6144  ;;  %p21997_p4 = scmp.lt.s32.totalorder %s579_s25, %s579_s25 }
 0x11a   : > { %p21990_p10 = scmp.ne.s32.totalorder %s579_s25, %s21989_s8  ;;  %p21998_p7 = scmp.lt.s32.totalorder %s21989_s8, %s21989_s8 }
 0x11c   : > { %p21992_p2 = pnand %p21990_p10, %p22519_p0  ;;  %p21999_p8 = por %p21998_p7, %p21997_p4 }
 0x11e   : > { %p21993_p3 = pneg %p21992_p2 }
 0x120   : > { %p22000_p11 = pnand %p21999_p8, %p21993_p3 }
 0x122   : > { %22003 = shalt.err (!%p22000_p11)
}
 0x123   : > { %s22315_s30 = smov 192   ;;  %s22316_s12 = smov 12  }
 0x124   : > { %19868 = dma.hbm_to_vmem [thread:$0]  (!%p22503_p12), %s24914_s14, 6144, %s579_s25, [#allocation9], %s22315_s30, %s22315_s30, %s22316_s12  }
 0x125   : > { %s22317_s29 = smov [#allocation13]   ;;  %s22318_s15 = smov [#allocation16]  }
 0x126   : > { %s605_s6 = sshll.u32 %s22317_s29, 4  ;;  %s628_s28 = sshll.u32 %s22318_s15, 4  ;;  %s606_s6 = int_to_ptr.vmem [resolvable:$true] %s605_s6  ;;  %s629_s28 = int_to_ptr.vmem [resolvable:$true] %s628_s28 }
 0x127   : > { %s24915_s8 = sld [smem:[#allocation55_spill]] }
 0x12d   : > { %s22004_s23 = scalar_lea.hbm %s24915_s8, 16 }
 0x12e   : > { %p22005_p13 = scmp.ne.s32.totalorder %s24915_s8, %s22004_s23  ;;  %p22011_p5 = scmp.lt.u32.totalorder %s22004_s23, %s24915_s8 }
 0x130   : > { %p22007_p1 = pnand %p22005_p13, %p22519_p0 }
 0x132   : > { %p22008_p6 = pneg %p22007_p1 }
 0x134   : > { %p22013_p9 = pnand %p22011_p5, %p22008_p6 }
 0x136   : > { %22016 = shalt.err (!%p22013_p9)
}
 0x137   : > { %s22017_s25 = scalar_lea.vmem %s606_s6, 16  ;;  %s22024_s30 = scalar_lea.vmem %s606_s6, 32 }
 0x138   : > { %p22018_p10 = scmp.ne.s32.totalorder %s606_s6, %s22017_s25  ;;  %p22025_p4 = scmp.lt.s32.totalorder %s606_s6, %s606_s6 }
 0x139   : > { %p22026_p7 = scmp.lt.s32.totalorder %s22024_s30, %s22017_s25 }
 0x13a   : > { %p22020_p2 = pnand %p22018_p10, %p22519_p0 }
 0x13b   : > { %p22027_p8 = por %p22026_p7, %p22025_p4 }
 0x13c   : > { %p22021_p3 = pneg %p22020_p2 }
 0x13e   : > { %p22028_p11 = pnand %p22027_p8, %p22021_p3 }
 0x140   : > { %22031 = shalt.err (!%p22028_p11)
}
 0x141   : > { %19874 = dma.hbm_to_vmem [thread:$0]  (!%p22503_p12), %s24915_s8, 16, %s606_s6, [#allocation12]  }
 0x142   : > { %s22032_s23 = scalar_lea.hbm %s24835_s7, 18432 }
 0x143   : > { %p22033_p13 = scmp.ne.s32.totalorder %s24835_s7, %s22032_s23  ;;  %p22039_p5 = scmp.lt.u32.totalorder %s22032_s23, %s24835_s7 }
 0x145   : > { %p22035_p1 = pnand %p22033_p13, %p22519_p0 }
 0x147   : > { %p22036_p6 = pneg %p22035_p1 }
 0x149   : > { %p22041_p9 = pnand %p22039_p5, %p22036_p6 }
 0x14b   : > { %22044 = shalt.err (!%p22041_p9)
}
 0x14c   : > { %s22045_s15 = scalar_lea.vmem %s629_s28, 18432  ;;  %p22053_p4 = scmp.lt.s32.totalorder %s629_s28, %s629_s28 }
 0x14d   : > { %p22046_p10 = scmp.ne.s32.totalorder %s629_s28, %s22045_s15  ;;  %p22054_p7 = scmp.lt.s32.totalorder %s22045_s15, %s22045_s15 }
 0x14f   : > { %p22048_p2 = pnand %p22046_p10, %p22519_p0  ;;  %p22055_p8 = por %p22054_p7, %p22053_p4 }
 0x151   : > { %p22049_p3 = pneg %p22048_p2 }
 0x153   : > { %p22056_p11 = pnand %p22055_p8, %p22049_p3 }
 0x155   : > { %22059 = shalt.err (!%p22056_p11)
}
 0x156   : > { %s22319_s6 = smov 128   ;;  %s22320_s3 = smov 8  }
 0x157   : > { %19880 = dma.hbm_to_vmem [thread:$0]  (!%p22503_p12), %s24835_s7, 18432, %s629_s28, [#allocation15], %s22319_s6, %s22319_s6, %s22320_s3  }
 0x158   : > { %s22321_s30 = smov [#allocation19]   ;;  %s22322_s20 = smov [#allocation22]  }
 0x159   : > { %s652_s2 = sshll.u32 %s22321_s30, 4  ;;  %s679_s10 = sshll.u32 %s22322_s20, 4  ;;  %s653_s2 = int_to_ptr.vmem [resolvable:$true] %s652_s2  ;;  %s680_s10 = int_to_ptr.vmem [resolvable:$true] %s679_s10 }
 0x15a   : > { %s22060_s12 = scalar_lea.hbm %s24837_s9, 128 }
 0x15b   : > { %p22061_p13 = scmp.ne.s32.totalorder %s24837_s9, %s22060_s12  ;;  %p22067_p5 = scmp.lt.u32.totalorder %s22060_s12, %s24837_s9 }
 0x15d   : > { %p22063_p1 = pnand %p22061_p13, %p22519_p0 }
 0x15f   : > { %p22064_p6 = pneg %p22063_p1 }
 0x161   : > { %p22069_p9 = pnand %p22067_p5, %p22064_p6 }
 0x163   : > { %22072 = shalt.err (!%p22069_p9)
}
 0x164   : > { %s22073_s28 = scalar_lea.vmem %s653_s2, 128  ;;  %p22081_p4 = scmp.lt.s32.totalorder %s653_s2, %s653_s2 }
 0x165   : > { %p22074_p10 = scmp.ne.s32.totalorder %s653_s2, %s22073_s28  ;;  %p22082_p7 = scmp.lt.s32.totalorder %s22073_s28, %s22073_s28 }
 0x167   : > { %p22076_p2 = pnand %p22074_p10, %p22519_p0  ;;  %p22083_p8 = por %p22082_p7, %p22081_p4 }
 0x169   : > { %p22077_p3 = pneg %p22076_p2 }
 0x16b   : > { %p22084_p11 = pnand %p22083_p8, %p22077_p3 }
 0x16d   : > { %22087 = shalt.err (!%p22084_p11)
}
 0x16e   : > { %s24916_s6 = smov 2   ;;  %s24917_s3 = smov 32  }
 0x16f   : > { %19886 = dma.hbm_to_vmem [thread:$0]  (!%p22503_p12), %s24837_s9, 128, %s653_s2, [#allocation18], %s24917_s3, %s24917_s3, %s24916_s6  }
 0x170   : > { %s22088_s16 = scalar_lea.hbm %s24839_s11, 64 }
 0x171   : > { %p22089_p13 = scmp.ne.s32.totalorder %s24839_s11, %s22088_s16  ;;  %p22095_p5 = scmp.lt.u32.totalorder %s22088_s16, %s24839_s11 }
 0x173   : > { %p22091_p1 = pnand %p22089_p13, %p22519_p0 }
 0x175   : > { %p22092_p6 = pneg %p22091_p1 }
 0x177   : > { %p22097_p9 = pnand %p22095_p5, %p22092_p6 }
 0x179   : > { %22100 = shalt.err (!%p22097_p9)
}
 0x17a   : > { %s22101_s29 = scalar_lea.vmem %s680_s10, 64  ;;  %p22109_p4 = scmp.lt.s32.totalorder %s680_s10, %s680_s10 }
 0x17b   : > { %p22102_p10 = scmp.ne.s32.totalorder %s680_s10, %s22101_s29  ;;  %p22110_p7 = scmp.lt.s32.totalorder %s22101_s29, %s22101_s29 }
 0x17d   : > { %p22104_p2 = pnand %p22102_p10, %p22519_p0  ;;  %p22111_p8 = por %p22110_p7, %p22109_p4 }
 0x17f   : > { %p22105_p3 = pneg %p22104_p2 }
 0x181   : > { %p22112_p11 = pnand %p22111_p8, %p22105_p3 }
 0x183   : > { %22115 = shalt.err (!%p22112_p11)
}
 0x184   : > { %19892 = dma.hbm_to_vmem [thread:$0]  (!%p22503_p12), %s24839_s11, 64, %s680_s10, [#allocation21]  }
 0x185   : > { %s22323_s28 = smov [#allocation25]   ;;  %s22324_s3 = smov [#allocation28]  }
 0x186   : > { %s715_s6 = sshll.u32 %s22323_s28, 4  ;;  %s739_s22 = sshll.u32 %s22324_s3, 4  ;;  %s716_s6 = int_to_ptr.vmem [resolvable:$true] %s715_s6  ;;  %s740_s22 = int_to_ptr.vmem [resolvable:$true] %s739_s22 }
 0x187   : > { %s22116_s20 = scalar_lea.hbm %s24845_s17, 64 }
 0x188   : > { %p22117_p13 = scmp.ne.s32.totalorder %s24845_s17, %s22116_s20  ;;  %p22123_p5 = scmp.lt.u32.totalorder %s22116_s20, %s24845_s17 }
 0x18a   : > { %p22119_p1 = pnand %p22117_p13, %p22519_p0 }
 0x18c   : > { %p22120_p6 = pneg %p22119_p1 }
 0x18e   : > { %p22125_p9 = pnand %p22123_p5, %p22120_p6 }
 0x190   : > { %22128 = shalt.err (!%p22125_p9)
}
 0x191   : > { %s22129_s10 = scalar_lea.vmem %s716_s6, 64  ;;  %p22137_p4 = scmp.lt.s32.totalorder %s716_s6, %s716_s6 }
 0x192   : > { %p22130_p10 = scmp.ne.s32.totalorder %s716_s6, %s22129_s10  ;;  %p22138_p7 = scmp.lt.s32.totalorder %s22129_s10, %s22129_s10 }
 0x194   : > { %p22132_p2 = pnand %p22130_p10, %p22519_p0  ;;  %p22139_p8 = por %p22138_p7, %p22137_p4 }
 0x196   : > { %p22133_p3 = pneg %p22132_p2 }
 0x198   : > { %p22140_p11 = pnand %p22139_p8, %p22133_p3 }
 0x19a   : > { %22143 = shalt.err (!%p22140_p11)
}
 0x19b   : > { %19898 = dma.hbm_to_vmem [thread:$0]  (!%p22503_p12), %s24845_s17, 64, %s716_s6, [#allocation24]  }
 0x19c   : > { %s22144_s28 = scalar_lea.hbm %s24847_s19, 64 }
 0x19d   : > { %p22145_p13 = scmp.ne.s32.totalorder %s24847_s19, %s22144_s28  ;;  %p22151_p5 = scmp.lt.u32.totalorder %s22144_s28, %s24847_s19 }
 0x19f   : > { %p22147_p1 = pnand %p22145_p13, %p22519_p0 }
 0x1a1   : > { %p22148_p6 = pneg %p22147_p1 }
 0x1a3   : > { %p22153_p9 = pnand %p22151_p5, %p22148_p6 }
 0x1a5   : > { %22156 = shalt.err (!%p22153_p9)
}
 0x1a6   : > { %s22157_s16 = scalar_lea.vmem %s740_s22, 64  ;;  %p22165_p4 = scmp.lt.s32.totalorder %s740_s22, %s740_s22 }
 0x1a7   : > { %p22158_p10 = scmp.ne.s32.totalorder %s740_s22, %s22157_s16  ;;  %p22166_p7 = scmp.lt.s32.totalorder %s22157_s16, %s22157_s16 }
 0x1a9   : > { %p22160_p2 = pnand %p22158_p10, %p22519_p0  ;;  %p22167_p8 = por %p22166_p7, %p22165_p4 }
 0x1ab   : > { %p22161_p3 = pneg %p22160_p2 }
 0x1ad   : > { %p22168_p11 = pnand %p22167_p8, %p22161_p3 }
 0x1af   : > { %22171 = shalt.err (!%p22168_p11)
}
 0x1b0   : > { %19904 = dma.hbm_to_vmem [thread:$0]  (!%p22503_p12), %s24847_s19, 64, %s740_s22, [#allocation27]  }
 0x1b1   : > { %s22325_s12 = smov [#allocation29]   ;;  %s22172_s29 = scalar_lea.hbm %s24849_s21, 16 }
 0x1b2   : > { %s753_s27 = sshll.u32 %s22325_s12, 4  ;;  %p22173_p13 = scmp.ne.s32.totalorder %s24849_s21, %s22172_s29  ;;  %s754_s27 = int_to_ptr.vmem [resolvable:$true] %s753_s27 }
 0x1b3   : > { %p22179_p5 = scmp.lt.u32.totalorder %s22172_s29, %s24849_s21 }
 0x1b4   : > { %p22175_p1 = pnand %p22173_p13, %p22519_p0 }
 0x1b6   : > { %p22176_p6 = pneg %p22175_p1 }
 0x1b8   : > { %p22181_p9 = pnand %p22179_p5, %p22176_p6 }
 0x1ba   : > { %22184 = shalt.err (!%p22181_p9)
}
 0x1bb   : > { %s22185_s22 = scalar_lea.vmem %s754_s27, 16  ;;  %s22192_s25 = scalar_lea.vmem %s754_s27, 32 }
 0x1bc   : > { %p22186_p10 = scmp.ne.s32.totalorder %s754_s27, %s22185_s22  ;;  %p22193_p4 = scmp.lt.s32.totalorder %s754_s27, %s754_s27 }
 0x1bd   : > { %p22194_p7 = scmp.lt.s32.totalorder %s22192_s25, %s22185_s22 }
 0x1be   : > { %p22188_p2 = pnand %p22186_p10, %p22519_p0 }
 0x1bf   : > { %p22195_p8 = por %p22194_p7, %p22193_p4 }
 0x1c0   : > { %p22189_p3 = pneg %p22188_p2 }
 0x1c2   : > { %p22196_p11 = pnand %p22195_p8, %p22189_p3 }
 0x1c4   : > { %22199 = shalt.err (!%p22196_p11)
}
 0x1c5   : > { %19907 = dma.hbm_to_vmem [thread:$0]  (!%p22503_p12), %s24849_s21, 16, %s754_s27, [#allocation30]  }
 0x1c6   : > { %p24918_p13 = scmp.ne.s32.totalorder %s24903_s26, 0 }
 0x1c7   : > { %p24919_p1 = scmp.eq.s32.totalorder (!%p24918_p13), %s22467_s4, 0 }
 0x1c8   : > { %774 = sbr.rel (%p24918_p13) target bundleno = 6007 (0x1777), region = 108 }
 0x1cf   : > { %22245 = dma.done.wait (%p24919_p1), [#allocation6], 288   ;;  %p24920_p0 = pmov %p24919_p1 }
 0x1d1   : > { %22247 = vsyncadd (%p24920_p0), [#allocation6], 4294967008  ;;  %p24921_p6 = pmov %p24920_p0 }
 0x1d2   : > { %p24922_p5 = pmov %p24920_p0 }
 0x1d3   : > { %22249 = dma.done.wait (%p24921_p6), [#allocation9], 6160  }
 0x1d4   : > { %22251 = vsyncadd (%p24922_p5), [#allocation9], 4294961136  ;;  %p24923_p9 = pmov %p24920_p0 }
 0x1d5   : > { %p24924_p12 = pmov %p24920_p0 }
 0x1d6   : > { %22253 = dma.done.wait (%p24923_p9), [#allocation12], 4624  }
 0x1d7   : > { %22255 = vsyncadd (%p24924_p12), [#allocation12], 4294962672  ;;  %p24925_p10 = pmov %p24920_p0 }
 0x1d8   : > { %p24926_p2 = pmov %p24920_p0 }
 0x1d9   : > { %22257 = dma.done.wait (%p24925_p10), [#allocation15], 18944  }
 0x1da   : > { %22259 = vsyncadd (%p24926_p2), [#allocation15], 4294948352  ;;  %p24927_p3 = pmov %p24920_p0 }
 0x1db   : > { %p24928_p4 = pmov %p24920_p0 }
 0x1dc   : > { %22261 = dma.done.wait (%p24927_p3), [#allocation18], 160  }
 0x1dd   : > { %22263 = vsyncadd (%p24928_p4), [#allocation18], 4294967136  ;;  %p24929_p7 = pmov %p24920_p0 }
 0x1de   : > { %p24930_p8 = pmov %p24920_p0 }
 0x1df   : > { %22265 = dma.done.wait (%p24929_p7), [#allocation21], 73792  }
 0x1e0   : > { %22267 = vsyncadd (%p24930_p8), [#allocation21], 4294893504  ;;  %p24931_p11 = pmov %p24920_p0 }
 0x1e1   : > { %p24932_p13 = pmov %p24920_p0 }
 0x1e2   : > { %22269 = dma.done.wait (%p24931_p11), [#allocation24], 16448  }
 0x1e3   : > { %22271 = vsyncadd (%p24932_p13), [#allocation24], 4294950848  ;;  %p24933_p1 = pmov %p24920_p0 }
 0x1e5   : > { %22273 = dma.done.wait (%p24933_p1), [#allocation27], 16448  }
 0x1e6   : > { %22275 = vsyncadd (%p24920_p0), [#allocation27], 4294950848  ;;  %p24934_p6 = pmov %p24920_p0 }
 0x1e7   : > { %p24935_p5 = pmov %p24920_p0 }
 0x1e8   : > { %22277 = dma.done.wait (%p24934_p6), [#allocation30], 16  }
 0x1e9   : > { %22279 = vsyncadd (%p24935_p5), [#allocation30], 4294967280  ;;  %vm1230_vm0 = vcmask 1040384   ;;  %p895_p9 = scmp.lt.s32.totalorder %s22467_s4, 1  ;;  %vm1231_vm1 = vcmask 1041408   ;;  %v22326_v0 = vmov 65535  }
 0x1ea   : > { %v1232_v1 = vsel %vm1230_vm0, 4294967295, %v22326_v0  ;;  %s24936_s6 = sld [smem:[#allocation50_spill]]  ;;  %vm1031_vm2 = vsmask.f32 7424  ;;  %v940_v3 = vld [vmem:[#allocation5 + $0x2] sm:$0x3] }
 0x1eb   : > { %s896_s26 = scalar_select %p895_p9, %s22467_s4, 1  ;;  %v22867_v2 = vsel %vm1231_vm1, %v1232_v1, 0  ;;  %vm1175_vm3 = vcmask 23552   ;;  %v937_v41 = vld [vmem:[#allocation5] sm:$0x3]  ;;  %vm1640_vm4 = vcmask 1046528  }
 0x1ec   : > { %v1235_v6 = vand.u32 %v22867_v2, %v940_v3  ;;  %v1455_v44 = vand.u32 %v22867_v2, %v937_v41  ;;  %vm2511_vm5 = vsmask.f32 6400  ;;  %vm2954_vm6 = vcmask 1045504   ;;  %s24937_s16 = sld [smem:[#allocation60_spill]]  ;;  %s24938_s29 = sld [smem:[#allocation61_spill]] }
 0x1ed   : > { %s19792_s5 = smul.u32 164, %s896_s26  ;;  %vm3707_vm7 = vsmask.f32 5376  ;;  %vm4154_vm8 = vcmask 1044480   ;;  %vm4635_vm9 = vcmask 244736   ;;  %vm22328_vm10 = vmmov 0  }
 0x1ee   : > { %18696 = vmatprep.subr.bf16.mxu0 %v1235_v6  ;;  %vm5513_vm11 = vcmask 523264   ;;  %vm5676_vm12 = vcmask 519168   ;;  %vm5689_vm13 = vcmask 517120   ;;  %vm7244_vm14 = vcmask 637952   ;;  %s24939_s28 = sld [smem:[#allocation59_spill]]  ;;  %s24942_s0 = sld [smem:[#allocation43_spill]] }
 0x1ef   : > { %18697 = vmatpush3.bf16.msra.mxu0 %v1235_v6  ;;  %vm7473_vm15 = vcmask 130048   ;;  %vm8251_vm0 = vsmask.f32 4352  ;;  %s24943_s12 = sld [smem:[#allocation48_spill]]  ;;  %s18145_s27 = sshll.u32 %s22467_s4, 4 }
 0x1f0   : > { %s22872_s23 = scalar_lea.vmem %s24936_s6, %s19792_s5  ;;  %18734 = vmatprep.subr.bf16.mxu0 %v1455_v44  ;;  %s24944_s15 = sld [smem:[#allocation64_spill]] }
 0x1f1   : > { %v901_v4 = vld [vmem:[%s22872_s23] sm:$0xf]  ;;  %v22876_v5 = vld [vmem:[%s22872_s23 + $0x4] sm:$0xf]  ;;  %v22883_v8 = vld [vmem:[%s22872_s23 + $0x8] sm:$0xff]   ;;  %s22330_s4 = smov [#allocation31]  }
 0x1f2   : > { %v22880_v7 = vcombine.low %v901_v4, %v22876_v5  ;;  %v22886_v9 = vld [vmem:[%s22872_s23 + $0x10] sm:$0xff]   ;;  %v1040_v12 = vshll.u32 %v22883_v8, 16  ;;  %v1044_v13 = vshrl.u32 %v22883_v8, 16  ;;  %v22894_v15 = vld [vmem:[%s22872_s23 + $0x18] sm:$0xff]   ;;  %v22898_v17 = vld [vmem:[%s22872_s23 + $0x20] sm:$0xff]   ;;  %s22204_s30 = sshll.u32 %s22330_s4, 4  ;;  %s22205_s30 = int_to_ptr.vmem [resolvable:$false] %s22204_s30 }
 0x1f3   : > { %v1048_v14 = vshll.u32 %v22886_v9, 16  ;;  %v1052_v16 = vshrl.u32 %v22886_v9, 16  ;;  %v1056_v21 = vshll.u32 %v22894_v15, 16  ;;  %v1064_v24 = vshll.u32 %v22898_v17, 16  ;;  %v22903_v25 = vld [vmem:[%s22872_s23 + $0x28] sm:$0xff]   ;;  %v22914_v35 = vld [vmem:[%s22872_s23 + $0x30] sm:$0xff]  }
 0x1f4   : > { %v1033_v10 = vshrl.u32 %v22880_v7, 16  ;;  %v1035_v11 = vshll.u32 %v22880_v7, 16  ;;  %v1042_v19 = vrot.slane %v1040_v12, 1  ;;  %v1060_v28 = vshrl.u32 %v22894_v15, 16  ;;  %v22918_v39 = vld [vmem:[%s22872_s23 + $0x38] sm:$0xff]   ;;  %v22923_v43 = vld [vmem:[%s22872_s23 + $0x40] sm:$0xff]   ;;  %s24940_s22 = smov %s24939_s28 }
 0x1f5   : > { %v1050_v20 = vrot.slane %v1048_v14, 1  ;;  %v1058_v27 = vrot.slane %v1056_v21, 1  ;;  %v1068_v31 = vshrl.u32 %v22898_v17, 16  ;;  %v1072_v32 = vshll.u32 %v22903_v25, 16  ;;  %v22928_v46 = vld [vmem:[%s22872_s23 + $0x48] sm:$0xff]   ;;  %v22934_v50 = vld [vmem:[%s22872_s23 + $0x50] sm:$0xff]  }
 0x1f6   : > { %v1037_v18 = vrot.slane %v1035_v11, 1  ;;  %v1046_v23 = vor.u32 %v1044_v13, %v1042_v19  ;;  %v1066_v34 = vrot.slane %v1064_v24, 1  ;;  %v1076_v40 = vshrl.u32 %v22903_v25, 16  ;;  %v22937_v51 = vld [vmem:[%s22872_s23 + $0x58] sm:$0xff]   ;;  %v22942_v55 = vld [vmem:[%s22872_s23 + $0x60] sm:$0xff]   ;;  %v22947_v57 = vld [vmem:[%s22872_s23 + $0x68] sm:$0xff]  }
 0x1f7   : > { %v1054_v26 = vor.u32 %v1052_v16, %v1050_v20  ;;  %v1062_v36 = vor.u32 %v1060_v28, %v1058_v27  ;;  %v1074_v38 = vrot.slane %v1072_v32, 1  ;;  %v1080_v42 = vshll.u32 %v22914_v35, 16  ;;  %v1636_v4 = vld [vmem:[#allocation5 + $0x4] sm:$0x3]  ;;  %v22959_v13 = vld [vmem:[%s22872_s23 + $0x70] sm:$0xff]   ;;  %s893_s6 = sand.u32 1, %s24942_s0  }
 0x1f8   : > { %v1038_v22 = vor.u32 %v1037_v18, %v1033_v10  ;;  %v1051_v30 = vsel %vm1031_vm2, %v1046_v23, %v1050_v20  ;;  %v1070_v37 = vor.u32 %v1068_v31, %v1066_v34  ;;  %v1084_v48 = vshrl.u32 %v22914_v35, 16  ;;  %v22962_v14 = vld [vmem:[%s22872_s23 + $0x78] sm:$0xff]   ;;  %s894_s10 = scalar_lea.vmem [#allocation31], %s893_s6  ;;  %s16374_s3 = scalar_lea.sflag [#allocation7], %s893_s6 }
 0x1f9   : > { %v1059_v33 = vsel %vm1031_vm2, %v1054_v26, %v1058_v27  ;;  %v1067_v45 = vsel %vm1031_vm2, %v1062_v36, %v1066_v34  ;;  %v1088_v49 = vshll.u32 %v22918_v39, 16  ;;  %v1078_v52 = vor.u32 %v1076_v40, %v1074_v38  ;;  %v20023_v40 = vld [vmem:[%s22872_s23 + $0x80] sm:$0xff]   ;;  %s16386_s1 = sshll.u32 %s894_s10, 4  ;;  %p24945_p10 = scmp.ne.s32.totalorder %s24943_s12, 0  ;;  %s24788_s1 = int_to_ptr.vmem [resolvable:$true] %s16386_s1 }
 0x1fa   : > { %v1043_v29 = vsel %vm1031_vm2, %v1038_v22, %v1042_v19  ;;  %v1075_v47 = vsel %vm1031_vm2, %v1070_v37, %v1074_v38  ;;  %v1082_v53 = vrot.slane %v1080_v42, 1  ;;  %v1096_v54 = vshll.u32 %v22923_v43, 16  ;;  %s22200_s25 = scalar_lea.vmem %s24788_s1, 16  ;;  %s22206_s20 = scalar_lea.vmem %s22205_s30, 32 }
 0x1fb   : > { %18698 = vmatprep.mubr.msk.bf16.mxu0 %vm1175_vm3, %v1043_v29  ;;  %v1104_v56 = vshll.u32 %v22928_v46, 16  ;;  %v1090_v59 = vrot.slane %v1088_v49, 1  ;;  %v1112_v60 = vshll.u32 %v22934_v50, 16  ;;  %v1092_v61 = vshrl.u32 %v22918_v39, 16  ;;  %p22201_p12 = scmp.ne.s32.totalorder %s24788_s1, %s22200_s25  ;;  %p22207_p4 = scmp.lt.s32.totalorder %s24788_s1, %s22205_s30 }
 0x1fc   : > { %18699 = vmatmul.mubr.msk.bf16.vlgmr.msra.gmra.mrb[0].mxu0 %vm1175_vm3, %v1051_v30  ;;  %v1086_v58 = vor.u32 %v1084_v48, %v1082_v53  ;;  %v1120_v62 = vshll.u32 %v22937_v51, 16  ;;  %v1083_v63 = vsel %vm1031_vm2, %v1078_v52, %v1082_v53  ;;  %v1098_v0 = vrot.slane %v1096_v54, 1  ;;  %p22208_p7 = scmp.lt.s32.totalorder %s22206_s20, %s22200_s25 }
 0x1fd   : > { %18702 = vmatprep.mubr.msk.bf16.mxu0 %vm1175_vm3, %v1059_v33  ;;  %18735 = vmatpush3.bf16.msra.mxu0 %v1455_v44  ;;  %v1100_v1 = vshrl.u32 %v22923_v43, 16  ;;  %v1108_v3 = vshrl.u32 %v22928_v46, 16  ;;  %v1106_v6 = vrot.slane %v1104_v56, 1  ;;  %v1116_v10 = vshrl.u32 %v22934_v50, 16  ;;  %p22202_p2 = pnand %p22201_p12, %p24945_p10 }
 0x1fe   : > { %v1128_v11 = vshll.u32 %v22942_v55, 16  ;;  %v1136_v12 = vshll.u32 %v22947_v57, 16  ;;  %v1091_v16 = vsel %vm1031_vm2, %v1086_v58, %v1090_v59  ;;  %v1114_v18 = vrot.slane %v1112_v60, 1  ;;  %p22209_p8 = por %p22208_p7, %p22207_p4 }
 0x1ff   : > { %v22966_v19 = vand.u32 %v1636_v4, %v22867_v2  ;;  %v1122_v20 = vrot.slane %v1120_v62, 1  ;;  %v1124_v21 = vshrl.u32 %v22937_v51, 16  ;;  %v1132_v22 = vshrl.u32 %v22942_v55, 16  ;;  %p22203_p3 = pneg %p22202_p2 }
 0x200   : > { %v1140_v23 = vshrl.u32 %v22947_v57, 16  ;;  %v1094_v24 = vor.u32 %v1092_v61, %v1090_v59  ;;  %v1130_v26 = vrot.slane %v1128_v11, 1  ;;  %v1138_v27 = vrot.slane %v1136_v12, 1 }
 0x201   : > { %18772 = vmatprep.subr.bf16.mxu0 %v22966_v19  ;;  %v1102_v28 = vor.u32 %v1100_v1, %v1098_v0  ;;  %v1144_v29 = vshll.u32 %v22959_v13, 16  ;;  %v1148_v30 = vshrl.u32 %v22959_v13, 16  ;;  %v1152_v31 = vshll.u32 %v22962_v14, 16  ;;  %p22210_p11 = pnand %p22209_p8, %p22203_p3 }
 0x202   : > { %v1099_v32 = vsel %vm1031_vm2, %v1094_v24, %v1098_v0  ;;  %v1156_v34 = vshrl.u32 %v22962_v14, 16  ;;  %v1110_v36 = vor.u32 %v1108_v3, %v1106_v6  ;;  %v1118_v38 = vor.u32 %v1116_v10, %v1114_v18  ;;  %v21741_v24 = vld [vmem:[%s22872_s23 + $0x30] sm:$0xff]  }
 0x203   : > { %v1107_v33 = vsel %vm1031_vm2, %v1102_v28, %v1106_v6  ;;  %v1146_v37 = vrot.slane %v1144_v29, 1  ;;  %v1154_v44 = vrot.slane %v1152_v31, 1  ;;  %v1126_v48 = vor.u32 %v1124_v21, %v1122_v20  ;;  %v21743_v31 = vld [vmem:[%s22872_s23 + $0x40] sm:$0xff]  }
 0x204   : > { %18703 = vmatmul.mubr.msk.bf16.gmra.mrb[4].mxu0 %vm1175_vm3, %v1067_v45  ;;  %v1115_v41 = vsel %vm1031_vm2, %v1110_v36, %v1114_v18  ;;  %v1123_v42 = vsel %vm1031_vm2, %v1118_v38, %v1122_v20  ;;  %v935_v45 = vld [vmem:[%s22872_s23 + $0x88] sm:$0xf]  ;;  %v1160_v49 = vshll.u32 %v20023_v40, 16  ;;  %v1134_v52 = vor.u32 %v1132_v22, %v1130_v26  ;;  %v21745_v38 = vld [vmem:[%s22872_s23 + $0x50] sm:$0xff]  }
 0x205   : > { %18706 = vmatprep.mubr.msk.bf16.mxu0 %vm1175_vm3, %v1075_v47  ;;  %v938_v47 = vld [vmem:[%s22872_s23 + $0x8c] sm:$0xf]  ;;  %v1131_v53 = vsel %vm1031_vm2, %v1126_v48, %v1130_v26  ;;  %v1164_v58 = vshrl.u32 %v20023_v40, 16  ;;  %v1142_v59 = vor.u32 %v1140_v23, %v1138_v27  ;;  %v1150_v61 = vor.u32 %v1148_v30, %v1146_v37 }
 0x206   : > { %v22990_v54 = vcombine.low %v935_v45, %v938_v47  ;;  %v1139_v56 = vsel %vm1031_vm2, %v1134_v52, %v1138_v27  ;;  %v1162_v0 = vrot.slane %v1160_v49, 1  ;;  %v1158_v1 = vor.u32 %v1156_v34, %v1154_v44  ;;  %v21740_v20 = vld [vmem:[%s22872_s23 + $0x28] sm:$0xff]   ;;  %v21742_v27 = vld [vmem:[%s22872_s23 + $0x38] sm:$0xff]   ;;  %v21747_v47 = vld [vmem:[%s22872_s23 + $0x60] sm:$0xff]  }
 0x207   : > { %v1147_v62 = vsel %vm1031_vm2, %v1142_v59, %v1146_v37  ;;  %v1650_v21 = vrot.slane %v21740_v20, 1  ;;  %v1652_v26 = vrot.slane %v21741_v24, 1  ;;  %v1654_v28 = vrot.slane %v21742_v27, 1  ;;  %v21748_v49 = vld [vmem:[%s22872_s23 + $0x68] sm:$0xff]   ;;  %v20038_v27 = vld [vmem:[%s22872_s23 + $0x60] sm:$0xff]  }
 0x208   : > { %v1168_v60 = vshll.u32 %v22990_v54, 16  ;;  %v1166_v4 = vor.u32 %v1164_v58, %v1162_v0  ;;  %v1163_v6 = vsel %vm1031_vm2, %v1158_v1, %v1162_v0  ;;  %v1172_v11 = vshrl.u32 %v22990_v54, 16  ;;  %v21749_v58 = vld [vmem:[%s22872_s23 + $0x70] sm:$0xff]   ;;  %v21751_v0 = vld [vmem:[%s22872_s23 + $0x80] sm:$0xff]   ;;  %v20035_v20 = vld [vmem:[%s22872_s23 + $0x48] sm:$0xff]  }
 0x209   : > { %v1653_v29 = vsel %vm1640_vm4, %v1650_v21, %v1652_v26  ;;  %v1655_v30 = vsel %vm1640_vm4, %v1652_v26, %v1654_v28  ;;  %v1664_v48 = vrot.slane %v21747_v47, 1  ;;  %v1666_v52 = vrot.slane %v21748_v49, 1  ;;  %v20037_v26 = vld [vmem:[%s22872_s23 + $0x58] sm:$0xff]   ;;  %v23149_v47 = vld [vmem:[%s22872_s23 + $0xc] sm:$0xf] }
 0x20a   : > { %v1170_v3 = vrot.slane %v1168_v60, 1  ;;  %v1668_v59 = vrot.slane %v21749_v58, 1  ;;  %v21750_v60 = vld [vmem:[%s22872_s23 + $0x78] sm:$0xff]   ;;  %v1672_v1 = vrot.slane %v21751_v0, 1 }
 0x20c   : > { %18707 = vmatmul.mubr.msk.bf16.gmra.mrb[8].mxu0 %vm1175_vm3, %v1083_v63  ;;  %v1155_v63 = vsel %vm1031_vm2, %v1150_v61, %v1154_v44  ;;  %v1171_v10 = vsel %vm1031_vm2, %v1166_v4, %v1170_v3  ;;  %v1174_v12 = vor.u32 %v1172_v11, %v1170_v3  ;;  %v1670_v61 = vrot.slane %v21750_v60, 1  ;;  %v20027_v4 = vld [vmem:[%s22872_s23 + $0x8] sm:$0xfe]   ;;  %v20028_v11 = vld [vmem:[%s22872_s23 + $0x10] sm:$0xff]  }
 0x20d   : > { %18710 = vmatprep.mubr.msk.bf16.mxu0 %vm1175_vm3, %v1091_v16  ;;  %v1983_v16 = vld [vmem:[#allocation5 + $0x6] sm:$0x3]  ;;  %v1674_v3 = vrot.slane %v22990_v54, 1 }
 0x20e   : > { %v2164_v18 = vand.u32 %v1983_v16, %v22867_v2  ;;  %v2075_v16 = vrot.slane %v20028_v11, 1 }
 0x214   : > { %18711 = vmatmul.mubr.msk.bf16.gmra.mrb[12].mxu0 %vm1175_vm3, %v1099_v32  ;;  %v1656_v32 = vrot.slane %v21743_v31, 1  ;;  %v2095_v31 = vrot.slane %v20038_v27, 1 }
 0x215   : > { %18714 = vmatprep.mubr.msk.bf16.mxu0 %vm1175_vm3, %v1107_v33  ;;  %v21744_v33 = vld [vmem:[%s22872_s23 + $0x48] sm:$0xff]  }
 0x216   : > { %v1658_v34 = vrot.slane %v21744_v33, 1  ;;  %v1657_v36 = vsel %vm1640_vm4, %v1654_v28, %v1656_v32  ;;  %v20040_v33 = vld [vmem:[%s22872_s23 + $0x70] sm:$0xff]  }
 0x218   : > { %v1659_v37 = vsel %vm1640_vm4, %v1656_v32, %v1658_v34  ;;  %v20039_v32 = vld [vmem:[%s22872_s23 + $0x68] sm:$0xff]  }
 0x21c   : > { %18715 = vmatmul.mubr.msk.bf16.gmra.mrb[16].mxu0 %vm1175_vm3, %v1115_v41  ;;  %v21746_v41 = vld [vmem:[%s22872_s23 + $0x58] sm:$0xff]  }
 0x21d   : > { %18718 = vmatprep.mubr.msk.bf16.mxu0 %vm1175_vm3, %v1123_v42  ;;  %v1662_v42 = vrot.slane %v21746_v41, 1  ;;  %v20042_v41 = vld [vmem:[%s22872_s23 + $0x80] sm:$0xff]  }
 0x21e   : > { %v2103_v49 = vrot.slane %v20042_v41, 1  ;;  %v23211_v41 = vld [vmem:[%s22872_s23 + $0x48] sm:$0xff]  }
 0x224   : > { %18719 = vmatmul.mubr.msk.bf16.gmra.mrb[20].mxu0 %vm1175_vm3, %v1131_v53  ;;  %v1665_v53 = vsel %vm1640_vm4, %v1662_v42, %v1664_v48 }
 0x225   : > { %18722 = vmatprep.mubr.msk.bf16.mxu0 %vm1175_vm3, %v1139_v56  ;;  %v1667_v56 = vsel %vm1640_vm4, %v1664_v48, %v1666_v52 }
 0x22c   : > { %18723 = vmatmul.mubr.msk.bf16.gmra.mrb[24].mxu0 %vm1175_vm3, %v1147_v62  ;;  %v1669_v62 = vsel %vm1640_vm4, %v1666_v52, %v1668_v59  ;;  %v20043_v52 = vld [vmem:[%s22872_s23 + $0x88] sm:$0xff]  }
 0x22d   : > { %18726 = vmatprep.mubr.msk.bf16.mxu0 %vm1175_vm3, %v1155_v63  ;;  %v1671_v63 = vsel %vm1640_vm4, %v1668_v59, %v1670_v61 }
 0x234   : > { %18727 = vmatmul.mubr.msk.bf16.gmra.mrb[28].mxu0 %vm1175_vm3, %v1163_v6  ;;  %v1673_v6 = vsel %vm1640_vm4, %v1670_v61, %v1672_v1  ;;  %v2105_v61 = vrot.slane %v20043_v52, 1 }
 0x235   : > { %18730 = vmatprep.mubr.msk.bf16.mxu0 %vm1175_vm3, %v1171_v10  ;;  %v1675_v10 = vsel %vm1640_vm4, %v1672_v1, %v1674_v3 }
 0x23c   : > { %18731 = vmatmul.mubr.msk.bf16.gmra.mrb[32].mxu0 %vm1175_vm3, %v1174_v12  ;;  %v2074_v12 = vrot.slane %v20027_v4, 1  ;;  %v23165_v4 = vld [vmem:[%s22872_s23 + $0x18] sm:$0xff]  }
 0x23d   : > { %18736 = vmatprep.mubr.msk.bf16.mxu0 %vm1175_vm3, %v22880_v7  ;;  %v1634_v7 = vld [vmem:[%s22872_s23] sm:$0xe] }
 0x244   : > { %18737 = vmatmul.mubr.msk.bf16.vlgmr.msra.gmra.mrb[0].mxu0 %vm1175_vm3, %v22883_v8  ;;  %v16688_v8 = vcombine.low %v1634_v7, %v22876_v5  ;;  %v21737_v5 = vld [vmem:[%s22872_s23 + $0x10] sm:$0xff]   ;;  %v2076_v7 = vsel %vm1640_vm4, %v2074_v12, %v2075_v16 }
 0x245   : > { %18740 = vmatprep.mubr.msk.bf16.mxu0 %vm1175_vm3, %v22886_v9  ;;  %18773 = vmatpush3.bf16.msra.mxu0 %v22966_v19  ;;  %v936_v9 = vld [vmem:[%s22872_s23 + $0x8c] sm:$0x7] }
 0x246   : > { %18810 = vmatprep.subr.bf16.mxu0 %v2164_v18 }
 0x24c   : > { %18741 = vmatmul.mubr.msk.bf16.gmra.mrb[4].mxu0 %vm1175_vm3, %v22894_v15  ;;  %v1641_v15 = vrot.slane %v16688_v8, 1  ;;  %v20030_v8 = vld [vmem:[%s22872_s23 + $0x20] sm:$0xff]  }
 0x24d   : > { %18744 = vmatprep.mubr.msk.bf16.mxu0 %vm1175_vm3, %v22898_v17  ;;  %v21736_v17 = vld [vmem:[%s22872_s23 + $0x8] sm:$0xff]  }
 0x254   : > { %18745 = vmatmul.mubr.msk.bf16.gmra.mrb[8].mxu0 %vm1175_vm3, %v22903_v25  ;;  %v1642_v25 = vrot.slane %v21736_v17, 1  ;;  %v20031_v17 = vld [vmem:[%s22872_s23 + $0x28] sm:$0xff]  }
 0x255   : > { %18748 = vmatprep.mubr.msk.bf16.mxu0 %vm1175_vm3, %v22914_v35  ;;  %v16669_v35 = vcombine.low %v935_v45, %v936_v9  ;;  %v2950_v9 = vld [vmem:[#allocation5 + $0xa] sm:$0x3] }
 0x25c   : > { %18749 = vmatmul.mubr.msk.bf16.gmra.mrb[12].mxu0 %vm1175_vm3, %v22918_v39  ;;  %v1643_v39 = vsel %vm1640_vm4, %v1641_v15, %v1642_v25  ;;  %v2079_v15 = vrot.slane %v20030_v8, 1  ;;  %v2530_v8 = vshrl.u32 %v23165_v4, 16 }
 0x25d   : > { %18752 = vmatprep.mubr.msk.bf16.mxu0 %vm1175_vm3, %v22923_v43  ;;  %v1644_v43 = vrot.slane %v21737_v5, 1  ;;  %v23112_v5 = vand.u32 %v2950_v9, %v22867_v2 }
 0x264   : > { %18753 = vmatmul.mubr.msk.bf16.gmra.mrb[16].mxu0 %vm1175_vm3, %v22928_v46  ;;  %v2417_v46 = vld [vmem:[#allocation5 + $0x8] sm:$0x3] }
 0x265   : > { %18756 = vmatprep.mubr.msk.bf16.mxu0 %vm1175_vm3, %v22934_v50  ;;  %v21738_v50 = vld [vmem:[%s22872_s23 + $0x18] sm:$0xff]  }
 0x26c   : > { %18757 = vmatmul.mubr.msk.bf16.gmra.mrb[20].mxu0 %vm1175_vm3, %v22937_v51  ;;  %v1646_v51 = vrot.slane %v21738_v50, 1  ;;  %v20033_v50 = vld [vmem:[%s22872_s23 + $0x38] sm:$0xff]  }
 0x26d   : > { %18760 = vmatprep.mubr.msk.bf16.mxu0 %vm1175_vm3, %v22942_v55  ;;  %v1645_v55 = vsel %vm1640_vm4, %v1642_v25, %v1644_v43 }
 0x274   : > { %18761 = vmatmul.mubr.msk.bf16.gmra.mrb[24].mxu0 %vm1175_vm3, %v22947_v57  ;;  %v1647_v57 = vsel %vm1640_vm4, %v1644_v43, %v1646_v51  ;;  %v2081_v43 = vrot.slane %v20031_v17, 1 }
 0x275   : > { %18764 = vmatprep.mubr.msk.bf16.mxu0 %vm1175_vm3, %v22959_v13  ;;  %v23053_v13 = vand.u32 %v2417_v46, %v22867_v2 }
 0x27c   : > { %18765 = vmatmul.mubr.msk.bf16.gmra.mrb[28].mxu0 %vm1175_vm3, %v22962_v14  ;;  %v21739_v14 = vld [vmem:[%s22872_s23 + $0x20] sm:$0xff]  }
 0x27d   : > { %18768 = vmatprep.mubr.msk.bf16.mxu0 %vm1175_vm3, %v20023_v40  ;;  %v1648_v19 = vrot.slane %v21739_v14, 1  ;;  %v1660_v40 = vrot.slane %v21745_v38, 1  ;;  %v2085_v14 = vrot.slane %v20033_v50, 1  ;;  %v2099_v38 = vrot.slane %v20040_v33, 1 }
 0x27f   : > { %v1649_v22 = vsel %vm1640_vm4, %v1646_v51, %v1648_v19  ;;  %v1651_v23 = vsel %vm1640_vm4, %v1648_v19, %v1650_v21  ;;  %v1661_v44 = vsel %vm1640_vm4, %v1658_v34, %v1660_v40  ;;  %v1663_v45 = vsel %vm1640_vm4, %v1660_v40, %v1662_v42  ;;  %v20034_v51 = vld [vmem:[%s22872_s23 + $0x40] sm:$0xff]   ;;  %v20041_v40 = vld [vmem:[%s22872_s23 + $0x78] sm:$0xff]  }
 0x280   : > { %v2087_v19 = vrot.slane %v20034_v51, 1  ;;  %v2101_v48 = vrot.slane %v20041_v40, 1 }
 0x282   : > { %v2102_v58 = vsel %vm1640_vm4, %v2099_v38, %v2101_v48  ;;  %v2104_v60 = vsel %vm1640_vm4, %v2101_v48, %v2103_v49 }
 0x284   : > { %18769 = vmatmul.mubr.msk.bf16.gmra.mrb[32].mxu0 %vm1175_vm3, %v16669_v35 }
 0x285   : > { %18774 = vmatprep.mubr.msk.bf16.mxu0 %vm1175_vm3, %v1643_v39  ;;  %v20032_v39 = vld [vmem:[%s22872_s23 + $0x30] sm:$0xff]  }
 0x286   : > { %v2083_v46 = vrot.slane %v20032_v39, 1  ;;  %v23182_v39 = vld [vmem:[%s22872_s23 + $0x30] sm:$0xff]  }
 0x288   : > { %v2086_v21 = vsel %vm1640_vm4, %v2083_v46, %v2085_v14 }
 0x28c   : > { %18775 = vmatmul.mubr.msk.bf16.vlgmr.msra.gmra.mrb[0].mxu0 %vm1175_vm3, %v1645_v55  ;;  %v2082_v55 = vsel %vm1640_vm4, %v2079_v15, %v2081_v43 }
 0x28d   : > { %18778 = vmatprep.mubr.msk.bf16.mxu0 %vm1175_vm3, %v1647_v57  ;;  %18811 = vmatpush3.bf16.msra.mxu0 %v2164_v18  ;;  %v20029_v18 = vld [vmem:[%s22872_s23 + $0x18] sm:$0xff]   ;;  %v2084_v57 = vsel %vm1640_vm4, %v2081_v43, %v2083_v46  ;;  %v2532_v43 = vrot.slane %v2530_v8, 1 }
 0x28e   : > { %18848 = vmatprep.subr.bf16.mxu0 %v23053_v13  ;;  %v2077_v54 = vrot.slane %v20029_v18, 1 }
 0x290   : > { %v2078_v25 = vsel %vm1640_vm4, %v2075_v16, %v2077_v54  ;;  %v2080_v35 = vsel %vm1640_vm4, %v2077_v54, %v2079_v15  ;;  %v2533_v54 = vshll.u32 %v23165_v4, 16 }
 0x292   : > { %v2535_v46 = vrot.slane %v2533_v54, 2 }
 0x294   : > { %18779 = vmatmul.mubr.msk.bf16.gmra.mrb[4].mxu0 %vm1175_vm3, %v1649_v22  ;;  %v2088_v22 = vsel %vm1640_vm4, %v2085_v14, %v2087_v19 }
 0x295   : > { %18782 = vmatprep.mubr.msk.bf16.mxu0 %vm1175_vm3, %v1651_v23  ;;  %v2089_v23 = vrot.slane %v20035_v20, 1  ;;  %v3300_v20 = vld [vmem:[#allocation5 + $0xc] sm:$0x3] }
 0x297   : > { %v2090_v28 = vsel %vm1640_vm4, %v2087_v19, %v2089_v23 }
 0x29c   : > { %18783 = vmatmul.mubr.msk.bf16.gmra.mrb[8].mxu0 %vm1175_vm3, %v1653_v29 }
 0x29d   : > { %18786 = vmatprep.mubr.msk.bf16.mxu0 %vm1175_vm3, %v1655_v30  ;;  %v2093_v30 = vrot.slane %v20037_v26, 1 }
 0x2a4   : > { %18787 = vmatmul.mubr.msk.bf16.gmra.mrb[12].mxu0 %vm1175_vm3, %v1657_v36  ;;  %v2096_v36 = vsel %vm1640_vm4, %v2093_v30, %v2095_v31 }
 0x2a5   : > { %18790 = vmatprep.mubr.msk.bf16.mxu0 %vm1175_vm3, %v1659_v37  ;;  %v2097_v37 = vrot.slane %v20039_v32, 1  ;;  %v23200_v32 = vand.u32 %v3300_v20, %v22867_v2 }
 0x2a7   : > { %v2098_v42 = vsel %vm1640_vm4, %v2095_v31, %v2097_v37 }
 0x2ac   : > { %18791 = vmatmul.mubr.msk.bf16.gmra.mrb[16].mxu0 %vm1175_vm3, %v1661_v44  ;;  %v2100_v44 = vsel %vm1640_vm4, %v2097_v37, %v2099_v38 }
 0x2ad   : > { %18794 = vmatprep.mubr.msk.bf16.mxu0 %vm1175_vm3, %v1663_v45  ;;  %v2379_v45 = vld [vmem:[%s22872_s23 + $0x8] sm:$0xe] }
 0x2ae   : > { %v16743_v59 = vcombine.low %v2379_v45, %v23149_v47 }
 0x2b0   : > { %v2516_v0 = vshll.u32 %v16743_v59, 16 }
 0x2b2   : > { %v2518_v16 = vrot.slane %v2516_v0, 2  ;;  %v23228_v0 = vld [vmem:[%s22872_s23 + $0x60] sm:$0xff]  }
 0x2b4   : > { %18795 = vmatmul.mubr.msk.bf16.gmra.mrb[20].mxu0 %vm1175_vm3, %v1665_v53  ;;  %v20044_v53 = vld [vmem:[%s22872_s23 + $0x90] sm:$0xff]  }
 0x2b5   : > { %18798 = vmatprep.mubr.msk.bf16.mxu0 %vm1175_vm3, %v1667_v56  ;;  %v23155_v56 = vld [vmem:[%s22872_s23 + $0x10] sm:$0xff]  }
 0x2b6   : > { %v2521_v1 = vshrl.u32 %v23155_v56, 16 }
 0x2b8   : > { %v2523_v18 = vrot.slane %v2521_v1, 1 }
 0x2bc   : > { %18799 = vmatmul.mubr.msk.bf16.gmra.mrb[24].mxu0 %vm1175_vm3, %v1669_v62  ;;  %v2107_v62 = vrot.slane %v20044_v53, 1 }
 0x2bd   : > { %18802 = vmatprep.mubr.msk.bf16.mxu0 %vm1175_vm3, %v1671_v63  ;;  %v2513_v63 = vshrl.u32 %v16743_v59, 16  ;;  %v2587_v59 = vshll.u32 %v23211_v41, 16 }
 0x2be   : > { %v2108_v12 = vsel %vm1640_vm4, %v2105_v61, %v2107_v62 }
 0x2bf   : > { %v2515_v11 = vrot.slane %v2513_v63, 1  ;;  %v23225_v63 = vld [vmem:[%s22872_s23 + $0x58] sm:$0xff]  }
 0x2c0   : > { %v2605_v8 = vshll.u32 %v23225_v63, 16 }
 0x2c1   : > { %v2519_v9 = vor.u32 %v2518_v16, %v2515_v11 }
 0x2c4   : > { %18803 = vmatmul.mubr.msk.bf16.gmra.mrb[28].mxu0 %vm1175_vm3, %v1673_v6  ;;  %v23168_v6 = vld [vmem:[%s22872_s23 + $0x20] sm:$0xff]  }
 0x2c5   : > { %18806 = vmatprep.mubr.msk.bf16.mxu0 %vm1175_vm3, %v1675_v10  ;;  %v2106_v10 = vsel %vm1640_vm4, %v2103_v49, %v2105_v61  ;;  %v2539_v17 = vshrl.u32 %v23168_v6, 16 }
 0x2c7   : > { %v2541_v51 = vrot.slane %v2539_v17, 1  ;;  %v23239_v17 = vld [vmem:[%s22872_s23 + $0x68] sm:$0xff]  }
 0x2c8   : > { %v2623_v20 = vshll.u32 %v23239_v17, 16 }
 0x2cc   : > { %18807 = vmatmul.mubr.msk.bf16.gmra.mrb[32].mxu0 %vm1175_vm3, %v1674_v3  ;;  %v2524_v3 = vshll.u32 %v23155_v56, 16 }
 0x2cd   : > { %18812 = vmatprep.mubr.msk.bf16.mxu0 %vm1175_vm3, %v2076_v7 }
 0x2ce   : > { %v2526_v7 = vrot.slane %v2524_v3, 2 }
 0x2d0   : > { %v2527_v15 = vor.u32 %v2526_v7, %v2523_v18  ;;  %v2602_v7 = vshrl.u32 %v23225_v63, 16 }
 0x2d2   : > { %v2528_v50 = vsel %vm2511_vm5, %v2519_v9, %v2527_v15  ;;  %v2611_v9 = vshrl.u32 %v23228_v0, 16 }
 0x2d4   : > { %18813 = vmatmul.mubr.msk.bf16.vlgmr.msra.gmra.mrb[0].mxu0 %vm1175_vm3, %v2078_v25  ;;  %v2542_v25 = vshll.u32 %v23168_v6, 16 }
 0x2d5   : > { %18816 = vmatprep.mubr.msk.bf16.mxu0 %vm1175_vm3, %v2080_v35  ;;  %18849 = vmatpush3.bf16.msra.mxu0 %v23053_v13  ;;  %v20036_v13 = vld [vmem:[%s22872_s23 + $0x50] sm:$0xff]   ;;  %v23179_v35 = vld [vmem:[%s22872_s23 + $0x28] sm:$0xff]  }
 0x2d6   : > { %18886 = vmatprep.subr.bf16.mxu0 %v23112_v5  ;;  %v2091_v24 = vrot.slane %v20036_v13, 1  ;;  %v2548_v14 = vshrl.u32 %v23179_v35, 16  ;;  %v2551_v19 = vshll.u32 %v23179_v35, 16 }
 0x2d8   : > { %v2092_v29 = vsel %vm1640_vm4, %v2089_v23, %v2091_v24  ;;  %v2094_v34 = vsel %vm1640_vm4, %v2091_v24, %v2093_v30  ;;  %v23192_v23 = vld [vmem:[%s22872_s23 + $0x38] sm:$0xff]   ;;  %v23195_v24 = vld [vmem:[%s22872_s23 + $0x40] sm:$0xff]   ;;  %v2550_v27 = vrot.slane %v2548_v14, 1 }
 0x2d9   : > { %v2575_v38 = vshrl.u32 %v23195_v24, 16  ;;  %v2578_v40 = vshll.u32 %v23195_v24, 16 }
 0x2db   : > { %v2580_v52 = vrot.slane %v2578_v40, 2 }
 0x2dc   : > { %18817 = vmatmul.mubr.msk.bf16.gmra.mrb[4].mxu0 %vm1175_vm3, %v2082_v55  ;;  %v2544_v55 = vrot.slane %v2542_v25, 2  ;;  %v23242_v25 = vld [vmem:[%s22872_s23 + $0x70] sm:$0xff]  }
 0x2dd   : > { %18820 = vmatprep.mubr.msk.bf16.mxu0 %vm1175_vm3, %v2084_v57  ;;  %v2536_v57 = vor.u32 %v2535_v46, %v2532_v43  ;;  %v2604_v46 = vrot.slane %v2602_v7, 1 }
 0x2de   : > { %v2545_v13 = vor.u32 %v2544_v55, %v2541_v51  ;;  %v2613_v55 = vrot.slane %v2611_v9, 1  ;;  %v23284_v9 = vld [vmem:[%s22872_s23 + $0x98] ss:$0 sps:$4 sm:$0x11]  }
 0x2df   : > { %v2537_v26 = vsel %vm2511_vm5, %v2527_v15, %v2536_v57  ;;  %v2614_v15 = vshll.u32 %v23228_v0, 16 }
 0x2e4   : > { %18821 = vmatmul.mubr.msk.bf16.gmra.mrb[8].mxu0 %vm1175_vm3, %v2086_v21  ;;  %v2557_v21 = vshrl.u32 %v23182_v39, 16 }
 0x2e5   : > { %18824 = vmatprep.mubr.msk.bf16.mxu0 %vm1175_vm3, %v2088_v22  ;;  %v2560_v22 = vshll.u32 %v23182_v39, 16 }
 0x2e6   : > { %v2559_v30 = vrot.slane %v2557_v21, 1  ;;  %v2629_v21 = vshrl.u32 %v23242_v25, 16 }
 0x2e7   : > { %v2562_v31 = vrot.slane %v2560_v22, 2  ;;  %v2632_v22 = vshll.u32 %v23242_v25, 16 }
 0x2e9   : > { %v2563_v37 = vor.u32 %v2562_v31, %v2559_v30  ;;  %v2625_v30 = vrot.slane %v2623_v20, 2  ;;  %v2956_v20 = vrot.slane %v23155_v56, 2 }
 0x2ec   : > { %18825 = vmatmul.mubr.msk.bf16.gmra.mrb[12].mxu0 %vm1175_vm3, %v2090_v28  ;;  %v2553_v28 = vrot.slane %v2551_v19, 2  ;;  %v2620_v19 = vshrl.u32 %v23239_v17, 16 }
 0x2ed   : > { %18828 = vmatprep.mubr.msk.bf16.mxu0 %vm1175_vm3, %v2092_v29  ;;  %v2546_v29 = vsel %vm2511_vm5, %v2536_v57, %v2545_v13  ;;  %v2616_v57 = vrot.slane %v2614_v15, 2 }
 0x2ee   : > { %v2554_v33 = vor.u32 %v2553_v28, %v2550_v27  ;;  %v23256_v27 = vld [vmem:[%s22872_s23 + $0x80] sm:$0xff]  }
 0x2f0   : > { %v2564_v49 = vsel %vm2511_vm5, %v2554_v33, %v2563_v37 }
 0x2f4   : > { %18829 = vmatmul.mubr.msk.bf16.gmra.mrb[16].mxu0 %vm1175_vm3, %v2094_v34  ;;  %v2566_v34 = vshrl.u32 %v23192_v23, 16 }
 0x2f5   : > { %18832 = vmatprep.mubr.msk.bf16.mxu0 %vm1175_vm3, %v2096_v36  ;;  %v2569_v36 = vshll.u32 %v23192_v23, 16 }
 0x2f6   : > { %v2568_v45 = vrot.slane %v2566_v34, 1  ;;  %v2634_v34 = vrot.slane %v2632_v22, 2  ;;  %v2958_v22 = vrot.slane %v23165_v4, 2  ;;  %v2964_v4 = vrot.slane %v23182_v39, 2 }
 0x2f7   : > { %v2571_v48 = vrot.slane %v2569_v36, 2  ;;  %v2970_v39 = vrot.slane %v23211_v41, 2 }
 0x2f9   : > { %v2572_v53 = vor.u32 %v2571_v48, %v2568_v45  ;;  %v2650_v45 = vshll.u32 %v23256_v27, 16  ;;  %v23267_v48 = vld [vmem:[%s22872_s23 + $0x88] sm:$0xff]  }
 0x2fb   : > { %v2573_v1 = vsel %vm2511_vm5, %v2563_v37, %v2572_v53 }
 0x2fc   : > { %18833 = vmatmul.mubr.msk.bf16.gmra.mrb[20].mxu0 %vm1175_vm3, %v2098_v42  ;;  %v23214_v42 = vld [vmem:[%s22872_s23 + $0x50] sm:$0xff]  }
 0x2fd   : > { %18836 = vmatprep.mubr.msk.bf16.mxu0 %vm1175_vm3, %v2100_v44  ;;  %v2555_v44 = vsel %vm2511_vm5, %v2545_v13, %v2554_v33  ;;  %v2593_v61 = vshrl.u32 %v23214_v42, 16  ;;  %v2617_v13 = vor.u32 %v2616_v57, %v2613_v55  ;;  %v2631_v33 = vrot.slane %v2629_v21, 1 }
 0x2ff   : > { %v2635_v40 = vor.u32 %v2634_v34, %v2631_v33  ;;  %v2966_v34 = vrot.slane %v23192_v23, 2  ;;  %v2974_v23 = vrot.slane %v23225_v63, 2 }
 0x304   : > { %18837 = vmatmul.mubr.msk.bf16.gmra.mrb[24].mxu0 %vm1175_vm3, %v2102_v58  ;;  %v2584_v58 = vshrl.u32 %v23211_v41, 16  ;;  %v2978_v41 = vrot.slane %v23239_v17, 2  ;;  %v2986_v17 = vrot.slane %v23267_v48, 2 }
 0x305   : > { %18840 = vmatprep.mubr.msk.bf16.mxu0 %vm1175_vm3, %v2104_v60 }
 0x306   : > { %v2586_v3 = vrot.slane %v2584_v58, 1 }
 0x30c   : > { %18841 = vmatmul.mubr.msk.bf16.gmra.mrb[28].mxu0 %vm1175_vm3, %v2106_v10  ;;  %v2589_v10 = vrot.slane %v2587_v59, 2 }
 0x30d   : > { %18844 = vmatprep.mubr.msk.bf16.mxu0 %vm1175_vm3, %v2108_v12  ;;  %v2595_v12 = vrot.slane %v2593_v61, 1 }
 0x30e   : > { %v2590_v18 = vor.u32 %v2589_v10, %v2586_v3 }
 0x314   : > { %18845 = vmatmul.mubr.msk.bf16.gmra.mrb[32].mxu0 %vm1175_vm3, %v2107_v62  ;;  %v2596_v62 = vshll.u32 %v23214_v42, 16 }
 0x315   : > { %18850 = vmatprep.mubr.msk.bf16.mxu0 %vm1175_vm3, %v2528_v50  ;;  %v2607_v50 = vrot.slane %v2605_v8, 2 }
 0x316   : > { %v2598_v16 = vrot.slane %v2596_v62, 2  ;;  %v2656_v62 = vshrl.u32 %v23267_v48, 16 }
 0x317   : > { %v2608_v14 = vor.u32 %v2607_v50, %v2604_v46 }
 0x318   : > { %v2599_v54 = vor.u32 %v2598_v16, %v2595_v12  ;;  %v2658_v16 = vrot.slane %v2656_v62, 1 }
 0x319   : > { %v2618_v31 = vsel %vm2511_vm5, %v2608_v14, %v2617_v13 }
 0x31a   : > { %v2600_v51 = vsel %vm2511_vm5, %v2590_v18, %v2599_v54  ;;  %v2609_v28 = vsel %vm2511_vm5, %v2599_v54, %v2608_v14 }
 0x31c   : > { %18851 = vmatmul.mubr.msk.bf16.vlgmr.msra.gmra.mrb[0].mxu0 %vm1175_vm3, %v2537_v26  ;;  %v23253_v26 = vld [vmem:[%s22872_s23 + $0x78] sm:$0xff]  }
 0x31d   : > { %18854 = vmatprep.mubr.msk.bf16.mxu0 %vm1175_vm3, %v2546_v29  ;;  %18887 = vmatpush3.bf16.msra.mxu0 %v23112_v5  ;;  %v2577_v5 = vrot.slane %v2575_v38, 1  ;;  %v2622_v29 = vrot.slane %v2620_v19, 1  ;;  %v2638_v37 = vshrl.u32 %v23253_v26, 16  ;;  %v2641_v38 = vshll.u32 %v23253_v26, 16 }
 0x31e   : > { %18924 = vmatprep.subr.bf16.mxu0 %v23200_v32 }
 0x31f   : > { %v2581_v60 = vor.u32 %v2580_v52, %v2577_v5  ;;  %v2626_v36 = vor.u32 %v2625_v30, %v2622_v29  ;;  %v2640_v52 = vrot.slane %v2638_v37, 1  ;;  %v2959_v29 = vsel %vm2954_vm6, %v2956_v20, %v2958_v22 }
 0x320   : > { %v2972_v37 = vrot.slane %v23214_v42, 2  ;;  %v2980_v42 = vrot.slane %v23242_v25, 2  ;;  %v3262_v25 = vld [vmem:[%s22872_s23 + $0x10] sm:$0xc] }
 0x321   : > { %v2582_v11 = vsel %vm2511_vm5, %v2572_v53, %v2581_v60  ;;  %v2591_v43 = vsel %vm2511_vm5, %v2581_v60, %v2590_v18  ;;  %v2627_v5 = vsel %vm2511_vm5, %v2617_v13, %v2626_v36  ;;  %v2643_v53 = vrot.slane %v2641_v38, 2 }
 0x322   : > { %v2636_v58 = vsel %vm2511_vm5, %v2626_v36, %v2635_v40  ;;  %v2652_v60 = vrot.slane %v2650_v45, 2  ;;  %v2968_v36 = vrot.slane %v23195_v24, 2  ;;  %v2976_v24 = vrot.slane %v23228_v0, 2 }
 0x323   : > { %v2644_v61 = vor.u32 %v2643_v53, %v2640_v52  ;;  %v2981_v63 = vsel %vm2954_vm6, %v2978_v41, %v2980_v42  ;;  %v2982_v0 = vrot.slane %v23253_v26, 2  ;;  %v2984_v52 = vrot.slane %v23256_v27, 2  ;;  %v23353_v26 = vld [vmem:[%s22872_s23 + $0x18] sm:$0xff]  }
 0x324   : > { %18855 = vmatmul.mubr.msk.bf16.gmra.mrb[4].mxu0 %vm1175_vm3, %v2555_v44  ;;  %v2647_v44 = vshrl.u32 %v23256_v27, 16  ;;  %v2971_v38 = vsel %vm2954_vm6, %v2968_v36, %v2970_v39  ;;  %v2977_v45 = vsel %vm2954_vm6, %v2974_v23, %v2976_v24 }
 0x325   : > { %18858 = vmatprep.mubr.msk.bf16.mxu0 %vm1175_vm3, %v2564_v49  ;;  %v23270_v49 = vld [vmem:[%s22872_s23 + $0x90] sm:$0xff]   ;;  %v2645_v12 = vsel %vm2511_vm5, %v2635_v40, %v2644_v61  ;;  %v2973_v40 = vsel %vm2954_vm6, %v2970_v39, %v2972_v37  ;;  %v2983_v53 = vsel %vm2954_vm6, %v2980_v42, %v2982_v0  ;;  %v2987_v27 = vsel %vm2954_vm6, %v2984_v52, %v2986_v17 }
 0x326   : > { %v2649_v59 = vrot.slane %v2647_v44, 1  ;;  %v2665_v10 = vshrl.u32 %v23270_v49, 16  ;;  %v2975_v44 = vsel %vm2954_vm6, %v2972_v37, %v2974_v23  ;;  %v23443_v37 = vld [vmem:[%s22872_s23 + $0x80] sm:$0xff]  }
 0x328   : > { %v2653_v3 = vor.u32 %v2652_v60, %v2649_v59  ;;  %v2667_v8 = vrot.slane %v2665_v10, 1  ;;  %v23349_v59 = vld [vmem:[%s22872_s23 + $0x14] sm:$0xf]  ;;  %v2988_v60 = vrot.slane %v23270_v49, 2  ;;  %v23369_v10 = vld [vmem:[%s22872_s23 + $0x28] sm:$0xff]  }
 0x329   : > { %v23358_v62 = vcombine.low %v3262_v25, %v23349_v59 }
 0x32a   : > { %v2654_v7 = vsel %vm2511_vm5, %v2644_v61, %v2653_v3  ;;  %v2989_v61 = vsel %vm2954_vm6, %v2986_v17, %v2988_v60  ;;  %v3720_v17 = vshll.u32 %v23353_v26, 16 }
 0x32c   : > { %18859 = vmatmul.mubr.msk.bf16.gmra.mrb[8].mxu0 %vm1175_vm3, %v2573_v1  ;;  %v2659_v1 = vshll.u32 %v23267_v48, 16  ;;  %v2990_v48 = vrot.slane %v23284_v9, 2 }
 0x32d   : > { %18862 = vmatprep.mubr.msk.bf16.mxu0 %vm1175_vm3, %v2582_v11  ;;  %v2668_v11 = vshll.u32 %v23270_v49, 16  ;;  %v3395_v49 = vrot.slane %v23353_v26, 2 }
 0x32e   : > { %v2661_v18 = vrot.slane %v2659_v1, 2  ;;  %v3394_v1 = vrot.slane %v23358_v62, 2 }
 0x32f   : > { %v2670_v54 = vrot.slane %v2668_v11, 2  ;;  %v2991_v11 = vsel %vm2954_vm6, %v2988_v60, %v2990_v48 }
 0x330   : > { %v2662_v15 = vor.u32 %v2661_v18, %v2658_v16  ;;  %v4150_v18 = vld [vmem:[#allocation5 + $0x10] sm:$0x3] }
 0x331   : > { %v2671_v46 = vor.u32 %v2670_v54, %v2667_v8  ;;  %v23378_v8 = vld [vmem:[%s22872_s23 + $0x30] sm:$0xff]   ;;  %v23381_v54 = vld [vmem:[%s22872_s23 + $0x38] sm:$0xff]  }
 0x332   : > { %v2663_v50 = vsel %vm2511_vm5, %v2653_v3, %v2662_v15  ;;  %v23366_v3 = vld [vmem:[%s22872_s23 + $0x20] sm:$0xff]  }
 0x333   : > { %v2672_v55 = vsel %vm2511_vm5, %v2662_v15, %v2671_v46  ;;  %v3397_v16 = vrot.slane %v23366_v3, 2 }
 0x334   : > { %18863 = vmatmul.mubr.msk.bf16.gmra.mrb[12].mxu0 %vm1175_vm3, %v2591_v43  ;;  %v2948_v43 = vld [vmem:[%s22872_s23 + $0x8] sm:$0xc] }
 0x335   : > { %18866 = vmatprep.mubr.msk.bf16.mxu0 %vm1175_vm3, %v2600_v51  ;;  %v2674_v51 = vshll.u32 %v23284_v9, 16  ;;  %v16780_v57 = vcombine.low %v2948_v43, %v23149_v47  ;;  %v3703_v47 = vld [vmem:[#allocation5 + $0xe] sm:$0x3]  ;;  %v3398_v9 = vsel %vm2954_vm6, %v3395_v49, %v3397_v16  ;;  %v23386_v43 = vand.u32 %v4150_v18, %v22867_v2 }
 0x336   : > { %v23304_v56 = vand.u32 %v3703_v47, %v22867_v2 }
 0x337   : > { %v2676_v14 = vrot.slane %v2674_v51, 2  ;;  %v2955_v19 = vrot.slane %v16780_v57, 2  ;;  %v23395_v51 = vld [vmem:[%s22872_s23 + $0x40] sm:$0xff]  }
 0x339   : > { %v2677_v13 = vsel %vm2511_vm5, %v2671_v46, %v2676_v14  ;;  %v2957_v21 = vsel %vm2954_vm6, %v2955_v19, %v2956_v20  ;;  %v3401_v46 = vrot.slane %v23378_v8, 2  ;;  %v3405_v14 = vrot.slane %v23395_v51, 2  ;;  %v23407_v20 = vld [vmem:[%s22872_s23 + $0x50] sm:$0xff]  }
 0x33a   : > { %v3409_v47 = vrot.slane %v23407_v20, 2 }
 0x33c   : > { %18867 = vmatmul.mubr.msk.bf16.gmra.mrb[16].mxu0 %vm1175_vm3, %v2609_v28  ;;  %v2960_v28 = vrot.slane %v23168_v6, 2 }
 0x33d   : > { %18870 = vmatprep.mubr.msk.bf16.mxu0 %vm1175_vm3, %v2618_v31  ;;  %v2962_v31 = vrot.slane %v23179_v35, 2  ;;  %v2967_v35 = vsel %vm2954_vm6, %v2964_v4, %v2966_v34 }
 0x33e   : > { %v2961_v30 = vsel %vm2954_vm6, %v2958_v22, %v2960_v28 }
 0x33f   : > { %v2963_v6 = vsel %vm2954_vm6, %v2960_v28, %v2962_v31  ;;  %v2965_v33 = vsel %vm2954_vm6, %v2962_v31, %v2964_v4 }
 0x344   : > { %18871 = vmatmul.mubr.msk.bf16.gmra.mrb[20].mxu0 %vm1175_vm3, %v2627_v5  ;;  %v2979_v5 = vsel %vm2954_vm6, %v2976_v24, %v2978_v41  ;;  %v3421_v24 = vrot.slane %v23443_v37, 2  ;;  %v23458_v41 = vld [vmem:[%s22872_s23 + $0x98] sm:$0xff]  }
 0x345   : > { %18874 = vmatprep.mubr.msk.bf16.mxu0 %vm1175_vm3, %v2636_v58  ;;  %v2985_v58 = vsel %vm2954_vm6, %v2982_v0, %v2984_v52  ;;  %v3427_v0 = vrot.slane %v23458_v41, 2  ;;  %v3709_v52 = vshrl.u32 %v23358_v62, 16 }
 0x34c   : > { %18875 = vmatmul.mubr.msk.bf16.gmra.mrb[24].mxu0 %vm1175_vm3, %v2645_v12  ;;  %v3396_v12 = vsel %vm2954_vm6, %v3394_v1, %v3395_v49  ;;  %v3722_v49 = vrot.slane %v3720_v17, 3 }
 0x34d   : > { %18878 = vmatprep.mubr.msk.bf16.mxu0 %vm1175_vm3, %v2654_v7  ;;  %v3399_v7 = vrot.slane %v23369_v10, 2 }
 0x34f   : > { %v3400_v15 = vsel %vm2954_vm6, %v3397_v16, %v3399_v7  ;;  %v3402_v2 = vsel %vm2954_vm6, %v3399_v7, %v3401_v46  ;;  %v3735_v7 = vshrl.u32 %v23369_v10, 16 }
 0x354   : > { %18879 = vmatmul.mubr.msk.bf16.gmra.mrb[28].mxu0 %vm1175_vm3, %v2663_v50  ;;  %v3403_v50 = vrot.slane %v23381_v54, 2 }
 0x355   : > { %18882 = vmatprep.mubr.msk.bf16.mxu0 %vm1175_vm3, %v2672_v55  ;;  %v23398_v55 = vld [vmem:[%s22872_s23 + $0x48] sm:$0xff]  }
 0x356   : > { %v3404_v57 = vsel %vm2954_vm6, %v3401_v46, %v3403_v50  ;;  %v3407_v19 = vrot.slane %v23398_v55, 2 }
 0x358   : > { %v3408_v22 = vsel %vm2954_vm6, %v3405_v14, %v3407_v19 }
 0x35c   : > { %18883 = vmatmul.mubr.msk.bf16.gmra.mrb[32].mxu0 %vm1175_vm3, %v2677_v13  ;;  %v23410_v13 = vld [vmem:[%s22872_s23 + $0x58] sm:$0xff]  }
 0x35d   : > { %18888 = vmatprep.mubr.msk.bf16.mxu0 %vm1175_vm3, %v2957_v21  ;;  %v3406_v21 = vsel %vm2954_vm6, %v3403_v50, %v3405_v14  ;;  %v3411_v28 = vrot.slane %v23410_v13, 2 }
 0x35f   : > { %v3412_v31 = vsel %vm2954_vm6, %v3409_v47, %v3411_v28 }
 0x364   : > { %18889 = vmatmul.mubr.msk.bf16.vlgmr.msra.gmra.mrb[0].mxu0 %vm1175_vm3, %v2959_v29  ;;  %v23419_v29 = vld [vmem:[%s22872_s23 + $0x60] sm:$0xff]  }
 0x365   : > { %18892 = vmatprep.mubr.msk.bf16.mxu0 %vm1175_vm3, %v2961_v30  ;;  %18925 = vmatpush3.bf16.msra.mxu0 %v23200_v32  ;;  %v2969_v32 = vsel %vm2954_vm6, %v2966_v34, %v2968_v36  ;;  %v23422_v30 = vld [vmem:[%s22872_s23 + $0x68] sm:$0xff]   ;;  %v3413_v4 = vrot.slane %v23419_v29, 2  ;;  %v23434_v34 = vld [vmem:[%s22872_s23 + $0x78] sm:$0xff]  }
 0x366   : > { %18962 = vmatprep.subr.bf16.mxu0 %v23304_v56  ;;  %v3419_v39 = vrot.slane %v23434_v34, 2 }
 0x367   : > { %v3414_v36 = vsel %vm2954_vm6, %v3411_v28, %v3413_v4  ;;  %v3753_v28 = vshrl.u32 %v23381_v54, 16 }
 0x368   : > { %v3422_v42 = vsel %vm2954_vm6, %v3419_v39, %v3421_v24 }
 0x36c   : > { %18893 = vmatmul.mubr.msk.bf16.gmra.mrb[4].mxu0 %vm1175_vm3, %v2963_v6  ;;  %v3415_v6 = vrot.slane %v23422_v30, 2 }
 0x36d   : > { %18896 = vmatprep.mubr.msk.bf16.mxu0 %vm1175_vm3, %v2965_v33  ;;  %v23431_v33 = vld [vmem:[%s22872_s23 + $0x70] sm:$0xff]  }
 0x374   : > { %18897 = vmatmul.mubr.msk.bf16.gmra.mrb[8].mxu0 %vm1175_vm3, %v2967_v35  ;;  %v3416_v35 = vsel %vm2954_vm6, %v3413_v4, %v3415_v6 }
 0x375   : > { %18900 = vmatprep.mubr.msk.bf16.mxu0 %vm1175_vm3, %v2969_v32  ;;  %v3417_v32 = vrot.slane %v23431_v33, 2 }
 0x377   : > { %v3420_v23 = vsel %vm2954_vm6, %v3417_v32, %v3419_v39 }
 0x37c   : > { %18901 = vmatmul.mubr.msk.bf16.gmra.mrb[12].mxu0 %vm1175_vm3, %v2971_v38  ;;  %v23446_v38 = vld [vmem:[%s22872_s23 + $0x88] sm:$0xff]  }
 0x37d   : > { %18904 = vmatprep.mubr.msk.bf16.mxu0 %vm1175_vm3, %v2973_v40  ;;  %v3418_v40 = vsel %vm2954_vm6, %v3415_v6, %v3417_v32 }
 0x384   : > { %18905 = vmatmul.mubr.msk.bf16.gmra.mrb[16].mxu0 %vm1175_vm3, %v2975_v44  ;;  %v3423_v44 = vrot.slane %v23446_v38, 2 }
 0x385   : > { %18908 = vmatprep.mubr.msk.bf16.mxu0 %vm1175_vm3, %v2977_v45  ;;  %v23455_v45 = vld [vmem:[%s22872_s23 + $0x90] sm:$0xff]  }
 0x38c   : > { %18909 = vmatmul.mubr.msk.bf16.gmra.mrb[20].mxu0 %vm1175_vm3, %v2979_v5  ;;  %v3424_v5 = vsel %vm2954_vm6, %v3421_v24, %v3423_v44 }
 0x38d   : > { %18912 = vmatprep.mubr.msk.bf16.mxu0 %vm1175_vm3, %v2981_v63  ;;  %v3425_v63 = vrot.slane %v23455_v45, 2 }
 0x38f   : > { %v3426_v25 = vsel %vm2954_vm6, %v3423_v44, %v3425_v63  ;;  %v3428_v60 = vsel %vm2954_vm6, %v3425_v63, %v3427_v0  ;;  %v3771_v44 = vshrl.u32 %v23398_v55, 16 }
 0x394   : > { %18913 = vmatmul.mubr.msk.bf16.gmra.mrb[24].mxu0 %vm1175_vm3, %v2983_v53  ;;  %v3712_v53 = vshll.u32 %v23358_v62, 16  ;;  %v3726_v62 = vshrl.u32 %v23366_v3, 16 }
 0x395   : > { %18916 = vmatprep.mubr.msk.bf16.mxu0 %vm1175_vm3, %v2985_v58  ;;  %v3717_v58 = vshrl.u32 %v23353_v26, 16 }
 0x396   : > { %v3714_v48 = vrot.slane %v3712_v53, 3  ;;  %v3728_v46 = vrot.slane %v3726_v62, 2  ;;  %v3773_v53 = vrot.slane %v3771_v44, 2  ;;  %v3837_v44 = vshll.u32 %v23443_v37, 16 }
 0x397   : > { %v3719_v1 = vrot.slane %v3717_v58, 2 }
 0x399   : > { %v3723_v18 = vor.u32 %v3722_v49, %v3719_v1 }
 0x39c   : > { %18917 = vmatmul.mubr.msk.bf16.gmra.mrb[28].mxu0 %vm1175_vm3, %v2987_v27  ;;  %v20083_v27 = vld [vmem:[%s22872_s23 + $0xa0] ss:$0 sps:$4 sm:$0x11]  }
 0x39d   : > { %18920 = vmatprep.mubr.msk.bf16.mxu0 %vm1175_vm3, %v2989_v61  ;;  %v3711_v61 = vrot.slane %v3709_v52, 2 }
 0x39f   : > { %v3715_v16 = vor.u32 %v3714_v48, %v3711_v61  ;;  %v3792_v61 = vshll.u32 %v23410_v13, 16 }
 0x3a4   : > { %18921 = vmatmul.mubr.msk.bf16.gmra.mrb[32].mxu0 %vm1175_vm3, %v2991_v11  ;;  %v3429_v11 = vrot.slane %v20083_v27, 2  ;;  %v3789_v27 = vshrl.u32 %v23410_v13, 16 }
 0x3a5   : > { %18926 = vmatprep.mubr.msk.bf16.mxu0 %vm1175_vm3, %v3396_v12  ;;  %v3729_v12 = vshll.u32 %v23366_v3, 16 }
 0x3a6   : > { %v3791_v62 = vrot.slane %v3789_v27, 2  ;;  %v3855_v27 = vshll.u32 %v23455_v45, 16 }
 0x3a7   : > { %v3731_v50 = vrot.slane %v3729_v12, 3  ;;  %v3794_v12 = vrot.slane %v3792_v61, 3 }
 0x3ac   : > { %18927 = vmatmul.mubr.msk.bf16.vlgmr.msra.gmra.mrb[0].mxu0 %vm1175_vm3, %v3398_v9  ;;  %v3738_v9 = vshll.u32 %v23369_v10, 16 }
 0x3ad   : > { %18930 = vmatprep.mubr.msk.bf16.mxu0 %vm1175_vm3, %v3400_v15  ;;  %18963 = vmatpush3.bf16.msra.mxu0 %v23304_v56  ;;  %v3410_v56 = vsel %vm2954_vm6, %v3407_v19, %v3409_v47  ;;  %v3430_v15 = vsel %vm2954_vm6, %v3427_v0, %v3429_v11  ;;  %v3732_v19 = vor.u32 %v3731_v50, %v3728_v46  ;;  %v3810_v46 = vshll.u32 %v23422_v30, 16 }
 0x3ae   : > { %19000 = vmatprep.subr.bf16.mxu0 %v23386_v43  ;;  %v3740_v14 = vrot.slane %v3738_v9, 3  ;;  %v3795_v9 = vor.u32 %v3794_v12, %v3791_v62  ;;  %v3857_v62 = vrot.slane %v3855_v27, 3  ;;  %v23538_v12 = vld [vmem:[%s22872_s23 + $0xa0] ss:$0 sps:$4 sm:$0x33]  }
 0x3b4   : > { %18931 = vmatmul.mubr.msk.bf16.gmra.mrb[4].mxu0 %vm1175_vm3, %v3402_v2  ;;  %v3724_v2 = vsel %vm3707_vm7, %v3715_v16, %v3723_v18 }
 0x3b5   : > { %18934 = vmatprep.mubr.msk.bf16.mxu0 %vm1175_vm3, %v3404_v57  ;;  %v3737_v57 = vrot.slane %v3735_v7, 2  ;;  %v3801_v7 = vshll.u32 %v23419_v29, 16 }
 0x3b7   : > { %v3741_v47 = vor.u32 %v3740_v14, %v3737_v57  ;;  %v3803_v57 = vrot.slane %v3801_v7, 3 }
 0x3bc   : > { %18935 = vmatmul.mubr.msk.bf16.gmra.mrb[8].mxu0 %vm1175_vm3, %v3406_v21  ;;  %v3744_v21 = vshrl.u32 %v23378_v8, 16 }
 0x3bd   : > { %18938 = vmatprep.mubr.msk.bf16.mxu0 %vm1175_vm3, %v3408_v22  ;;  %v3747_v22 = vshll.u32 %v23378_v8, 16 }
 0x3be   : > { %v3746_v4 = vrot.slane %v3744_v21, 2  ;;  %v3812_v21 = vrot.slane %v3810_v46, 3  ;;  %v3873_v46 = vshll.u32 %v23538_v12, 16 }
 0x3bf   : > { %v3749_v6 = vrot.slane %v3747_v22, 3 }
 0x3c1   : > { %v3750_v39 = vor.u32 %v3749_v6, %v3746_v4  ;;  %v3828_v4 = vshll.u32 %v23434_v34, 16 }
 0x3c4   : > { %18939 = vmatmul.mubr.msk.bf16.gmra.mrb[12].mxu0 %vm1175_vm3, %v3410_v56  ;;  %v3756_v56 = vshll.u32 %v23381_v54, 16 }
 0x3c5   : > { %18942 = vmatprep.mubr.msk.bf16.mxu0 %vm1175_vm3, %v3412_v31  ;;  %v3733_v31 = vsel %vm3707_vm7, %v3723_v18, %v3732_v19  ;;  %v3798_v18 = vshrl.u32 %v23419_v29, 16 }
 0x3c6   : > { %v3758_v32 = vrot.slane %v3756_v56, 3 }
 0x3cc   : > { %18943 = vmatmul.mubr.msk.bf16.gmra.mrb[16].mxu0 %vm1175_vm3, %v3414_v36  ;;  %v3742_v36 = vsel %vm3707_vm7, %v3732_v19, %v3741_v47 }
 0x3cd   : > { %18946 = vmatprep.mubr.msk.bf16.mxu0 %vm1175_vm3, %v3416_v35  ;;  %v3755_v35 = vrot.slane %v3753_v28, 2  ;;  %v3819_v28 = vshll.u32 %v23431_v33, 16 }
 0x3cf   : > { %v3759_v24 = vor.u32 %v3758_v32, %v3755_v35  ;;  %v3821_v35 = vrot.slane %v3819_v28, 3 }
 0x3d1   : > { %v3760_v52 = vsel %vm3707_vm7, %v3750_v39, %v3759_v24 }
 0x3d4   : > { %18947 = vmatmul.mubr.msk.bf16.gmra.mrb[20].mxu0 %vm1175_vm3, %v3418_v40  ;;  %v3762_v40 = vshrl.u32 %v23395_v51, 16 }
 0x3d5   : > { %18950 = vmatprep.mubr.msk.bf16.mxu0 %vm1175_vm3, %v3420_v23  ;;  %v3765_v23 = vshll.u32 %v23395_v51, 16 }
 0x3d6   : > { %v3764_v63 = vrot.slane %v3762_v40, 2  ;;  %v3830_v40 = vrot.slane %v3828_v4, 3 }
 0x3d7   : > { %v3767_v0 = vrot.slane %v3765_v23, 3 }
 0x3d9   : > { %v3768_v17 = vor.u32 %v3767_v0, %v3764_v63  ;;  %v3846_v63 = vshll.u32 %v23446_v38, 16 }
 0x3db   : > { %v3769_v48 = vsel %vm3707_vm7, %v3759_v24, %v3768_v17  ;;  %v3834_v24 = vshrl.u32 %v23443_v37, 16 }
 0x3dc   : > { %18951 = vmatmul.mubr.msk.bf16.gmra.mrb[24].mxu0 %vm1175_vm3, %v3422_v42  ;;  %v3774_v42 = vshll.u32 %v23398_v55, 16 }
 0x3dd   : > { %18954 = vmatprep.mubr.msk.bf16.mxu0 %vm1175_vm3, %v3424_v5  ;;  %v3751_v5 = vsel %vm3707_vm7, %v3741_v47, %v3750_v39  ;;  %v3816_v47 = vshrl.u32 %v23431_v33, 16 }
 0x3de   : > { %v3776_v58 = vrot.slane %v3774_v42, 3 }
 0x3e4   : > { %18955 = vmatmul.mubr.msk.bf16.gmra.mrb[28].mxu0 %vm1175_vm3, %v3426_v25  ;;  %v3783_v25 = vshll.u32 %v23407_v20, 16 }
 0x3e5   : > { %18958 = vmatprep.mubr.msk.bf16.mxu0 %vm1175_vm3, %v3428_v60  ;;  %v3777_v60 = vor.u32 %v3776_v58, %v3773_v53  ;;  %v3839_v53 = vrot.slane %v3837_v44, 3 }
 0x3e6   : > { %v3785_v49 = vrot.slane %v3783_v25, 3 }
 0x3e7   : > { %v3778_v11 = vsel %vm3707_vm7, %v3768_v17, %v3777_v60 }
 0x3ec   : > { %18959 = vmatmul.mubr.msk.bf16.gmra.mrb[32].mxu0 %vm1175_vm3, %v3430_v15  ;;  %v3807_v15 = vshrl.u32 %v23422_v30, 16 }
 0x3ed   : > { %18964 = vmatprep.mubr.msk.bf16.mxu0 %vm1175_vm3, %v3724_v2  ;;  %v3800_v2 = vrot.slane %v3798_v18, 2 }
 0x3ee   : > { %v3809_v19 = vrot.slane %v3807_v15, 2  ;;  %v3870_v15 = vshrl.u32 %v23538_v12, 16 }
 0x3ef   : > { %v3804_v22 = vor.u32 %v3803_v57, %v3800_v2  ;;  %v4148_v2 = vld [vmem:[%s22872_s23 + $0x10] sm:$0x8]  ;;  %s24941_s23 = sld [smem:[#allocation63_spill]] }
 0x3f0   : > { %v3813_v56 = vor.u32 %v3812_v21, %v3809_v19  ;;  %v3875_v19 = vrot.slane %v3873_v46, 3 }
 0x3f1   : > { %v3805_v6 = vsel %vm3707_vm7, %v3795_v9, %v3804_v22 }
 0x3f2   : > { %v3814_v32 = vsel %vm3707_vm7, %v3804_v22, %v3813_v56  ;;  %v16855_v22 = vcombine.low %v4148_v2, %v23349_v59  ;;  %v4160_v59 = vrot.slane %v23369_v10, 3  ;;  %v4168_v10 = vrot.slane %v23398_v55, 3 }
 0x3f3   : > { %v4176_v55 = vrot.slane %v23422_v30, 3  ;;  %v4184_v30 = vrot.slane %v23446_v38, 3 }
 0x3f4   : > { %18965 = vmatmul.mubr.msk.bf16.vlgmr.msra.gmra.mrb[0].mxu0 %vm1175_vm3, %v3733_v31  ;;  %v3825_v31 = vshrl.u32 %v23434_v34, 16  ;;  %v4155_v28 = vrot.slane %v16855_v22, 3 }
 0x3f5   : > { %18968 = vmatprep.mubr.msk.bf16.mxu0 %vm1175_vm3, %v3742_v36  ;;  %19001 = vmatpush3.bf16.msra.mxu0 %v23386_v43  ;;  %v3780_v43 = vshrl.u32 %v23407_v20, 16  ;;  %v3818_v36 = vrot.slane %v3816_v47, 2 }
 0x3f6   : > { %v3827_v39 = vrot.slane %v3825_v31, 2 }
 0x3f7   : > { %v3782_v1 = vrot.slane %v3780_v43, 2  ;;  %v3822_v23 = vor.u32 %v3821_v35, %v3818_v36  ;;  %v3848_v43 = vrot.slane %v3846_v63, 3 }
 0x3f8   : > { %v3831_v42 = vor.u32 %v3830_v40, %v3827_v39 }
 0x3f9   : > { %v3786_v16 = vor.u32 %v3785_v49, %v3782_v1  ;;  %v3823_v0 = vsel %vm3707_vm7, %v3813_v56, %v3822_v23  ;;  %v3864_v1 = vshll.u32 %v23458_v41, 16  ;;  %v4156_v56 = vrot.slane %v23353_v26, 3 }
 0x3fa   : > { %v3832_v58 = vsel %vm3707_vm7, %v3822_v23, %v3831_v42  ;;  %v4162_v26 = vrot.slane %v23378_v8, 3  ;;  %v4170_v8 = vrot.slane %v23407_v20, 3  ;;  %v4178_v20 = vrot.slane %v23431_v33, 3 }
 0x3fb   : > { %v3787_v50 = vsel %vm3707_vm7, %v3777_v60, %v3786_v16  ;;  %v3796_v14 = vsel %vm3707_vm7, %v3786_v16, %v3795_v9  ;;  %v3852_v60 = vshrl.u32 %v23455_v45, 16  ;;  %v3866_v7 = vrot.slane %v3864_v1, 3 }
 0x3fc   : > { %18969 = vmatmul.mubr.msk.bf16.gmra.mrb[4].mxu0 %vm1175_vm3, %v3751_v5  ;;  %v3843_v5 = vshrl.u32 %v23446_v38, 16  ;;  %v4157_v4 = vsel %vm4154_vm8, %v4155_v28, %v4156_v56  ;;  %v4163_v39 = vsel %vm4154_vm8, %v4160_v59, %v4162_v26  ;;  %v4171_v44 = vsel %vm4154_vm8, %v4168_v10, %v4170_v8 }
 0x3fd   : > { %18972 = vmatprep.mubr.msk.bf16.mxu0 %vm1175_vm3, %v3760_v52  ;;  %v3836_v52 = vrot.slane %v3834_v24, 2  ;;  %v4186_v33 = vrot.slane %v23455_v45, 3 }
 0x3fe   : > { %v3845_v17 = vrot.slane %v3843_v5, 2 }
 0x3ff   : > { %v3840_v25 = vor.u32 %v3839_v53, %v3836_v52 }
 0x400   : > { %v3849_v61 = vor.u32 %v3848_v43, %v3845_v17  ;;  %v4187_v17 = vsel %vm4154_vm8, %v4184_v30, %v4186_v33 }
 0x401   : > { %v3841_v49 = vsel %vm3707_vm7, %v3831_v42, %v3840_v25 }
 0x402   : > { %v3850_v16 = vsel %vm3707_vm7, %v3840_v25, %v3849_v61  ;;  %v20088_v25 = vld [vmem:[#allocation10 + $0x4] ss:$12 sps:$4 sm:$0xff]  }
 0x403   : > { %4684 = vmatprep.mubr.bf16.mxu1 %v20088_v25 }
 0x404   : > { %18973 = vmatmul.mubr.msk.bf16.gmra.mrb[8].mxu0 %vm1175_vm3, %v3769_v48  ;;  %v3861_v48 = vshrl.u32 %v23458_v41, 16 }
 0x405   : > { %18976 = vmatprep.mubr.msk.bf16.mxu0 %vm1175_vm3, %v3778_v11  ;;  %v3854_v11 = vrot.slane %v3852_v60, 2  ;;  %v23607_v60 = vld [vmem:[#allocation8] ss:$0 sm:$0xff] }
 0x406   : > { %v3863_v18 = vrot.slane %v3861_v48, 2 }
 0x407   : > { %v3858_v9 = vor.u32 %v3857_v62, %v3854_v11 }
 0x409   : > { %v3859_v57 = vsel %vm3707_vm7, %v3849_v61, %v3858_v9 }
 0x40c   : > { %18977 = vmatmul.mubr.msk.bf16.gmra.mrb[12].mxu0 %vm1175_vm3, %v3787_v50  ;;  %v3867_v50 = vor.u32 %v3866_v7, %v3863_v18 }
 0x40d   : > { %18980 = vmatprep.mubr.msk.bf16.mxu0 %vm1175_vm3, %v3796_v14  ;;  %v3872_v14 = vrot.slane %v3870_v15, 2 }
 0x40e   : > { %v3868_v21 = vsel %vm3707_vm7, %v3858_v9, %v3867_v50 }
 0x40f   : > { %v3876_v47 = vor.u32 %v3875_v19, %v3872_v14 }
 0x411   : > { %v3877_v31 = vsel %vm3707_vm7, %v3867_v50, %v3876_v47 }
 0x414   : > { %18981 = vmatmul.mubr.msk.bf16.gmra.mrb[16].mxu0 %vm1175_vm3, %v3805_v6  ;;  %v4158_v6 = vrot.slane %v23366_v3, 3  ;;  %v4166_v3 = vrot.slane %v23395_v51, 3  ;;  %v4174_v51 = vrot.slane %v23419_v29, 3  ;;  %v4182_v29 = vrot.slane %v23443_v37, 3 }
 0x415   : > { %18984 = vmatprep.mubr.msk.bf16.mxu0 %vm1175_vm3, %v3814_v32  ;;  %v4164_v32 = vrot.slane %v23381_v54, 3  ;;  %v4172_v54 = vrot.slane %v23410_v13, 3  ;;  %v4180_v13 = vrot.slane %v23434_v34, 3  ;;  %v4188_v34 = vrot.slane %v23458_v41, 3 }
 0x416   : > { %v4159_v36 = vsel %vm4154_vm8, %v4156_v56, %v4158_v6  ;;  %v4161_v35 = vsel %vm4154_vm8, %v4158_v6, %v4160_v59  ;;  %v4169_v24 = vsel %vm4154_vm8, %v4166_v3, %v4168_v10  ;;  %v4177_v63 = vsel %vm4154_vm8, %v4174_v51, %v4176_v55 }
 0x417   : > { %v4165_v40 = vsel %vm4154_vm8, %v4162_v26, %v4164_v32  ;;  %v4167_v23 = vsel %vm4154_vm8, %v4164_v32, %v4166_v3  ;;  %v4173_v42 = vsel %vm4154_vm8, %v4170_v8, %v4172_v54  ;;  %v4175_v5 = vsel %vm4154_vm8, %v4172_v54, %v4174_v51 }
 0x418   : > { %v4181_v52 = vsel %vm4154_vm8, %v4178_v20, %v4180_v13  ;;  %v4183_v53 = vsel %vm4154_vm8, %v4180_v13, %v4182_v29  ;;  %v4189_v43 = vsel %vm4154_vm8, %v4186_v33, %v4188_v34  ;;  %v4190_v37 = vrot.slane %v23538_v12, 3 }
 0x41a   : > { %v4191_v38 = vsel %vm4154_vm8, %v4188_v34, %v4190_v37 }
 0x41c   : > { %18985 = vmatmul.mubr.msk.bf16.gmra.mrb[20].mxu0 %vm1175_vm3, %v3823_v0  ;;  %v4179_v0 = vsel %vm4154_vm8, %v4176_v55, %v4178_v20 }
 0x41d   : > { %18988 = vmatprep.mubr.msk.bf16.mxu0 %vm1175_vm3, %v3832_v58  ;;  %v4185_v58 = vsel %vm4154_vm8, %v4182_v29, %v4184_v30 }
 0x424   : > { %18989 = vmatmul.mubr.msk.bf16.gmra.mrb[24].mxu0 %vm1175_vm3, %v3841_v49 }
 0x425   : > { %18992 = vmatprep.mubr.msk.bf16.mxu0 %vm1175_vm3, %v3850_v16 }
 0x42c   : > { %18993 = vmatmul.mubr.msk.bf16.gmra.mrb[28].mxu0 %vm1175_vm3, %v3859_v57 }
 0x42d   : > { %18996 = vmatprep.mubr.msk.bf16.mxu0 %vm1175_vm3, %v3868_v21 }
 0x434   : > { %18997 = vmatmul.mubr.msk.bf16.gmra.mrb[32].mxu0 %vm1175_vm3, %v3877_v31 }
 0x435   : > { %19002 = vmatprep.mubr.msk.bf16.mxu0 %vm1175_vm3, %v4157_v4 }
 0x43c   : > { %19003 = vmatmul.mubr.msk.bf16.vlgmr.msra.gmra.mrb[0].mxu0 %vm1175_vm3, %v4159_v36 }
 0x43d   : > { %19006 = vmatprep.mubr.msk.bf16.mxu0 %vm1175_vm3, %v4161_v35 }
 0x444   : > { %19007 = vmatmul.mubr.msk.bf16.gmra.mrb[4].mxu0 %vm1175_vm3, %v4163_v39 }
 0x445   : > { %19010 = vmatprep.mubr.msk.bf16.mxu0 %vm1175_vm3, %v4165_v40 }
 0x44c   : > { %19011 = vmatmul.mubr.msk.bf16.gmra.mrb[8].mxu0 %vm1175_vm3, %v4167_v23 }
 0x44d   : > { %19014 = vmatprep.mubr.msk.bf16.mxu0 %vm1175_vm3, %v4169_v24 }
 0x454   : > { %19015 = vmatmul.mubr.msk.bf16.gmra.mrb[12].mxu0 %vm1175_vm3, %v4171_v44 }
 0x455   : > { %19018 = vmatprep.mubr.msk.bf16.mxu0 %vm1175_vm3, %v4173_v42 }
 0x45c   : > { %19019 = vmatmul.mubr.msk.bf16.gmra.mrb[16].mxu0 %vm1175_vm3, %v4175_v5 }
 0x45d   : > { %19022 = vmatprep.mubr.msk.bf16.mxu0 %vm1175_vm3, %v4177_v63 }
 0x464   : > { %19023 = vmatmul.mubr.msk.bf16.gmra.mrb[20].mxu0 %vm1175_vm3, %v4179_v0 }
 0x465   : > { %19026 = vmatprep.mubr.msk.bf16.mxu0 %vm1175_vm3, %v4181_v52 }
 0x46c   : > { %19027 = vmatmul.mubr.msk.bf16.gmra.mrb[24].mxu0 %vm1175_vm3, %v4183_v53 }
 0x46d   : > { %19030 = vmatprep.mubr.msk.bf16.mxu0 %vm1175_vm3, %v4185_v58 }
 0x474   : > { %19031 = vmatmul.mubr.msk.bf16.gmra.mrb[28].mxu0 %vm1175_vm3, %v4187_v17 }
 0x475   : > { %19034 = vmatprep.mubr.msk.bf16.mxu0 %vm1175_vm3, %v4189_v43 }
 0x47c   : > { %19035 = vmatmul.mubr.msk.bf16.gmra.mrb[32].mxu0 %vm1175_vm3, %v4191_v38  ;;  %vm9108_vm3 = vcmask 179200  }
 0x50f   : > { %v19004_v45 = vpop.f32.mrb[0].mxu0 }
 0x510   : > { %v4471_v41 = vadd.f32 %v19004_v45, %v23607_v60  ;;  %v4283_v27 = vpop.f32.mrb[1].mxu0 }
 0x511   : > { %v4469_v61 = vadd.f32 %v23607_v60, %v4283_v27  ;;  %v19005_v48 = vpop.f32.mrb[2].mxu0 }
 0x512   : > { %v4472_v1 = vadd.f32 %v19005_v48, %v23607_v60  ;;  %v4286_v49 = vpop.f32.mrb[3].mxu0  ;;  %v4507_v62 = vmax.f32 %v4471_v41, 0.0 }
 0x513   : > { %v4470_v11 = vadd.f32 %v23607_v60, %v4286_v49  ;;  %v4505_v16 = vmax.f32 %v4469_v61, 0.0 }
 0x514   : > { %v4508_v12 = vmax.f32 %v4472_v1, 0.0 }
 0x515   : > { %v4506_v18 = vmax.f32 %v4470_v11, 0.0 }
 0x516   : > { %v23613_v7 = vpack.c.bf16 %v4508_v12, %v4507_v62 }
 0x517   : > { %v23615_v9 = vpack.c.bf16 %v4506_v18, %v4505_v16  ;;  %v19008_v15 = vpop.f32.mrb[4].mxu0 }
 0x518   : > { %v4475_v46 = vadd.f32 %v19008_v15, %v23607_v60  ;;  %v4299_v50 = vpop.f32.mrb[5].mxu0 }
 0x519   : > { %v4473_v2 = vadd.f32 %v23607_v60, %v4299_v50  ;;  %v19009_v57 = vpop.f32.mrb[6].mxu0 }
 0x51a   : > { %v4476_v14 = vadd.f32 %v19009_v57, %v23607_v60  ;;  %v4302_v19 = vpop.f32.mrb[7].mxu0  ;;  %v4511_v22 = vmax.f32 %v4475_v46, 0.0 }
 0x51b   : > { %v4474_v21 = vadd.f32 %v23607_v60, %v4302_v19  ;;  %v4509_v28 = vmax.f32 %v4473_v2, 0.0 }
 0x51c   : > { %v4512_v47 = vmax.f32 %v4476_v14, 0.0 }
 0x51d   : > { %v4510_v56 = vmax.f32 %v4474_v21, 0.0 }
 0x51e   : > { %v23621_v31 = vpack.c.bf16 %v4512_v47, %v4511_v22 }
 0x51f   : > { %v23623_v4 = vpack.c.bf16 %v4510_v56, %v4509_v28  ;;  %v19012_v6 = vpop.f32.mrb[8].mxu0 }
 0x520   : > { %v4479_v59 = vadd.f32 %v19012_v6, %v23607_v60  ;;  %v4315_v36 = vpop.f32.mrb[9].mxu0 }
 0x521   : > { %v4477_v35 = vadd.f32 %v23607_v60, %v4315_v36  ;;  %v19013_v26 = vpop.f32.mrb[10].mxu0 }
 0x522   : > { %v4480_v32 = vadd.f32 %v19013_v26, %v23607_v60  ;;  %v4318_v39 = vpop.f32.mrb[11].mxu0  ;;  %v4515_v3 = vmax.f32 %v4479_v59, 0.0 }
 0x523   : > { %v4478_v40 = vadd.f32 %v23607_v60, %v4318_v39  ;;  %v4513_v23 = vmax.f32 %v4477_v35, 0.0 }
 0x524   : > { %v4516_v10 = vmax.f32 %v4480_v32, 0.0 }
 0x525   : > { %v4514_v24 = vmax.f32 %v4478_v40, 0.0 }
 0x526   : > { %v23629_v8 = vpack.c.bf16 %v4516_v10, %v4515_v3 }
 0x527   : > { %v23631_v54 = vpack.c.bf16 %v4514_v24, %v4513_v23  ;;  %v19016_v44 = vpop.f32.mrb[12].mxu0 }
 0x528   : > { %v4483_v42 = vadd.f32 %v19016_v44, %v23607_v60  ;;  %v4331_v51 = vpop.f32.mrb[13].mxu0 }
 0x529   : > { %v4481_v55 = vadd.f32 %v23607_v60, %v4331_v51  ;;  %v19017_v5 = vpop.f32.mrb[14].mxu0 }
 0x52a   : > { %v4484_v63 = vadd.f32 %v19017_v5, %v23607_v60  ;;  %v4334_v20 = vpop.f32.mrb[15].mxu0  ;;  %v4519_v0 = vmax.f32 %v4483_v42, 0.0 }
 0x52b   : > { %v4482_v13 = vadd.f32 %v23607_v60, %v4334_v20  ;;  %v4517_v29 = vmax.f32 %v4481_v55, 0.0 }
 0x52c   : > { %v4520_v52 = vmax.f32 %v4484_v63, 0.0 }
 0x52d   : > { %v4518_v30 = vmax.f32 %v4482_v13, 0.0 }
 0x52e   : > { %v23637_v53 = vpack.c.bf16 %v4520_v52, %v4519_v0 }
 0x52f   : > { %v23639_v58 = vpack.c.bf16 %v4518_v30, %v4517_v29  ;;  %v19020_v33 = vpop.f32.mrb[16].mxu0 }
 0x530   : > { %v4487_v34 = vadd.f32 %v19020_v33, %v23607_v60  ;;  %v4347_v17 = vpop.f32.mrb[17].mxu0 }
 0x531   : > { %v4485_v43 = vadd.f32 %v23607_v60, %v4347_v17  ;;  %v19021_v37 = vpop.f32.mrb[18].mxu0 }
 0x532   : > { %v4488_v38 = vadd.f32 %v19021_v37, %v23607_v60  ;;  %v4350_v25 = vpop.f32.mrb[19].mxu0  ;;  %v4523_v41 = vmax.f32 %v4487_v34, 0.0 }
 0x533   : > { %v4486_v45 = vadd.f32 %v23607_v60, %v4350_v25  ;;  %v4521_v61 = vmax.f32 %v4485_v43, 0.0 }
 0x534   : > { %v4524_v27 = vmax.f32 %v4488_v38, 0.0 }
 0x535   : > { %v4522_v48 = vmax.f32 %v4486_v45, 0.0 }
 0x536   : > { %v23645_v1 = vpack.c.bf16 %v4524_v27, %v4523_v41 }
 0x537   : > { %v23647_v49 = vpack.c.bf16 %v4522_v48, %v4521_v61  ;;  %v19024_v11 = vpop.f32.mrb[20].mxu0 }
 0x538   : > { %v4491_v62 = vadd.f32 %v19024_v11, %v23607_v60  ;;  %v4363_v12 = vpop.f32.mrb[21].mxu0 }
 0x539   : > { %v4489_v16 = vadd.f32 %v23607_v60, %v4363_v12  ;;  %v19025_v18 = vpop.f32.mrb[22].mxu0  ;;  %18348 = vmatprep.subr.bf16.mxu1 %v23647_v49 }
 0x53a   : > { %v4492_v15 = vadd.f32 %v19025_v18, %v23607_v60  ;;  %v4366_v46 = vpop.f32.mrb[23].mxu0  ;;  %18349 = vmatpush3.bf16.msra.mxu1 %v23615_v9  ;;  %v4527_v2 = vmax.f32 %v4491_v62, 0.0  ;;  %v20086_v62 = vld [vmem:[#allocation10] ss:$12 sps:$4 sm:$0xff]  }
 0x53b   : > { %v4490_v50 = vadd.f32 %v23607_v60, %v4366_v46  ;;  %18350 = vmatprep.subr.bf16.mxu1 %v23645_v1  ;;  %v4525_v14 = vmax.f32 %v4489_v16, 0.0  ;;  %v20089_v16 = vld [vmem:[#allocation10 + $0x1c] ss:$12 sps:$4 sm:$0xff]   ;;  %v20092_v46 = vld [vmem:[#allocation10 + $0x34] ss:$12 sps:$4 sm:$0xff]  }
 0x53c   : > { %v4528_v57 = vmax.f32 %v4492_v15, 0.0  ;;  %v20091_v15 = vld [vmem:[#allocation10 + $0x18] ss:$12 sps:$4 sm:$0xff]  }
 0x53d   : > { %v4526_v19 = vmax.f32 %v4490_v50, 0.0  ;;  %v20094_v50 = vld [vmem:[#allocation10 + $0x30] ss:$12 sps:$4 sm:$0xff]  }
 0x53e   : > { %v23656_v21 = vpack.c.bf16 %v4528_v57, %v4527_v2  ;;  %18351 = vmatpush3.bf16.msra.mxu1 %v23613_v7  ;;  %v20095_v2 = vld [vmem:[#allocation10 + $0x4c] ss:$12 sps:$4 sm:$0xff]   ;;  %v20097_v57 = vld [vmem:[#allocation10 + $0x48] ss:$12 sps:$4 sm:$0xff]  }
 0x53f   : > { %v23659_v22 = vpack.c.bf16 %v4526_v19, %v4525_v14  ;;  %v19028_v47 = vpop.f32.mrb[24].mxu0  ;;  %v20098_v14 = vld [vmem:[#allocation10 + $0x8] ss:$12 sps:$4 sm:$0xff]   ;;  %v20099_v19 = vld [vmem:[#allocation10 + $0x20] ss:$12 sps:$4 sm:$0xff]  }
 0x540   : > { %v4495_v28 = vadd.f32 %v19028_v47, %v23607_v60  ;;  %v4379_v56 = vpop.f32.mrb[25].mxu0  ;;  %v20100_v47 = vld [vmem:[#allocation10 + $0x38] ss:$12 sps:$4 sm:$0xff]  }
 0x541   : > { %v4493_v6 = vadd.f32 %v23607_v60, %v4379_v56  ;;  %v19029_v59 = vpop.f32.mrb[26].mxu0  ;;  %18352 = vmatprep.subr.bf16.mxu1 %v23659_v22  ;;  %v20104_v56 = vld [vmem:[#allocation10 + $0x64] ss:$12 sps:$4 sm:$0xff]  }
 0x542   : > { %v4496_v36 = vadd.f32 %v19029_v59, %v23607_v60  ;;  %v4382_v35 = vpop.f32.mrb[27].mxu0  ;;  %18353 = vmatpush3.bf16.msra.mxu1 %v23623_v4  ;;  %v4531_v32 = vmax.f32 %v4495_v28, 0.0  ;;  %v20101_v28 = vld [vmem:[#allocation10 + $0x50] ss:$12 sps:$4 sm:$0xff]  }
 0x543   : > { %v4494_v26 = vadd.f32 %v23607_v60, %v4382_v35  ;;  %18354 = vmatprep.subr.bf16.mxu1 %v23656_v21  ;;  %v4529_v40 = vmax.f32 %v4493_v6, 0.0  ;;  %v20102_v6 = vld [vmem:[#allocation10 + $0x60] ss:$12 sps:$4 sm:$0xff]   ;;  %v20105_v59 = vld [vmem:[#allocation10 + $0x7c] ss:$12 sps:$4 sm:$0xff]  }
 0x544   : > { %v4532_v39 = vmax.f32 %v4496_v36, 0.0  ;;  %v20107_v36 = vld [vmem:[#allocation10 + $0x78] ss:$12 sps:$4 sm:$0xff]   ;;  %v20108_v35 = vld [vmem:[#allocation10 + $0x94] ss:$12 sps:$4 sm:$0xff]  }
 0x545   : > { %v4530_v3 = vmax.f32 %v4494_v26, 0.0  ;;  %v20110_v26 = vld [vmem:[#allocation10 + $0x90] ss:$12 sps:$4 sm:$0xff]  }
 0x546   : > { %v23668_v10 = vpack.c.bf16 %v4532_v39, %v4531_v32  ;;  %18355 = vmatpush3.bf16.msra.mxu1 %v23621_v31  ;;  %v20111_v32 = vld [vmem:[#allocation10 + $0xac] ss:$12 sps:$4 sm:$0xff]   ;;  %v20113_v39 = vld [vmem:[#allocation10 + $0xa8] ss:$12 sps:$4 sm:$0xff]  }
 0x547   : > { %v23671_v23 = vpack.c.bf16 %v4530_v3, %v4529_v40  ;;  %v19032_v24 = vpop.f32.mrb[28].mxu0  ;;  %v20114_v40 = vld [vmem:[#allocation10 + $0x68] ss:$12 sps:$4 sm:$0xff]   ;;  %v20115_v3 = vld [vmem:[#allocation10 + $0x80] ss:$12 sps:$4 sm:$0xff]  }
 0x548   : > { %v4499_v44 = vadd.f32 %v19032_v24, %v23607_v60  ;;  %v4395_v42 = vpop.f32.mrb[29].mxu0  ;;  %v20116_v24 = vld [vmem:[#allocation10 + $0x98] ss:$12 sps:$4 sm:$0xff]  }
 0x549   : > { %v4497_v51 = vadd.f32 %v23607_v60, %v4395_v42  ;;  %v19033_v55 = vpop.f32.mrb[30].mxu0  ;;  %18356 = vmatprep.subr.bf16.mxu1 %v23671_v23  ;;  %v20120_v42 = vld [vmem:[#allocation10 + $0xc4] ss:$12 sps:$4 sm:$0xff]  }
 0x54a   : > { %v4500_v5 = vadd.f32 %v19033_v55, %v23607_v60  ;;  %v4398_v63 = vpop.f32.mrb[31].mxu0  ;;  %18357 = vmatpush3.bf16.msra.mxu1 %v23631_v54  ;;  %v4535_v13 = vmax.f32 %v4499_v44, 0.0  ;;  %v20117_v44 = vld [vmem:[#allocation10 + $0xb0] ss:$12 sps:$4 sm:$0xff]  }
 0x54b   : > { %v4498_v20 = vadd.f32 %v23607_v60, %v4398_v63  ;;  %18358 = vmatprep.subr.bf16.mxu1 %v23668_v10  ;;  %v4533_v52 = vmax.f32 %v4497_v51, 0.0  ;;  %v20118_v51 = vld [vmem:[#allocation10 + $0xc0] ss:$12 sps:$4 sm:$0xff]   ;;  %v20121_v55 = vld [vmem:[#allocation10 + $0xdc] ss:$12 sps:$4 sm:$0xff]  }
 0x54c   : > { %v4536_v0 = vmax.f32 %v4500_v5, 0.0  ;;  %v20123_v5 = vld [vmem:[#allocation10 + $0xd8] ss:$12 sps:$4 sm:$0xff]   ;;  %v20124_v63 = vld [vmem:[#allocation10 + $0xf4] ss:$12 sps:$4 sm:$0xff]  }
 0x54d   : > { %v4534_v29 = vmax.f32 %v4498_v20, 0.0  ;;  %v20126_v20 = vld [vmem:[#allocation10 + $0xf0] ss:$12 sps:$4 sm:$0xff]  }
 0x54e   : > { %v23680_v30 = vpack.c.bf16 %v4536_v0, %v4535_v13  ;;  %18359 = vmatpush3.bf16.msra.mxu1 %v23629_v8  ;;  %v20127_v13 = vld [vmem:[#allocation10 + $0x10c] ss:$12 sps:$4 sm:$0xff]   ;;  %v20129_v0 = vld [vmem:[#allocation10 + $0x108] ss:$12 sps:$4 sm:$0xff]  }
 0x54f   : > { %v23683_v33 = vpack.c.bf16 %v4534_v29, %v4533_v52  ;;  %v19036_v34 = vpop.f32.mrb[32].mxu0  ;;  %v20130_v52 = vld [vmem:[#allocation10 + $0xc8] ss:$12 sps:$4 sm:$0xff]   ;;  %v20131_v29 = vld [vmem:[#allocation10 + $0xe0] ss:$12 sps:$4 sm:$0xff]  }
 0x550   : > { %v4503_v17 = vadd.f32 %v19036_v34, %v23607_v60  ;;  %v4411_v43 = vpop.f32.mrb[33].mxu0  ;;  %v20132_v34 = vld [vmem:[#allocation10 + $0xf8] ss:$12 sps:$4 sm:$0xff]  }
 0x551   : > { %v4501_v37 = vadd.f32 %v23607_v60, %v4411_v43  ;;  %v19037_v38 = vpop.f32.mrb[34].mxu0  ;;  %18360 = vmatprep.subr.bf16.mxu1 %v23683_v33 }
 0x552   : > { %v4504_v25 = vadd.f32 %v19037_v38, %v23607_v60  ;;  %v4414_v45 = vpop.f32.mrb[35].mxu0  ;;  %18361 = vmatpush3.bf16.msra.mxu1 %v23639_v58  ;;  %v4539_v27 = vmax.f32 %v4503_v17, 0.0  ;;  %v20136_v17 = vld [vmem:[#allocation10 + $0x124] ss:$12 sps:$4 sm:$0xff]  }
 0x553   : > { %v4502_v41 = vadd.f32 %v23607_v60, %v4414_v45  ;;  %18362 = vmatprep.subr.bf16.mxu1 %v23680_v30  ;;  %v4537_v48 = vmax.f32 %v4501_v37, 0.0  ;;  %v20147_v37 = vld [vmem:[#allocation10 + $0x140] ss:$12 sps:$4 sm:$0xff]   ;;  %v20148_v45 = vld [vmem:[#allocation10 + $0x158] ss:$12 sps:$4 sm:$0xff]  }
 0x554   : > { %v4540_v61 = vmax.f32 %v4504_v25, 0.0 }
 0x555   : > { %v4538_v11 = vmax.f32 %v4502_v41, 0.0 }
 0x556   : > { %v23692_v12 = vpack.c.bf16 %v4540_v61, %v4539_v27  ;;  %18363 = vmatpush3.bf16.msra.mxu1 %v23637_v53 }
 0x557   : > { %v23695_v18 = vpack.c.bf16 %v4538_v11, %v4537_v48  ;;  %v20149_v11 = vld [vmem:[#allocation10 + $0x170] ss:$12 sps:$4 sm:$0xff]  }
 0x558   : > { %v23703_v60 = vsel %vm1640_vm4, %v23692_v12, 0 }
 0x559   : > { %4685 = vmatmul.mubr.bf16.vlgmr.msra.gmra.mrb[0].mxu1 %v20086_v62  ;;  %19038 = vmatprep.subr.bf16.mxu1 %v23695_v18 }
 0x55a   : > { %19039 = vmatpush3.bf16.msra.mxu1 %v23695_v18  ;;  %4692 = vmatprep.mubr.bf16.mxu1 %v20089_v16 }
 0x55b   : > { %19788 = vmatprep.subr.msk.bf16.mxu1 %vm1640_vm4, %v23692_v12 }
 0x55e   : > { %19041 = vmatpush3.bf16.msra.mxu1 %v23703_v60 }
 0x55f   : > { %18394 = vmatprep.subr.bf16.mxu1 %v23647_v49 }
 0x561   : > { %4693 = vmatmul.mubr.bf16.gmra.mrb[4].mxu1 %v20091_v15 }
 0x562   : > { %4700 = vmatprep.mubr.bf16.mxu1 %v20092_v46 }
 0x569   : > { %4701 = vmatmul.mubr.bf16.gmra.mrb[8].mxu1 %v20094_v50 }
 0x56a   : > { %4708 = vmatprep.mubr.bf16.mxu1 %v20095_v2 }
 0x571   : > { %4709 = vmatmul.mubr.bf16.gmra.mrb[12].mxu1 %v20097_v57 }
 0x572   : > { %19042 = vmatprep.mubr.msk.bf16.mxu1 %vm4635_vm9, %v20098_v14 }
 0x579   : > { %19043 = vmatmul.mubr.msk.bf16.vlgmr.msra.gmra.mrb[16].mxu1 %vm4635_vm9, %v20099_v19 }
 0x57a   : > { %18395 = vmatpush3.bf16.msra.mxu1 %v23615_v9  ;;  %19046 = vmatprep.mubr.msk.bf16.mxu1 %vm4635_vm9, %v20100_v47 }
 0x57b   : > { %18396 = vmatprep.subr.bf16.mxu1 %v23645_v1 }
 0x57e   : > { %18397 = vmatpush3.bf16.msra.mxu1 %v23613_v7 }
 0x57f   : > { %18398 = vmatprep.subr.bf16.mxu1 %v23659_v22 }
 0x581   : > { %19047 = vmatmul.mubr.msk.bf16.gmra.mrb[20].mxu1 %vm4635_vm9, %v20101_v28 }
 0x582   : > { %18399 = vmatpush3.bf16.msra.mxu1 %v23623_v4  ;;  %4903 = vmatprep.mubr.bf16.mxu1 %v20104_v56 }
 0x583   : > { %18400 = vmatprep.subr.bf16.mxu1 %v23656_v21 }
 0x586   : > { %18401 = vmatpush3.bf16.msra.mxu1 %v23621_v31 }
 0x587   : > { %18402 = vmatprep.subr.bf16.mxu1 %v23671_v23 }
 0x58a   : > { %18403 = vmatpush3.bf16.msra.mxu1 %v23631_v54 }
 0x58b   : > { %18404 = vmatprep.subr.bf16.mxu1 %v23668_v10 }
 0x58e   : > { %18405 = vmatpush3.bf16.msra.mxu1 %v23629_v8 }
 0x58f   : > { %18406 = vmatprep.subr.bf16.mxu1 %v23683_v33 }
 0x592   : > { %18407 = vmatpush3.bf16.msra.mxu1 %v23639_v58 }
 0x593   : > { %18408 = vmatprep.subr.bf16.mxu1 %v23680_v30 }
 0x596   : > { %18409 = vmatpush3.bf16.msra.mxu1 %v23637_v53 }
 0x597   : > { %19050 = vmatprep.subr.bf16.mxu1 %v23695_v18 }
 0x599   : > { %4904 = vmatmul.mubr.bf16.vlgmr.msra.gmra.mrb[24].mxu1 %v20102_v6 }
 0x59a   : > { %19051 = vmatpush3.bf16.msra.mxu1 %v23695_v18  ;;  %4911 = vmatprep.mubr.bf16.mxu1 %v20105_v59 }
 0x59b   : > { %19789 = vmatprep.subr.msk.bf16.mxu1 %vm1640_vm4, %v23692_v12 }
 0x59e   : > { %19053 = vmatpush3.bf16.msra.mxu1 %v23703_v60 }
 0x59f   : > { %18440 = vmatprep.subr.bf16.mxu1 %v23647_v49 }
 0x5a1   : > { %4912 = vmatmul.mubr.bf16.gmra.mrb[28].mxu1 %v20107_v36 }
 0x5a2   : > { %4919 = vmatprep.mubr.bf16.mxu1 %v20108_v35 }
 0x5a9   : > { %4920 = vmatmul.mubr.bf16.gmra.mrb[32].mxu1 %v20110_v26 }
 0x5aa   : > { %4927 = vmatprep.mubr.bf16.mxu1 %v20111_v32 }
 0x5b1   : > { %4928 = vmatmul.mubr.bf16.gmra.mrb[36].mxu1 %v20113_v39 }
 0x5b2   : > { %19054 = vmatprep.mubr.msk.bf16.mxu1 %vm4635_vm9, %v20114_v40 }
 0x5b9   : > { %19055 = vmatmul.mubr.msk.bf16.vlgmr.msra.gmra.mrb[40].mxu1 %vm4635_vm9, %v20115_v3 }
 0x5ba   : > { %18441 = vmatpush3.bf16.msra.mxu1 %v23615_v9  ;;  %19058 = vmatprep.mubr.msk.bf16.mxu1 %vm4635_vm9, %v20116_v24 }
 0x5bb   : > { %18442 = vmatprep.subr.bf16.mxu1 %v23645_v1 }
 0x5be   : > { %18443 = vmatpush3.bf16.msra.mxu1 %v23613_v7 }
 0x5bf   : > { %18444 = vmatprep.subr.bf16.mxu1 %v23659_v22 }
 0x5c1   : > { %19059 = vmatmul.mubr.msk.bf16.gmra.mrb[44].mxu1 %vm4635_vm9, %v20117_v44 }
 0x5c2   : > { %18445 = vmatpush3.bf16.msra.mxu1 %v23623_v4  ;;  %5130 = vmatprep.mubr.bf16.mxu1 %v20120_v42 }
 0x5c3   : > { %18446 = vmatprep.subr.bf16.mxu1 %v23656_v21 }
 0x5c6   : > { %18447 = vmatpush3.bf16.msra.mxu1 %v23621_v31 }
 0x5c7   : > { %18448 = vmatprep.subr.bf16.mxu1 %v23671_v23 }
 0x5ca   : > { %18449 = vmatpush3.bf16.msra.mxu1 %v23631_v54 }
 0x5cb   : > { %18450 = vmatprep.subr.bf16.mxu1 %v23668_v10 }
 0x5ce   : > { %18451 = vmatpush3.bf16.msra.mxu1 %v23629_v8 }
 0x5cf   : > { %18452 = vmatprep.subr.bf16.mxu1 %v23683_v33 }
 0x5d2   : > { %18453 = vmatpush3.bf16.msra.mxu1 %v23639_v58 }
 0x5d3   : > { %18454 = vmatprep.subr.bf16.mxu1 %v23680_v30 }
 0x5d6   : > { %18455 = vmatpush3.bf16.msra.mxu1 %v23637_v53 }
 0x5d7   : > { %19062 = vmatprep.subr.bf16.mxu1 %v23695_v18 }
 0x5d9   : > { %5131 = vmatmul.mubr.bf16.vlgmr.msra.gmra.mrb[48].mxu1 %v20118_v51 }
 0x5da   : > { %19063 = vmatpush3.bf16.msra.mxu1 %v23695_v18  ;;  %5138 = vmatprep.mubr.bf16.mxu1 %v20121_v55 }
 0x5db   : > { %19790 = vmatprep.subr.msk.bf16.mxu1 %vm1640_vm4, %v23692_v12 }
 0x5de   : > { %19065 = vmatpush3.bf16.msra.mxu1 %v23703_v60 }
 0x5df   : > { %18486 = vmatprep.subr.bf16.mxu1 %v23647_v49  ;;  %v20133_v49 = vld [vmem:[#allocation10 + $0x110] ss:$12 sps:$4 sm:$0xff]  }
 0x5e1   : > { %5139 = vmatmul.mubr.bf16.gmra.mrb[52].mxu1 %v20123_v5 }
 0x5e2   : > { %5146 = vmatprep.mubr.bf16.mxu1 %v20124_v63 }
 0x5e9   : > { %5147 = vmatmul.mubr.bf16.gmra.mrb[56].mxu1 %v20126_v20 }
 0x5ea   : > { %5154 = vmatprep.mubr.bf16.mxu1 %v20127_v13 }
 0x5f1   : > { %5155 = vmatmul.mubr.bf16.gmra.mrb[60].mxu1 %v20129_v0 }
 0x5f2   : > { %19066 = vmatprep.mubr.msk.bf16.mxu1 %vm4635_vm9, %v20130_v52 }
 0x5f9   : > { %19067 = vmatmul.mubr.msk.bf16.vlgmr.msra.gmra.mrb[64].mxu1 %vm4635_vm9, %v20131_v29 }
 0x5fa   : > { %18487 = vmatpush3.bf16.msra.mxu1 %v23615_v9  ;;  %19070 = vmatprep.mubr.msk.bf16.mxu1 %vm4635_vm9, %v20132_v34  ;;  %v20137_v9 = vld [vmem:[#allocation10 + $0x13c] ss:$12 sps:$4 sm:$0xff]  }
 0x5fb   : > { %18488 = vmatprep.subr.bf16.mxu1 %v23645_v1  ;;  %v20145_v1 = vld [vmem:[#allocation10 + $0x168] ss:$12 sps:$4 sm:$0xff]  }
 0x5fe   : > { %18489 = vmatpush3.bf16.msra.mxu1 %v23613_v7  ;;  %v20134_v7 = vld [vmem:[#allocation10 + $0x120] ss:$12 sps:$4 sm:$0xff]  }
 0x5ff   : > { %18490 = vmatprep.subr.bf16.mxu1 %v23659_v22 }
 0x601   : > { %19071 = vmatmul.mubr.msk.bf16.gmra.mrb[68].mxu1 %vm4635_vm9, %v20133_v49 }
 0x602   : > { %18491 = vmatpush3.bf16.msra.mxu1 %v23623_v4  ;;  %5357 = vmatprep.mubr.bf16.mxu1 %v20136_v17  ;;  %v20140_v4 = vld [vmem:[#allocation10 + $0x154] ss:$12 sps:$4 sm:$0xff]  }
 0x603   : > { %18492 = vmatprep.subr.bf16.mxu1 %v23656_v21 }
 0x606   : > { %18493 = vmatpush3.bf16.msra.mxu1 %v23621_v31  ;;  %v20139_v31 = vld [vmem:[#allocation10 + $0x138] ss:$12 sps:$4 sm:$0xff]  }
 0x607   : > { %18494 = vmatprep.subr.bf16.mxu1 %v23671_v23 }
 0x60a   : > { %18495 = vmatpush3.bf16.msra.mxu1 %v23631_v54  ;;  %v20143_v54 = vld [vmem:[#allocation10 + $0x16c] ss:$12 sps:$4 sm:$0xff]  }
 0x60b   : > { %18496 = vmatprep.subr.bf16.mxu1 %v23668_v10  ;;  %v20146_v10 = vld [vmem:[#allocation10 + $0x128] ss:$12 sps:$4 sm:$0xff]  }
 0x60e   : > { %18497 = vmatpush3.bf16.msra.mxu1 %v23629_v8  ;;  %v20142_v8 = vld [vmem:[#allocation10 + $0x150] ss:$12 sps:$4 sm:$0xff]  }
 0x60f   : > { %18498 = vmatprep.subr.bf16.mxu1 %v23683_v33 }
 0x612   : > { %18499 = vmatpush3.bf16.msra.mxu1 %v23639_v58 }
 0x613   : > { %18500 = vmatprep.subr.bf16.mxu1 %v23680_v30 }
 0x616   : > { %18501 = vmatpush3.bf16.msra.mxu1 %v23637_v53 }
 0x617   : > { %19074 = vmatprep.subr.bf16.mxu1 %v23695_v18 }
 0x619   : > { %5358 = vmatmul.mubr.bf16.vlgmr.msra.gmra.mrb[72].mxu1 %v20134_v7 }
 0x61a   : > { %19075 = vmatpush3.bf16.msra.mxu1 %v23695_v18  ;;  %5365 = vmatprep.mubr.bf16.mxu1 %v20137_v9 }
 0x61b   : > { %19791 = vmatprep.subr.msk.bf16.mxu1 %vm1640_vm4, %v23692_v12 }
 0x61e   : > { %19077 = vmatpush3.bf16.msra.mxu1 %v23703_v60 }
 0x621   : > { %5366 = vmatmul.mubr.bf16.gmra.mrb[76].mxu1 %v20139_v31 }
 0x622   : > { %5373 = vmatprep.mubr.bf16.mxu1 %v20140_v4 }
 0x629   : > { %5374 = vmatmul.mubr.bf16.gmra.mrb[80].mxu1 %v20142_v8 }
 0x62a   : > { %5381 = vmatprep.mubr.bf16.mxu1 %v20143_v54 }
 0x62c   : > { %v18364_v53 = vpop.f32.mrb[0].mxu1 }
 0x62d   : > { %v18365_v58 = vpop.f32.mrb[1].mxu1 }
 0x62e   : > { %v18366_v21 = vadd.f32 %v18365_v58, %v18364_v53  ;;  %v18367_v22 = vpop.f32.mrb[2].mxu1 }
 0x62f   : > { %v18368_v23 = vpop.f32.mrb[3].mxu1 }
 0x630   : > { %v18369_v30 = vadd.f32 %v18368_v23, %v18367_v22 }
 0x631   : > { %5382 = vmatmul.mubr.bf16.gmra.mrb[84].mxu1 %v20145_v1 }
 0x632   : > { %19078 = vmatprep.mubr.msk.bf16.mxu1 %vm4635_vm9, %v20146_v10 }
 0x634   : > { %v18370_v33 = vpop.f32.mrb[4].mxu1 }
 0x635   : > { %v18371_v43 = vpop.f32.mrb[5].mxu1 }
 0x636   : > { %v18372_v38 = vadd.f32 %v18371_v43, %v18370_v33  ;;  %v18373_v25 = vpop.f32.mrb[6].mxu1 }
 0x637   : > { %v18374_v41 = vpop.f32.mrb[7].mxu1 }
 0x638   : > { %v18375_v27 = vadd.f32 %v18374_v41, %v18373_v25 }
 0x639   : > { %19079 = vmatmul.mubr.msk.bf16.vlgmr.msra.gmra.mrb[88].mxu1 %vm4635_vm9, %v20147_v37 }
 0x63a   : > { %19082 = vmatprep.mubr.msk.bf16.mxu1 %vm4635_vm9, %v20148_v45 }
 0x63c   : > { %v18376_v61 = vpop.f32.mrb[8].mxu1 }
 0x63d   : > { %v18377_v48 = vpop.f32.mrb[9].mxu1 }
 0x63e   : > { %v18378_v62 = vadd.f32 %v18377_v48, %v18376_v61  ;;  %v18379_v12 = vpop.f32.mrb[10].mxu1 }
 0x63f   : > { %v18380_v16 = vpop.f32.mrb[11].mxu1 }
 0x640   : > { %v18381_v18 = vadd.f32 %v18380_v16, %v18379_v12  ;;  %v22327_v12 = vmov 0.0  }
 0x641   : > { %19083 = vmatmul.mubr.msk.bf16.gmra.mrb[92].mxu1 %vm4635_vm9, %v20149_v11  ;;  %19086 = vmatprep.subr.bf16.mxu1 %v22327_v12 }
 0x642   : > { %19374 = vmatprep.subr.bf16.mxu0 %v22327_v12  ;;  %19094 = vmatprep.mubr.msk.bf16.mxu1 %vm22328_vm10, %v22327_v12 }
 0x643   : > { %19384 = vmatprep.mubr.msk.bf16.mxu0 %vm22328_vm10, %v22327_v12 }
 0x644   : > { %v18382_v60 = vpop.f32.mrb[12].mxu1 }
 0x645   : > { %v18383_v15 = vpop.f32.mrb[13].mxu1 }
 0x646   : > { %v18384_v46 = vadd.f32 %v18383_v15, %v18382_v60  ;;  %v18385_v50 = vpop.f32.mrb[14].mxu1 }
 0x647   : > { %v18386_v2 = vpop.f32.mrb[15].mxu1 }
 0x648   : > { %v18387_v57 = vadd.f32 %v18386_v2, %v18385_v50 }
 0x64c   : > { %v19044_v14 = vpop.f32.mrb[16].mxu1 }
 0x64d   : > { %v23785_v19 = vadd.f32 %v19044_v14, %v18372_v38  ;;  %v4751_v47 = vpop.f32.mrb[17].mxu1 }
 0x64e   : > { %v23787_v28 = vadd.f32 %v18366_v21, %v4751_v47  ;;  %v19045_v56 = vpop.f32.mrb[18].mxu1 }
 0x64f   : > { %v23789_v6 = vadd.f32 %v19045_v56, %v18375_v27  ;;  %v4754_v59 = vpop.f32.mrb[19].mxu1 }
 0x650   : > { %v23791_v36 = vadd.f32 %v18369_v30, %v4754_v59 }
 0x654   : > { %v19048_v35 = vpop.f32.mrb[20].mxu1 }
 0x655   : > { %v23793_v26 = vadd.f32 %v19048_v35, %v18384_v46  ;;  %v4767_v32 = vpop.f32.mrb[21].mxu1 }
 0x656   : > { %v23795_v39 = vadd.f32 %v18378_v62, %v4767_v32  ;;  %v19049_v40 = vpop.f32.mrb[22].mxu1 }
 0x657   : > { %v23797_v3 = vadd.f32 %v19049_v40, %v18387_v57  ;;  %v4770_v24 = vpop.f32.mrb[23].mxu1 }
 0x658   : > { %v23799_v44 = vadd.f32 %v18381_v18, %v4770_v24 }
 0x66c   : > { %v18410_v42 = vpop.f32.mrb[24].mxu1 }
 0x66d   : > { %v18411_v51 = vpop.f32.mrb[25].mxu1 }
 0x66e   : > { %v18412_v55 = vadd.f32 %v18411_v51, %v18410_v42  ;;  %v18413_v5 = vpop.f32.mrb[26].mxu1 }
 0x66f   : > { %v18414_v63 = vpop.f32.mrb[27].mxu1 }
 0x670   : > { %v18415_v20 = vadd.f32 %v18414_v63, %v18413_v5 }
 0x674   : > { %v18416_v13 = vpop.f32.mrb[28].mxu1 }
 0x675   : > { %v18417_v0 = vpop.f32.mrb[29].mxu1 }
 0x676   : > { %v18418_v52 = vadd.f32 %v18417_v0, %v18416_v13  ;;  %v18419_v29 = vpop.f32.mrb[30].mxu1 }
 0x677   : > { %v18420_v34 = vpop.f32.mrb[31].mxu1 }
 0x678   : > { %v18421_v49 = vadd.f32 %v18420_v34, %v18419_v29 }
 0x67c   : > { %v18422_v17 = vpop.f32.mrb[32].mxu1 }
 0x67d   : > { %v18423_v7 = vpop.f32.mrb[33].mxu1 }
 0x67e   : > { %v18424_v9 = vadd.f32 %v18423_v7, %v18422_v17  ;;  %v18425_v31 = vpop.f32.mrb[34].mxu1 }
 0x67f   : > { %v18426_v4 = vpop.f32.mrb[35].mxu1 }
 0x680   : > { %v18427_v8 = vadd.f32 %v18426_v4, %v18425_v31 }
 0x684   : > { %v18428_v54 = vpop.f32.mrb[36].mxu1 }
 0x685   : > { %v18429_v53 = vpop.f32.mrb[37].mxu1 }
 0x686   : > { %v18430_v58 = vadd.f32 %v18429_v53, %v18428_v54  ;;  %v18431_v1 = vpop.f32.mrb[38].mxu1 }
 0x687   : > { %v18432_v21 = vpop.f32.mrb[39].mxu1 }
 0x688   : > { %v18433_v22 = vadd.f32 %v18432_v21, %v18431_v1 }
 0x68c   : > { %v19056_v10 = vpop.f32.mrb[40].mxu1 }
 0x68d   : > { %v4979_v23 = vadd.f32 %v19056_v10, %v18418_v52  ;;  %v4970_v30 = vpop.f32.mrb[41].mxu1 }
 0x68e   : > { %v4971_v33 = vadd.f32 %v18412_v55, %v4970_v30  ;;  %v19057_v43 = vpop.f32.mrb[42].mxu1 }
 0x68f   : > { %v5003_v37 = vmax.f32 %v23785_v19, %v4979_v23  ;;  %v4982_v38 = vadd.f32 %v19057_v43, %v18421_v49  ;;  %v4973_v25 = vpop.f32.mrb[43].mxu1 }
 0x690   : > { %v5001_v45 = vmax.f32 %v23787_v28, %v4971_v33  ;;  %v4974_v41 = vadd.f32 %v18415_v20, %v4973_v25 }
 0x691   : > { %v5004_v27 = vmax.f32 %v23789_v6, %v4982_v38 }
 0x692   : > { %v5002_v61 = vmax.f32 %v23791_v36, %v4974_v41 }
 0x694   : > { %v19060_v48 = vpop.f32.mrb[44].mxu1 }
 0x695   : > { %v4995_v11 = vadd.f32 %v19060_v48, %v18430_v58  ;;  %v4986_v62 = vpop.f32.mrb[45].mxu1 }
 0x696   : > { %v4987_v16 = vadd.f32 %v18424_v9, %v4986_v62  ;;  %v19061_v18 = vpop.f32.mrb[46].mxu1 }
 0x697   : > { %v5007_v60 = vmax.f32 %v23793_v26, %v4995_v11  ;;  %v4998_v15 = vadd.f32 %v19061_v18, %v18433_v22  ;;  %v4989_v46 = vpop.f32.mrb[47].mxu1 }
 0x698   : > { %v5005_v50 = vmax.f32 %v23795_v39, %v4987_v16  ;;  %v4990_v2 = vadd.f32 %v18427_v8, %v4989_v46 }
 0x699   : > { %v5008_v57 = vmax.f32 %v23797_v3, %v4998_v15 }
 0x69a   : > { %v5006_v14 = vmax.f32 %v23799_v44, %v4990_v2 }
 0x6ac   : > { %v18456_v19 = vpop.f32.mrb[48].mxu1 }
 0x6ad   : > { %v18457_v47 = vpop.f32.mrb[49].mxu1 }
 0x6ae   : > { %v18458_v28 = vadd.f32 %v18457_v47, %v18456_v19  ;;  %v18459_v56 = vpop.f32.mrb[50].mxu1 }
 0x6af   : > { %v18460_v6 = vpop.f32.mrb[51].mxu1 }
 0x6b0   : > { %v18461_v59 = vadd.f32 %v18460_v6, %v18459_v56 }
 0x6b4   : > { %v18462_v36 = vpop.f32.mrb[52].mxu1 }
 0x6b5   : > { %v18463_v35 = vpop.f32.mrb[53].mxu1 }
 0x6b6   : > { %v18464_v26 = vadd.f32 %v18463_v35, %v18462_v36  ;;  %v18465_v32 = vpop.f32.mrb[54].mxu1 }
 0x6b7   : > { %v18466_v39 = vpop.f32.mrb[55].mxu1 }
 0x6b8   : > { %v18467_v40 = vadd.f32 %v18466_v39, %v18465_v32 }
 0x6bc   : > { %v18468_v3 = vpop.f32.mrb[56].mxu1 }
 0x6bd   : > { %v18469_v24 = vpop.f32.mrb[57].mxu1 }
 0x6be   : > { %v18470_v44 = vadd.f32 %v18469_v24, %v18468_v3  ;;  %v18471_v42 = vpop.f32.mrb[58].mxu1 }
 0x6bf   : > { %v18472_v51 = vpop.f32.mrb[59].mxu1 }
 0x6c0   : > { %v18473_v55 = vadd.f32 %v18472_v51, %v18471_v42 }
 0x6c4   : > { %v18474_v5 = vpop.f32.mrb[60].mxu1 }
 0x6c5   : > { %v18475_v63 = vpop.f32.mrb[61].mxu1 }
 0x6c6   : > { %v18476_v20 = vadd.f32 %v18475_v63, %v18474_v5  ;;  %v18477_v13 = vpop.f32.mrb[62].mxu1 }
 0x6c7   : > { %v18478_v0 = vpop.f32.mrb[63].mxu1 }
 0x6c8   : > { %v18479_v52 = vadd.f32 %v18478_v0, %v18477_v13 }
 0x6cc   : > { %v19068_v29 = vpop.f32.mrb[64].mxu1 }
 0x6cd   : > { %v5206_v34 = vadd.f32 %v19068_v29, %v18464_v26  ;;  %v5197_v49 = vpop.f32.mrb[65].mxu1 }
 0x6ce   : > { %v5198_v17 = vadd.f32 %v18458_v28, %v5197_v49  ;;  %v19069_v7 = vpop.f32.mrb[66].mxu1 }
 0x6cf   : > { %v5230_v9 = vmax.f32 %v5003_v37, %v5206_v34  ;;  %v5209_v31 = vadd.f32 %v19069_v7, %v18467_v40  ;;  %v5200_v4 = vpop.f32.mrb[67].mxu1 }
 0x6d0   : > { %v5228_v8 = vmax.f32 %v5001_v45, %v5198_v17  ;;  %v5201_v54 = vadd.f32 %v18461_v59, %v5200_v4 }
 0x6d1   : > { %v5231_v53 = vmax.f32 %v5004_v27, %v5209_v31 }
 0x6d2   : > { %v5229_v58 = vmax.f32 %v5002_v61, %v5201_v54 }
 0x6d4   : > { %v19072_v1 = vpop.f32.mrb[68].mxu1 }
 0x6d5   : > { %v5222_v21 = vadd.f32 %v19072_v1, %v18476_v20  ;;  %v5213_v22 = vpop.f32.mrb[69].mxu1 }
 0x6d6   : > { %v5214_v10 = vadd.f32 %v18470_v44, %v5213_v22  ;;  %v19073_v23 = vpop.f32.mrb[70].mxu1  ;;  %v20151_v22 = vld [vmem:[%s24841_s13 + $0x8] sm:$0xff]  }
 0x6d7   : > { %v5234_v30 = vmax.f32 %v5007_v60, %v5222_v21  ;;  %v5225_v33 = vadd.f32 %v19073_v23, %v18479_v52  ;;  %v5216_v43 = vpop.f32.mrb[71].mxu1  ;;  %v20150_v21 = vld [vmem:[%s24841_s13] sm:$0xff]   ;;  %v20153_v23 = vld [vmem:[%s24841_s13 + $0x18] sm:$0xff]  }
 0x6d8   : > { %v5232_v38 = vmax.f32 %v5005_v50, %v5214_v10  ;;  %v5217_v25 = vadd.f32 %v18473_v55, %v5216_v43  ;;  %v20152_v10 = vld [vmem:[%s24841_s13 + $0x10] sm:$0xff]  }
 0x6d9   : > { %v5235_v41 = vmax.f32 %v5008_v57, %v5225_v33  ;;  %v20155_v33 = vld [vmem:[%s24841_s13 + $0x28] sm:$0xff]   ;;  %v20156_v43 = vld [vmem:[%s24841_s13 + $0x30] ss:$0 sps:$4 sm:$0x33]  }
 0x6da   : > { %v5233_v48 = vmax.f32 %v5006_v14, %v5217_v25  ;;  %v20158_v25 = vld [vmem:[#allocation11 + $0x28] sm:$0xff]  }
 0x6ec   : > { %v18502_v11 = vpop.f32.mrb[72].mxu1 }
 0x6ed   : > { %v18503_v37 = vpop.f32.mrb[73].mxu1 }
 0x6ee   : > { %v18504_v62 = vadd.f32 %v18503_v37, %v18502_v11  ;;  %v18505_v16 = vpop.f32.mrb[74].mxu1 }
 0x6ef   : > { %v18506_v45 = vpop.f32.mrb[75].mxu1 }
 0x6f0   : > { %v18507_v18 = vadd.f32 %v18506_v45, %v18505_v16 }
 0x6f4   : > { %v18508_v27 = vpop.f32.mrb[76].mxu1 }
 0x6f5   : > { %v18509_v61 = vpop.f32.mrb[77].mxu1 }
 0x6f6   : > { %v18510_v15 = vadd.f32 %v18509_v61, %v18508_v27  ;;  %v18511_v46 = vpop.f32.mrb[78].mxu1 }
 0x6f7   : > { %v18512_v2 = vpop.f32.mrb[79].mxu1 }
 0x6f8   : > { %v18513_v19 = vadd.f32 %v18512_v2, %v18511_v46 }
 0x6fc   : > { %v18514_v47 = vpop.f32.mrb[80].mxu1 }
 0x6fd   : > { %v18515_v60 = vpop.f32.mrb[81].mxu1 }
 0x6fe   : > { %v18516_v28 = vadd.f32 %v18515_v60, %v18514_v47  ;;  %v18517_v56 = vpop.f32.mrb[82].mxu1 }
 0x6ff   : > { %v18518_v50 = vpop.f32.mrb[83].mxu1 }
 0x700   : > { %v18519_v6 = vadd.f32 %v18518_v50, %v18517_v56 }
 0x704   : > { %v18520_v57 = vpop.f32.mrb[84].mxu1 }
 0x705   : > { %v18521_v14 = vpop.f32.mrb[85].mxu1 }
 0x706   : > { %v18522_v59 = vadd.f32 %v18521_v14, %v18520_v57  ;;  %v18523_v36 = vpop.f32.mrb[86].mxu1 }
 0x707   : > { %v18524_v35 = vpop.f32.mrb[87].mxu1 }
 0x708   : > { %v18525_v26 = vadd.f32 %v18524_v35, %v18523_v36 }
 0x70c   : > { %v19080_v32 = vpop.f32.mrb[88].mxu1 }
 0x70d   : > { %v5433_v39 = vadd.f32 %v19080_v32, %v18510_v15  ;;  %v5424_v40 = vpop.f32.mrb[89].mxu1 }
 0x70e   : > { %v5425_v3 = vadd.f32 %v18504_v62, %v5424_v40  ;;  %v19081_v24 = vpop.f32.mrb[90].mxu1 }
 0x70f   : > { %v5457_v44 = vmax.f32 %v5230_v9, %v5433_v39  ;;  %v5436_v42 = vadd.f32 %v19081_v24, %v18513_v19  ;;  %v5427_v51 = vpop.f32.mrb[91].mxu1 }
 0x710   : > { %v5455_v55 = vmax.f32 %v5228_v8, %v5425_v3  ;;  %v5428_v5 = vadd.f32 %v18507_v18, %v5427_v51 }
 0x711   : > { %v5458_v63 = vmax.f32 %v5231_v53, %v5436_v42 }
 0x712   : > { %v5456_v20 = vmax.f32 %v5229_v58, %v5428_v5  ;;  %v20166_v5 = vld [vmem:[#allocation11] sm:$0xff]  }
 0x713   : > { %v5477_v13 = vpack.c.bf16 %v5458_v63, %v5457_v44 }
 0x714   : > { %v19084_v0 = vpop.f32.mrb[92].mxu1  ;;  %v5476_v52 = vpack.c.bf16 %v5456_v20, %v5455_v55 }
 0x715   : > { %v5449_v29 = vadd.f32 %v19084_v0, %v18522_v59  ;;  %v5440_v34 = vpop.f32.mrb[93].mxu1 }
 0x716   : > { %v5441_v49 = vadd.f32 %v18516_v28, %v5440_v34  ;;  %v19085_v17 = vpop.f32.mrb[94].mxu1  ;;  %19087 = vmatpush3.bf16.msra.mxu1 %v5476_v52 }
 0x717   : > { %v5461_v7 = vmax.f32 %v5234_v30, %v5449_v29  ;;  %v5452_v31 = vadd.f32 %v19085_v17, %v18525_v26  ;;  %v5443_v4 = vpop.f32.mrb[95].mxu1  ;;  %19088 = vmatprep.subr.bf16.mxu1 %v22327_v12  ;;  %v20154_v30 = vld [vmem:[%s24841_s13 + $0x20] sm:$0xff]  }
 0x718   : > { %v5459_v9 = vmax.f32 %v5232_v38, %v5441_v49  ;;  %v5444_v54 = vadd.f32 %v18519_v6, %v5443_v4  ;;  %v20157_v38 = vld [vmem:[#allocation11 + $0x20] sm:$0xff]   ;;  %v20167_v49 = vld [vmem:[#allocation11 + $0x8] sm:$0xff]  }
 0x719   : > { %v5462_v1 = vmax.f32 %v5235_v41, %v5452_v31  ;;  %v20159_v41 = vld [vmem:[#allocation11 + $0x30] sm:$0xff]  }
 0x71a   : > { %v5460_v8 = vmax.f32 %v5233_v48, %v5444_v54  ;;  %19089 = vmatpush3.bf16.msra.mxu1 %v5477_v13  ;;  %v20160_v48 = vld [vmem:[#allocation11 + $0x38] sm:$0xff]  }
 0x71b   : > { %19090 = vmatprep.subr.bf16.mxu1 %v22327_v12  ;;  %v5479_v53 = vpack.c.bf16 %v5462_v1, %v5461_v7 }
 0x71c   : > { %v5478_v58 = vpack.c.bf16 %v5460_v8, %v5459_v9  ;;  %v20168_v8 = vld [vmem:[#allocation11 + $0x10] sm:$0xff]  }
 0x71e   : > { %19091 = vmatpush3.bf16.msra.mxu1 %v5478_v58 }
 0x71f   : > { %19092 = vmatprep.subr.bf16.mxu1 %v22327_v12 }
 0x722   : > { %19093 = vmatpush3.bf16.msra.mxu1 %v5479_v53 }
 0x723   : > { %19122 = vmatprep.subr.bf16.mxu1 %v22327_v12 }
 0x725   : > { %19095 = vmatmul.mubr.msk.bf16.vlgmr.msra.gmra.mrb[96].mxu1 %vm5513_vm11, %v20150_v21 }
 0x726   : > { %19098 = vmatprep.mubr.msk.bf16.mxu1 %vm22328_vm10, %v22327_v12  ;;  %19123 = vmatpush3.bf16.msra.mxu1 %v20157_v38 }
 0x727   : > { %19124 = vmatprep.subr.bf16.mxu1 %v22327_v12 }
 0x72a   : > { %19125 = vmatpush3.bf16.msra.mxu1 %v20158_v25 }
 0x72b   : > { %19126 = vmatprep.subr.bf16.mxu1 %v22327_v12 }
 0x72d   : > { %19099 = vmatmul.mubr.msk.bf16.gmra.mrb[100].mxu1 %vm5513_vm11, %v20151_v22 }
 0x72e   : > { %19102 = vmatprep.mubr.msk.bf16.mxu1 %vm22328_vm10, %v22327_v12  ;;  %19127 = vmatpush3.bf16.msra.mxu1 %v20159_v41 }
 0x72f   : > { %19128 = vmatprep.subr.bf16.mxu1 %v22327_v12 }
 0x732   : > { %19129 = vmatpush3.bf16.msra.mxu1 %v20160_v48 }
 0x733   : > { %19150 = vmatprep.subr.bf16.mxu1 %v22327_v12 }
 0x735   : > { %19103 = vmatmul.mubr.msk.bf16.gmra.mrb[104].mxu1 %vm5513_vm11, %v20152_v10 }
 0x736   : > { %19106 = vmatprep.mubr.msk.bf16.mxu1 %vm22328_vm10, %v22327_v12 }
 0x73d   : > { %19107 = vmatmul.mubr.msk.bf16.gmra.mrb[108].mxu1 %vm5513_vm11, %v20153_v23 }
 0x73e   : > { %19110 = vmatprep.mubr.msk.bf16.mxu1 %vm22328_vm10, %v22327_v12 }
 0x745   : > { %19111 = vmatmul.mubr.msk.bf16.gmra.mrb[112].mxu1 %vm5513_vm11, %v20154_v30 }
 0x746   : > { %19114 = vmatprep.mubr.msk.bf16.mxu1 %vm22328_vm10, %v22327_v12 }
 0x74d   : > { %19115 = vmatmul.mubr.msk.bf16.gmra.mrb[116].mxu1 %vm5513_vm11, %v20155_v33  ;;  %v20169_v33 = vld [vmem:[#allocation11 + $0x18] sm:$0xff]  }
 0x74e   : > { %19118 = vmatprep.mubr.msk.bf16.mxu1 %vm22328_vm10, %v22327_v12 }
 0x755   : > { %19119 = vmatmul.mubr.msk.bf16.gmra.mrb[120].mxu1 %vm5513_vm11, %v20156_v43 }
 0x756   : > { %19130 = vmatprep.mubr.msk.bf16.mxu1 %vm22328_vm10, %v22327_v12 }
 0x7f8   : > { %v5569_v11 = vpop.f32.mrb[96].mxu1 }
 0x7f9   : > { %v18148_v37 = vpack.c.bf16 %v5569_v11, %v5569_v11  ;;  %v19096_v62 = vpop.f32.mrb[97].mxu1 }
 0x7fa   : > { %v5572_v16 = vpop.f32.mrb[98].mxu1 }
 0x7fb   : > { %5677 = vst.msk [vmem:[#allocation2] sm:$0xf] %vm5676_vm12, %v18148_v37  ;;  %v18149_v45 = vpack.c.bf16 %v5572_v16, %v5572_v16  ;;  %v19097_v18 = vpop.f32.mrb[99].mxu1 }
 0x7fd   : > { %5678 = vst.msk [vmem:[#allocation2 + $0x4] sm:$0xf] %vm5676_vm12, %v18149_v45 }
 0x800   : > { %v5577_v27 = vpop.f32.mrb[100].mxu1 }
 0x801   : > { %v18150_v61 = vpack.c.bf16 %v5577_v27, %v5577_v27  ;;  %v19100_v15 = vpop.f32.mrb[101].mxu1 }
 0x802   : > { %v5580_v46 = vpop.f32.mrb[102].mxu1  ;;  %v5691_v47 = vld [vmem:[#allocation2] sm:$0xf] }
 0x803   : > { %5679 = vst.msk [vmem:[#allocation2 + $0x8] sm:$0xf] %vm5676_vm12, %v18150_v61  ;;  %v18151_v2 = vpack.c.bf16 %v5580_v46, %v5580_v46  ;;  %v19101_v19 = vpop.f32.mrb[103].mxu1  ;;  %v6006_v14 = vld [vmem:[#allocation2] sm:$0xe] }
 0x804   : > { %v5692_v60 = vld [vmem:[#allocation2 + $0x4] sm:$0xf] }
 0x805   : > { %5680 = vst.msk [vmem:[#allocation2 + $0xc] sm:$0xf] %vm5676_vm12, %v18151_v2  ;;  %v23869_v28 = vcombine.low %v5691_v47, %v5692_v60  ;;  %v16990_v36 = vcombine.low %v6006_v14, %v5692_v60 }
 0x807   : > { %v5747_v50 = vshll.u32 %v23869_v28, 16  ;;  %v5745_v40 = vshrl.u32 %v23869_v28, 16  ;;  %v6019_v24 = vrot.slane %v16990_v36, 1 }
 0x808   : > { %v5585_v56 = vpop.f32.mrb[104].mxu1 }
 0x809   : > { %v18152_v6 = vpack.c.bf16 %v5585_v56, %v5585_v56  ;;  %v19104_v57 = vpop.f32.mrb[105].mxu1  ;;  %v5749_v39 = vrot.slane %v5747_v50, 1 }
 0x80a   : > { %v5588_v59 = vpop.f32.mrb[106].mxu1 }
 0x80b   : > { %5681 = vst.msk [vmem:[#allocation2 + $0x10] sm:$0xf] %vm5676_vm12, %v18152_v6  ;;  %v18153_v35 = vpack.c.bf16 %v5588_v59, %v5588_v59  ;;  %v19105_v26 = vpop.f32.mrb[107].mxu1  ;;  %v5750_v51 = vor.u32 %v5749_v39, %v5745_v40 }
 0x80c   : > { %v23873_v32 = vld [vmem:[#allocation2 + $0x8] sm:$0xff]  }
 0x80d   : > { %5682 = vst.msk [vmem:[#allocation2 + $0x14] sm:$0xf] %vm5676_vm12, %v18153_v35  ;;  %v5752_v3 = vshll.u32 %v23873_v32, 16  ;;  %v6020_v44 = vrot.slane %v23873_v32, 1  ;;  %v5756_v7 = vshrl.u32 %v23873_v32, 16 }
 0x80e   : > { %v23933_v35 = vld [vmem:[#allocation2 + $0xc] sm:$0xf] }
 0x80f   : > { %v5754_v55 = vrot.slane %v5752_v3, 1  ;;  %v23880_v63 = vsel %vm1640_vm4, %v6019_v24, %v6020_v44  ;;  %v7059_v24 = vld [vmem:[#allocation2 + $0x8] sm:$0x8] }
 0x810   : > { %v5593_v42 = vpop.f32.mrb[108].mxu1 }
 0x811   : > { %v18154_v20 = vpack.c.bf16 %v5593_v42, %v5593_v42  ;;  %v19108_v13 = vpop.f32.mrb[109].mxu1  ;;  %v5755_v52 = vsel %vm1031_vm2, %v5750_v51, %v5754_v55  ;;  %v5758_v54 = vor.u32 %v5756_v7, %v5754_v55 }
 0x812   : > { %v5596_v0 = vpop.f32.mrb[110].mxu1  ;;  %19131 = vmatmul.mubr.msk.bf16.vlgmr.msra.gmra.mrb[124].mxu1 %vm5513_vm11, %v5755_v52 }
 0x813   : > { %5683 = vst.msk [vmem:[#allocation2 + $0x18] sm:$0xf] %vm5676_vm12, %v18154_v20  ;;  %v18155_v29 = vpack.c.bf16 %v5596_v0, %v5596_v0  ;;  %v19109_v34 = vpop.f32.mrb[111].mxu1  ;;  %19134 = vmatprep.mubr.msk.bf16.mxu1 %vm22328_vm10, %v22327_v12  ;;  %19151 = vmatpush3.bf16.msra.mxu1 %v20166_v5 }
 0x814   : > { %v23887_v17 = vld [vmem:[#allocation2 + $0x10] sm:$0xff]   ;;  %19152 = vmatprep.subr.bf16.mxu1 %v22327_v12 }
 0x815   : > { %5684 = vst.msk [vmem:[#allocation2 + $0x1c] sm:$0xf] %vm5676_vm12, %v18155_v29  ;;  %v5760_v31 = vshll.u32 %v23887_v17, 16  ;;  %v6022_v4 = vrot.slane %v23887_v17, 1  ;;  %v5764_v38 = vshrl.u32 %v23887_v17, 16  ;;  %v23935_v39 = vld [vmem:[#allocation2 + $0x10] sm:$0xff]  }
 0x816   : > { %v7073_v51 = vrot.slane %v23935_v39, 3 }
 0x817   : > { %v5762_v1 = vrot.slane %v5760_v31, 1  ;;  %19153 = vmatpush3.bf16.msra.mxu1 %v20167_v49  ;;  %v23895_v53 = vsel %vm1640_vm4, %v6020_v44, %v6022_v4  ;;  %v17064_v44 = vcombine.low %v7059_v24, %v23933_v35  ;;  %v20193_v24 = vld [vmem:[#allocation11 + $0xa0] sm:$0xff]  }
 0x818   : > { %v5601_v9 = vpop.f32.mrb[112].mxu1  ;;  %19154 = vmatprep.subr.bf16.mxu1 %v22327_v12 }
 0x819   : > { %v18156_v58 = vpack.c.bf16 %v5601_v9, %v5601_v9  ;;  %v19112_v21 = vpop.f32.mrb[113].mxu1  ;;  %v5763_v10 = vsel %vm1031_vm2, %v5758_v54, %v5762_v1  ;;  %v5766_v11 = vor.u32 %v5764_v38, %v5762_v1  ;;  %v7072_v5 = vrot.slane %v17064_v44, 3  ;;  %v20170_v9 = vld [vmem:[#allocation11 + $0x40] sm:$0xff]   ;;  %v20171_v54 = vld [vmem:[#allocation11 + $0x48] sm:$0xff]   ;;  %v20173_v1 = vld [vmem:[#allocation11 + $0x50] sm:$0xff]  }
 0x81a   : > { %v5604_v22 = vpop.f32.mrb[114].mxu1  ;;  %19135 = vmatmul.mubr.msk.bf16.gmra.mrb[128].mxu1 %vm5513_vm11, %v5763_v10  ;;  %v20177_v21 = vld [vmem:[#allocation11 + $0x70] sm:$0xff]   ;;  %v20185_v38 = vld [vmem:[#allocation11 + $0x88] sm:$0xff]  }
 0x81b   : > { %5685 = vst.msk [vmem:[#allocation2 + $0x20] sm:$0xf] %vm5676_vm12, %v18156_v58  ;;  %v18157_v23 = vpack.c.bf16 %v5604_v22, %v5604_v22  ;;  %v19113_v30 = vpop.f32.mrb[115].mxu1  ;;  %19138 = vmatprep.mubr.msk.bf16.mxu1 %vm22328_vm10, %v22327_v12  ;;  %19155 = vmatpush3.bf16.msra.mxu1 %v20168_v8  ;;  %v23952_v29 = vsel %vm4154_vm8, %v7072_v5, %v7073_v51  ;;  %v20174_v8 = vld [vmem:[#allocation11 + $0x58] sm:$0xff]   ;;  %v20175_v58 = vld [vmem:[#allocation11 + $0x60] sm:$0xff]  }
 0x81c   : > { %v23903_v43 = vld [vmem:[#allocation2 + $0x18] sm:$0xff]   ;;  %19156 = vmatprep.subr.bf16.mxu1 %v22327_v12  ;;  %v20178_v22 = vld [vmem:[#allocation11 + $0x78] sm:$0xff]   ;;  %v20184_v30 = vld [vmem:[#allocation11 + $0x80] sm:$0xff]  }
 0x81d   : > { %5686 = vst.msk [vmem:[#allocation2 + $0x24] sm:$0xf] %vm5676_vm12, %v18157_v23  ;;  %v5768_v25 = vshll.u32 %v23903_v43, 16  ;;  %v6024_v41 = vrot.slane %v23903_v43, 1  ;;  %v5772_v47 = vshrl.u32 %v23903_v43, 16  ;;  %v23940_v42 = vld [vmem:[#allocation2 + $0x18] sm:$0xff]  }
 0x81e   : > { %v7075_v0 = vrot.slane %v23940_v42, 3 }
 0x81f   : > { %v5770_v37 = vrot.slane %v5768_v25, 1  ;;  %19157 = vmatpush3.bf16.msra.mxu1 %v20169_v33  ;;  %v23911_v62 = vsel %vm1640_vm4, %v6022_v4, %v6024_v41 }
 0x820   : > { %v5609_v48 = vpop.f32.mrb[116].mxu1  ;;  %19178 = vmatprep.subr.bf16.mxu1 %v22327_v12  ;;  %v23956_v34 = vsel %vm4154_vm8, %v7073_v51, %v7075_v0 }
 0x821   : > { %v18158_v16 = vpack.c.bf16 %v5609_v48, %v5609_v48  ;;  %v19116_v45 = vpop.f32.mrb[117].mxu1  ;;  %v5771_v27 = vsel %vm1031_vm2, %v5766_v11, %v5770_v37  ;;  %v5774_v6 = vor.u32 %v5772_v47, %v5770_v37  ;;  %v20187_v37 = vld [vmem:[#allocation11 + $0x98] sm:$0xff]  }
 0x822   : > { %v5612_v18 = vpop.f32.mrb[118].mxu1  ;;  %19139 = vmatmul.mubr.msk.bf16.gmra.mrb[132].mxu1 %vm5513_vm11, %v5771_v27  ;;  %v23919_v46 = vld [vmem:[#allocation2 + $0x20] sm:$0xf]  ;;  %v24035_v27 = vld [vmem:[#allocation2 + $0x8] sm:$0xf] }
 0x823   : > { %5687 = vst.msk [vmem:[#allocation2 + $0x28] sm:$0xf] %vm5676_vm12, %v18158_v16  ;;  %v18159_v61 = vpack.c.bf16 %v5612_v18, %v5612_v18  ;;  %v19117_v15 = vpop.f32.mrb[119].mxu1  ;;  %19142 = vmatprep.mubr.msk.bf16.mxu1 %vm22328_vm10, %v22327_v12  ;;  %v20182_v11 = vld [vmem:[#allocation2 + $0x1c] sm:$0xff]  }
 0x824   : > { %v5709_v2 = vld [vmem:[#allocation2 + $0x24] sm:$0xf]  ;;  %v24038_v15 = vld [vmem:[#allocation2 + $0xc] sm:$0xff]   ;;  %v24054_v5 = vld [vmem:[#allocation2 + $0x1c] sm:$0xff]  }
 0x825   : > { %5688 = vst.msk [vmem:[#allocation2 + $0x2c] sm:$0xf] %vm5676_vm12, %v18159_v61  ;;  %v23923_v19 = vcombine.low %v23919_v46, %v5709_v2  ;;  %v23946_v20 = vld [vmem:[#allocation2 + $0x20] sm:$0xff]   ;;  %v6385_v47 = vshll.u32 %v24038_v15, 16 }
 0x826   : > { %v7077_v49 = vrot.slane %v23946_v20, 3 }
 0x827   : > { %v5776_v60 = vshll.u32 %v23923_v19, 16  ;;  %v6026_v56 = vrot.slane %v23923_v19, 1  ;;  %v5780_v55 = vshrl.u32 %v23923_v19, 16  ;;  %v6382_v19 = vshrl.u32 %v24038_v15, 16 }
 0x828   : > { %v5617_v50 = vpop.f32.mrb[120].mxu1  ;;  %v23963_v31 = vsel %vm4154_vm8, %v7075_v0, %v7077_v49  ;;  %v20194_v0 = vld [vmem:[#allocation11 + $0xa8] sm:$0xff]  }
 0x829   : > { %v5778_v57 = vrot.slane %v5776_v60, 1  ;;  %v23931_v14 = vsel %vm1640_vm4, %v6024_v41, %v6026_v56  ;;  %v18160_v59 = vpack.c.bf16 %v5617_v50, %v5617_v50  ;;  %v19120_v36 = vpop.f32.mrb[121].mxu1  ;;  %v20186_v41 = vld [vmem:[#allocation11 + $0x90] sm:$0xff]   ;;  %v6384_v50 = vrot.slane %v6382_v19, 1 }
 0x82a   : > { %v5620_v26 = vpop.f32.mrb[122].mxu1  ;;  %v20183_v45 = vld [vmem:[#allocation2 + $0x24] sm:$0xff]   ;;  %v6562_v19 = vrot.slane %v24054_v5, 2 }
 0x82b   : > { %v5779_v40 = vsel %vm1031_vm2, %v5774_v6, %v5778_v57  ;;  %5690 = vst.msk [vmem:[#allocation2 + $0x30] sm:$0x3] %vm5689_vm13, %v18160_v59  ;;  %v19121_v3 = vpop.f32.mrb[123].mxu1  ;;  %v5782_v52 = vor.u32 %v5780_v55, %v5778_v57  ;;  %v6201_v18 = vrot.slane %v20183_v45, 1  ;;  %v6387_v6 = vrot.slane %v6385_v47, 2  ;;  %v24046_v57 = vld [vmem:[#allocation2 + $0x14] sm:$0xff]  }
 0x82c   : > { %19143 = vmatmul.mubr.msk.bf16.gmra.mrb[136].mxu1 %vm5513_vm11, %v5779_v40  ;;  %v23948_v13 = vld [vmem:[#allocation2 + $0x28] sm:$0xff]   ;;  %v6391_v26 = vshrl.u32 %v24046_v57, 16  ;;  %v6394_v40 = vshll.u32 %v24046_v57, 16  ;;  %v20200_v45 = vld [vmem:[#allocation11 + $0xc8] sm:$0xff]  }
 0x82d   : > { %19146 = vmatprep.mubr.msk.bf16.mxu1 %vm22328_vm10, %v22327_v12  ;;  %v7079_v7 = vrot.slane %v23948_v13, 3  ;;  %v6388_v36 = vor.u32 %v6387_v6, %v6384_v50 }
 0x82e   : > { %v6393_v51 = vrot.slane %v6391_v26, 1  ;;  %v6396_v55 = vrot.slane %v6394_v40, 2 }
 0x82f   : > { %v23968_v4 = vsel %vm4154_vm8, %v7077_v49, %v7079_v7  ;;  %v6400_v49 = vshrl.u32 %v24054_v5, 16 }
 0x834   : > { %19147 = vmatmul.mubr.msk.bf16.gmra.mrb[140].mxu1 %vm5513_vm11, %v5782_v52  ;;  %v6397_v52 = vor.u32 %v6396_v55, %v6393_v51  ;;  %v6690_v55 = vld [vmem:[#allocation2 + $0x8] sm:$0xc] }
 0x835   : > { %19158 = vmatprep.mubr.msk.bf16.mxu1 %vm22328_vm10, %v22327_v12 }
 0x83c   : > { %19159 = vmatmul.mubr.msk.bf16.vlgmr.msra.gmra.mrb[144].mxu1 %vm5513_vm11, %v23869_v28  ;;  %v5700_v28 = vld [vmem:[#allocation2 + $0x24] sm:$0x7] }
 0x83d   : > { %19162 = vmatprep.mubr.msk.bf16.mxu1 %vm22328_vm10, %v22327_v12  ;;  %19179 = vmatpush3.bf16.msra.mxu1 %v20170_v9  ;;  %v6403_v9 = vshll.u32 %v24054_v5, 16  ;;  %v24119_v5 = vcombine.low %v6690_v55, %v23933_v35  ;;  %v20210_v35 = vld [vmem:[#allocation11 + $0xe8] sm:$0xff]   ;;  %v6902_v55 = vshrl.u32 %v23940_v42, 16 }
 0x83e   : > { %19180 = vmatprep.subr.bf16.mxu1 %v22327_v12 }
 0x841   : > { %19181 = vmatpush3.bf16.msra.mxu1 %v20171_v54  ;;  %v20196_v54 = vld [vmem:[#allocation11 + $0xb0] sm:$0xff]  }
 0x842   : > { %19182 = vmatprep.subr.bf16.mxu1 %v22327_v12 }
 0x844   : > { %19163 = vmatmul.mubr.msk.bf16.gmra.mrb[148].mxu1 %vm5513_vm11, %v23873_v32  ;;  %v16980_v32 = vcombine.low %v23919_v46, %v5700_v28  ;;  %v6325_v46 = vld [vmem:[#allocation2 + $0x4] sm:$0xe]  ;;  %v6405_v28 = vrot.slane %v6403_v9, 2 }
 0x845   : > { %19166 = vmatprep.mubr.msk.bf16.mxu1 %vm22328_vm10, %v22327_v12  ;;  %19183 = vmatpush3.bf16.msra.mxu1 %v20173_v1  ;;  %v17014_v2 = vcombine.low %v6325_v46, %v24035_v27  ;;  %v6398_v1 = vsel %vm2511_vm5, %v6388_v36, %v6397_v52 }
 0x846   : > { %19184 = vmatprep.subr.bf16.mxu1 %v22327_v12 }
 0x847   : > { %v6374_v60 = vshrl.u32 %v17014_v2, 16 }
 0x849   : > { %19185 = vmatpush3.bf16.msra.mxu1 %v20174_v8  ;;  %v6402_v8 = vrot.slane %v6400_v49, 1 }
 0x84a   : > { %19206 = vmatprep.subr.bf16.mxu1 %v22327_v12 }
 0x84c   : > { %19167 = vmatmul.mubr.msk.bf16.gmra.mrb[152].mxu1 %vm5513_vm11, %v23887_v17  ;;  %v20176_v17 = vld [vmem:[#allocation11 + $0x68] sm:$0xff]  }
 0x84d   : > { %19170 = vmatprep.mubr.msk.bf16.mxu1 %vm22328_vm10, %v22327_v12 }
 0x854   : > { %19171 = vmatmul.mubr.msk.bf16.gmra.mrb[156].mxu1 %vm5513_vm11, %v23903_v43  ;;  %v20181_v43 = vld [vmem:[#allocation2 + $0x14] sm:$0xff]  }
 0x855   : > { %19174 = vmatprep.mubr.msk.bf16.mxu1 %vm22328_vm10, %v22327_v12  ;;  %v6197_v25 = vrot.slane %v20181_v43, 1 }
 0x85c   : > { %19175 = vmatmul.mubr.msk.bf16.gmra.mrb[160].mxu1 %vm5513_vm11, %v16980_v32  ;;  %v24064_v32 = vld [vmem:[#allocation2 + $0x24] sm:$0xff]  }
 0x85d   : > { %19186 = vmatprep.mubr.msk.bf16.mxu1 %vm22328_vm10, %v22327_v12 }
 0x864   : > { %19187 = vmatmul.mubr.msk.bf16.vlgmr.msra.gmra.mrb[164].mxu1 %vm5513_vm11, %v23880_v63  ;;  %v20180_v63 = vld [vmem:[#allocation2 + $0xc] sm:$0xff]  }
 0x865   : > { %19190 = vmatprep.mubr.msk.bf16.mxu1 %vm22328_vm10, %v22327_v12  ;;  %19207 = vmatpush3.bf16.msra.mxu1 %v20175_v58  ;;  %v6195_v10 = vrot.slane %v20180_v63, 1  ;;  %v20197_v58 = vld [vmem:[#allocation11 + $0xb8] sm:$0xff]  }
 0x866   : > { %19208 = vmatprep.subr.bf16.mxu1 %v22327_v12 }
 0x867   : > { %v6198_v48 = vsel %vm1640_vm4, %v6195_v10, %v6197_v25 }
 0x869   : > { %19209 = vmatpush3.bf16.msra.mxu1 %v20176_v17  ;;  %v6406_v17 = vor.u32 %v6405_v28, %v6402_v8 }
 0x86a   : > { %19210 = vmatprep.subr.bf16.mxu1 %v22327_v12 }
 0x86b   : > { %v6407_v63 = vsel %vm2511_vm5, %v6397_v52, %v6406_v17  ;;  %v6739_v52 = vrot.slane %v23935_v39, 2 }
 0x86c   : > { %19191 = vmatmul.mubr.msk.bf16.gmra.mrb[168].mxu1 %vm5513_vm11, %v23895_v53  ;;  %v20179_v53 = vld [vmem:[#allocation2 + $0x4] sm:$0xfe]  }
 0x86d   : > { %19194 = vmatprep.mubr.msk.bf16.mxu1 %vm22328_vm10, %v22327_v12  ;;  %19211 = vmatpush3.bf16.msra.mxu1 %v20177_v21  ;;  %v6194_v23 = vrot.slane %v20179_v53, 1  ;;  %v6409_v21 = vshrl.u32 %v24064_v32, 16 }
 0x86e   : > { %19212 = vmatprep.subr.bf16.mxu1 %v22327_v12 }
 0x86f   : > { %v6196_v33 = vsel %vm1640_vm4, %v6194_v23, %v6195_v10  ;;  %v6411_v53 = vrot.slane %v6409_v21, 1 }
 0x871   : > { %19213 = vmatpush3.bf16.msra.mxu1 %v20178_v22  ;;  %v6412_v22 = vshll.u32 %v24064_v32, 16 }
 0x872   : > { %19234 = vmatprep.subr.bf16.mxu1 %v22327_v12 }
 0x873   : > { %v6414_v10 = vrot.slane %v6412_v22, 2  ;;  %v20212_v22 = vld [vmem:[#allocation11 + $0xf0] sm:$0xff]  }
 0x874   : > { %19195 = vmatmul.mubr.msk.bf16.gmra.mrb[172].mxu1 %vm5513_vm11, %v23911_v62  ;;  %v6199_v62 = vrot.slane %v20182_v11, 1  ;;  %v6558_v11 = vrot.slane %v24038_v15, 2  ;;  %v20202_v15 = vld [vmem:[#allocation11 + $0xd8] sm:$0xff]  }
 0x875   : > { %19198 = vmatprep.mubr.msk.bf16.mxu1 %vm22328_vm10, %v22327_v12  ;;  %v6415_v23 = vor.u32 %v6414_v10, %v6411_v53  ;;  %v20213_v10 = vld [vmem:[#allocation11 + $0xf8] sm:$0xff]  }
 0x876   : > { %v6200_v16 = vsel %vm1640_vm4, %v6197_v25, %v6199_v62  ;;  %v6202_v61 = vsel %vm1640_vm4, %v6199_v62, %v6201_v18  ;;  %v20199_v62 = vld [vmem:[#allocation11 + $0xc0] sm:$0xff]  }
 0x87c   : > { %19199 = vmatmul.mubr.msk.bf16.gmra.mrb[176].mxu1 %vm5513_vm11, %v23931_v14  ;;  %v6376_v14 = vrot.slane %v6374_v60, 1 }
 0x87d   : > { %19202 = vmatprep.mubr.msk.bf16.mxu1 %vm22328_vm10, %v22327_v12 }
 0x884   : > { %19203 = vmatmul.mubr.msk.bf16.gmra.mrb[180].mxu1 %vm5513_vm11, %v6026_v56  ;;  %v6377_v56 = vshll.u32 %v17014_v2, 16 }
 0x885   : > { %19214 = vmatprep.mubr.msk.bf16.mxu1 %vm22328_vm10, %v22327_v12 }
 0x886   : > { %v6379_v59 = vrot.slane %v6377_v56, 2 }
 0x888   : > { %v6380_v3 = vor.u32 %v6379_v59, %v6376_v14 }
 0x88a   : > { %v6389_v44 = vsel %vm2511_vm5, %v6380_v3, %v6388_v36 }
 0x88c   : > { %19215 = vmatmul.mubr.msk.bf16.vlgmr.msra.gmra.mrb[184].mxu1 %vm5513_vm11, %v6196_v33  ;;  %v6416_v33 = vsel %vm2511_vm5, %v6406_v17, %v6415_v23 }
 0x88d   : > { %19218 = vmatprep.mubr.msk.bf16.mxu1 %vm22328_vm10, %v22327_v12  ;;  %19235 = vmatpush3.bf16.msra.mxu1 %v20184_v30  ;;  %v20195_v30 = vld [vmem:[#allocation2 + $0x2c] ss:$0 sps:$4 sm:$0x11]  }
 0x88e   : > { %19236 = vmatprep.subr.bf16.mxu1 %v22327_v12  ;;  %v6418_v43 = vshll.u32 %v20195_v30, 16  ;;  %v6566_v3 = vrot.slane %v20195_v30, 2  ;;  %v6743_v30 = vrot.slane %v23946_v20, 2 }
 0x891   : > { %19237 = vmatpush3.bf16.msra.mxu1 %v20185_v38  ;;  %v6420_v38 = vrot.slane %v6418_v43, 2 }
 0x892   : > { %19238 = vmatprep.subr.bf16.mxu1 %v22327_v12 }
 0x893   : > { %v6421_v25 = vsel %vm2511_vm5, %v6415_v23, %v6420_v38  ;;  %vm16371_vm5 = vcmask 49152  }
 0x894   : > { %19219 = vmatmul.mubr.msk.bf16.gmra.mrb[188].mxu1 %vm5513_vm11, %v6198_v48 }
 0x895   : > { %19222 = vmatprep.mubr.msk.bf16.mxu1 %vm22328_vm10, %v22327_v12  ;;  %19239 = vmatpush3.bf16.msra.mxu1 %v20186_v41  ;;  %v6544_v41 = vld [vmem:[#allocation2 + $0x4] sm:$0xc] }
 0x896   : > { %19240 = vmatprep.subr.bf16.mxu1 %v22327_v12  ;;  %v17029_v48 = vcombine.low %v6544_v41, %v24035_v27 }
 0x899   : > { %19241 = vmatpush3.bf16.msra.mxu1 %v20187_v37  ;;  %v6557_v37 = vrot.slane %v17029_v48, 2 }
 0x89a   : > { %19262 = vmatprep.subr.bf16.mxu1 %v22327_v12 }
 0x89c   : > { %19223 = vmatmul.mubr.msk.bf16.gmra.mrb[192].mxu1 %vm5513_vm11, %v6200_v16  ;;  %v6559_v16 = vsel %vm2954_vm6, %v6557_v37, %v6558_v11 }
 0x89d   : > { %19226 = vmatprep.mubr.msk.bf16.mxu1 %vm22328_vm10, %v22327_v12 }
 0x8a4   : > { %19227 = vmatmul.mubr.msk.bf16.gmra.mrb[196].mxu1 %vm5513_vm11, %v6202_v61  ;;  %v20201_v61 = vld [vmem:[#allocation11 + $0xd0] sm:$0xff]  }
 0x8a5   : > { %19230 = vmatprep.mubr.msk.bf16.mxu1 %vm22328_vm10, %v22327_v12 }
 0x8ac   : > { %19231 = vmatmul.mubr.msk.bf16.gmra.mrb[200].mxu1 %vm5513_vm11, %v6201_v18  ;;  %v6560_v18 = vrot.slane %v24046_v57, 2  ;;  %v6564_v57 = vrot.slane %v24064_v32, 2 }
 0x8ad   : > { %19242 = vmatprep.mubr.msk.bf16.mxu1 %vm22328_vm10, %v22327_v12 }
 0x8ae   : > { %v6561_v27 = vsel %vm2954_vm6, %v6558_v11, %v6560_v18  ;;  %v6563_v56 = vsel %vm2954_vm6, %v6560_v18, %v6562_v19  ;;  %v6565_v36 = vsel %vm2954_vm6, %v6562_v19, %v6564_v57  ;;  %v6567_v51 = vsel %vm2954_vm6, %v6564_v57, %v6566_v3 }
 0x8af   : > { %v6745_v11 = vrot.slane %v23948_v13, 2 }
 0x8b4   : > { %19243 = vmatmul.mubr.msk.bf16.vlgmr.msra.gmra.mrb[204].mxu1 %vm5513_vm11, %v6389_v44 }
 0x8b5   : > { %19246 = vmatprep.mubr.msk.bf16.mxu1 %vm22328_vm10, %v22327_v12  ;;  %19263 = vmatpush3.bf16.msra.mxu1 %v20193_v24 }
 0x8b6   : > { %19264 = vmatprep.subr.bf16.mxu1 %v22327_v12 }
 0x8b9   : > { %19265 = vmatpush3.bf16.msra.mxu1 %v20194_v0 }
 0x8ba   : > { %19266 = vmatprep.subr.bf16.mxu1 %v22327_v12 }
 0x8bc   : > { %19247 = vmatmul.mubr.msk.bf16.gmra.mrb[208].mxu1 %vm5513_vm11, %v6398_v1  ;;  %v20209_v1 = vld [vmem:[#allocation11 + $0xe0] sm:$0xff]  }
 0x8bd   : > { %19250 = vmatprep.mubr.msk.bf16.mxu1 %vm22328_vm10, %v22327_v12  ;;  %19267 = vmatpush3.bf16.msra.mxu1 %v20196_v54  ;;  %v6738_v54 = vrot.slane %v24119_v5, 2 }
 0x8be   : > { %19268 = vmatprep.subr.bf16.mxu1 %v22327_v12 }
 0x8bf   : > { %v6740_v28 = vsel %vm2954_vm6, %v6738_v54, %v6739_v52 }
 0x8c1   : > { %19269 = vmatpush3.bf16.msra.mxu1 %v20197_v58  ;;  %v6741_v58 = vrot.slane %v23940_v42, 2 }
 0x8c2   : > { %19290 = vmatprep.subr.bf16.mxu1 %v22327_v12 }
 0x8c3   : > { %v6742_v53 = vsel %vm2954_vm6, %v6739_v52, %v6741_v58  ;;  %v6744_v48 = vsel %vm2954_vm6, %v6741_v58, %v6743_v30  ;;  %v6904_v58 = vrot.slane %v6902_v55, 2 }
 0x8c4   : > { %19251 = vmatmul.mubr.msk.bf16.gmra.mrb[212].mxu1 %vm5513_vm11, %v6407_v63 }
 0x8c5   : > { %19254 = vmatprep.mubr.msk.bf16.mxu1 %vm22328_vm10, %v22327_v12 }
 0x8cc   : > { %19255 = vmatmul.mubr.msk.bf16.gmra.mrb[216].mxu1 %vm5513_vm11, %v6416_v33 }
 0x8cd   : > { %19258 = vmatprep.mubr.msk.bf16.mxu1 %vm22328_vm10, %v22327_v12 }
 0x8d4   : > { %19259 = vmatmul.mubr.msk.bf16.gmra.mrb[220].mxu1 %vm5513_vm11, %v6421_v25 }
 0x8d5   : > { %19270 = vmatprep.mubr.msk.bf16.mxu1 %vm22328_vm10, %v22327_v12 }
 0x8dc   : > { %19271 = vmatmul.mubr.msk.bf16.vlgmr.msra.gmra.mrb[224].mxu1 %vm5513_vm11, %v6559_v16 }
 0x8dd   : > { %19274 = vmatprep.mubr.msk.bf16.mxu1 %vm22328_vm10, %v22327_v12  ;;  %19291 = vmatpush3.bf16.msra.mxu1 %v20199_v62 }
 0x8de   : > { %19292 = vmatprep.subr.bf16.mxu1 %v22327_v12 }
 0x8e1   : > { %19293 = vmatpush3.bf16.msra.mxu1 %v20200_v45 }
 0x8e2   : > { %19294 = vmatprep.subr.bf16.mxu1 %v22327_v12 }
 0x8e4   : > { %19275 = vmatmul.mubr.msk.bf16.gmra.mrb[228].mxu1 %vm5513_vm11, %v6561_v27  ;;  %v6746_v27 = vsel %vm2954_vm6, %v6743_v30, %v6745_v11  ;;  %v20217_v30 = vld [vmem:[#allocation11 + $0x110] sm:$0xff]  }
 0x8e5   : > { %19278 = vmatprep.mubr.msk.bf16.mxu1 %vm22328_vm10, %v22327_v12  ;;  %19295 = vmatpush3.bf16.msra.mxu1 %v20201_v61  ;;  %v5856_v46 = vpop.f32.mrb[124].mxu1 }
 0x8e6   : > { %19296 = vmatprep.subr.bf16.mxu1 %v22327_v12  ;;  %v19132_v2 = vpop.f32.mrb[125].mxu1 }
 0x8e7   : > { %v5859_v47 = vpop.f32.mrb[126].mxu1  ;;  %v6896_v2 = vshll.u32 %v23935_v39, 16 }
 0x8e8   : > { %v19133_v60 = vpop.f32.mrb[127].mxu1 }
 0x8e9   : > { %19297 = vmatpush3.bf16.msra.mxu1 %v20202_v15  ;;  %v20211_v15 = vld [vmem:[#allocation2 + $0x30] ss:$0 sps:$4 sm:$0x11]  }
 0x8ea   : > { %19318 = vmatprep.subr.bf16.mxu1 %v22327_v12 }
 0x8ec   : > { %19279 = vmatmul.mubr.msk.bf16.gmra.mrb[232].mxu1 %vm5513_vm11, %v6563_v56 }
 0x8ed   : > { %19282 = vmatprep.mubr.msk.bf16.mxu1 %vm22328_vm10, %v22327_v12  ;;  %v5864_v50 = vpop.f32.mrb[128].mxu1 }
 0x8ee   : > { %v19136_v6 = vpop.f32.mrb[129].mxu1 }
 0x8ef   : > { %v5867_v14 = vpop.f32.mrb[130].mxu1  ;;  %v6888_v6 = vshll.u32 %v24119_v5, 16 }
 0x8f0   : > { %v19137_v59 = vpop.f32.mrb[131].mxu1 }
 0x8f4   : > { %19283 = vmatmul.mubr.msk.bf16.gmra.mrb[236].mxu1 %vm5513_vm11, %v6565_v36 }
 0x8f5   : > { %19286 = vmatprep.mubr.msk.bf16.mxu1 %vm22328_vm10, %v22327_v12  ;;  %v24110_v26 = vpop.f32.mrb[132].mxu1 }
 0x8f6   : > { %v19140_v40 = vpop.f32.mrb[133].mxu1 }
 0x8f7   : > { %v24112_v24 = vpop.f32.mrb[134].mxu1  ;;  %v6898_v40 = vrot.slane %v6896_v2, 3 }
 0x8f8   : > { %v19141_v44 = vpop.f32.mrb[135].mxu1 }
 0x8f9   : > { %v6890_v44 = vrot.slane %v6888_v6, 3 }
 0x8fc   : > { %19287 = vmatmul.mubr.msk.bf16.gmra.mrb[240].mxu1 %vm5513_vm11, %v6567_v51 }
 0x8fd   : > { %19298 = vmatprep.mubr.msk.bf16.mxu1 %vm22328_vm10, %v22327_v12 }
 0x8ff   : > { %v24121_v0 = vpop.f32.mrb[136].mxu1 }
 0x900   : > { %v19144_v49 = vpop.f32.mrb[137].mxu1 }
 0x901   : > { %v24124_v9 = vpop.f32.mrb[138].mxu1 }
 0x902   : > { %v19145_v8 = vpop.f32.mrb[139].mxu1 }
 0x904   : > { %19299 = vmatmul.mubr.msk.bf16.vlgmr.msra.gmra.mrb[244].mxu1 %vm5513_vm11, %v6740_v28 }
 0x905   : > { %19302 = vmatprep.mubr.msk.bf16.mxu1 %vm22328_vm10, %v22327_v12  ;;  %19319 = vmatpush3.bf16.msra.mxu1 %v20209_v1  ;;  %v20214_v1 = vld [vmem:[#allocation11 + $0x100] sm:$0xff]  }
 0x906   : > { %19320 = vmatprep.subr.bf16.mxu1 %v22327_v12 }
 0x907   : > { %v24132_v32 = vpop.f32.mrb[140].mxu1 }
 0x908   : > { %v19148_v17 = vpop.f32.mrb[141].mxu1 }
 0x909   : > { %v24135_v21 = vpop.f32.mrb[142].mxu1  ;;  %19321 = vmatpush3.bf16.msra.mxu1 %v20210_v35 }
 0x90a   : > { %v19149_v63 = vpop.f32.mrb[143].mxu1  ;;  %19322 = vmatprep.subr.bf16.mxu1 %v22327_v12 }
 0x90b   : > { %v6911_v63 = vshrl.u32 %v23946_v20, 16 }
 0x90c   : > { %19303 = vmatmul.mubr.msk.bf16.gmra.mrb[248].mxu1 %vm5513_vm11, %v6742_v53 }
 0x90d   : > { %19306 = vmatprep.mubr.msk.bf16.mxu1 %vm22328_vm10, %v22327_v12  ;;  %19323 = vmatpush3.bf16.msra.mxu1 %v20212_v22 }
 0x90e   : > { %19324 = vmatprep.subr.bf16.mxu1 %v22327_v12 }
 0x90f   : > { %v5967_v23 = vpop.f32.mrb[144].mxu1 }
 0x910   : > { %v19160_v33 = vpop.f32.mrb[145].mxu1  ;;  %v24144_v43 = vadd.f32 %v5967_v23, %v5856_v46  ;;  %v6893_v46 = vshrl.u32 %v23935_v39, 16 }
 0x911   : > { %v5970_v38 = vpop.f32.mrb[146].mxu1  ;;  %19325 = vmatpush3.bf16.msra.mxu1 %v20213_v10 }
 0x912   : > { %v19161_v25 = vpop.f32.mrb[147].mxu1  ;;  %v24146_v41 = vadd.f32 %v5970_v38, %v5859_v47  ;;  %19346 = vmatprep.subr.bf16.mxu1 %v22327_v12  ;;  %v6747_v47 = vrot.slane %v20211_v15, 2  ;;  %v6895_v36 = vrot.slane %v6893_v46, 2 }
 0x914   : > { %19307 = vmatmul.mubr.msk.bf16.gmra.mrb[252].mxu1 %vm5513_vm11, %v6744_v48  ;;  %v6748_v3 = vsel %vm2954_vm6, %v6745_v11, %v6747_v47  ;;  %v6899_v51 = vor.u32 %v6898_v40, %v6895_v36  ;;  %v6913_v48 = vrot.slane %v6911_v63, 2 }
 0x915   : > { %19310 = vmatprep.mubr.msk.bf16.mxu1 %vm22328_vm10, %v22327_v12 }
 0x917   : > { %v5975_v37 = vpop.f32.mrb[148].mxu1 }
 0x918   : > { %v24154_v62 = vadd.f32 %v5975_v37, %v5864_v50  ;;  %v19164_v16 = vpop.f32.mrb[149].mxu1  ;;  %v6885_v50 = vshrl.u32 %v24119_v5, 16  ;;  %v6905_v5 = vshll.u32 %v23940_v42, 16  ;;  %v20215_v42 = vld [vmem:[#allocation11 + $0x108] sm:$0xff]  }
 0x919   : > { %v5978_v45 = vpop.f32.mrb[150].mxu1  ;;  %v6923_v16 = vshll.u32 %v23948_v13, 16 }
 0x91a   : > { %v24156_v18 = vadd.f32 %v5978_v45, %v5867_v14  ;;  %v19165_v61 = vpop.f32.mrb[151].mxu1  ;;  %v6887_v39 = vrot.slane %v6885_v50, 2  ;;  %v6907_v17 = vrot.slane %v6905_v5, 3 }
 0x91b   : > { %v6925_v47 = vrot.slane %v6923_v16, 3 }
 0x91c   : > { %19311 = vmatmul.mubr.msk.bf16.gmra.mrb[0].mxu1 %vm5513_vm11, %v6746_v27  ;;  %v6891_v49 = vor.u32 %v6890_v44, %v6887_v39  ;;  %v6908_v22 = vor.u32 %v6907_v17, %v6904_v58 }
 0x91d   : > { %19314 = vmatprep.mubr.msk.bf16.mxu1 %vm22328_vm10, %v22327_v12 }
 0x91e   : > { %v6900_v35 = vsel %vm3707_vm7, %v6891_v49, %v6899_v51  ;;  %v6909_v25 = vsel %vm3707_vm7, %v6899_v51, %v6908_v22 }
 0x91f   : > { %v5983_v19 = vpop.f32.mrb[152].mxu1 }
 0x920   : > { %v24165_v60 = vadd.f32 %v5983_v19, %v24110_v26  ;;  %v19168_v56 = vpop.f32.mrb[153].mxu1 }
 0x921   : > { %v5986_v57 = vpop.f32.mrb[154].mxu1  ;;  %v24209_v56 = vld [vmem:[#allocation2 + $0x30] ss:$0 sps:$4 sm:$0x33]  }
 0x922   : > { %v24170_v14 = vadd.f32 %v5986_v57, %v24112_v24  ;;  %v19169_v59 = vpop.f32.mrb[155].mxu1  ;;  %v6929_v6 = vshrl.u32 %v24209_v56, 16 }
 0x924   : > { %19315 = vmatmul.mubr.msk.bf16.gmra.mrb[4].mxu1 %vm5513_vm11, %v6748_v3  ;;  %v6931_v44 = vrot.slane %v6929_v6, 2 }
 0x925   : > { %19326 = vmatprep.mubr.msk.bf16.mxu1 %vm22328_vm10, %v22327_v12 }
 0x927   : > { %v5991_v26 = vpop.f32.mrb[156].mxu1 }
 0x928   : > { %v24179_v24 = vadd.f32 %v5991_v26, %v24121_v0  ;;  %v19172_v52 = vpop.f32.mrb[157].mxu1 }
 0x929   : > { %v5994_v54 = vpop.f32.mrb[158].mxu1 }
 0x92a   : > { %v24182_v8 = vadd.f32 %v5994_v54, %v24124_v9  ;;  %v19173_v28 = vpop.f32.mrb[159].mxu1  ;;  %v6914_v9 = vshll.u32 %v23946_v20, 16  ;;  %v20218_v20 = vld [vmem:[#allocation11 + $0x118] sm:$0xff]  }
 0x92c   : > { %19327 = vmatmul.mubr.msk.bf16.vlgmr.msra.gmra.mrb[8].mxu1 %vm5513_vm11, %v6900_v35  ;;  %v6916_v11 = vrot.slane %v6914_v9, 3 }
 0x92d   : > { %19330 = vmatprep.mubr.msk.bf16.mxu1 %vm22328_vm10, %v22327_v12  ;;  %19347 = vmatpush3.bf16.msra.mxu1 %v20214_v1 }
 0x92e   : > { %19348 = vmatprep.subr.bf16.mxu1 %v22327_v12  ;;  %v6917_v37 = vor.u32 %v6916_v11, %v6913_v48 }
 0x92f   : > { %v5999_v0 = vpop.f32.mrb[160].mxu1 }
 0x930   : > { %v24192_v53 = vadd.f32 %v5999_v0, %v24132_v32  ;;  %v19176_v10 = vpop.f32.mrb[161].mxu1  ;;  %v6918_v2 = vsel %vm3707_vm7, %v6908_v22, %v6917_v37 }
 0x931   : > { %v6002_v23 = vpop.f32.mrb[162].mxu1  ;;  %19349 = vmatpush3.bf16.msra.mxu1 %v20215_v42 }
 0x932   : > { %v24195_v33 = vadd.f32 %v6002_v23, %v24135_v21  ;;  %v19177_v38 = vpop.f32.mrb[163].mxu1  ;;  %19350 = vmatprep.subr.bf16.mxu1 %v22327_v12  ;;  %v6920_v21 = vshrl.u32 %v23948_v13, 16 }
 0x934   : > { %19331 = vmatmul.mubr.msk.bf16.gmra.mrb[12].mxu1 %vm5513_vm11, %v6909_v25  ;;  %v6922_v19 = vrot.slane %v6920_v21, 2 }
 0x935   : > { %19334 = vmatprep.mubr.msk.bf16.mxu1 %vm22328_vm10, %v22327_v12  ;;  %19351 = vmatpush3.bf16.msra.mxu1 %v20217_v30 }
 0x936   : > { %19352 = vmatprep.subr.bf16.mxu1 %v22327_v12  ;;  %v6926_v50 = vor.u32 %v6925_v47, %v6922_v19 }
 0x937   : > { %v6101_v32 = vpop.f32.mrb[164].mxu1 }
 0x938   : > { %v6140_v45 = vadd.f32 %v6101_v32, %v24144_v43  ;;  %v19188_v61 = vpop.f32.mrb[165].mxu1  ;;  %v6927_v39 = vsel %vm3707_vm7, %v6917_v37, %v6926_v50 }
 0x939   : > { %v6104_v27 = vpop.f32.mrb[166].mxu1  ;;  %19353 = vmatpush3.bf16.msra.mxu1 %v20218_v20  ;;  %v7081_v20 = vrot.slane %v24209_v56, 3 }
 0x93a   : > { %v6141_v15 = vadd.f32 %v6104_v27, %v24146_v41  ;;  %v19189_v46 = vpop.f32.mrb[167].mxu1  ;;  %19402 = vmatprep.subr.bf16.mxu1 %v22327_v12  ;;  %v6932_v41 = vshll.u32 %v24209_v56, 16 }
 0x93c   : > { %19335 = vmatmul.mubr.msk.bf16.gmra.mrb[16].mxu1 %vm5513_vm11, %v6918_v2  ;;  %v6934_v26 = vrot.slane %v6932_v41, 3 }
 0x93d   : > { %19338 = vmatprep.mubr.msk.bf16.mxu1 %vm22328_vm10, %v22327_v12 }
 0x93e   : > { %v6935_v55 = vor.u32 %v6934_v26, %v6931_v44 }
 0x93f   : > { %v6109_v43 = vpop.f32.mrb[168].mxu1 }
 0x940   : > { %v6142_v57 = vadd.f32 %v6109_v43, %v24154_v62  ;;  %v19192_v59 = vpop.f32.mrb[169].mxu1 }
 0x941   : > { %v6112_v36 = vpop.f32.mrb[170].mxu1 }
 0x942   : > { %v6143_v40 = vadd.f32 %v6112_v36, %v24156_v18  ;;  %v19193_v3 = vpop.f32.mrb[171].mxu1  ;;  %v6936_v18 = vsel %vm3707_vm7, %v6926_v50, %v6935_v55 }
 0x944   : > { %19339 = vmatmul.mubr.msk.bf16.gmra.mrb[20].mxu1 %vm5513_vm11, %v6927_v39 }
 0x945   : > { %19342 = vmatprep.mubr.msk.bf16.mxu1 %vm22328_vm10, %v22327_v12 }
 0x947   : > { %v6117_v51 = vpop.f32.mrb[172].mxu1 }
 0x948   : > { %v6144_v5 = vadd.f32 %v6117_v51, %v24165_v60  ;;  %v19196_v52 = vpop.f32.mrb[173].mxu1 }
 0x949   : > { %v6120_v62 = vpop.f32.mrb[174].mxu1 }
 0x94a   : > { %v6145_v49 = vadd.f32 %v6120_v62, %v24170_v14  ;;  %v19197_v54 = vpop.f32.mrb[175].mxu1 }
 0x94c   : > { %19343 = vmatmul.mubr.msk.bf16.gmra.mrb[24].mxu1 %vm5513_vm11, %v6936_v18 }
 0x94d   : > { %19354 = vmatprep.mubr.msk.bf16.mxu1 %vm22328_vm10, %v22327_v12 }
 0x94f   : > { %v6125_v1 = vpop.f32.mrb[176].mxu1 }
 0x950   : > { %v6146_v28 = vadd.f32 %v6125_v1, %v24179_v24  ;;  %v19200_v35 = vpop.f32.mrb[177].mxu1 }
 0x951   : > { %v6128_v58 = vpop.f32.mrb[178].mxu1 }
 0x952   : > { %v6147_v17 = vadd.f32 %v6128_v58, %v24182_v8  ;;  %v19201_v60 = vpop.f32.mrb[179].mxu1 }
 0x954   : > { %19355 = vmatmul.mubr.msk.bf16.vlgmr.msra.gmra.mrb[28].mxu1 %vm5513_vm11, %v23952_v29 }
 0x955   : > { %19358 = vmatprep.mubr.msk.bf16.mxu1 %vm22328_vm10, %v22327_v12 }
 0x957   : > { %v6133_v14 = vpop.f32.mrb[180].mxu1 }
 0x958   : > { %v6148_v42 = vadd.f32 %v6133_v14, %v24192_v53  ;;  %v19204_v0 = vpop.f32.mrb[181].mxu1 }
 0x959   : > { %v6136_v22 = vpop.f32.mrb[182].mxu1 }
 0x95a   : > { %v6149_v63 = vadd.f32 %v6136_v22, %v24195_v33  ;;  %v19205_v9 = vpop.f32.mrb[183].mxu1 }
 0x95c   : > { %19359 = vmatmul.mubr.msk.bf16.gmra.mrb[32].mxu1 %vm5513_vm11, %v23956_v34 }
 0x95d   : > { %19362 = vmatprep.mubr.msk.bf16.mxu1 %vm22328_vm10, %v22327_v12 }
 0x95f   : > { %v6276_v24 = vpop.f32.mrb[184].mxu1 }
 0x960   : > { %v6315_v8 = vadd.f32 %v6276_v24, %v6140_v45  ;;  %v19216_v29 = vpop.f32.mrb[185].mxu1  ;;  %v7082_v45 = vsel %vm4154_vm8, %v7079_v7, %v7081_v20 }
 0x961   : > { %v6279_v10 = vpop.f32.mrb[186].mxu1 }
 0x962   : > { %v6316_v23 = vadd.f32 %v6279_v10, %v6141_v15  ;;  %v19217_v30 = vpop.f32.mrb[187].mxu1 }
 0x964   : > { %19363 = vmatmul.mubr.msk.bf16.gmra.mrb[36].mxu1 %vm5513_vm11, %v23963_v31 }
 0x965   : > { %19366 = vmatprep.mubr.msk.bf16.mxu1 %vm22328_vm10, %v22327_v12 }
 0x967   : > { %v6284_v53 = vpop.f32.mrb[188].mxu1 }
 0x968   : > { %v6317_v33 = vadd.f32 %v6284_v53, %v6142_v57  ;;  %v19220_v38 = vpop.f32.mrb[189].mxu1 }
 0x969   : > { %v6287_v25 = vpop.f32.mrb[190].mxu1 }
 0x96a   : > { %v6318_v34 = vadd.f32 %v6287_v25, %v6143_v40  ;;  %v19221_v48 = vpop.f32.mrb[191].mxu1 }
 0x96c   : > { %19367 = vmatmul.mubr.msk.bf16.gmra.mrb[40].mxu1 %vm5513_vm11, %v23968_v4 }
 0x96d   : > { %19370 = vmatprep.mubr.msk.bf16.mxu1 %vm22328_vm10, %v22327_v12 }
 0x96f   : > { %v6292_v11 = vpop.f32.mrb[192].mxu1 }
 0x970   : > { %v6319_v32 = vadd.f32 %v6292_v11, %v6144_v5  ;;  %v19224_v31 = vpop.f32.mrb[193].mxu1 }
 0x971   : > { %v6295_v37 = vpop.f32.mrb[194].mxu1 }
 0x972   : > { %v6320_v21 = vadd.f32 %v6295_v37, %v6145_v49  ;;  %v19225_v16 = vpop.f32.mrb[195].mxu1 }
 0x974   : > { %19371 = vmatmul.mubr.msk.bf16.gmra.mrb[44].mxu1 %vm5513_vm11, %v7082_v45 }
 0x975   : > { %19412 = vmatprep.mubr.msk.bf16.mxu1 %vm22328_vm10, %v22327_v12 }
 0x977   : > { %v6300_v4 = vpop.f32.mrb[196].mxu1 }
 0x978   : > { %v6321_v61 = vadd.f32 %v6300_v4, %v6146_v28  ;;  %v19228_v27 = vpop.f32.mrb[197].mxu1 }
 0x979   : > { %v6303_v15 = vpop.f32.mrb[198].mxu1 }
 0x97a   : > { %v6322_v46 = vadd.f32 %v6303_v15, %v6147_v17  ;;  %v19229_v2 = vpop.f32.mrb[199].mxu1 }
 0x97f   : > { %v6308_v19 = vpop.f32.mrb[200].mxu1 }
 0x980   : > { %v6323_v47 = vadd.f32 %v6308_v19, %v6148_v42  ;;  %v19232_v56 = vpop.f32.mrb[201].mxu1 }
 0x981   : > { %v6311_v43 = vpop.f32.mrb[202].mxu1 }
 0x982   : > { %v6324_v50 = vadd.f32 %v6311_v43, %v6149_v63  ;;  %v19233_v6 = vpop.f32.mrb[203].mxu1 }
 0x987   : > { %v6495_v13 = vpop.f32.mrb[204].mxu1 }
 0x988   : > { %v6534_v41 = vadd.f32 %v6495_v13, %v6315_v8  ;;  %v19244_v7 = vpop.f32.mrb[205].mxu1 }
 0x989   : > { %v6498_v57 = vpop.f32.mrb[206].mxu1 }
 0x98a   : > { %v6535_v59 = vadd.f32 %v6498_v57, %v6316_v23  ;;  %v19245_v36 = vpop.f32.mrb[207].mxu1 }
 0x98f   : > { %v6503_v40 = vpop.f32.mrb[208].mxu1 }
 0x990   : > { %v6536_v3 = vadd.f32 %v6503_v40, %v6317_v33  ;;  %v19248_v39 = vpop.f32.mrb[209].mxu1 }
 0x991   : > { %v6506_v44 = vpop.f32.mrb[210].mxu1 }
 0x992   : > { %v6537_v26 = vadd.f32 %v6506_v44, %v6318_v34  ;;  %v19249_v51 = vpop.f32.mrb[211].mxu1 }
 0x997   : > { %v6511_v55 = vpop.f32.mrb[212].mxu1 }
 0x998   : > { %v6538_v5 = vadd.f32 %v6511_v55, %v6319_v32  ;;  %v19252_v52 = vpop.f32.mrb[213].mxu1 }
 0x999   : > { %v6514_v62 = vpop.f32.mrb[214].mxu1 }
 0x99a   : > { %v6539_v49 = vadd.f32 %v6514_v62, %v6320_v21  ;;  %v19253_v54 = vpop.f32.mrb[215].mxu1 }
 0x99f   : > { %v6519_v18 = vpop.f32.mrb[216].mxu1 }
 0x9a0   : > { %v6540_v1 = vadd.f32 %v6519_v18, %v6321_v61  ;;  %v19256_v28 = vpop.f32.mrb[217].mxu1 }
 0x9a1   : > { %v6522_v35 = vpop.f32.mrb[218].mxu1 }
 0x9a2   : > { %v6541_v58 = vadd.f32 %v6522_v35, %v6322_v46  ;;  %v19257_v17 = vpop.f32.mrb[219].mxu1 }
 0x9a7   : > { %v6527_v60 = vpop.f32.mrb[220].mxu1 }
 0x9a8   : > { %v6542_v14 = vadd.f32 %v6527_v60, %v6323_v47  ;;  %v19260_v42 = vpop.f32.mrb[221].mxu1 }
 0x9a9   : > { %v6530_v0 = vpop.f32.mrb[222].mxu1 }
 0x9aa   : > { %v6543_v22 = vadd.f32 %v6530_v0, %v6324_v50  ;;  %v19261_v63 = vpop.f32.mrb[223].mxu1 }
 0x9af   : > { %v6641_v9 = vpop.f32.mrb[224].mxu1 }
 0x9b0   : > { %v6680_v24 = vadd.f32 %v6641_v9, %v6534_v41  ;;  %v19272_v8 = vpop.f32.mrb[225].mxu1 }
 0x9b1   : > { %v6644_v29 = vpop.f32.mrb[226].mxu1 }
 0x9b2   : > { %v6681_v10 = vadd.f32 %v6644_v29, %v6535_v59  ;;  %v19273_v23 = vpop.f32.mrb[227].mxu1 }
 0x9b7   : > { %v6649_v30 = vpop.f32.mrb[228].mxu1 }
 0x9b8   : > { %v6682_v53 = vadd.f32 %v6649_v30, %v6536_v3  ;;  %v19276_v33 = vpop.f32.mrb[229].mxu1 }
 0x9b9   : > { %v6652_v38 = vpop.f32.mrb[230].mxu1 }
 0x9ba   : > { %v6683_v25 = vadd.f32 %v6652_v38, %v6537_v26  ;;  %v19277_v34 = vpop.f32.mrb[231].mxu1 }
 0x9bf   : > { %v6657_v48 = vpop.f32.mrb[232].mxu1 }
 0x9c0   : > { %v6684_v11 = vadd.f32 %v6657_v48, %v6538_v5  ;;  %v19280_v20 = vpop.f32.mrb[233].mxu1 }
 0x9c1   : > { %v6660_v32 = vpop.f32.mrb[234].mxu1 }
 0x9c2   : > { %v6685_v31 = vadd.f32 %v6660_v32, %v6539_v49  ;;  %v19281_v37 = vpop.f32.mrb[235].mxu1 }
 0x9c7   : > { %v6665_v21 = vpop.f32.mrb[236].mxu1 }
 0x9c8   : > { %v6686_v16 = vadd.f32 %v6665_v21, %v6540_v1  ;;  %v19284_v45 = vpop.f32.mrb[237].mxu1 }
 0x9c9   : > { %v6668_v4 = vpop.f32.mrb[238].mxu1 }
 0x9ca   : > { %v6687_v61 = vadd.f32 %v6668_v4, %v6541_v58  ;;  %v19285_v27 = vpop.f32.mrb[239].mxu1 }
 0x9cf   : > { %v6673_v15 = vpop.f32.mrb[240].mxu1 }
 0x9d0   : > { %v6688_v46 = vadd.f32 %v6673_v15, %v6542_v14  ;;  %v19288_v2 = vpop.f32.mrb[241].mxu1 }
 0x9d1   : > { %v6676_v19 = vpop.f32.mrb[242].mxu1 }
 0x9d2   : > { %v6689_v47 = vadd.f32 %v6676_v19, %v6543_v22  ;;  %v19289_v56 = vpop.f32.mrb[243].mxu1 }
 0x9d7   : > { %v6822_v43 = vpop.f32.mrb[244].mxu1 }
 0x9d8   : > { %v6861_v50 = vadd.f32 %v6822_v43, %v6680_v24  ;;  %v19300_v6 = vpop.f32.mrb[245].mxu1 }
 0x9d9   : > { %v6825_v13 = vpop.f32.mrb[246].mxu1 }
 0x9da   : > { %v6862_v41 = vadd.f32 %v6825_v13, %v6681_v10  ;;  %v19301_v7 = vpop.f32.mrb[247].mxu1 }
 0x9df   : > { %v6830_v57 = vpop.f32.mrb[248].mxu1 }
 0x9e0   : > { %v6863_v59 = vadd.f32 %v6830_v57, %v6682_v53  ;;  %v19304_v36 = vpop.f32.mrb[249].mxu1 }
 0x9e1   : > { %v6833_v40 = vpop.f32.mrb[250].mxu1 }
 0x9e2   : > { %v6864_v3 = vadd.f32 %v6833_v40, %v6683_v25  ;;  %v19305_v39 = vpop.f32.mrb[251].mxu1 }
 0x9e7   : > { %v6838_v44 = vpop.f32.mrb[252].mxu1 }
 0x9e8   : > { %v6865_v26 = vadd.f32 %v6838_v44, %v6684_v11  ;;  %v19308_v51 = vpop.f32.mrb[253].mxu1 }
 0x9e9   : > { %v6841_v55 = vpop.f32.mrb[254].mxu1 }
 0x9ea   : > { %v6866_v5 = vadd.f32 %v6841_v55, %v6685_v31  ;;  %v19309_v52 = vpop.f32.mrb[255].mxu1 }
 0x9ef   : > { %v6846_v62 = vpop.f32.mrb[0].mxu1 }
 0x9f0   : > { %v6867_v49 = vadd.f32 %v6846_v62, %v6686_v16  ;;  %v19312_v54 = vpop.f32.mrb[1].mxu1 }
 0x9f1   : > { %v6849_v18 = vpop.f32.mrb[2].mxu1 }
 0x9f2   : > { %v6868_v1 = vadd.f32 %v6849_v18, %v6687_v61  ;;  %v19313_v28 = vpop.f32.mrb[3].mxu1 }
 0x9f7   : > { %v6854_v35 = vpop.f32.mrb[4].mxu1 }
 0x9f8   : > { %v6869_v58 = vadd.f32 %v6854_v35, %v6688_v46  ;;  %v19316_v17 = vpop.f32.mrb[5].mxu1 }
 0x9f9   : > { %v6857_v60 = vpop.f32.mrb[6].mxu1 }
 0x9fa   : > { %v6870_v14 = vadd.f32 %v6857_v60, %v6689_v47  ;;  %v19317_v42 = vpop.f32.mrb[7].mxu1  ;;  %v24259_v47 = vld [vmem:[#allocation13] ss:$0 sm:$0xff] }
 0x9ff   : > { %v7010_v0 = vpop.f32.mrb[8].mxu1 }
 0xa00   : > { %v7049_v22 = vadd.f32 %v7010_v0, %v6861_v50  ;;  %v19328_v63 = vpop.f32.mrb[9].mxu1 }
 0xa01   : > { %v7013_v9 = vpop.f32.mrb[10].mxu1 }
 0xa02   : > { %v7050_v24 = vadd.f32 %v7013_v9, %v6862_v41  ;;  %v19329_v8 = vpop.f32.mrb[11].mxu1 }
 0xa07   : > { %v7018_v29 = vpop.f32.mrb[12].mxu1 }
 0xa08   : > { %v7051_v10 = vadd.f32 %v7018_v29, %v6863_v59  ;;  %v19332_v23 = vpop.f32.mrb[13].mxu1 }
 0xa09   : > { %v7021_v30 = vpop.f32.mrb[14].mxu1 }
 0xa0a   : > { %v7052_v53 = vadd.f32 %v7021_v30, %v6864_v3  ;;  %v19333_v33 = vpop.f32.mrb[15].mxu1 }
 0xa0f   : > { %v7026_v38 = vpop.f32.mrb[16].mxu1 }
 0xa10   : > { %v7053_v25 = vadd.f32 %v7026_v38, %v6865_v26  ;;  %v19336_v34 = vpop.f32.mrb[17].mxu1 }
 0xa11   : > { %v7029_v48 = vpop.f32.mrb[18].mxu1 }
 0xa12   : > { %v7054_v11 = vadd.f32 %v7029_v48, %v6866_v5  ;;  %v19337_v20 = vpop.f32.mrb[19].mxu1 }
 0xa17   : > { %v7034_v32 = vpop.f32.mrb[20].mxu1 }
 0xa18   : > { %v7055_v31 = vadd.f32 %v7034_v32, %v6867_v49  ;;  %v19340_v37 = vpop.f32.mrb[21].mxu1 }
 0xa19   : > { %v7037_v21 = vpop.f32.mrb[22].mxu1 }
 0xa1a   : > { %v7056_v16 = vadd.f32 %v7037_v21, %v6868_v1  ;;  %v19341_v45 = vpop.f32.mrb[23].mxu1 }
 0xa1f   : > { %v7042_v4 = vpop.f32.mrb[24].mxu1 }
 0xa20   : > { %v24255_v61 = vadd.f32 %v7042_v4, %v6869_v58  ;;  %v19344_v27 = vpop.f32.mrb[25].mxu1  ;;  %v20219_v4 = vld [vmem:[#allocation14] sm:$0xff]  }
 0xa21   : > { %v7045_v15 = vpop.f32.mrb[26].mxu1  ;;  %v20220_v27 = vld [vmem:[#allocation14 + $0x8] sm:$0xff]  }
 0xa22   : > { %v24257_v46 = vadd.f32 %v7045_v15, %v6870_v14  ;;  %v19345_v2 = vpop.f32.mrb[27].mxu1  ;;  %v20222_v15 = vld [vmem:[#allocation14 + $0x18] sm:$0xff]  }
 0xa23   : > { %v20228_v2 = vld [vmem:[#allocation16 + $0x84] ss:$8 sps:$4 sm:$0xff]  }
 0xa27   : > { %v7156_v19 = vpop.f32.mrb[28].mxu1 }
 0xa28   : > { %v7195_v56 = vadd.f32 %v7156_v19, %v7049_v22  ;;  %v19356_v43 = vpop.f32.mrb[29].mxu1  ;;  %v20231_v19 = vld [vmem:[#allocation16 + $0x94] ss:$8 sps:$4 sm:$0xff]  }
 0xa29   : > { %v7159_v50 = vpop.f32.mrb[30].mxu1  ;;  %v20232_v43 = vld [vmem:[#allocation16 + $0xa0] ss:$8 sps:$4 sm:$0xff]  }
 0xa2a   : > { %v7212_v6 = vadd.f32 %v24259_v47, %v7195_v56  ;;  %v7196_v13 = vadd.f32 %v7159_v50, %v7050_v24  ;;  %v19357_v41 = vpop.f32.mrb[31].mxu1  ;;  %v20234_v56 = vld [vmem:[#allocation16 + $0xa4] ss:$8 sps:$4 sm:$0xff]  }
 0xa2c   : > { %v7213_v7 = vadd.f32 %v24259_v47, %v7196_v13  ;;  %v7222_v57 = vmax.f32 %v7212_v6, 0.0 }
 0xa2e   : > { %v7223_v59 = vmax.f32 %v7213_v7, 0.0 }
 0xa2f   : > { %v7164_v36 = vpop.f32.mrb[32].mxu1 }
 0xa30   : > { %v24263_v40 = vpack.c.bf16 %v7223_v59, %v7222_v57  ;;  %v7197_v3 = vadd.f32 %v7164_v36, %v7051_v10  ;;  %v19360_v39 = vpop.f32.mrb[33].mxu1 }
 0xa31   : > { %v7167_v44 = vpop.f32.mrb[34].mxu1 }
 0xa32   : > { %v7214_v26 = vadd.f32 %v24259_v47, %v7197_v3  ;;  %v7198_v51 = vadd.f32 %v7167_v44, %v7052_v53  ;;  %v19361_v55 = vpop.f32.mrb[35].mxu1  ;;  %19375 = vmatpush3.bf16.msra.mxu0 %v24263_v40  ;;  %19403 = vmatpush3.bf16.msra.mxu1 %v24263_v40 }
 0xa33   : > { %19376 = vmatprep.subr.bf16.mxu0 %v22327_v12  ;;  %19404 = vmatprep.subr.bf16.mxu1 %v22327_v12 }
 0xa34   : > { %v7215_v5 = vadd.f32 %v24259_v47, %v7198_v51  ;;  %v7224_v52 = vmax.f32 %v7214_v26, 0.0 }
 0xa36   : > { %v7225_v62 = vmax.f32 %v7215_v5, 0.0 }
 0xa37   : > { %v7172_v49 = vpop.f32.mrb[36].mxu1 }
 0xa38   : > { %v24271_v54 = vpack.c.bf16 %v7225_v62, %v7224_v52  ;;  %v7199_v18 = vadd.f32 %v7172_v49, %v7053_v25  ;;  %v19364_v1 = vpop.f32.mrb[37].mxu1 }
 0xa39   : > { %v7175_v28 = vpop.f32.mrb[38].mxu1 }
 0xa3a   : > { %v7216_v35 = vadd.f32 %v24259_v47, %v7199_v18  ;;  %v7200_v58 = vadd.f32 %v7175_v28, %v7054_v11  ;;  %v19365_v17 = vpop.f32.mrb[39].mxu1  ;;  %19377 = vmatpush3.bf16.msra.mxu0 %v24271_v54  ;;  %19405 = vmatpush3.bf16.msra.mxu1 %v24271_v54 }
 0xa3b   : > { %19378 = vmatprep.subr.bf16.mxu0 %v22327_v12  ;;  %19406 = vmatprep.subr.bf16.mxu1 %v22327_v12  ;;  %v20225_v17 = vld [vmem:[%s24937_s16 + $0x10] ss:$0 sps:$4 sm:$0x33]  }
 0xa3c   : > { %v7217_v60 = vadd.f32 %v24259_v47, %v7200_v58  ;;  %v7226_v14 = vmax.f32 %v7216_v35, 0.0  ;;  %v20223_v35 = vld [vmem:[%s24937_s16] sm:$0xff]   ;;  %v20224_v58 = vld [vmem:[%s24937_s16 + $0x8] sm:$0xff]  }
 0xa3e   : > { %v7227_v42 = vmax.f32 %v7217_v60, 0.0  ;;  %v20235_v60 = vld [vmem:[#allocation16 + $0xb0] ss:$8 sps:$4 sm:$0xff]  }
 0xa3f   : > { %v7180_v0 = vpop.f32.mrb[40].mxu1 }
 0xa40   : > { %v7234_v22 = vpack.c.bf16 %v7227_v42, %v7226_v14  ;;  %v7201_v63 = vadd.f32 %v7180_v0, %v7055_v31  ;;  %v19368_v9 = vpop.f32.mrb[41].mxu1  ;;  %v20237_v14 = vld [vmem:[#allocation16 + $0xb4] ss:$8 sps:$4 sm:$0xff]   ;;  %v20238_v42 = vld [vmem:[#allocation16 + $0xc0] ss:$8 sps:$4 sm:$0xff]  }
 0xa41   : > { %v7183_v24 = vpop.f32.mrb[42].mxu1  ;;  %v20240_v0 = vld [vmem:[#allocation16 + $0xc4] ss:$8 sps:$4 sm:$0xff]  }
 0xa42   : > { %v7218_v8 = vadd.f32 %v24259_v47, %v7201_v63  ;;  %v7202_v29 = vadd.f32 %v7183_v24, %v7056_v16  ;;  %v19369_v10 = vpop.f32.mrb[43].mxu1  ;;  %19379 = vmatpush3.bf16.msra.mxu0 %v7234_v22  ;;  %19407 = vmatpush3.bf16.msra.mxu1 %v7234_v22  ;;  %v20241_v63 = vld [vmem:[#allocation16 + $0xd0] ss:$8 sps:$4 sm:$0xff]   ;;  %v20246_v9 = vld [vmem:[#allocation16 + $0xe4] ss:$8 sps:$4 sm:$0xff]  }
 0xa43   : > { %19380 = vmatprep.subr.bf16.mxu0 %v22327_v12  ;;  %19408 = vmatprep.subr.bf16.mxu1 %v22327_v12  ;;  %v20244_v24 = vld [vmem:[#allocation16 + $0xe0] ss:$8 sps:$4 sm:$0xff]   ;;  %v20252_v10 = vld [vmem:[#allocation16 + $0x4] ss:$8 sps:$4 sm:$0xff]  }
 0xa44   : > { %v7219_v23 = vadd.f32 %v24259_v47, %v7202_v29  ;;  %v7228_v30 = vmax.f32 %v7218_v8, 0.0  ;;  %v20249_v8 = vld [vmem:[#allocation16 + $0xf4] ss:$8 sps:$4 sm:$0xff]   ;;  %v20247_v29 = vld [vmem:[#allocation16 + $0xf0] ss:$8 sps:$4 sm:$0xff]  }
 0xa46   : > { %v7229_v53 = vmax.f32 %v7219_v23, 0.0 }
 0xa47   : > { %v7188_v33 = vpop.f32.mrb[44].mxu1 }
 0xa48   : > { %v7235_v38 = vpack.c.bf16 %v7229_v53, %v7228_v30  ;;  %v7203_v25 = vadd.f32 %v7188_v33, %v24255_v61  ;;  %v19372_v34 = vpop.f32.mrb[45].mxu1  ;;  %v20221_v61 = vld [vmem:[#allocation14 + $0x10] sm:$0xff]  }
 0xa49   : > { %v7191_v48 = vpop.f32.mrb[46].mxu1 }
 0xa4a   : > { %v7220_v11 = vadd.f32 %v24259_v47, %v7203_v25  ;;  %v7204_v20 = vadd.f32 %v7191_v48, %v24257_v46  ;;  %v19373_v32 = vpop.f32.mrb[47].mxu1  ;;  %19381 = vmatpush3.bf16.msra.mxu0 %v7235_v38  ;;  %19409 = vmatpush3.bf16.msra.mxu1 %v7235_v38  ;;  %v20226_v46 = vld [vmem:[#allocation16 + $0x80] ss:$8 sps:$4 sm:$0xff]  }
 0xa4b   : > { %19382 = vmatprep.subr.bf16.mxu0 %v22327_v12  ;;  %19410 = vmatprep.subr.bf16.mxu1 %v22327_v12 }
 0xa4c   : > { %v7221_v31 = vadd.f32 %v24259_v47, %v7204_v20  ;;  %v7230_v37 = vmax.f32 %v7220_v11, 0.0  ;;  %v20229_v47 = vld [vmem:[#allocation16 + $0x90] ss:$8 sps:$4 sm:$0xff]  }
 0xa4e   : > { %v7231_v21 = vmax.f32 %v7221_v31, 0.0 }
 0xa50   : > { %v7236_v16 = vpack.c.bf16 %v7231_v21, %v7230_v37 }
 0xa52   : > { %v7249_v45 = vsel %vm1640_vm4, %v7236_v16, 0 }
 0xa53   : > { %19383 = vmatpush3.bf16.msra.mxu0 %v7249_v45  ;;  %19411 = vmatpush3.bf16.msra.mxu1 %v7249_v45 }
 0xa54   : > { %19388 = vmatprep.subr.bf16.mxu0 %v22327_v12  ;;  %19430 = vmatprep.subr.bf16.mxu1 %v22327_v12 }
 0xa56   : > { %19385 = vmatmul.mubr.msk.bf16.vlgmr.msra.gmra.mrb[36].mxu0 %vm7244_vm14, %v20219_v4  ;;  %19413 = vmatmul.mubr.msk.bf16.vlgmr.msra.gmra.mrb[48].mxu1 %vm7244_vm14, %v20221_v61 }
 0xa57   : > { %19389 = vmatpush3.bf16.msra.mxu0 %v24263_v40  ;;  %19398 = vmatprep.mubr.msk.bf16.mxu0 %vm22328_vm10, %v22327_v12 }
 0xa58   : > { %19390 = vmatprep.subr.bf16.mxu0 %v22327_v12  ;;  %19432 = vmatprep.mubr.msk.bf16.mxu1 %vm22328_vm10, %v22327_v12 }
 0xa5b   : > { %19391 = vmatpush3.bf16.msra.mxu0 %v24271_v54 }
 0xa5c   : > { %19392 = vmatprep.subr.bf16.mxu0 %v22327_v12 }
 0xa5f   : > { %19393 = vmatpush3.bf16.msra.mxu0 %v7234_v22 }
 0xa60   : > { %19394 = vmatprep.subr.bf16.mxu0 %v22327_v12 }
 0xa63   : > { %19395 = vmatpush3.bf16.msra.mxu0 %v7235_v38 }
 0xa64   : > { %19396 = vmatprep.subr.bf16.mxu0 %v22327_v12 }
 0xa67   : > { %19397 = vmatpush3.bf16.msra.mxu0 %v7249_v45 }
 0xa68   : > { %19416 = vmatprep.subr.bf16.mxu0 %v22327_v12 }
 0xa6a   : > { %19399 = vmatmul.mubr.msk.bf16.vlgmr.msra.gmra.mrb[40].mxu0 %vm7244_vm14, %v20220_v27 }
 0xa6b   : > { %19417 = vmatpush3.bf16.msra.mxu0 %v24263_v40  ;;  %19426 = vmatprep.mubr.msk.bf16.mxu0 %vm22328_vm10, %v22327_v12 }
 0xa6c   : > { %19418 = vmatprep.subr.bf16.mxu0 %v22327_v12 }
 0xa6f   : > { %19419 = vmatpush3.bf16.msra.mxu0 %v24271_v54 }
 0xa70   : > { %19420 = vmatprep.subr.bf16.mxu0 %v22327_v12 }
 0xa73   : > { %19421 = vmatpush3.bf16.msra.mxu0 %v7234_v22  ;;  %v20243_v22 = vld [vmem:[#allocation16 + $0xd4] ss:$8 sps:$4 sm:$0xff]  }
 0xa74   : > { %19422 = vmatprep.subr.bf16.mxu0 %v22327_v12 }
 0xa77   : > { %19423 = vmatpush3.bf16.msra.mxu0 %v7235_v38 }
 0xa78   : > { %19424 = vmatprep.subr.bf16.mxu0 %v22327_v12 }
 0xa7b   : > { %19425 = vmatpush3.bf16.msra.mxu0 %v7249_v45 }
 0xa7c   : > { %7707 = vmatprep.subr.bf16.mxu0 %v20228_v2 }
 0xa7e   : > { %19427 = vmatmul.mubr.msk.bf16.vlgmr.msra.gmra.mrb[44].mxu0 %vm7244_vm14, %v20222_v15 }
 0xa7f   : > { %7708 = vmatpush1.bf16.msra.mxu0 %v20226_v46 }
 0xa80   : > { %7709 = vmatprep.subr.bf16.mxu0 %v20231_v19 }
 0xa83   : > { %7710 = vmatpush1.bf16.msra.mxu0 %v20229_v47 }
 0xa84   : > { %7711 = vmatprep.subr.bf16.mxu0 %v20234_v56 }
 0xa87   : > { %7712 = vmatpush1.bf16.msra.mxu0 %v20232_v43 }
 0xa88   : > { %7713 = vmatprep.subr.bf16.mxu0 %v20237_v14  ;;  %v20281_v14 = vld [vmem:[#allocation16 + $0x114] ss:$8 sps:$4 sm:$0xff]  }
 0xa8b   : > { %7714 = vmatpush1.bf16.msra.mxu0 %v20235_v60  ;;  %v20276_v60 = vld [vmem:[#allocation16 + $0x100] ss:$8 sps:$4 sm:$0xff]  }
 0xa8c   : > { %7715 = vmatprep.subr.bf16.mxu0 %v20240_v0  ;;  %v20285_v0 = vld [vmem:[#allocation16 + $0x124] ss:$8 sps:$4 sm:$0xff]  }
 0xa8f   : > { %7716 = vmatpush1.bf16.msra.mxu0 %v20238_v42  ;;  %v20279_v42 = vld [vmem:[#allocation16 + $0x110] ss:$8 sps:$4 sm:$0xff]  }
 0xa90   : > { %7717 = vmatprep.subr.bf16.mxu0 %v20243_v22  ;;  %v20283_v22 = vld [vmem:[#allocation16 + $0x120] ss:$8 sps:$4 sm:$0xff]  }
 0xa93   : > { %7718 = vmatpush1.bf16.msra.mxu0 %v20241_v63 }
 0xa94   : > { %7719 = vmatprep.subr.bf16.mxu0 %v20246_v9  ;;  %v20288_v9 = vld [vmem:[#allocation16 + $0x134] ss:$8 sps:$4 sm:$0xff]  }
 0xa97   : > { %7720 = vmatpush1.bf16.msra.mxu0 %v20244_v24  ;;  %v20286_v24 = vld [vmem:[#allocation16 + $0x130] ss:$8 sps:$4 sm:$0xff]  }
 0xa98   : > { %7721 = vmatprep.subr.bf16.mxu0 %v20249_v8  ;;  %v20291_v8 = vld [vmem:[#allocation16 + $0x144] ss:$8 sps:$4 sm:$0xff]  }
 0xa9b   : > { %7722 = vmatpush1.bf16.msra.mxu0 %v20247_v29  ;;  %v20289_v29 = vld [vmem:[#allocation16 + $0x140] ss:$8 sps:$4 sm:$0xff]  }
 0xa9c   : > { %7843 = vmatprep.subr.bf16.mxu0 %v20252_v10  ;;  %v20294_v10 = vld [vmem:[#allocation16 + $0x154] ss:$8 sps:$4 sm:$0xff]  }
 0xb29   : > { %v7285_v50 = vpop.f32.mrb[36].mxu0  ;;  %v7391_v6 = vpop.f32.mrb[48].mxu1 }
 0xb2a   : > { %v19386_v13 = vpop.f32.mrb[37].mxu0  ;;  %v19414_v41 = vpop.f32.mrb[49].mxu1 }
 0xb2b   : > { %v7288_v7 = vpop.f32.mrb[38].mxu0  ;;  %v7394_v57 = vpop.f32.mrb[50].mxu1 }
 0xb2c   : > { %v19387_v59 = vpop.f32.mrb[39].mxu0  ;;  %v19415_v36 = vpop.f32.mrb[51].mxu1 }
 0xb3d   : > { %v7337_v40 = vpop.f32.mrb[40].mxu0 }
 0xb3e   : > { %v7344_v3 = vmax.f32 %v7285_v50, %v7337_v40  ;;  %v19400_v39 = vpop.f32.mrb[41].mxu0  ;;  %v20257_v40 = vld [vmem:[#allocation16 + $0x14] ss:$8 sps:$4 sm:$0xff]  }
 0xb3f   : > { %v7340_v44 = vpop.f32.mrb[42].mxu0  ;;  %v20255_v39 = vld [vmem:[#allocation16 + $0x10] ss:$8 sps:$4 sm:$0xff]  }
 0xb40   : > { %v7345_v26 = vmax.f32 %v7288_v7, %v7340_v44  ;;  %v7398_v51 = vmax.f32 %v7344_v3, %v7391_v6  ;;  %v19401_v55 = vpop.f32.mrb[43].mxu0  ;;  %v20250_v7 = vld [vmem:[#allocation16] ss:$8 sps:$4 sm:$0xff]   ;;  %v20260_v44 = vld [vmem:[#allocation16 + $0x24] ss:$8 sps:$4 sm:$0xff]  }
 0xb41   : > { %v20263_v55 = vld [vmem:[#allocation16 + $0x34] ss:$8 sps:$4 sm:$0xff]  }
 0xb42   : > { %v7399_v5 = vmax.f32 %v7345_v26, %v7394_v57 }
 0xb51   : > { %v7445_v52 = vpop.f32.mrb[44].mxu0 }
 0xb52   : > { %v7452_v62 = vmax.f32 %v7398_v51, %v7445_v52  ;;  %v19428_v49 = vpop.f32.mrb[45].mxu0  ;;  %v20258_v51 = vld [vmem:[#allocation16 + $0x20] ss:$8 sps:$4 sm:$0xff]   ;;  %v20261_v52 = vld [vmem:[#allocation16 + $0x30] ss:$8 sps:$4 sm:$0xff]  }
 0xb53   : > { %v7448_v54 = vpop.f32.mrb[46].mxu0  ;;  %v20264_v49 = vld [vmem:[#allocation16 + $0x40] ss:$8 sps:$4 sm:$0xff]  }
 0xb54   : > { %v7453_v18 = vmax.f32 %v7399_v5, %v7448_v54  ;;  %v19429_v1 = vpop.f32.mrb[47].mxu0  ;;  %v20269_v54 = vld [vmem:[#allocation16 + $0x54] ss:$8 sps:$4 sm:$0xff]  }
 0xb55   : > { %v20272_v1 = vld [vmem:[#allocation16 + $0x64] ss:$8 sps:$4 sm:$0xff]  }
 0xb56   : > { %v7459_v28 = vpack.c.bf16 %v7453_v18, %v7452_v62  ;;  %v20266_v62 = vld [vmem:[#allocation16 + $0x44] ss:$8 sps:$4 sm:$0xff]   ;;  %v20267_v18 = vld [vmem:[#allocation16 + $0x50] ss:$8 sps:$4 sm:$0xff]  }
 0xb58   : > { %19431 = vmatpush3.bf16.msra.mxu1 %v7459_v28  ;;  %v20270_v28 = vld [vmem:[#allocation16 + $0x60] ss:$8 sps:$4 sm:$0xff]  }
 0xb5b   : > { %19433 = vmatmul.mubr.msk.bf16.vlgmr.msra.gmra.mrb[52].mxu1 %vm7473_vm15, %v20223_v35  ;;  %v20275_v35 = vld [vmem:[#allocation16 + $0x74] ss:$8 sps:$4 sm:$0xff]  }
 0xb5c   : > { %19436 = vmatprep.mubr.msk.bf16.mxu1 %vm22328_vm10, %v22327_v12 }
 0xb63   : > { %19437 = vmatmul.mubr.msk.bf16.gmra.mrb[56].mxu1 %vm7473_vm15, %v20224_v58  ;;  %v20273_v58 = vld [vmem:[#allocation16 + $0x70] ss:$8 sps:$4 sm:$0xff]  }
 0xb64   : > { %19440 = vmatprep.mubr.msk.bf16.mxu1 %vm22328_vm10, %v22327_v12  ;;  %v22329_v12 = vmov 0  }
 0xb65   : > { %7739 = vmatprep.mubr.bf16.mxu0 %v22329_v12 }
 0xb6b   : > { %19441 = vmatmul.mubr.msk.bf16.gmra.mrb[60].mxu1 %vm7473_vm15, %v20225_v17  ;;  %v20278_v17 = vld [vmem:[#allocation16 + $0x104] ss:$8 sps:$4 sm:$0xff]  }
 0xb6c   : > { %9151 = vmatprep.mubr.bf16.mxu1 %v22329_v12 }
 0xc2e   : > { %v7517_v23 = vpop.f32.mrb[52].mxu1 }
 0xc2f   : > { %v19434_v30 = vpop.f32.mrb[53].mxu1 }
 0xc30   : > { %v7520_v53 = vpop.f32.mrb[54].mxu1  ;;  %v20297_v30 = vld [vmem:[#allocation16 + $0x164] ss:$8 sps:$4 sm:$0xff]  }
 0xc31   : > { %v18169_v33 = vpack.c.bf16 %v7520_v53, %v7517_v23  ;;  %v19435_v38 = vpop.f32.mrb[55].mxu1  ;;  %v20292_v23 = vld [vmem:[#allocation16 + $0x150] ss:$8 sps:$4 sm:$0xff]   ;;  %v20295_v53 = vld [vmem:[#allocation16 + $0x160] ss:$8 sps:$4 sm:$0xff]  }
 0xc32   : > { %v20298_v38 = vld [vmem:[#allocation16 + $0x170] ss:$8 sps:$4 sm:$0xff]  }
 0xc33   : > { %18170 = vst [vmem:[#allocation3] sm:$0xff] %v18169_v33   ;;  %v20300_v33 = vld [vmem:[#allocation16 + $0x174] ss:$8 sps:$4 sm:$0xff]  }
 0xc36   : > { %v7525_v25 = vpop.f32.mrb[56].mxu1 }
 0xc37   : > { %v19438_v34 = vpop.f32.mrb[57].mxu1 }
 0xc38   : > { %v7528_v48 = vpop.f32.mrb[58].mxu1  ;;  %v20302_v34 = vld [vmem:[#allocation16 + $0x180] ss:$8 sps:$4 sm:$0xff]  }
 0xc39   : > { %v18174_v11 = vpack.c.bf16 %v7528_v48, %v7525_v25  ;;  %v19439_v20 = vpop.f32.mrb[59].mxu1  ;;  %v20304_v25 = vld [vmem:[#allocation16 + $0x184] ss:$8 sps:$4 sm:$0xff]   ;;  %v20307_v48 = vld [vmem:[#allocation16 + $0x194] ss:$8 sps:$4 sm:$0xff]  }
 0xc3a   : > { %v7565_v32 = vld [vmem:[#allocation3] sm:$0xf]  ;;  %v7566_v31 = vld [vmem:[#allocation3 + $0x4] sm:$0xf] }
 0xc3b   : > { %18176 = vst [vmem:[#allocation3 + $0x8] sm:$0xff] %v18174_v11   ;;  %v17094_v37 = vcombine.low %v7565_v32, %v7566_v31  ;;  %v7894_v16 = vld [vmem:[#allocation3] sm:$0xe]  ;;  %v24332_v56 = vld [vmem:[#allocation3 + $0x4] sm:$0xf] }
 0xc3c   : > { %v17129_v27 = vcombine.low %v7894_v16, %v7566_v31  ;;  %v20305_v11 = vld [vmem:[#allocation16 + $0x190] ss:$8 sps:$4 sm:$0xff]   ;;  %v20310_v20 = vld [vmem:[#allocation16 + $0x1a4] ss:$8 sps:$4 sm:$0xff]   ;;  %v20308_v32 = vld [vmem:[#allocation16 + $0x1a0] ss:$8 sps:$4 sm:$0xff]  }
 0xc3d   : > { %v7613_v21 = vshll.u32 %v17094_v37, 16  ;;  %v7611_v47 = vshrl.u32 %v17094_v37, 16  ;;  %v20313_v31 = vld [vmem:[#allocation16 + $0x1b4] ss:$8 sps:$4 sm:$0xff]   ;;  %v20314_v16 = vld [vmem:[#allocation16 + $0x1c0] ss:$8 sps:$4 sm:$0xff]  }
 0xc3e   : > { %v7533_v45 = vpop.f32.mrb[60].mxu1  ;;  %v7915_v6 = vrot.slane %v17129_v27, 1 }
 0xc3f   : > { %v18165_v4 = vpack.c.bf16 %v7533_v45, %v7533_v45  ;;  %v19442_v61 = vpop.f32.mrb[61].mxu1  ;;  %v7615_v46 = vrot.slane %v7613_v21, 1  ;;  %v20316_v21 = vld [vmem:[#allocation16 + $0x1c4] ss:$8 sps:$4 sm:$0xff]   ;;  %v20319_v45 = vld [vmem:[#allocation16 + $0x1d4] ss:$8 sps:$4 sm:$0xff]  }
 0xc40   : > { %v7536_v15 = vpop.f32.mrb[62].mxu1  ;;  %v20322_v61 = vld [vmem:[#allocation16 + $0x1e4] ss:$8 sps:$4 sm:$0xff]  }
 0xc41   : > { %7564 = vst [vmem:[#allocation3 + $0x10] sm:$0x3] %v18165_v4  ;;  %v19443_v2 = vpop.f32.mrb[63].mxu1  ;;  %v7616_v57 = vor.u32 %v7615_v46, %v7611_v47  ;;  %v20317_v4 = vld [vmem:[#allocation16 + $0x1d0] ss:$8 sps:$4 sm:$0xff]  }
 0xc42   : > { %v24330_v19 = vld [vmem:[#allocation3 + $0x8] ss:$0 sps:$4 sm:$0xff]   ;;  %v8060_v27 = vld [vmem:[#allocation3 + $0xc] sm:$0x3]  ;;  %v20320_v15 = vld [vmem:[#allocation16 + $0x1e0] ss:$8 sps:$4 sm:$0xff]  }
 0xc43   : > { %v24334_v43 = vld [vmem:[#allocation3 + $0x8] sm:$0xf]  ;;  %v7618_v50 = vshll.u32 %v24330_v19, 16  ;;  %v7916_v13 = vrot.slane %v24330_v19, 1  ;;  %v7622_v26 = vshrl.u32 %v24330_v19, 16 }
 0xc44   : > { %v17181_v41 = vcombine.low %v24332_v56, %v24334_v43  ;;  %v20282_v63 = vld [vmem:[#allocation3 + $0x8] ss:$0 sps:$4 sm:$0x77]   ;;  %v20325_v46 = vld [vmem:[#allocation16 + $0x1f4] ss:$8 sps:$4 sm:$0xff]   ;;  %v17147_v19 = vcombine.low %v24334_v43, %v8060_v27 }
 0xc45   : > { %v7620_v59 = vrot.slane %v7618_v50, 1  ;;  %v24343_v36 = vsel %vm1640_vm4, %v7915_v6, %v7916_v13  ;;  %v8057_v2 = vld [vmem:[#allocation3] sm:$0x8]  ;;  %v20323_v47 = vld [vmem:[#allocation16 + $0x1f0] ss:$8 sps:$4 sm:$0xff]   ;;  %vm9313_vm4 = vcmask 31744  }
 0xc46   : > { %v17146_v50 = vcombine.low %v8057_v2, %v24332_v56  ;;  %v20330_v6 = vld [vmem:[#allocation16 + $0x204] ss:$8 sps:$4 sm:$0xff]   ;;  %v20385_v27 = vld [vmem:[#allocation16 + $0x320] ss:$8 sps:$4 sm:$0xff]   ;;  %v20388_v2 = vld [vmem:[#allocation16 + $0x330] ss:$8 sps:$4 sm:$0xff]  }
 0xc47   : > { %v7621_v3 = vsel %vm1031_vm2, %v7616_v57, %v7620_v59  ;;  %v7624_v5 = vor.u32 %v7622_v26, %v7620_v59  ;;  %v20328_v57 = vld [vmem:[#allocation16 + $0x200] ss:$8 sps:$4 sm:$0xff]   ;;  %v20333_v59 = vld [vmem:[#allocation16 + $0x214] ss:$8 sps:$4 sm:$0xff]   ;;  %v20337_v26 = vld [vmem:[#allocation16 + $0x230] ss:$8 sps:$4 sm:$0xff]  }
 0xc48   : > { %7740 = vmatmul.mubr.bf16.vlgmr.msra.gmra.mrb[48].mxu0 %v7621_v3  ;;  %v20336_v3 = vld [vmem:[#allocation16 + $0x224] ss:$8 sps:$4 sm:$0xff]   ;;  %vm9112_vm2 = vcmask 1042432  }
 0xc49   : > { %7844 = vmatpush1.bf16.msra.mxu0 %v20250_v7  ;;  %7749 = vmatprep.mubr.bf16.mxu0 %v22329_v12  ;;  %v8088_v7 = vrot.slane %v17146_v50, 3  ;;  %v20393_v56 = vld [vmem:[#allocation16 + $0x344] ss:$8 sps:$4 sm:$0xff]  }
 0xc4a   : > { %7845 = vmatprep.subr.bf16.mxu0 %v20257_v40  ;;  %v20331_v40 = vld [vmem:[#allocation16 + $0x210] ss:$8 sps:$4 sm:$0xff]  }
 0xc4d   : > { %7846 = vmatpush1.bf16.msra.mxu0 %v20255_v39  ;;  %v20334_v39 = vld [vmem:[#allocation16 + $0x220] ss:$8 sps:$4 sm:$0xff]  }
 0xc4e   : > { %7847 = vmatprep.subr.bf16.mxu0 %v20260_v44  ;;  %v20339_v44 = vld [vmem:[#allocation16 + $0x234] ss:$8 sps:$4 sm:$0xff]  }
 0xc50   : > { %7750 = vmatmul.mubr.bf16.gmra.mrb[52].mxu0 %v7624_v5  ;;  %v20340_v5 = vld [vmem:[#allocation16 + $0x240] ss:$8 sps:$4 sm:$0xff]  }
 0xc51   : > { %7848 = vmatpush1.bf16.msra.mxu0 %v20258_v51  ;;  %7875 = vmatprep.mubr.bf16.mxu0 %v22329_v12  ;;  %v20342_v51 = vld [vmem:[#allocation16 + $0x244] ss:$8 sps:$4 sm:$0xff]  }
 0xc52   : > { %7849 = vmatprep.subr.bf16.mxu0 %v20263_v55  ;;  %v24361_v55 = vld [vmem:[#allocation3 + $0xc] sm:$0x7] }
 0xc55   : > { %7850 = vmatpush1.bf16.msra.mxu0 %v20261_v52  ;;  %v20345_v52 = vld [vmem:[#allocation16 + $0x254] ss:$8 sps:$4 sm:$0xff]  }
 0xc56   : > { %7851 = vmatprep.subr.bf16.mxu0 %v20266_v62  ;;  %v17164_v62 = vcombine.low %v24334_v43, %v24361_v55  ;;  %v20391_v43 = vld [vmem:[#allocation16 + $0x340] ss:$8 sps:$4 sm:$0xff]  }
 0xc59   : > { %7852 = vmatpush1.bf16.msra.mxu0 %v20264_v49  ;;  %v20343_v49 = vld [vmem:[#allocation16 + $0x250] ss:$8 sps:$4 sm:$0xff]  }
 0xc5a   : > { %7853 = vmatprep.subr.bf16.mxu0 %v20269_v54  ;;  %v20348_v54 = vld [vmem:[#allocation16 + $0x264] ss:$8 sps:$4 sm:$0xff]  }
 0xc5d   : > { %7854 = vmatpush1.bf16.msra.mxu0 %v20267_v18  ;;  %v8261_v18 = vshrl.u32 %v17164_v62, 16 }
 0xc5e   : > { %7855 = vmatprep.subr.bf16.mxu0 %v20272_v1  ;;  %v8264_v1 = vshll.u32 %v17164_v62, 16  ;;  %v20414_v62 = vld [vmem:[#allocation16 + $0x3a4] ss:$8 sps:$4 sm:$0xff]  }
 0xc61   : > { %7856 = vmatpush1.bf16.msra.mxu0 %v20270_v28  ;;  %v20346_v28 = vld [vmem:[#allocation16 + $0x260] ss:$8 sps:$4 sm:$0xff]  }
 0xc62   : > { %7857 = vmatprep.subr.bf16.mxu0 %v20275_v35  ;;  %v8253_v35 = vshrl.u32 %v17146_v50, 16 }
 0xc65   : > { %7858 = vmatpush1.bf16.msra.mxu0 %v20273_v58  ;;  %v8256_v58 = vshll.u32 %v17146_v50, 16  ;;  %v8569_v50 = vld [vmem:[#allocation3 + $0x10] sm:$0x1] }
 0xc66   : > { %8000 = vmatprep.subr.bf16.mxu0 %v20278_v17  ;;  %v20351_v17 = vld [vmem:[#allocation16 + $0x274] ss:$8 sps:$4 sm:$0xff]  }
 0xc68   : > { %7876 = vmatmul.mubr.bf16.vlgmr.msra.gmra.mrb[48].mxu0 %v17094_v37  ;;  %v20311_v37 = vld [vmem:[#allocation16 + $0x1b0] ss:$8 sps:$4 sm:$0xff]  }
 0xc69   : > { %8001 = vmatpush1.bf16.msra.mxu0 %v20276_v60  ;;  %7885 = vmatprep.mubr.bf16.mxu0 %v22329_v12  ;;  %v8263_v60 = vrot.slane %v8261_v18, 3  ;;  %v20415_v18 = vld [vmem:[#allocation16 + $0x3b0] ss:$8 sps:$4 sm:$0xff]  }
 0xc6a   : > { %8002 = vmatprep.subr.bf16.mxu0 %v20281_v14  ;;  %v8266_v14 = vrot.slane %v8264_v1, 4  ;;  %v20420_v1 = vld [vmem:[#allocation16 + $0x3c4] ss:$8 sps:$4 sm:$0xff]  }
 0xc6d   : > { %8003 = vmatpush1.bf16.msra.mxu0 %v20279_v42  ;;  %v20349_v42 = vld [vmem:[#allocation16 + $0x270] ss:$8 sps:$4 sm:$0xff]  }
 0xc6e   : > { %8004 = vmatprep.subr.bf16.mxu0 %v20285_v0  ;;  %v8255_v0 = vrot.slane %v8253_v35, 3  ;;  %v20418_v35 = vld [vmem:[#allocation16 + $0x3c0] ss:$8 sps:$4 sm:$0xff]  }
 0xc70   : > { %7886 = vmatmul.mubr.bf16.gmra.mrb[56].mxu0 %v20282_v63  ;;  %v20355_v63 = vld [vmem:[#allocation16 + $0x284] ss:$8 sps:$4 sm:$0xff]  }
 0xc71   : > { %8005 = vmatpush1.bf16.msra.mxu0 %v20283_v22  ;;  %8032 = vmatprep.mubr.bf16.mxu0 %v22329_v12  ;;  %v8258_v22 = vrot.slane %v8256_v58, 4  ;;  %v20423_v58 = vld [vmem:[#allocation16 + $0x3d4] ss:$8 sps:$4 sm:$0xff]  }
 0xc72   : > { %8006 = vmatprep.subr.bf16.mxu0 %v20288_v9  ;;  %v8267_v9 = vor.u32 %v8266_v14, %v8263_v60  ;;  %v20421_v60 = vld [vmem:[#allocation16 + $0x3d0] ss:$8 sps:$4 sm:$0xff]   ;;  %v20426_v14 = vld [vmem:[#allocation16 + $0x3e4] ss:$8 sps:$4 sm:$0xff]  }
 0xc75   : > { %8007 = vmatpush1.bf16.msra.mxu0 %v20286_v24  ;;  %v8259_v24 = vor.u32 %v8258_v22, %v8255_v0  ;;  %v20424_v22 = vld [vmem:[#allocation16 + $0x3e0] ss:$8 sps:$4 sm:$0xff]  }
 0xc76   : > { %8008 = vmatprep.subr.bf16.mxu0 %v20291_v8  ;;  %v20353_v8 = vld [vmem:[#allocation16 + $0x280] ss:$8 sps:$4 sm:$0xff]  }
 0xc79   : > { %8009 = vmatpush1.bf16.msra.mxu0 %v20289_v29  ;;  %v20358_v29 = vld [vmem:[#allocation16 + $0x294] ss:$8 sps:$4 sm:$0xff]  }
 0xc7a   : > { %8010 = vmatprep.subr.bf16.mxu0 %v20294_v10  ;;  %v8268_v10 = vsel %vm8251_vm0, %v8259_v24, %v8267_v9  ;;  %v20429_v24 = vld [vmem:[#allocation16 + $0x3f4] ss:$8 sps:$4 sm:$0xff]  }
 0xc7d   : > { %8011 = vmatpush1.bf16.msra.mxu0 %v20292_v23  ;;  %v20356_v23 = vld [vmem:[#allocation16 + $0x290] ss:$8 sps:$4 sm:$0xff]  }
 0xc7e   : > { %8012 = vmatprep.subr.bf16.mxu0 %v20297_v30  ;;  %v20361_v30 = vld [vmem:[#allocation16 + $0x2a4] ss:$8 sps:$4 sm:$0xff]  }
 0xc81   : > { %8013 = vmatpush1.bf16.msra.mxu0 %v20295_v53  ;;  %v20359_v53 = vld [vmem:[#allocation16 + $0x2a0] ss:$8 sps:$4 sm:$0xff]  }
 0xc82   : > { %8014 = vmatprep.subr.bf16.mxu0 %v20300_v33  ;;  %v20364_v33 = vld [vmem:[#allocation16 + $0x2b4] ss:$8 sps:$4 sm:$0xff]  }
 0xc85   : > { %8015 = vmatpush1.bf16.msra.mxu0 %v20298_v38  ;;  %v20362_v38 = vld [vmem:[#allocation16 + $0x2b0] ss:$8 sps:$4 sm:$0xff]  }
 0xc86   : > { %8173 = vmatprep.subr.bf16.mxu0 %v20304_v25  ;;  %v20367_v25 = vld [vmem:[#allocation16 + $0x2c4] ss:$8 sps:$4 sm:$0xff]  }
 0xc88   : > { %8033 = vmatmul.mubr.bf16.vlgmr.msra.gmra.mrb[48].mxu0 %v24343_v36 }
 0xc89   : > { %8174 = vmatpush1.bf16.msra.mxu0 %v20302_v34  ;;  %8042 = vmatprep.mubr.bf16.mxu0 %v22329_v12  ;;  %v20365_v34 = vld [vmem:[#allocation16 + $0x2c0] ss:$8 sps:$4 sm:$0xff]  }
 0xc8a   : > { %8175 = vmatprep.subr.bf16.mxu0 %v20307_v48  ;;  %v20370_v48 = vld [vmem:[#allocation16 + $0x2d4] ss:$8 sps:$4 sm:$0xff]  }
 0xc8d   : > { %8176 = vmatpush1.bf16.msra.mxu0 %v20305_v11  ;;  %v20368_v11 = vld [vmem:[#allocation16 + $0x2d0] ss:$8 sps:$4 sm:$0xff]  }
 0xc8e   : > { %8177 = vmatprep.subr.bf16.mxu0 %v20310_v20  ;;  %v20373_v20 = vld [vmem:[#allocation16 + $0x2e4] ss:$8 sps:$4 sm:$0xff]  }
 0xc90   : > { %8043 = vmatmul.mubr.bf16.gmra.mrb[60].mxu0 %v7916_v13  ;;  %v8089_v13 = vrot.slane %v17147_v19, 3  ;;  %v20394_v19 = vld [vmem:[#allocation16 + $0x350] ss:$8 sps:$4 sm:$0xff]  }
 0xc91   : > { %8178 = vmatpush1.bf16.msra.mxu0 %v20308_v32  ;;  %8205 = vmatprep.mubr.bf16.mxu0 %v22329_v12  ;;  %v20371_v32 = vld [vmem:[#allocation16 + $0x2e0] ss:$8 sps:$4 sm:$0xff]  }
 0xc92   : > { %8179 = vmatprep.subr.bf16.mxu0 %v20313_v31  ;;  %v8090_v36 = vsel %vm4154_vm8, %v8088_v7, %v8089_v13  ;;  %v20376_v31 = vld [vmem:[#allocation16 + $0x2f4] ss:$8 sps:$4 sm:$0xff]   ;;  %v24374_v7 = vld [vmem:[#allocation3 + $0x8] sm:$0xf] }
 0xc95   : > { %8180 = vmatpush1.bf16.msra.mxu0 %v20311_v37  ;;  %v20374_v37 = vld [vmem:[#allocation16 + $0x2f0] ss:$8 sps:$4 sm:$0xff]  }
 0xc96   : > { %8181 = vmatprep.subr.bf16.mxu0 %v20316_v21  ;;  %v20380_v21 = vld [vmem:[#allocation16 + $0x304] ss:$8 sps:$4 sm:$0xff]  }
 0xc99   : > { %8182 = vmatpush1.bf16.msra.mxu0 %v20314_v16  ;;  %v20378_v16 = vld [vmem:[#allocation16 + $0x300] ss:$8 sps:$4 sm:$0xff]  }
 0xc9a   : > { %8183 = vmatprep.subr.bf16.mxu0 %v20319_v45  ;;  %v20383_v45 = vld [vmem:[#allocation16 + $0x314] ss:$8 sps:$4 sm:$0xff]  }
 0xc9d   : > { %8184 = vmatpush1.bf16.msra.mxu0 %v20317_v4  ;;  %v20381_v4 = vld [vmem:[#allocation16 + $0x310] ss:$8 sps:$4 sm:$0xff]  }
 0xc9e   : > { %8185 = vmatprep.subr.bf16.mxu0 %v20322_v61  ;;  %v20387_v61 = vld [vmem:[#allocation16 + $0x324] ss:$8 sps:$4 sm:$0xff]  }
 0xca1   : > { %8186 = vmatpush1.bf16.msra.mxu0 %v20320_v15  ;;  %v17182_v15 = vcombine.low %v24361_v55, %v24361_v55  ;;  %v20411_v55 = vld [vmem:[#allocation16 + $0x394] ss:$8 sps:$4 sm:$0xff]  }
 0xca2   : > { %8187 = vmatprep.subr.bf16.mxu0 %v20325_v46  ;;  %v20390_v46 = vld [vmem:[#allocation16 + $0x334] ss:$8 sps:$4 sm:$0xff]  }
 0xca5   : > { %8188 = vmatpush1.bf16.msra.mxu0 %v20323_v47  ;;  %v20399_v47 = vld [vmem:[#allocation16 + $0x364] ss:$8 sps:$4 sm:$0xff]  }
 0xca6   : > { %8351 = vmatprep.subr.bf16.mxu0 %v20330_v6  ;;  %v20397_v6 = vld [vmem:[#allocation16 + $0x360] ss:$8 sps:$4 sm:$0xff]  }
 0xca8   : > { %8206 = vmatmul.mubr.bf16.vlgmr.msra.gmra.mrb[48].mxu0 %v8090_v36  ;;  %v8566_v36 = vld [vmem:[#allocation3 + $0x4] sm:$0xc] }
 0xca9   : > { %8352 = vmatpush1.bf16.msra.mxu0 %v20328_v57  ;;  %8215 = vmatprep.mubr.bf16.mxu0 %v22329_v12  ;;  %v8568_v57 = vld [vmem:[#allocation3 + $0xc] sm:$0xf] }
 0xcaa   : > { %8353 = vmatprep.subr.bf16.mxu0 %v20333_v59  ;;  %v17200_v59 = vcombine.low %v8568_v57, %v8569_v50 }
 0xcad   : > { %8354 = vmatpush1.bf16.msra.mxu0 %v20331_v40  ;;  %v20400_v40 = vld [vmem:[#allocation16 + $0x370] ss:$8 sps:$4 sm:$0xff]  }
 0xcae   : > { %8355 = vmatprep.subr.bf16.mxu0 %v20336_v3  ;;  %v17199_v3 = vcombine.low %v8566_v36, %v24374_v7 }
 0xcb0   : > { %8216 = vmatmul.mubr.bf16.gmra.mrb[64].mxu0 %v8089_v13  ;;  %v20402_v13 = vld [vmem:[#allocation16 + $0x374] ss:$8 sps:$4 sm:$0xff]  }
 0xcb1   : > { %8356 = vmatpush1.bf16.msra.mxu0 %v20334_v39  ;;  %8383 = vmatprep.mubr.bf16.mxu0 %v22329_v12  ;;  %v20408_v39 = vld [vmem:[#allocation16 + $0x384] ss:$8 sps:$4 sm:$0xff]  }
 0xcb2   : > { %8357 = vmatprep.subr.bf16.mxu0 %v20339_v44  ;;  %v8598_v44 = vrot.slane %v17200_v59, 2 }
 0xcb5   : > { %8358 = vmatpush1.bf16.msra.mxu0 %v20337_v26  ;;  %v8597_v26 = vrot.slane %v17199_v3, 2 }
 0xcb6   : > { %8359 = vmatprep.subr.bf16.mxu0 %v20342_v51  ;;  %v20406_v51 = vld [vmem:[#allocation16 + $0x380] ss:$8 sps:$4 sm:$0xff]  }
 0xcb9   : > { %8360 = vmatpush1.bf16.msra.mxu0 %v20340_v5  ;;  %v8599_v5 = vsel %vm2954_vm6, %v8597_v26, %v8598_v44 }
 0xcba   : > { %8361 = vmatprep.subr.bf16.mxu0 %v20345_v52  ;;  %v20409_v52 = vld [vmem:[#allocation16 + $0x390] ss:$8 sps:$4 sm:$0xff]  }
 0xcbd   : > { %8362 = vmatpush1.bf16.msra.mxu0 %v20343_v49  ;;  %v20412_v49 = vld [vmem:[#allocation16 + $0x3a0] ss:$8 sps:$4 sm:$0xff]  }
 0xcbe   : > { %8363 = vmatprep.subr.bf16.mxu0 %v20348_v54  ;;  %v20417_v54 = vld [vmem:[#allocation16 + $0x3b4] ss:$8 sps:$4 sm:$0xff]  }
 0xcc1   : > { %8364 = vmatpush1.bf16.msra.mxu0 %v20346_v28  ;;  %v8739_v28 = vld [vmem:[#allocation3 + $0x10] sm:$0x3] }
 0xcc2   : > { %8365 = vmatprep.subr.bf16.mxu0 %v20351_v17  ;;  %v24380_v17 = vcombine.low %v8568_v57, %v8739_v28 }
 0xcc4   : > { %v8772_v0 = vshll.u32 %v24380_v17, 16 }
 0xcc5   : > { %8366 = vmatpush1.bf16.msra.mxu0 %v20349_v42  ;;  %v8769_v42 = vshrl.u32 %v24380_v17, 16 }
 0xcc6   : > { %8509 = vmatprep.subr.bf16.mxu0 %v20355_v63  ;;  %v8761_v63 = vshrl.u32 %v17199_v3, 16 }
 0xcc8   : > { %8384 = vmatmul.mubr.bf16.vlgmr.msra.gmra.mrb[48].mxu0 %v8268_v10  ;;  %v20427_v10 = vld [vmem:[#allocation16 + $0x3f0] ss:$8 sps:$4 sm:$0xff]  }
 0xcc9   : > { %8510 = vmatpush1.bf16.msra.mxu0 %v20353_v8  ;;  %8393 = vmatprep.mubr.bf16.mxu0 %v22329_v12  ;;  %v8771_v8 = vrot.slane %v8769_v42, 2 }
 0xcca   : > { %8511 = vmatprep.subr.bf16.mxu0 %v20358_v29  ;;  %v8774_v29 = vrot.slane %v8772_v0, 3 }
 0xccd   : > { %8512 = vmatpush1.bf16.msra.mxu0 %v20356_v23  ;;  %v8763_v23 = vrot.slane %v8761_v63, 2 }
 0xcce   : > { %8513 = vmatprep.subr.bf16.mxu0 %v20361_v30 }
 0xcd0   : > { %8394 = vmatmul.mubr.bf16.gmra.mrb[68].mxu0 %v8267_v9  ;;  %v8764_v9 = vshll.u32 %v17199_v3, 16 }
 0xcd1   : > { %8514 = vmatpush1.bf16.msra.mxu0 %v20359_v53  ;;  %8541 = vmatprep.mubr.bf16.mxu0 %v22329_v12  ;;  %v20432_v53 = vld [vmem:[#allocation16 + $0x404] ss:$8 sps:$4 sm:$0xff]  }
 0xcd2   : > { %8515 = vmatprep.subr.bf16.mxu0 %v20364_v33  ;;  %v8766_v30 = vrot.slane %v8764_v9, 3  ;;  %v8775_v33 = vor.u32 %v8774_v29, %v8771_v8 }
 0xcd5   : > { %8516 = vmatpush1.bf16.msra.mxu0 %v20362_v38 }
 0xcd6   : > { %8517 = vmatprep.subr.bf16.mxu0 %v20367_v25 }
 0xcd9   : > { %8518 = vmatpush1.bf16.msra.mxu0 %v20365_v34  ;;  %v8767_v34 = vor.u32 %v8766_v30, %v8763_v23 }
 0xcda   : > { %8519 = vmatprep.subr.bf16.mxu0 %v20370_v48  ;;  %v20430_v48 = vld [vmem:[#allocation16 + $0x400] ss:$8 sps:$4 sm:$0xff]  }
 0xcdd   : > { %8520 = vmatpush1.bf16.msra.mxu0 %v20368_v11 }
 0xcde   : > { %8521 = vmatprep.subr.bf16.mxu0 %v20373_v20  ;;  %v20435_v20 = vld [vmem:[#allocation16 + $0x414] ss:$8 sps:$4 sm:$0xff]  }
 0xce1   : > { %8522 = vmatpush1.bf16.msra.mxu0 %v20371_v32 }
 0xce2   : > { %8523 = vmatprep.subr.bf16.mxu0 %v20376_v31  ;;  %v8776_v31 = vsel %vm3707_vm7, %v8767_v34, %v8775_v33 }
 0xce5   : > { %8524 = vmatpush1.bf16.msra.mxu0 %v20374_v37  ;;  %v20433_v37 = vld [vmem:[#allocation16 + $0x410] ss:$8 sps:$4 sm:$0xff]  }
 0xce6   : > { %8682 = vmatprep.subr.bf16.mxu0 %v20380_v21  ;;  %v20438_v21 = vld [vmem:[#allocation16 + $0x424] ss:$8 sps:$4 sm:$0xff]  }
 0xce8   : > { %8542 = vmatmul.mubr.bf16.vlgmr.msra.gmra.mrb[48].mxu0 %v17181_v41  ;;  %v20396_v41 = vld [vmem:[#allocation16 + $0x354] ss:$8 sps:$4 sm:$0xff]  }
 0xce9   : > { %8683 = vmatpush1.bf16.msra.mxu0 %v20378_v16  ;;  %8551 = vmatprep.mubr.bf16.mxu0 %v22329_v12  ;;  %v20436_v16 = vld [vmem:[#allocation16 + $0x420] ss:$8 sps:$4 sm:$0xff]  }
 0xcea   : > { %8684 = vmatprep.subr.bf16.mxu0 %v20383_v45  ;;  %v20441_v45 = vld [vmem:[#allocation16 + $0x434] ss:$8 sps:$4 sm:$0xff]  }
 0xced   : > { %8685 = vmatpush1.bf16.msra.mxu0 %v20381_v4  ;;  %v20439_v4 = vld [vmem:[#allocation16 + $0x430] ss:$8 sps:$4 sm:$0xff]  }
 0xcee   : > { %8686 = vmatprep.subr.bf16.mxu0 %v20387_v61  ;;  %v20444_v61 = vld [vmem:[#allocation16 + $0x444] ss:$8 sps:$4 sm:$0xff]  }
 0xcf0   : > { %8552 = vmatmul.mubr.bf16.gmra.mrb[72].mxu0 %v17182_v15  ;;  %v20447_v15 = vld [vmem:[#allocation16 + $0x454] ss:$8 sps:$4 sm:$0xff]  }
 0xcf1   : > { %8687 = vmatpush1.bf16.msra.mxu0 %v20385_v27  ;;  %8714 = vmatprep.mubr.bf16.mxu0 %v22329_v12  ;;  %v20442_v27 = vld [vmem:[#allocation16 + $0x440] ss:$8 sps:$4 sm:$0xff]  }
 0xcf2   : > { %8688 = vmatprep.subr.bf16.mxu0 %v20390_v46  ;;  %v20445_v46 = vld [vmem:[#allocation16 + $0x450] ss:$8 sps:$4 sm:$0xff]  }
 0xcf5   : > { %8689 = vmatpush1.bf16.msra.mxu0 %v20388_v2  ;;  %v20450_v2 = vld [vmem:[#allocation16 + $0x464] ss:$8 sps:$4 sm:$0xff]  }
 0xcf6   : > { %8690 = vmatprep.subr.bf16.mxu0 %v20393_v56  ;;  %v20448_v56 = vld [vmem:[#allocation16 + $0x460] ss:$8 sps:$4 sm:$0xff]  }
 0xcf9   : > { %8691 = vmatpush1.bf16.msra.mxu0 %v20391_v43  ;;  %v20453_v43 = vld [vmem:[#allocation16 + $0x474] ss:$8 sps:$4 sm:$0xff]  }
 0xcfa   : > { %8692 = vmatprep.subr.bf16.mxu0 %v20396_v41  ;;  %v8916_v41 = vld [vmem:[#allocation3 + $0x4] sm:$0x8] }
 0xcfd   : > { %8693 = vmatpush1.bf16.msra.mxu0 %v20394_v19  ;;  %v20451_v19 = vld [vmem:[#allocation16 + $0x470] ss:$8 sps:$4 sm:$0xff]  }
 0xcfe   : > { %8694 = vmatprep.subr.bf16.mxu0 %v20399_v47  ;;  %v17234_v47 = vcombine.low %v8916_v41, %v24374_v7 }
 0xd01   : > { %8695 = vmatpush1.bf16.msra.mxu0 %v20397_v6  ;;  %v8938_v6 = vrot.slane %v24380_v17, 3 }
 0xd02   : > { %8696 = vmatprep.subr.bf16.mxu0 %v20402_v13 }
 0xd05   : > { %8697 = vmatpush1.bf16.msra.mxu0 %v20400_v40  ;;  %v8937_v40 = vrot.slane %v17234_v47, 3 }
 0xd06   : > { %8859 = vmatprep.subr.bf16.mxu0 %v20408_v39 }
 0xd07   : > { %v8939_v39 = vsel %vm4154_vm8, %v8937_v40, %v8938_v6 }
 0xd08   : > { %8715 = vmatmul.mubr.bf16.vlgmr.msra.gmra.mrb[48].mxu0 %v8599_v5 }
 0xd09   : > { %8860 = vmatpush1.bf16.msra.mxu0 %v20406_v51  ;;  %8724 = vmatprep.mubr.bf16.mxu0 %v22329_v12 }
 0xd0a   : > { %8861 = vmatprep.subr.bf16.mxu0 %v20411_v55 }
 0xd0d   : > { %8862 = vmatpush1.bf16.msra.mxu0 %v20409_v52 }
 0xd0e   : > { %8863 = vmatprep.subr.bf16.mxu0 %v20414_v62 }
 0xd10   : > { %8725 = vmatmul.mubr.bf16.gmra.mrb[76].mxu0 %v8598_v44 }
 0xd11   : > { %8864 = vmatpush1.bf16.msra.mxu0 %v20412_v49  ;;  %8891 = vmatprep.mubr.bf16.mxu0 %v22329_v12 }
 0xd12   : > { %8865 = vmatprep.subr.bf16.mxu0 %v20417_v54 }
 0xd15   : > { %8866 = vmatpush1.bf16.msra.mxu0 %v20415_v18 }
 0xd16   : > { %8867 = vmatprep.subr.bf16.mxu0 %v20420_v1 }
 0xd19   : > { %8868 = vmatpush1.bf16.msra.mxu0 %v20418_v35 }
 0xd1a   : > { %8869 = vmatprep.subr.bf16.mxu0 %v20423_v58 }
 0xd1d   : > { %8870 = vmatpush1.bf16.msra.mxu0 %v20421_v60 }
 0xd1e   : > { %8871 = vmatprep.subr.bf16.mxu0 %v20426_v14 }
 0xd21   : > { %8872 = vmatpush1.bf16.msra.mxu0 %v20424_v22 }
 0xd22   : > { %8873 = vmatprep.subr.bf16.mxu0 %v20429_v24 }
 0xd23   : > { %v7751_v38 = vpop.f32.mrb[52].mxu0 }
 0xd24   : > { %v7753_v25 = vpop.f32.mrb[53].mxu0 }
 0xd25   : > { %8874 = vmatpush1.bf16.msra.mxu0 %v20427_v10  ;;  %v7755_v11 = vpop.f32.mrb[54].mxu0 }
 0xd26   : > { %9022 = vmatprep.subr.bf16.mxu0 %v20432_v53  ;;  %v7756_v32 = vpop.f32.mrb[55].mxu0 }
 0xd28   : > { %8892 = vmatmul.mubr.bf16.vlgmr.msra.gmra.mrb[48].mxu0 %v8776_v31 }
 0xd29   : > { %9023 = vmatpush1.bf16.msra.mxu0 %v20430_v48  ;;  %8901 = vmatprep.mubr.bf16.mxu0 %v22329_v12 }
 0xd2a   : > { %9024 = vmatprep.subr.bf16.mxu0 %v20435_v20  ;;  %v9081_v20 = vlaneseq }
 0xd2c   : > { %v24391_v32 = vshrl.u32 %v9081_v20, 7 }
 0xd2d   : > { %9025 = vmatpush1.bf16.msra.mxu0 %v20433_v37  ;;  %v9079_v37 = vld [vmem:[#allocation17] sm:$0x3] }
 0xd2e   : > { %9026 = vmatprep.subr.bf16.mxu0 %v20438_v21  ;;  %v24394_v31 = vsub.s32 0, %v24391_v32  ;;  %v24397_v21 = vsub.s32 1, %v24391_v32 }
 0xd30   : > { %8902 = vmatmul.mubr.bf16.gmra.mrb[80].mxu0 %v8775_v33 }
 0xd31   : > { %9027 = vmatpush1.bf16.msra.mxu0 %v20436_v16  ;;  %9054 = vmatprep.mubr.bf16.mxu0 %v22329_v12  ;;  %v9084_v16 = vrot.slane %v9079_v37, %v24394_v31 }
 0xd32   : > { %9028 = vmatprep.subr.bf16.mxu0 %v20441_v45  ;;  %v9088_v45 = vrot.slane %v9079_v37, %v24397_v21 }
 0xd35   : > { %9029 = vmatpush1.bf16.msra.mxu0 %v20439_v4 }
 0xd36   : > { %9030 = vmatprep.subr.bf16.mxu0 %v20444_v61 }
 0xd39   : > { %9031 = vmatpush1.bf16.msra.mxu0 %v20442_v27 }
 0xd3a   : > { %9032 = vmatprep.subr.bf16.mxu0 %v20447_v15 }
 0xd3d   : > { %9033 = vmatpush1.bf16.msra.mxu0 %v20445_v46 }
 0xd3e   : > { %9034 = vmatprep.subr.bf16.mxu0 %v20450_v2 }
 0xd41   : > { %9035 = vmatpush1.bf16.msra.mxu0 %v20448_v56 }
 0xd42   : > { %9036 = vmatprep.subr.bf16.mxu0 %v20453_v43 }
 0xd43   : > { %v7887_v50 = vpop.f32.mrb[56].mxu0 }
 0xd44   : > { %v7888_v13 = vadd.f32 %v7887_v50, %v7751_v38  ;;  %v7889_v57 = vpop.f32.mrb[57].mxu0 }
 0xd45   : > { %v7890_v59 = vadd.f32 %v7889_v57, %v7753_v25  ;;  %v7891_v36 = vpop.f32.mrb[58].mxu0  ;;  %9037 = vmatpush1.bf16.msra.mxu0 %v20451_v19 }
 0xd46   : > { %v7892_v3 = vpop.f32.mrb[59].mxu0 }
 0xd48   : > { %9055 = vmatmul.mubr.bf16.vlgmr.msra.gmra.mrb[48].mxu0 %v8939_v39 }
 0xd49   : > { %9064 = vmatprep.mubr.bf16.mxu0 %v22329_v12 }
 0xd50   : > { %9065 = vmatmul.mubr.bf16.gmra.mrb[84].mxu0 %v8938_v6 }
 0xd63   : > { %v8044_v44 = vpop.f32.mrb[60].mxu0 }
 0xd64   : > { %v8055_v26 = vadd.f32 %v8044_v44, %v7888_v13  ;;  %v8046_v7 = vpop.f32.mrb[61].mxu0 }
 0xd65   : > { %v8056_v51 = vadd.f32 %v8046_v7, %v7890_v59  ;;  %v8048_v55 = vpop.f32.mrb[62].mxu0 }
 0xd66   : > { %v8049_v5 = vpop.f32.mrb[63].mxu0 }
 0xd83   : > { %v8217_v52 = vpop.f32.mrb[64].mxu0 }
 0xd84   : > { %v8228_v62 = vadd.f32 %v8217_v52, %v8055_v26  ;;  %v8219_v49 = vpop.f32.mrb[65].mxu0 }
 0xd85   : > { %v8229_v54 = vadd.f32 %v8219_v49, %v8056_v51  ;;  %v8221_v18 = vpop.f32.mrb[66].mxu0  ;;  %v9161_v49 = vld [vmem:[#allocation19 + $0x2] sm:$0x3] }
 0xd86   : > { %v8222_v1 = vpop.f32.mrb[67].mxu0  ;;  %v9257_v18 = vld [vmem:[#allocation19 + $0x6] sm:$0x3] }
 0xd87   : > { %v20456_v1 = vld [vmem:[#allocation20 + $0x400] ss:$16 sps:$4 sm:$0xff]  }
 0xda3   : > { %v8395_v28 = vpop.f32.mrb[68].mxu0 }
 0xda4   : > { %v8406_v35 = vadd.f32 %v8395_v28, %v8228_v62  ;;  %v8397_v58 = vpop.f32.mrb[69].mxu0  ;;  %v9107_v62 = vld [vmem:[#allocation19] sm:$0x3]  ;;  %v20458_v28 = vld [vmem:[#allocation20 + $0x404] ss:$16 sps:$4 sm:$0xff]  }
 0xda5   : > { %v8407_v17 = vadd.f32 %v8397_v58, %v8229_v54  ;;  %v8399_v60 = vpop.f32.mrb[70].mxu0  ;;  %v9209_v54 = vld [vmem:[#allocation19 + $0x4] sm:$0x3]  ;;  %10716 = vmatprep.subr.bf16.mxu0 %v20458_v28  ;;  %v20462_v58 = vld [vmem:[#allocation20 + $0x420] ss:$16 sps:$4 sm:$0xff]  }
 0xda6   : > { %v8400_v14 = vpop.f32.mrb[71].mxu0  ;;  %10717 = vmatpush1.bf16.msra.mxu0 %v20456_v1  ;;  %v20468_v60 = vld [vmem:[#allocation20 + $0x440] ss:$16 sps:$4 sm:$0xff]   ;;  %v20491_v1 = vld [vmem:[#allocation20 + $0x2a4] ss:$16 sps:$4 sm:$0xff]  }
 0xda7   : > { %v20476_v14 = vld [vmem:[#allocation20 + $0x464] ss:$16 sps:$4 sm:$0xff]   ;;  %v20489_v28 = vld [vmem:[#allocation20 + $0x2a0] ss:$16 sps:$4 sm:$0xff]  }
 0xdc3   : > { %v8553_v42 = vpop.f32.mrb[72].mxu0 }
 0xdc4   : > { %v8564_v0 = vadd.f32 %v8553_v42, %v8406_v35  ;;  %v8555_v22 = vpop.f32.mrb[73].mxu0  ;;  %v20464_v35 = vld [vmem:[#allocation20 + $0x424] ss:$16 sps:$4 sm:$0xff]   ;;  %v20474_v42 = vld [vmem:[#allocation20 + $0x460] ss:$16 sps:$4 sm:$0xff]  }
 0xdc5   : > { %v8565_v63 = vadd.f32 %v8555_v22, %v8407_v17  ;;  %v8557_v9 = vpop.f32.mrb[74].mxu0  ;;  %10718 = vmatprep.subr.bf16.mxu0 %v20464_v35  ;;  %v20470_v17 = vld [vmem:[#allocation20 + $0x444] ss:$16 sps:$4 sm:$0xff]   ;;  %v20480_v22 = vld [vmem:[#allocation20 + $0x480] ss:$16 sps:$4 sm:$0xff]  }
 0xdc6   : > { %v8558_v24 = vpop.f32.mrb[75].mxu0  ;;  %10719 = vmatpush1.bf16.msra.mxu0 %v20462_v58  ;;  %v20486_v9 = vld [vmem:[#allocation20 + $0x4a0] ss:$16 sps:$4 sm:$0xff]   ;;  %v20497_v35 = vld [vmem:[#allocation20 + $0x2c4] ss:$16 sps:$4 sm:$0xff]  }
 0xdc7   : > { %10720 = vmatprep.subr.bf16.mxu0 %v20470_v17  ;;  %v20494_v24 = vld [vmem:[#allocation20 + $0x4c4] ss:$16 sps:$4 sm:$0xff]   ;;  %v20495_v58 = vld [vmem:[#allocation20 + $0x2c0] ss:$16 sps:$4 sm:$0xff]  }
 0xdc8   : > { %v20503_v17 = vld [vmem:[#allocation20 + $0x2e4] ss:$16 sps:$4 sm:$0xff]  }
 0xdca   : > { %10721 = vmatpush1.bf16.msra.mxu0 %v20468_v60  ;;  %v20501_v60 = vld [vmem:[#allocation20 + $0x2e0] ss:$16 sps:$4 sm:$0xff]  }
 0xdcb   : > { %10722 = vmatprep.subr.bf16.mxu0 %v20476_v14  ;;  %v20509_v14 = vld [vmem:[#allocation20 + $0x304] ss:$16 sps:$4 sm:$0xff]  }
 0xdce   : > { %10723 = vmatpush1.bf16.msra.mxu0 %v20474_v42  ;;  %v20507_v42 = vld [vmem:[#allocation20 + $0x300] ss:$16 sps:$4 sm:$0xff]  }
 0xde3   : > { %v8726_v8 = vpop.f32.mrb[76].mxu0 }
 0xde4   : > { %v8737_v29 = vadd.f32 %v8726_v8, %v8564_v0  ;;  %v8728_v10 = vpop.f32.mrb[77].mxu0  ;;  %v20482_v0 = vld [vmem:[#allocation20 + $0x484] ss:$16 sps:$4 sm:$0xff]   ;;  %v20492_v8 = vld [vmem:[#allocation20 + $0x4c0] ss:$16 sps:$4 sm:$0xff]  }
 0xde5   : > { %v8738_v23 = vadd.f32 %v8728_v10, %v8565_v63  ;;  %v8730_v30 = vpop.f32.mrb[78].mxu0  ;;  %10724 = vmatprep.subr.bf16.mxu0 %v20482_v0  ;;  %v20488_v63 = vld [vmem:[#allocation20 + $0x4a4] ss:$16 sps:$4 sm:$0xff]   ;;  %v20498_v10 = vld [vmem:[#allocation20 + $0x4e0] ss:$16 sps:$4 sm:$0xff]  }
 0xde6   : > { %v8731_v53 = vpop.f32.mrb[79].mxu0  ;;  %10725 = vmatpush1.bf16.msra.mxu0 %v20480_v22  ;;  %v20504_v30 = vld [vmem:[#allocation20 + $0x500] ss:$16 sps:$4 sm:$0xff]   ;;  %v20515_v0 = vld [vmem:[#allocation20 + $0x324] ss:$16 sps:$4 sm:$0xff]  }
 0xde7   : > { %10726 = vmatprep.subr.bf16.mxu0 %v20488_v63  ;;  %v20512_v53 = vld [vmem:[#allocation20 + $0x524] ss:$16 sps:$4 sm:$0xff]   ;;  %v20513_v22 = vld [vmem:[#allocation20 + $0x320] ss:$16 sps:$4 sm:$0xff]  }
 0xde8   : > { %v20521_v63 = vld [vmem:[#allocation20 + $0x344] ss:$16 sps:$4 sm:$0xff]  }
 0xdea   : > { %10727 = vmatpush1.bf16.msra.mxu0 %v20486_v9  ;;  %v20519_v9 = vld [vmem:[#allocation20 + $0x340] ss:$16 sps:$4 sm:$0xff]  }
 0xdeb   : > { %10728 = vmatprep.subr.bf16.mxu0 %v20494_v24  ;;  %v20525_v24 = vld [vmem:[#allocation20 + $0x360] ss:$16 sps:$4 sm:$0xff]  }
 0xdee   : > { %10729 = vmatpush1.bf16.msra.mxu0 %v20492_v8  ;;  %v20527_v8 = vld [vmem:[#allocation20 + $0x364] ss:$16 sps:$4 sm:$0xff]  }
 0xe03   : > { %v8903_v33 = vpop.f32.mrb[80].mxu0 }
 0xe04   : > { %v8914_v38 = vadd.f32 %v8903_v33, %v8737_v29  ;;  %v8905_v25 = vpop.f32.mrb[81].mxu0  ;;  %v20500_v29 = vld [vmem:[#allocation20 + $0x4e4] ss:$16 sps:$4 sm:$0xff]   ;;  %v20510_v33 = vld [vmem:[#allocation20 + $0x520] ss:$16 sps:$4 sm:$0xff]  }
 0xe05   : > { %v8915_v34 = vadd.f32 %v8905_v25, %v8738_v23  ;;  %v8907_v48 = vpop.f32.mrb[82].mxu0  ;;  %10730 = vmatprep.subr.bf16.mxu0 %v20500_v29  ;;  %v20506_v23 = vld [vmem:[#allocation20 + $0x504] ss:$16 sps:$4 sm:$0xff]   ;;  %v20516_v25 = vld [vmem:[#allocation20 + $0x540] ss:$16 sps:$4 sm:$0xff]  }
 0xe06   : > { %v8908_v11 = vpop.f32.mrb[83].mxu0  ;;  %10731 = vmatpush1.bf16.msra.mxu0 %v20498_v10  ;;  %v20522_v48 = vld [vmem:[#allocation20 + $0x560] ss:$16 sps:$4 sm:$0xff]   ;;  %v20530_v10 = vld [vmem:[#allocation20 + $0x584] ss:$16 sps:$4 sm:$0xff]  }
 0xe07   : > { %10732 = vmatprep.subr.bf16.mxu0 %v20506_v23  ;;  %v20528_v29 = vld [vmem:[#allocation20 + $0x580] ss:$16 sps:$4 sm:$0xff]  }
 0xe08   : > { %v20531_v23 = vld [vmem:[#allocation20 + $0x380] ss:$16 sps:$4 sm:$0xff]  }
 0xe0a   : > { %10733 = vmatpush1.bf16.msra.mxu0 %v20504_v30  ;;  %v20533_v30 = vld [vmem:[#allocation20 + $0x384] ss:$16 sps:$4 sm:$0xff]  }
 0xe0b   : > { %10734 = vmatprep.subr.bf16.mxu0 %v20512_v53  ;;  %v20534_v53 = vld [vmem:[#allocation20 + $0x5a0] ss:$16 sps:$4 sm:$0xff]  }
 0xe0e   : > { %10735 = vmatpush1.bf16.msra.mxu0 %v20510_v33  ;;  %v20536_v33 = vld [vmem:[#allocation20 + $0x5a4] ss:$16 sps:$4 sm:$0xff]  }
 0xe1b   : > { %v9056_v4 = vpop.f32.mrb[48].mxu0 }
 0xe1c   : > { %v9091_v61 = vadd.f32 %v9084_v16, %v9056_v4  ;;  %v9058_v27 = vpop.f32.mrb[49].mxu0 }
 0xe1d   : > { %v9092_v15 = vadd.f32 %v9088_v45, %v9058_v27  ;;  %v9060_v46 = vpop.f32.mrb[50].mxu0 }
 0xe1e   : > { %v9093_v2 = vadd.f32 %v9084_v16, %v9060_v46  ;;  %v9062_v56 = vpop.f32.mrb[51].mxu0  ;;  %v9097_v41 = vmax.f32 %v9091_v61, 0.0 }
 0xe1f   : > { %v9094_v43 = vadd.f32 %v9088_v45, %v9062_v56  ;;  %v9098_v47 = vmax.f32 %v9092_v15, 0.0 }
 0xe20   : > { %v9099_v19 = vmax.f32 %v9093_v2, 0.0 }
 0xe21   : > { %v9100_v50 = vmax.f32 %v9094_v43, 0.0 }
 0xe22   : > { %v9103_v6 = vpack.c.bf16 %v9099_v19, %v9097_v41 }
 0xe23   : > { %v9104_v13 = vpack.c.bf16 %v9100_v50, %v9098_v47  ;;  %v9066_v57 = vpop.f32.mrb[84].mxu0 }
 0xe24   : > { %v9077_v59 = vadd.f32 %v9066_v57, %v8914_v38  ;;  %v9068_v36 = vpop.f32.mrb[85].mxu0  ;;  %v20518_v38 = vld [vmem:[#allocation20 + $0x544] ss:$16 sps:$4 sm:$0xff]  }
 0xe25   : > { %v9078_v40 = vadd.f32 %v9068_v36, %v8915_v34  ;;  %v9070_v3 = vpop.f32.mrb[86].mxu0  ;;  %9119 = vmatprep.subr.bf16.mxu1 %v9104_v13  ;;  %10736 = vmatprep.subr.bf16.mxu0 %v20518_v38  ;;  %v20524_v34 = vld [vmem:[#allocation20 + $0x564] ss:$16 sps:$4 sm:$0xff]  }
 0xe26   : > { %v9095_v39 = vadd.f32 %v9084_v16, %v9077_v59  ;;  %v9071_v44 = vpop.f32.mrb[87].mxu0  ;;  %9120 = vmatpush1.bf16.msra.mxu1 %v9103_v6  ;;  %10737 = vmatpush1.bf16.msra.mxu0 %v20516_v25  ;;  %v20539_v38 = vld [vmem:[#allocation20 + $0x3a4] ss:$16 sps:$4 sm:$0xff]  }
 0xe27   : > { %v9096_v26 = vadd.f32 %v9088_v45, %v9078_v40  ;;  %10738 = vmatprep.subr.bf16.mxu0 %v20524_v34  ;;  %v20542_v25 = vld [vmem:[#allocation20 + $0x5c4] ss:$16 sps:$4 sm:$0xff]   ;;  %v20537_v34 = vld [vmem:[#allocation20 + $0x3a0] ss:$16 sps:$4 sm:$0xff]  }
 0xe28   : > { %v9101_v7 = vmax.f32 %v9095_v39, 0.0  ;;  %v20461_v39 = vld [vmem:[#allocation20 + $0x204] ss:$16 sps:$4 sm:$0xff]  }
 0xe29   : > { %v9102_v51 = vmax.f32 %v9096_v26, 0.0  ;;  %v20455_v26 = vld [vmem:[%s24938_s29] sm:$0xff]  }
 0xe2a   : > { %v9105_v55 = vpack.c.bf16 %v9101_v7, %v9101_v7  ;;  %10739 = vmatpush1.bf16.msra.mxu0 %v20522_v48  ;;  %v20459_v7 = vld [vmem:[#allocation20 + $0x200] ss:$16 sps:$4 sm:$0xff]  }
 0xe2b   : > { %v9106_v5 = vpack.c.bf16 %v9102_v51, %v9102_v51  ;;  %v20467_v51 = vld [vmem:[#allocation20 + $0x224] ss:$16 sps:$4 sm:$0xff]   ;;  %10740 = vmatprep.subr.bf16.mxu0 %v20530_v10  ;;  %v20540_v48 = vld [vmem:[#allocation20 + $0x5c0] ss:$16 sps:$4 sm:$0xff]  }
 0xe2c   : > { %v9114_v52 = vsel %vm9112_vm2, %v9105_v55, 0  ;;  %v20465_v55 = vld [vmem:[#allocation20 + $0x220] ss:$16 sps:$4 sm:$0xff]   ;;  %v20590_v10 = vld [vmem:[#allocation20 + $0x6c4] ss:$16 sps:$4 sm:$0xff]  }
 0xe2d   : > { %17251 = vmatprep.subr.msk.bf16.mxu1 %vm9112_vm2, %v9106_v5 }
 0xe2e   : > { %9122 = vmatpush1.bf16.msra.mxu1 %v9114_v52  ;;  %10741 = vmatpush1.bf16.msra.mxu0 %v20528_v29  ;;  %v20587_v29 = vld [vmem:[#allocation20 + $0x2ac] ss:$16 sps:$4 sm:$0xff]  }
 0xe2f   : > { %9165 = vmatprep.subr.bf16.mxu1 %v9104_v13  ;;  %10742 = vmatprep.subr.bf16.mxu0 %v20536_v33  ;;  %v20596_v33 = vld [vmem:[#allocation20 + $0x6e4] ss:$16 sps:$4 sm:$0xff]  }
 0xe31   : > { %17252 = vmatmul.mubr.msk.bf16.vlgmr.msra.gmra.mrb[64].mxu1 %vm9108_vm3, %v9107_v62  ;;  %v20479_v62 = vld [vmem:[#allocation20 + $0x264] ss:$16 sps:$4 sm:$0xff]  }
 0xe32   : > { %9166 = vmatpush1.bf16.msra.mxu1 %v9103_v6  ;;  %9197 = vmatprep.mubr.bf16.mxu1 %v22329_v12 }
 0xe33   : > { %17253 = vmatprep.subr.msk.bf16.mxu1 %vm9112_vm2, %v9106_v5  ;;  %10743 = vmatpush1.bf16.msra.mxu0 %v20534_v53  ;;  %v20593_v53 = vld [vmem:[#allocation20 + $0x2cc] ss:$16 sps:$4 sm:$0xff]  }
 0xe34   : > { %10744 = vmatprep.subr.bf16.mxu0 %v20542_v25  ;;  %v20594_v25 = vld [vmem:[#allocation20 + $0x6e0] ss:$16 sps:$4 sm:$0xff]  }
 0xe36   : > { %9168 = vmatpush1.bf16.msra.mxu1 %v9114_v52 }
 0xe37   : > { %9213 = vmatprep.subr.bf16.mxu1 %v9104_v13  ;;  %10745 = vmatpush1.bf16.msra.mxu0 %v20540_v48  ;;  %v20602_v48 = vld [vmem:[#allocation20 + $0x704] ss:$16 sps:$4 sm:$0xff]  }
 0xe39   : > { %17254 = vmatmul.mubr.msk.bf16.vlgmr.msra.gmra.mrb[68].mxu1 %vm9108_vm3, %v9161_v49  ;;  %v20477_v49 = vld [vmem:[#allocation20 + $0x260] ss:$16 sps:$4 sm:$0xff]  }
 0xe3a   : > { %9214 = vmatpush1.bf16.msra.mxu1 %v9103_v6  ;;  %9245 = vmatprep.mubr.bf16.mxu1 %v22329_v12 }
 0xe3b   : > { %17255 = vmatprep.subr.msk.bf16.mxu1 %vm9112_vm2, %v9106_v5 }
 0xe3e   : > { %9216 = vmatpush1.bf16.msra.mxu1 %v9114_v52 }
 0xe3f   : > { %9261 = vmatprep.subr.bf16.mxu1 %v9104_v13 }
 0xe41   : > { %17256 = vmatmul.mubr.msk.bf16.vlgmr.msra.gmra.mrb[72].mxu1 %vm9108_vm3, %v9209_v54  ;;  %v20485_v54 = vld [vmem:[#allocation20 + $0x284] ss:$16 sps:$4 sm:$0xff]  }
 0xe42   : > { %9262 = vmatpush1.bf16.msra.mxu1 %v9103_v6  ;;  %9293 = vmatprep.mubr.bf16.mxu1 %v22329_v12 }
 0xe43   : > { %17257 = vmatprep.subr.msk.bf16.mxu1 %vm9112_vm2, %v9106_v5  ;;  %v20473_v5 = vld [vmem:[#allocation20 + $0x244] ss:$16 sps:$4 sm:$0xff]  }
 0xe46   : > { %9264 = vmatpush1.bf16.msra.mxu1 %v9114_v52  ;;  %v20471_v52 = vld [vmem:[#allocation20 + $0x240] ss:$16 sps:$4 sm:$0xff]  }
 0xe49   : > { %17258 = vmatmul.mubr.msk.bf16.vlgmr.msra.gmra.mrb[76].mxu1 %vm9108_vm3, %v9257_v18  ;;  %v20483_v18 = vld [vmem:[#allocation20 + $0x280] ss:$16 sps:$4 sm:$0xff]  }
 0xe4a   : > { %9355 = vmatprep.mubr.bf16.mxu1 %v22329_v12 }
 0xf04   : > { %v9153_v11 = vpop.f32.mrb[64].mxu1 }
 0xf05   : > { %v9155_v20 = vpop.f32.mrb[65].mxu1 }
 0xf06   : > { %v9157_v37 = vpop.f32.mrb[66].mxu1 }
 0xf07   : > { %v9158_v16 = vpop.f32.mrb[67].mxu1  ;;  %v20543_v37 = vld [vmem:[#allocation20 + $0x3c0] ss:$16 sps:$4 sm:$0xff]  }
 0xf08   : > { %v20546_v16 = vld [vmem:[#allocation20 + $0x5e0] ss:$16 sps:$4 sm:$0xff]  }
 0xf0c   : > { %v9199_v45 = vpop.f32.mrb[68].mxu1 }
 0xf0d   : > { %v9206_v4 = vmax.f32 %v9153_v11, %v9199_v45  ;;  %v9201_v61 = vpop.f32.mrb[69].mxu1  ;;  %v20545_v11 = vld [vmem:[#allocation20 + $0x3c4] ss:$16 sps:$4 sm:$0xff]  }
 0xf0e   : > { %v9207_v27 = vmax.f32 %v9155_v20, %v9201_v61  ;;  %v9203_v15 = vpop.f32.mrb[70].mxu1  ;;  %v20548_v20 = vld [vmem:[#allocation20 + $0x5e4] ss:$16 sps:$4 sm:$0xff]   ;;  %v20549_v61 = vld [vmem:[#allocation20 + $0x3e0] ss:$16 sps:$4 sm:$0xff]  }
 0xf0f   : > { %v9204_v46 = vpop.f32.mrb[71].mxu1  ;;  %v20551_v45 = vld [vmem:[#allocation20 + $0x3e4] ss:$16 sps:$4 sm:$0xff]   ;;  %10746 = vmatprep.subr.bf16.mxu0 %v20548_v20  ;;  %v20600_v20 = vld [vmem:[#allocation20 + $0x700] ss:$16 sps:$4 sm:$0xff]  }
 0xf10   : > { %10747 = vmatpush1.bf16.msra.mxu0 %v20546_v16  ;;  %v20608_v16 = vld [vmem:[#allocation20 + $0x724] ss:$16 sps:$4 sm:$0xff]  }
 0xf14   : > { %v9247_v2 = vpop.f32.mrb[72].mxu1 }
 0xf15   : > { %v9254_v56 = vmax.f32 %v9206_v4, %v9247_v2  ;;  %v9249_v43 = vpop.f32.mrb[73].mxu1  ;;  %v20554_v4 = vld [vmem:[#allocation20 + $0x604] ss:$16 sps:$4 sm:$0xff]  }
 0xf16   : > { %v9255_v41 = vmax.f32 %v9207_v27, %v9249_v43  ;;  %v9251_v19 = vpop.f32.mrb[74].mxu1  ;;  %11195 = vmatprep.subr.bf16.mxu0 %v20554_v4  ;;  %v20557_v27 = vld [vmem:[#allocation20 + $0x20c] ss:$16 sps:$4 sm:$0xff]   ;;  %v20606_v4 = vld [vmem:[#allocation20 + $0x720] ss:$16 sps:$4 sm:$0xff]  }
 0xf17   : > { %v9252_v47 = vpop.f32.mrb[75].mxu1 }
 0xf1c   : > { %v9295_v50 = vpop.f32.mrb[76].mxu1 }
 0xf1d   : > { %v9302_v6 = vmax.f32 %v9254_v56, %v9295_v50  ;;  %v9297_v13 = vpop.f32.mrb[77].mxu1 }
 0xf1e   : > { %v9303_v57 = vmax.f32 %v9255_v41, %v9297_v13  ;;  %v9299_v59 = vpop.f32.mrb[78].mxu1 }
 0xf1f   : > { %v9306_v36 = vpack.c.bf16 %v9302_v6, %v9302_v6  ;;  %v9300_v40 = vpop.f32.mrb[79].mxu1  ;;  %v20552_v6 = vld [vmem:[#allocation20 + $0x600] ss:$16 sps:$4 sm:$0xff]  }
 0xf20   : > { %v9307_v3 = vpack.c.bf16 %v9303_v57, %v9303_v57 }
 0xf21   : > { %v9318_v44 = vsel %vm1231_vm1, %v9306_v36, 0 }
 0xf22   : > { %17260 = vmatprep.subr.msk.bf16.mxu1 %vm1231_vm1, %v9307_v3  ;;  %vm13735_vm1 = vcmask 48128  }
 0xf23   : > { %9324 = vmatpush1.bf16.msra.mxu1 %v9318_v44 }
 0xf24   : > { %9839 = vmatprep.subr.bf16.mxu1 %v20461_v39  ;;  %v20560_v39 = vld [vmem:[#allocation20 + $0x624] ss:$16 sps:$4 sm:$0xff]  }
 0xf26   : > { %17261 = vmatmul.mubr.msk.bf16.vlgmr.msra.gmra.mrb[80].mxu1 %vm9313_vm4, %v20455_v26 }
 0xf27   : > { %9840 = vmatpush1.bf16.msra.mxu1 %v20459_v7 }
 0xf28   : > { %9841 = vmatprep.subr.bf16.mxu1 %v20467_v51 }
 0xf2b   : > { %9842 = vmatpush1.bf16.msra.mxu1 %v20465_v55 }
 0xf2c   : > { %9843 = vmatprep.subr.bf16.mxu1 %v20473_v5 }
 0xf2f   : > { %9844 = vmatpush1.bf16.msra.mxu1 %v20471_v52  ;;  %v20555_v52 = vld [vmem:[#allocation20 + $0x208] ss:$16 sps:$4 sm:$0xff]  }
 0xf30   : > { %9845 = vmatprep.subr.bf16.mxu1 %v20479_v62  ;;  %v20558_v62 = vld [vmem:[#allocation20 + $0x620] ss:$16 sps:$4 sm:$0xff]  }
 0xf33   : > { %9846 = vmatpush1.bf16.msra.mxu1 %v20477_v49 }
 0xf34   : > { %9847 = vmatprep.subr.bf16.mxu1 %v20485_v54  ;;  %v20563_v54 = vld [vmem:[#allocation20 + $0x22c] ss:$16 sps:$4 sm:$0xff]  }
 0xf37   : > { %9848 = vmatpush1.bf16.msra.mxu1 %v20483_v18  ;;  %v20566_v18 = vld [vmem:[#allocation20 + $0x644] ss:$16 sps:$4 sm:$0xff]  }
 0xf38   : > { %9849 = vmatprep.subr.bf16.mxu1 %v20491_v1  ;;  %v20561_v1 = vld [vmem:[#allocation20 + $0x228] ss:$16 sps:$4 sm:$0xff]  }
 0xf3b   : > { %9850 = vmatpush1.bf16.msra.mxu1 %v20489_v28  ;;  %v20564_v28 = vld [vmem:[#allocation20 + $0x640] ss:$16 sps:$4 sm:$0xff]  }
 0xf3c   : > { %9851 = vmatprep.subr.bf16.mxu1 %v20497_v35  ;;  %v20569_v35 = vld [vmem:[#allocation20 + $0x24c] ss:$16 sps:$4 sm:$0xff]  }
 0xf3f   : > { %9852 = vmatpush1.bf16.msra.mxu1 %v20495_v58  ;;  %v20572_v58 = vld [vmem:[#allocation20 + $0x664] ss:$16 sps:$4 sm:$0xff]  }
 0xf40   : > { %9853 = vmatprep.subr.bf16.mxu1 %v20503_v17  ;;  %v20567_v17 = vld [vmem:[#allocation20 + $0x248] ss:$16 sps:$4 sm:$0xff]  }
 0xf43   : > { %9854 = vmatpush1.bf16.msra.mxu1 %v20501_v60  ;;  %v20570_v60 = vld [vmem:[#allocation20 + $0x660] ss:$16 sps:$4 sm:$0xff]  }
 0xf44   : > { %9855 = vmatprep.subr.bf16.mxu1 %v20509_v14  ;;  %v20575_v14 = vld [vmem:[#allocation20 + $0x26c] ss:$16 sps:$4 sm:$0xff]  }
 0xf47   : > { %9856 = vmatpush1.bf16.msra.mxu1 %v20507_v42  ;;  %v20578_v42 = vld [vmem:[#allocation20 + $0x684] ss:$16 sps:$4 sm:$0xff]  }
 0xf48   : > { %9857 = vmatprep.subr.bf16.mxu1 %v20515_v0  ;;  %v20573_v0 = vld [vmem:[#allocation20 + $0x268] ss:$16 sps:$4 sm:$0xff]  }
 0xf4b   : > { %9858 = vmatpush1.bf16.msra.mxu1 %v20513_v22  ;;  %v20576_v22 = vld [vmem:[#allocation20 + $0x680] ss:$16 sps:$4 sm:$0xff]  }
 0xf4c   : > { %9859 = vmatprep.subr.bf16.mxu1 %v20521_v63  ;;  %v20581_v63 = vld [vmem:[#allocation20 + $0x28c] ss:$16 sps:$4 sm:$0xff]  }
 0xf4f   : > { %9860 = vmatpush1.bf16.msra.mxu1 %v20519_v9  ;;  %v20584_v9 = vld [vmem:[#allocation20 + $0x6a4] ss:$16 sps:$4 sm:$0xff]  }
 0xf50   : > { %9861 = vmatprep.subr.bf16.mxu1 %v20527_v8  ;;  %v20582_v8 = vld [vmem:[#allocation20 + $0x6a0] ss:$16 sps:$4 sm:$0xff]  }
 0xf53   : > { %9862 = vmatpush1.bf16.msra.mxu1 %v20525_v24  ;;  %v20579_v24 = vld [vmem:[#allocation20 + $0x288] ss:$16 sps:$4 sm:$0xff]  }
 0xf54   : > { %9863 = vmatprep.subr.bf16.mxu1 %v20533_v30  ;;  %v20588_v30 = vld [vmem:[#allocation20 + $0x6c0] ss:$16 sps:$4 sm:$0xff]  }
 0xf57   : > { %9864 = vmatpush1.bf16.msra.mxu1 %v20531_v23  ;;  %v20585_v23 = vld [vmem:[#allocation20 + $0x2a8] ss:$16 sps:$4 sm:$0xff]  }
 0xf58   : > { %9865 = vmatprep.subr.bf16.mxu1 %v20539_v38  ;;  %v20591_v38 = vld [vmem:[#allocation20 + $0x2c8] ss:$16 sps:$4 sm:$0xff]  }
 0xf5b   : > { %9866 = vmatpush1.bf16.msra.mxu1 %v20537_v34  ;;  %v20599_v34 = vld [vmem:[#allocation20 + $0x2ec] ss:$16 sps:$4 sm:$0xff]  }
 0xf5c   : > { %9867 = vmatprep.subr.bf16.mxu1 %v20545_v11  ;;  %v20597_v11 = vld [vmem:[#allocation20 + $0x2e8] ss:$16 sps:$4 sm:$0xff]  }
 0xf5f   : > { %9868 = vmatpush1.bf16.msra.mxu1 %v20543_v37  ;;  %v20605_v37 = vld [vmem:[#allocation20 + $0x30c] ss:$16 sps:$4 sm:$0xff]  }
 0xf60   : > { %9869 = vmatprep.subr.bf16.mxu1 %v20551_v45  ;;  %v20603_v45 = vld [vmem:[#allocation20 + $0x308] ss:$16 sps:$4 sm:$0xff]  }
 0xf63   : > { %9870 = vmatpush1.bf16.msra.mxu1 %v20549_v61  ;;  %v20611_v61 = vld [vmem:[#allocation20 + $0x32c] ss:$16 sps:$4 sm:$0xff]  }
 0xf64   : > { %9880 = vmatprep.subr.bf16.mxu1 %v20557_v27  ;;  %v20614_v27 = vld [vmem:[#allocation20 + $0x744] ss:$16 sps:$4 sm:$0xff]  }
 0xff9   : > { %v9357_v15 = vpop.f32.mrb[80].mxu1 }
 0xffa   : > { %v9359_v46 = vpop.f32.mrb[81].mxu1 }
 0xffb   : > { %v9361_v2 = vpop.f32.mrb[82].mxu1 }
 0xffc   : > { %v9366_v56 = vpack.c.bf16 %v9361_v2, %v9357_v15  ;;  %v9363_v43 = vpop.f32.mrb[83].mxu1  ;;  %v20609_v15 = vld [vmem:[#allocation20 + $0x328] ss:$16 sps:$4 sm:$0xff]   ;;  %v20617_v2 = vld [vmem:[#allocation20 + $0x34c] ss:$16 sps:$4 sm:$0xff]  }
 0xffd   : > { %v9367_v41 = vpack.c.bf16 %v9363_v43, %v9359_v46  ;;  %v20612_v46 = vld [vmem:[#allocation20 + $0x740] ss:$16 sps:$4 sm:$0xff]   ;;  %v20615_v43 = vld [vmem:[#allocation20 + $0x348] ss:$16 sps:$4 sm:$0xff]  }
 0xffe   : > { %9368 = vst [vmem:[#allocation4] sm:$0xff] %v9366_v56  ;;  %v20620_v56 = vld [vmem:[#allocation20 + $0x764] ss:$16 sps:$4 sm:$0xff]  }
 0xfff   : > { %9369 = vst [vmem:[#allocation4 + $0x8] sm:$0xff] %v9367_v41  ;;  %v20618_v41 = vld [vmem:[#allocation20 + $0x760] ss:$16 sps:$4 sm:$0xff]  }
0x1005   : > { %v24419_v19 = vld [vmem:[#allocation4] sm:$0xe] }
0x1006   : > { %v9436_v47 = vld [vmem:[#allocation4] sm:$0xf]  ;;  %v24421_v50 = vld [vmem:[#allocation4 + $0x8] sm:$0xe]  ;;  %v10392_v3 = vrot.slane %v24419_v19, 1 }
0x1007   : > { %v9437_v13 = vld [vmem:[#allocation4 + $0x8] sm:$0xf]  ;;  %v10393_v57 = vrot.slane %v24421_v50, 1  ;;  %v9506_v36 = vshll.u32 %v9436_v47, 16  ;;  %v9504_v55 = vshrl.u32 %v9436_v47, 16 }
0x1008   : > { %v9513_v59 = vshll.u32 %v9437_v13, 16  ;;  %v24424_v40 = vld [vmem:[#allocation4 + $0x8] sm:$0x1c]  ;;  %v9511_v44 = vshrl.u32 %v9437_v13, 16  ;;  %v20864_v50 = vld [vmem:[#allocation20 + $0xc80] ss:$16 sps:$4 sm:$0xff]  }
0x1009   : > { %10748 = vmatprep.mubr.bf16.mxu0 %v10393_v57  ;;  %v9508_v7 = vrot.slane %v9506_v36, 1  ;;  %v10872_v51 = vrot.slane %v24424_v40, 2  ;;  %v20623_v47 = vld [vmem:[#allocation20 + $0x36c] ss:$16 sps:$4 sm:$0xff]   ;;  %v20621_v13 = vld [vmem:[#allocation20 + $0x368] ss:$16 sps:$4 sm:$0xff]  }
0x100a   : > { %v9515_v26 = vrot.slane %v9513_v59, 1  ;;  %10749 = vmatmul.mubr.bf16.vlgmr.msra.gmra.mrb[88].mxu0 %v10392_v3  ;;  %v20624_v59 = vld [vmem:[#allocation20 + $0x780] ss:$16 sps:$4 sm:$0xff]   ;;  %v20629_v36 = vld [vmem:[#allocation20 + $0x38c] ss:$16 sps:$4 sm:$0xff]  }
0x100b   : > { %11196 = vmatpush1.bf16.msra.mxu0 %v20552_v6  ;;  %11227 = vmatprep.mubr.bf16.mxu0 %v10872_v51  ;;  %v24434_v49 = vor.u32 %v9508_v7, %v9504_v55  ;;  %v20626_v6 = vld [vmem:[#allocation20 + $0x784] ss:$16 sps:$4 sm:$0xff]   ;;  %v20635_v7 = vld [vmem:[#allocation20 + $0x3ac] ss:$16 sps:$4 sm:$0xff]   ;;  %v20960_v40 = vld [vmem:[#allocation20 + $0xe80] ss:$16 sps:$4 sm:$0xff]  }
0x100c   : > { %v9516_v5 = vor.u32 %v9515_v26, %v9511_v44  ;;  %11197 = vmatprep.subr.bf16.mxu0 %v20560_v39  ;;  %v20632_v39 = vld [vmem:[#allocation20 + $0x7a4] ss:$16 sps:$4 sm:$0xff]   ;;  %v20627_v44 = vld [vmem:[#allocation20 + $0x388] ss:$16 sps:$4 sm:$0xff]   ;;  %v20630_v26 = vld [vmem:[#allocation20 + $0x7a0] ss:$16 sps:$4 sm:$0xff]  }
0x100d   : > { %v20638_v55 = vld [vmem:[#allocation20 + $0x7c4] ss:$16 sps:$4 sm:$0xff]  }
0x100e   : > { %9871 = vmatprep.mubr.bf16.mxu1 %v9516_v5  ;;  %v20962_v19 = vld [vmem:[#allocation20 + $0xe84] ss:$16 sps:$4 sm:$0xff]  }
0x100f   : > { %9872 = vmatmul.mubr.bf16.vlgmr.msra.gmra.mrb[84].mxu1 %v24434_v49  ;;  %11198 = vmatpush1.bf16.msra.mxu0 %v20558_v62  ;;  %v11282_v62 = vld [vmem:[#allocation4 + $0x8] sm:$0x3c] }
0x1010   : > { %9881 = vmatpush1.bf16.msra.mxu1 %v20555_v52  ;;  %11199 = vmatprep.subr.bf16.mxu0 %v20566_v18  ;;  %v20636_v52 = vld [vmem:[#allocation20 + $0x7c0] ss:$16 sps:$4 sm:$0xff]   ;;  %v20644_v18 = vld [vmem:[#allocation20 + $0x7e4] ss:$16 sps:$4 sm:$0xff]  }
0x1011   : > { %9882 = vmatprep.subr.bf16.mxu1 %v20563_v54  ;;  %9912 = vmatprep.mubr.bf16.mxu1 %v9516_v5  ;;  %v20633_v5 = vld [vmem:[#allocation20 + $0x3a8] ss:$16 sps:$4 sm:$0xff]   ;;  %v20641_v54 = vld [vmem:[#allocation20 + $0x3cc] ss:$16 sps:$4 sm:$0xff]  }
0x1013   : > { %11200 = vmatpush1.bf16.msra.mxu0 %v20564_v28  ;;  %v11360_v28 = vshll.u32 %v11282_v62, 16 }
0x1014   : > { %9883 = vmatpush1.bf16.msra.mxu1 %v20561_v1  ;;  %11201 = vmatprep.subr.bf16.mxu0 %v20572_v58  ;;  %v11357_v1 = vshrl.u32 %v11282_v62, 16  ;;  %v20642_v58 = vld [vmem:[#allocation20 + $0x7e0] ss:$16 sps:$4 sm:$0xff]   ;;  %v20710_v62 = vld [vmem:[#allocation20 + $0x944] ss:$16 sps:$4 sm:$0xff]  }
0x1015   : > { %9884 = vmatprep.subr.bf16.mxu1 %v20569_v35  ;;  %v20639_v35 = vld [vmem:[#allocation20 + $0x3c8] ss:$16 sps:$4 sm:$0xff]  }
0x1017   : > { %11202 = vmatpush1.bf16.msra.mxu0 %v20570_v60  ;;  %v20650_v60 = vld [vmem:[#allocation20 + $0x804] ss:$16 sps:$4 sm:$0xff]  }
0x1018   : > { %9885 = vmatpush1.bf16.msra.mxu1 %v20567_v17  ;;  %11203 = vmatprep.subr.bf16.mxu0 %v20578_v42  ;;  %v20647_v17 = vld [vmem:[#allocation20 + $0x3ec] ss:$16 sps:$4 sm:$0xff]   ;;  %v11359_v42 = vrot.slane %v11357_v1, 2  ;;  %v20713_v1 = vld [vmem:[#allocation20 + $0x144] ss:$16 sps:$4 sm:$0xff]  }
0x1019   : > { %9886 = vmatprep.subr.bf16.mxu1 %v20575_v14  ;;  %v24437_v14 = vld [vmem:[#allocation4] sm:$0x1c] }
0x101b   : > { %11204 = vmatpush1.bf16.msra.mxu0 %v20576_v22  ;;  %v20645_v22 = vld [vmem:[#allocation20 + $0x3e8] ss:$16 sps:$4 sm:$0xff]  }
0x101c   : > { %9887 = vmatpush1.bf16.msra.mxu1 %v20573_v0  ;;  %11205 = vmatprep.subr.bf16.mxu0 %v20584_v9  ;;  %v11362_v0 = vrot.slane %v11360_v28, 3  ;;  %v10871_v9 = vrot.slane %v24437_v14, 2  ;;  %v20716_v28 = vld [vmem:[#allocation20 + $0x964] ss:$16 sps:$4 sm:$0xff]   ;;  %v21053_v14 = vld [vmem:[#allocation20 + $0x868] ss:$16 sps:$4 sm:$0xff]  }
0x101d   : > { %9888 = vmatprep.subr.bf16.mxu1 %v20581_v63  ;;  %v20648_v63 = vld [vmem:[#allocation20 + $0x800] ss:$16 sps:$4 sm:$0xff]  }
0x101f   : > { %11206 = vmatpush1.bf16.msra.mxu0 %v20582_v8  ;;  %v20656_v8 = vld [vmem:[#allocation20 + $0x824] ss:$16 sps:$4 sm:$0xff]  }
0x1020   : > { %9889 = vmatpush1.bf16.msra.mxu1 %v20579_v24  ;;  %11207 = vmatprep.subr.bf16.mxu0 %v20590_v10  ;;  %v20653_v24 = vld [vmem:[#allocation20 + $0x4] ss:$16 sps:$4 sm:$0xff]   ;;  %v20651_v10 = vld [vmem:[#allocation20] ss:$16 sps:$4 sm:$0xff]  }
0x1021   : > { %9890 = vmatprep.subr.bf16.mxu1 %v20587_v29  ;;  %v24442_v29 = vor.u32 %v11362_v0, %v11359_v42  ;;  %v20717_v42 = vld [vmem:[#allocation20 + $0x160] ss:$16 sps:$4 sm:$0xff]  }
0x1022   : > { %v20720_v0 = vld [vmem:[#allocation20 + $0x980] ss:$16 sps:$4 sm:$0xff]  }
0x1023   : > { %11208 = vmatpush1.bf16.msra.mxu0 %v20588_v30  ;;  %v20659_v30 = vld [vmem:[#allocation20 + $0x24] ss:$16 sps:$4 sm:$0xff]  }
0x1024   : > { %9891 = vmatpush1.bf16.msra.mxu1 %v20585_v23  ;;  %11209 = vmatprep.subr.bf16.mxu0 %v20596_v33  ;;  %v20654_v23 = vld [vmem:[#allocation20 + $0x820] ss:$16 sps:$4 sm:$0xff]   ;;  %v24446_v33 = vld [vmem:[#allocation4 + $0x8] sm:$0x7] }
0x1025   : > { %9892 = vmatprep.subr.bf16.mxu1 %v20593_v53  ;;  %v20662_v53 = vld [vmem:[#allocation20 + $0x844] ss:$16 sps:$4 sm:$0xff]  }
0x1027   : > { %11210 = vmatpush1.bf16.msra.mxu0 %v20594_v25  ;;  %v20660_v25 = vld [vmem:[#allocation20 + $0x840] ss:$16 sps:$4 sm:$0xff]  }
0x1028   : > { %9893 = vmatpush1.bf16.msra.mxu1 %v20591_v38  ;;  %11211 = vmatprep.subr.bf16.mxu0 %v20602_v48  ;;  %v20657_v38 = vld [vmem:[#allocation20 + $0x20] ss:$16 sps:$4 sm:$0xff]   ;;  %v20668_v48 = vld [vmem:[#allocation20 + $0x864] ss:$16 sps:$4 sm:$0xff]  }
0x1029   : > { %9894 = vmatprep.subr.bf16.mxu1 %v20599_v34  ;;  %v20665_v34 = vld [vmem:[#allocation20 + $0x44] ss:$16 sps:$4 sm:$0xff]  }
0x102b   : > { %11212 = vmatpush1.bf16.msra.mxu0 %v20600_v20  ;;  %v20666_v20 = vld [vmem:[#allocation20 + $0x860] ss:$16 sps:$4 sm:$0xff]  }
0x102c   : > { %9895 = vmatpush1.bf16.msra.mxu1 %v20597_v11  ;;  %11213 = vmatprep.subr.bf16.mxu0 %v20608_v16  ;;  %v20663_v11 = vld [vmem:[#allocation20 + $0x40] ss:$16 sps:$4 sm:$0xff]  }
0x102d   : > { %9896 = vmatprep.subr.bf16.mxu1 %v20605_v37  ;;  %v20671_v37 = vld [vmem:[#allocation20 + $0x64] ss:$16 sps:$4 sm:$0xff]   ;;  %v20669_v16 = vld [vmem:[#allocation20 + $0x60] ss:$16 sps:$4 sm:$0xff]  }
0x102f   : > { %11214 = vmatpush1.bf16.msra.mxu0 %v20606_v4  ;;  %v20677_v4 = vld [vmem:[#allocation20 + $0x84] ss:$16 sps:$4 sm:$0xff]  }
0x1030   : > { %9897 = vmatpush1.bf16.msra.mxu1 %v20603_v45  ;;  %11215 = vmatprep.subr.bf16.mxu0 %v20614_v27  ;;  %v20672_v45 = vld [vmem:[#allocation20 + $0x880] ss:$16 sps:$4 sm:$0xff]  }
0x1031   : > { %9898 = vmatprep.subr.bf16.mxu1 %v20611_v61  ;;  %v20680_v61 = vld [vmem:[#allocation20 + $0x8a4] ss:$16 sps:$4 sm:$0xff]   ;;  %v20675_v27 = vld [vmem:[#allocation20 + $0x80] ss:$16 sps:$4 sm:$0xff]  }
0x1033   : > { %11216 = vmatpush1.bf16.msra.mxu0 %v20612_v46  ;;  %v20683_v46 = vld [vmem:[#allocation20 + $0xa4] ss:$16 sps:$4 sm:$0xff]  }
0x1034   : > { %9899 = vmatpush1.bf16.msra.mxu1 %v20609_v15  ;;  %11217 = vmatprep.subr.bf16.mxu0 %v20620_v56  ;;  %v20678_v15 = vld [vmem:[#allocation20 + $0x8a0] ss:$16 sps:$4 sm:$0xff]  }
0x1035   : > { %9900 = vmatprep.subr.bf16.mxu1 %v20617_v2  ;;  %v20686_v2 = vld [vmem:[#allocation20 + $0x8c4] ss:$16 sps:$4 sm:$0xff]   ;;  %v20681_v56 = vld [vmem:[#allocation20 + $0xa0] ss:$16 sps:$4 sm:$0xff]  }
0x1037   : > { %11218 = vmatpush1.bf16.msra.mxu0 %v20618_v41  ;;  %v20689_v41 = vld [vmem:[#allocation20 + $0xc4] ss:$16 sps:$4 sm:$0xff]  }
0x1038   : > { %9901 = vmatpush1.bf16.msra.mxu1 %v20615_v43  ;;  %11219 = vmatprep.subr.bf16.mxu0 %v20626_v6  ;;  %v20684_v43 = vld [vmem:[#allocation20 + $0x8c0] ss:$16 sps:$4 sm:$0xff]  }
0x1039   : > { %9902 = vmatprep.subr.bf16.mxu1 %v20623_v47  ;;  %v20692_v47 = vld [vmem:[#allocation20 + $0x8e4] ss:$16 sps:$4 sm:$0xff]   ;;  %v20687_v6 = vld [vmem:[#allocation20 + $0xc0] ss:$16 sps:$4 sm:$0xff]  }
0x103b   : > { %11220 = vmatpush1.bf16.msra.mxu0 %v20624_v59  ;;  %v20695_v59 = vld [vmem:[#allocation20 + $0xe4] ss:$16 sps:$4 sm:$0xff]  }
0x103c   : > { %9903 = vmatpush1.bf16.msra.mxu1 %v20621_v13  ;;  %11221 = vmatprep.subr.bf16.mxu0 %v20632_v39  ;;  %v20690_v13 = vld [vmem:[#allocation20 + $0x8e0] ss:$16 sps:$4 sm:$0xff]  }
0x103d   : > { %9904 = vmatprep.subr.bf16.mxu1 %v20629_v36  ;;  %v20698_v36 = vld [vmem:[#allocation20 + $0x904] ss:$16 sps:$4 sm:$0xff]   ;;  %v20693_v39 = vld [vmem:[#allocation20 + $0xe0] ss:$16 sps:$4 sm:$0xff]  }
0x103f   : > { %11222 = vmatpush1.bf16.msra.mxu0 %v20630_v26  ;;  %v20701_v26 = vld [vmem:[#allocation20 + $0x104] ss:$16 sps:$4 sm:$0xff]  }
0x1040   : > { %9905 = vmatpush1.bf16.msra.mxu1 %v20627_v44  ;;  %11223 = vmatprep.subr.bf16.mxu0 %v20638_v55  ;;  %v20696_v44 = vld [vmem:[#allocation20 + $0x900] ss:$16 sps:$4 sm:$0xff]  }
0x1041   : > { %9906 = vmatprep.subr.bf16.mxu1 %v20635_v7  ;;  %v20704_v7 = vld [vmem:[#allocation20 + $0x924] ss:$16 sps:$4 sm:$0xff]   ;;  %v20699_v55 = vld [vmem:[#allocation20 + $0x100] ss:$16 sps:$4 sm:$0xff]  }
0x1043   : > { %11224 = vmatpush1.bf16.msra.mxu0 %v20636_v52  ;;  %v20707_v52 = vld [vmem:[#allocation20 + $0x124] ss:$16 sps:$4 sm:$0xff]  }
0x1044   : > { %9907 = vmatpush1.bf16.msra.mxu1 %v20633_v5  ;;  %11225 = vmatprep.subr.bf16.mxu0 %v20644_v18  ;;  %v20702_v5 = vld [vmem:[#allocation20 + $0x920] ss:$16 sps:$4 sm:$0xff]  }
0x1045   : > { %9908 = vmatprep.subr.bf16.mxu1 %v20641_v54  ;;  %v20705_v54 = vld [vmem:[#allocation20 + $0x120] ss:$16 sps:$4 sm:$0xff]  }
0x1046   : > { %v20708_v18 = vld [vmem:[#allocation20 + $0x940] ss:$16 sps:$4 sm:$0xff]  }
0x1047   : > { %11226 = vmatpush1.bf16.msra.mxu0 %v20642_v58  ;;  %v20714_v58 = vld [vmem:[#allocation20 + $0x960] ss:$16 sps:$4 sm:$0xff]  }
0x1048   : > { %9909 = vmatpush1.bf16.msra.mxu1 %v20639_v35  ;;  %11686 = vmatprep.subr.bf16.mxu0 %v20650_v60  ;;  %v20711_v35 = vld [vmem:[#allocation20 + $0x140] ss:$16 sps:$4 sm:$0xff]   ;;  %v20722_v60 = vld [vmem:[#allocation20 + $0x984] ss:$16 sps:$4 sm:$0xff]  }
0x1049   : > { %9910 = vmatprep.subr.bf16.mxu1 %v20647_v17  ;;  %v20719_v17 = vld [vmem:[#allocation20 + $0x164] ss:$16 sps:$4 sm:$0xff]  }
0x104a   : > { %11228 = vmatmul.mubr.bf16.vlgmr.msra.gmra.mrb[92].mxu0 %v10871_v9 }
0x104b   : > { %11687 = vmatpush1.bf16.msra.mxu0 %v20648_v63  ;;  %11718 = vmatprep.mubr.bf16.mxu0 %v24442_v29  ;;  %v20728_v63 = vld [vmem:[#allocation20 + $0x9a4] ss:$16 sps:$4 sm:$0xff]  }
0x104c   : > { %9911 = vmatpush1.bf16.msra.mxu1 %v20645_v22  ;;  %11688 = vmatprep.subr.bf16.mxu0 %v20656_v8  ;;  %v20725_v22 = vld [vmem:[#allocation20 + $0x184] ss:$16 sps:$4 sm:$0xff]   ;;  %v20726_v8 = vld [vmem:[#allocation20 + $0x9a0] ss:$16 sps:$4 sm:$0xff]  }
0x104d   : > { %10241 = vmatprep.subr.bf16.mxu1 %v20653_v24  ;;  %v20723_v24 = vld [vmem:[#allocation20 + $0x180] ss:$16 sps:$4 sm:$0xff]  }
0x104f   : > { %9913 = vmatmul.mubr.bf16.vlgmr.msra.gmra.mrb[88].mxu1 %v24434_v49  ;;  %11689 = vmatpush1.bf16.msra.mxu0 %v20654_v23  ;;  %v20674_v49 = vld [vmem:[#allocation20 + $0x884] ss:$16 sps:$4 sm:$0xff]  }
0x1050   : > { %10242 = vmatpush1.bf16.msra.mxu1 %v20651_v10  ;;  %10273 = vmatprep.mubr.bf16.mxu1 %v24446_v33  ;;  %v20731_v10 = vld [vmem:[#allocation20 + $0x1a4] ss:$16 sps:$4 sm:$0xff]  }
0x1051   : > { %10243 = vmatprep.subr.bf16.mxu1 %v20659_v30  ;;  %11690 = vmatprep.subr.bf16.mxu0 %v20662_v53  ;;  %v20734_v23 = vld [vmem:[#allocation20 + $0x9c4] ss:$16 sps:$4 sm:$0xff]   ;;  %v20729_v53 = vld [vmem:[#allocation20 + $0x1a0] ss:$16 sps:$4 sm:$0xff]  }
0x1052   : > { %v11281_v30 = vld [vmem:[#allocation4] sm:$0x3c] }
0x1053   : > { %11691 = vmatpush1.bf16.msra.mxu0 %v20660_v25  ;;  %v20737_v25 = vld [vmem:[#allocation20 + $0x1c4] ss:$16 sps:$4 sm:$0xff]  }
0x1054   : > { %10244 = vmatpush1.bf16.msra.mxu1 %v20657_v38  ;;  %11692 = vmatprep.subr.bf16.mxu0 %v20668_v48  ;;  %v20732_v38 = vld [vmem:[#allocation20 + $0x9c0] ss:$16 sps:$4 sm:$0xff]   ;;  %v11349_v48 = vshrl.u32 %v11281_v30, 16 }
0x1055   : > { %10245 = vmatprep.subr.bf16.mxu1 %v20665_v34  ;;  %v20740_v34 = vld [vmem:[#allocation20 + $0x9e4] ss:$16 sps:$4 sm:$0xff]  }
0x1057   : > { %11693 = vmatpush1.bf16.msra.mxu0 %v20666_v20  ;;  %v20735_v20 = vld [vmem:[#allocation20 + $0x1c0] ss:$16 sps:$4 sm:$0xff]  }
0x1058   : > { %10246 = vmatpush1.bf16.msra.mxu1 %v20663_v11  ;;  %11694 = vmatprep.subr.bf16.mxu0 %v20674_v49  ;;  %v11352_v11 = vshll.u32 %v11281_v30, 16  ;;  %v20743_v49 = vld [vmem:[#allocation20 + $0x1e4] ss:$16 sps:$4 sm:$0xff]   ;;  %v20797_v30 = vld [vmem:[#allocation20 + $0x10c] ss:$16 sps:$4 sm:$0xff]  }
0x1059   : > { %10247 = vmatprep.subr.bf16.mxu1 %v20671_v37  ;;  %v20738_v37 = vld [vmem:[#allocation20 + $0x9e0] ss:$16 sps:$4 sm:$0xff]  }
0x105b   : > { %11695 = vmatpush1.bf16.msra.mxu0 %v20672_v45  ;;  %v11354_v45 = vrot.slane %v11352_v11, 3  ;;  %v20801_v11 = vld [vmem:[#allocation20 + $0x128] ss:$16 sps:$4 sm:$0xff]  }
0x105c   : > { %10248 = vmatpush1.bf16.msra.mxu1 %v20669_v16  ;;  %11696 = vmatprep.subr.bf16.mxu0 %v20680_v61  ;;  %v11351_v16 = vrot.slane %v11349_v48, 2  ;;  %v20741_v61 = vld [vmem:[#allocation20 + $0x1e0] ss:$16 sps:$4 sm:$0xff]   ;;  %v20806_v48 = vld [vmem:[#allocation20 + $0xb44] ss:$16 sps:$4 sm:$0xff]  }
0x105d   : > { %10249 = vmatprep.subr.bf16.mxu1 %v20677_v4  ;;  %v20746_v4 = vld [vmem:[#allocation20 + $0xa04] ss:$16 sps:$4 sm:$0xff]  }
0x105f   : > { %11697 = vmatpush1.bf16.msra.mxu0 %v20678_v15  ;;  %v20744_v15 = vld [vmem:[#allocation20 + $0xa00] ss:$16 sps:$4 sm:$0xff]  }
0x1060   : > { %10250 = vmatpush1.bf16.msra.mxu1 %v20675_v27  ;;  %11698 = vmatprep.subr.bf16.mxu0 %v20686_v2  ;;  %v24449_v27 = vld [vmem:[#allocation4 + $0x8] sm:$0x38] }
0x1061   : > { %10251 = vmatprep.subr.bf16.mxu1 %v20683_v46  ;;  %v24451_v46 = vor.u32 %v11354_v45, %v11351_v16  ;;  %v20749_v2 = vld [vmem:[#allocation20 + $0xc] ss:$16 sps:$4 sm:$0xff]   ;;  %v20807_v16 = vld [vmem:[#allocation20 + $0x148] ss:$16 sps:$4 sm:$0xff]   ;;  %v20810_v45 = vld [vmem:[#allocation20 + $0xb60] ss:$16 sps:$4 sm:$0xff]  }
0x1063   : > { %11699 = vmatpush1.bf16.msra.mxu0 %v20684_v43  ;;  %v11842_v43 = vrot.slane %v24449_v27, 3 }
0x1064   : > { %10252 = vmatpush1.bf16.msra.mxu1 %v20681_v56  ;;  %11700 = vmatprep.subr.bf16.mxu0 %v20692_v47  ;;  %v20752_v56 = vld [vmem:[#allocation20 + $0xa24] ss:$16 sps:$4 sm:$0xff]   ;;  %v20750_v47 = vld [vmem:[#allocation20 + $0xa20] ss:$16 sps:$4 sm:$0xff]  }
0x1065   : > { %10253 = vmatprep.subr.bf16.mxu1 %v20689_v41  ;;  %v20747_v41 = vld [vmem:[#allocation20 + $0x8] ss:$16 sps:$4 sm:$0xff]  }
0x1067   : > { %11701 = vmatpush1.bf16.msra.mxu0 %v20690_v13  ;;  %v24457_v13 = vld [vmem:[#allocation4] sm:$0x7] }
0x1068   : > { %10254 = vmatpush1.bf16.msra.mxu1 %v20687_v6  ;;  %11702 = vmatprep.subr.bf16.mxu0 %v20698_v36  ;;  %v20755_v6 = vld [vmem:[#allocation20 + $0x2c] ss:$16 sps:$4 sm:$0xff]   ;;  %v20753_v36 = vld [vmem:[#allocation20 + $0x28] ss:$16 sps:$4 sm:$0xff]  }
0x1069   : > { %10255 = vmatprep.subr.bf16.mxu1 %v20695_v59  ;;  %v20758_v59 = vld [vmem:[#allocation20 + $0xa44] ss:$16 sps:$4 sm:$0xff]  }
0x106b   : > { %11703 = vmatpush1.bf16.msra.mxu0 %v20696_v44  ;;  %v20761_v44 = vld [vmem:[#allocation20 + $0x4c] ss:$16 sps:$4 sm:$0xff]  }
0x106c   : > { %10256 = vmatpush1.bf16.msra.mxu1 %v20693_v39  ;;  %11704 = vmatprep.subr.bf16.mxu0 %v20704_v7  ;;  %v20756_v39 = vld [vmem:[#allocation20 + $0xa40] ss:$16 sps:$4 sm:$0xff]   ;;  %v20759_v7 = vld [vmem:[#allocation20 + $0x48] ss:$16 sps:$4 sm:$0xff]  }
0x106d   : > { %10257 = vmatprep.subr.bf16.mxu1 %v20701_v26  ;;  %v20764_v26 = vld [vmem:[#allocation20 + $0xa64] ss:$16 sps:$4 sm:$0xff]  }
0x106f   : > { %11705 = vmatpush1.bf16.msra.mxu0 %v20702_v5  ;;  %v20767_v5 = vld [vmem:[#allocation20 + $0x6c] ss:$16 sps:$4 sm:$0xff]  }
0x1070   : > { %10258 = vmatpush1.bf16.msra.mxu1 %v20699_v55  ;;  %11706 = vmatprep.subr.bf16.mxu0 %v20710_v62  ;;  %v20762_v55 = vld [vmem:[#allocation20 + $0xa60] ss:$16 sps:$4 sm:$0xff]   ;;  %v20765_v62 = vld [vmem:[#allocation20 + $0x68] ss:$16 sps:$4 sm:$0xff]  }
0x1071   : > { %10259 = vmatprep.subr.bf16.mxu1 %v20707_v52  ;;  %v20770_v52 = vld [vmem:[#allocation20 + $0xa84] ss:$16 sps:$4 sm:$0xff]  }
0x1073   : > { %11707 = vmatpush1.bf16.msra.mxu0 %v20708_v18  ;;  %v20776_v18 = vld [vmem:[#allocation20 + $0xaa4] ss:$16 sps:$4 sm:$0xff]  }
0x1074   : > { %10260 = vmatpush1.bf16.msra.mxu1 %v20705_v54  ;;  %11708 = vmatprep.subr.bf16.mxu0 %v20716_v28  ;;  %v20773_v54 = vld [vmem:[#allocation20 + $0x8c] ss:$16 sps:$4 sm:$0xff]   ;;  %v20774_v28 = vld [vmem:[#allocation20 + $0xaa0] ss:$16 sps:$4 sm:$0xff]  }
0x1075   : > { %10261 = vmatprep.subr.bf16.mxu1 %v20713_v1  ;;  %v20771_v1 = vld [vmem:[#allocation20 + $0x88] ss:$16 sps:$4 sm:$0xff]  }
0x1077   : > { %11709 = vmatpush1.bf16.msra.mxu0 %v20714_v58  ;;  %v20782_v58 = vld [vmem:[#allocation20 + $0xac4] ss:$16 sps:$4 sm:$0xff]  }
0x1078   : > { %10262 = vmatpush1.bf16.msra.mxu1 %v20711_v35  ;;  %11710 = vmatprep.subr.bf16.mxu0 %v20722_v60  ;;  %v20779_v35 = vld [vmem:[#allocation20 + $0xac] ss:$16 sps:$4 sm:$0xff]   ;;  %v20780_v60 = vld [vmem:[#allocation20 + $0xac0] ss:$16 sps:$4 sm:$0xff]  }
0x1079   : > { %10263 = vmatprep.subr.bf16.mxu1 %v20719_v17  ;;  %v20777_v17 = vld [vmem:[#allocation20 + $0xa8] ss:$16 sps:$4 sm:$0xff]  }
0x107b   : > { %11711 = vmatpush1.bf16.msra.mxu0 %v20720_v0  ;;  %v20788_v0 = vld [vmem:[#allocation20 + $0xae4] ss:$16 sps:$4 sm:$0xff]  }
0x107c   : > { %10264 = vmatpush1.bf16.msra.mxu1 %v20717_v42  ;;  %11712 = vmatprep.subr.bf16.mxu0 %v20728_v63  ;;  %v20785_v42 = vld [vmem:[#allocation20 + $0xcc] ss:$16 sps:$4 sm:$0xff]   ;;  %v20786_v63 = vld [vmem:[#allocation20 + $0xae0] ss:$16 sps:$4 sm:$0xff]  }
0x107d   : > { %10265 = vmatprep.subr.bf16.mxu1 %v20725_v22  ;;  %v20783_v22 = vld [vmem:[#allocation20 + $0xc8] ss:$16 sps:$4 sm:$0xff]  }
0x107f   : > { %11713 = vmatpush1.bf16.msra.mxu0 %v20726_v8  ;;  %v20794_v8 = vld [vmem:[#allocation20 + $0xb04] ss:$16 sps:$4 sm:$0xff]  }
0x1080   : > { %10266 = vmatpush1.bf16.msra.mxu1 %v20723_v24  ;;  %11714 = vmatprep.subr.bf16.mxu0 %v20734_v23  ;;  %v20791_v24 = vld [vmem:[#allocation20 + $0xec] ss:$16 sps:$4 sm:$0xff]   ;;  %v20792_v23 = vld [vmem:[#allocation20 + $0xb00] ss:$16 sps:$4 sm:$0xff]  }
0x1081   : > { %10267 = vmatprep.subr.bf16.mxu1 %v20731_v10  ;;  %v20789_v10 = vld [vmem:[#allocation20 + $0xe8] ss:$16 sps:$4 sm:$0xff]  }
0x1083   : > { %11715 = vmatpush1.bf16.msra.mxu0 %v20732_v38  ;;  %v20795_v38 = vld [vmem:[#allocation20 + $0x108] ss:$16 sps:$4 sm:$0xff]  }
0x1084   : > { %10268 = vmatpush1.bf16.msra.mxu1 %v20729_v53  ;;  %11716 = vmatprep.subr.bf16.mxu0 %v20740_v34  ;;  %v20800_v53 = vld [vmem:[#allocation20 + $0xb24] ss:$16 sps:$4 sm:$0xff]   ;;  %v20803_v34 = vld [vmem:[#allocation20 + $0x12c] ss:$16 sps:$4 sm:$0xff]  }
0x1085   : > { %10269 = vmatprep.subr.bf16.mxu1 %v20737_v25  ;;  %v20798_v25 = vld [vmem:[#allocation20 + $0xb20] ss:$16 sps:$4 sm:$0xff]  }
0x1087   : > { %11717 = vmatpush1.bf16.msra.mxu0 %v20738_v37  ;;  %v20809_v37 = vld [vmem:[#allocation20 + $0x14c] ss:$16 sps:$4 sm:$0xff]  }
0x1088   : > { %10270 = vmatpush1.bf16.msra.mxu1 %v20735_v20  ;;  %12165 = vmatprep.subr.bf16.mxu0 %v20746_v4  ;;  %v20804_v20 = vld [vmem:[#allocation20 + $0xb40] ss:$16 sps:$4 sm:$0xff]   ;;  %v20815_v4 = vld [vmem:[#allocation20 + $0x16c] ss:$16 sps:$4 sm:$0xff]  }
0x1089   : > { %10271 = vmatprep.subr.bf16.mxu1 %v20743_v49  ;;  %v20812_v49 = vld [vmem:[#allocation20 + $0xb64] ss:$16 sps:$4 sm:$0xff]  }
0x108a   : > { %11719 = vmatmul.mubr.bf16.vlgmr.msra.gmra.mrb[96].mxu0 %v24451_v46 }
0x108b   : > { %12166 = vmatpush1.bf16.msra.mxu0 %v20744_v15  ;;  %12197 = vmatprep.mubr.bf16.mxu0 %v11842_v43  ;;  %v20813_v15 = vld [vmem:[#allocation20 + $0x168] ss:$16 sps:$4 sm:$0xff]  }
0x108c   : > { %10272 = vmatpush1.bf16.msra.mxu1 %v20741_v61  ;;  %12167 = vmatprep.subr.bf16.mxu0 %v20752_v56  ;;  %v20818_v61 = vld [vmem:[#allocation20 + $0xb84] ss:$16 sps:$4 sm:$0xff]   ;;  %v20821_v56 = vld [vmem:[#allocation20 + $0x18c] ss:$16 sps:$4 sm:$0xff]  }
0x108d   : > { %10282 = vmatprep.subr.bf16.mxu1 %v20749_v2  ;;  %v20816_v2 = vld [vmem:[#allocation20 + $0xb80] ss:$16 sps:$4 sm:$0xff]  }
0x108f   : > { %10274 = vmatmul.mubr.bf16.vlgmr.msra.gmra.mrb[92].mxu1 %v24457_v13  ;;  %12168 = vmatpush1.bf16.msra.mxu0 %v20750_v47  ;;  %v20819_v47 = vld [vmem:[#allocation20 + $0x188] ss:$16 sps:$4 sm:$0xff]  }
0x1090   : > { %10283 = vmatpush1.bf16.msra.mxu1 %v20747_v41  ;;  %10314 = vmatprep.mubr.bf16.mxu1 %v24446_v33  ;;  %v20768_v33 = vld [vmem:[#allocation20 + $0xa80] ss:$16 sps:$4 sm:$0xff]   ;;  %v20824_v41 = vld [vmem:[#allocation20 + $0xba4] ss:$16 sps:$4 sm:$0xff]  }
0x1091   : > { %10284 = vmatprep.subr.bf16.mxu1 %v20755_v6  ;;  %12169 = vmatprep.subr.bf16.mxu0 %v20758_v59  ;;  %v20822_v6 = vld [vmem:[#allocation20 + $0xba0] ss:$16 sps:$4 sm:$0xff]   ;;  %v20827_v59 = vld [vmem:[#allocation20 + $0x1ac] ss:$16 sps:$4 sm:$0xff]  }
0x1093   : > { %12170 = vmatpush1.bf16.msra.mxu0 %v20756_v39  ;;  %v20825_v39 = vld [vmem:[#allocation20 + $0x1a8] ss:$16 sps:$4 sm:$0xff]  }
0x1094   : > { %10285 = vmatpush1.bf16.msra.mxu1 %v20753_v36  ;;  %12171 = vmatprep.subr.bf16.mxu0 %v20764_v26  ;;  %v20830_v36 = vld [vmem:[#allocation20 + $0xbc4] ss:$16 sps:$4 sm:$0xff]   ;;  %v20833_v26 = vld [vmem:[#allocation20 + $0x1cc] ss:$16 sps:$4 sm:$0xff]  }
0x1095   : > { %10286 = vmatprep.subr.bf16.mxu1 %v20761_v44  ;;  %v20828_v44 = vld [vmem:[#allocation20 + $0xbc0] ss:$16 sps:$4 sm:$0xff]  }
0x1097   : > { %12172 = vmatpush1.bf16.msra.mxu0 %v20762_v55  ;;  %v20831_v55 = vld [vmem:[#allocation20 + $0x1c8] ss:$16 sps:$4 sm:$0xff]  }
0x1098   : > { %10287 = vmatpush1.bf16.msra.mxu1 %v20759_v7  ;;  %12173 = vmatprep.subr.bf16.mxu0 %v20770_v52  ;;  %v20836_v7 = vld [vmem:[#allocation20 + $0xbe4] ss:$16 sps:$4 sm:$0xff]   ;;  %v20839_v52 = vld [vmem:[#allocation20 + $0x1ec] ss:$16 sps:$4 sm:$0xff]  }
0x1099   : > { %10288 = vmatprep.subr.bf16.mxu1 %v20767_v5  ;;  %v20834_v5 = vld [vmem:[#allocation20 + $0xbe0] ss:$16 sps:$4 sm:$0xff]  }
0x109b   : > { %12174 = vmatpush1.bf16.msra.mxu0 %v20768_v33  ;;  %v24461_v33 = vld [vmem:[#allocation4] sm:$0x38] }
0x109c   : > { %10289 = vmatpush1.bf16.msra.mxu1 %v20765_v62  ;;  %12175 = vmatprep.subr.bf16.mxu0 %v20776_v18  ;;  %v20842_v62 = vld [vmem:[#allocation20 + $0xc04] ss:$16 sps:$4 sm:$0xff]   ;;  %v24463_v18 = vld [vmem:[#allocation4 + $0x8] sm:$0x70] }
0x109d   : > { %10290 = vmatprep.subr.bf16.mxu1 %v20773_v54  ;;  %v20837_v54 = vld [vmem:[#allocation20 + $0x1e8] ss:$16 sps:$4 sm:$0xff]  }
0x109f   : > { %12176 = vmatpush1.bf16.msra.mxu0 %v20774_v28  ;;  %v11841_v28 = vrot.slane %v24461_v33, 3  ;;  %v21193_v33 = vld [vmem:[#allocation20 + $0xcac] ss:$16 sps:$4 sm:$0xff]  }
0x10a0   : > { %10291 = vmatpush1.bf16.msra.mxu1 %v20771_v1  ;;  %12177 = vmatprep.subr.bf16.mxu0 %v20782_v58  ;;  %v20840_v1 = vld [vmem:[#allocation20 + $0xc00] ss:$16 sps:$4 sm:$0xff]   ;;  %v20848_v58 = vld [vmem:[#allocation20 + $0xc24] ss:$16 sps:$4 sm:$0xff]  }
0x10a1   : > { %10292 = vmatprep.subr.bf16.mxu1 %v20779_v35  ;;  %v20845_v35 = vld [vmem:[#allocation20 + $0x40c] ss:$16 sps:$4 sm:$0xff]  }
0x10a3   : > { %12178 = vmatpush1.bf16.msra.mxu0 %v20780_v60  ;;  %v20843_v60 = vld [vmem:[#allocation20 + $0x408] ss:$16 sps:$4 sm:$0xff]  }
0x10a4   : > { %10293 = vmatpush1.bf16.msra.mxu1 %v20777_v17  ;;  %12179 = vmatprep.subr.bf16.mxu0 %v20788_v0  ;;  %v12321_v17 = vrot.slane %v24463_v18, 4  ;;  %v20851_v0 = vld [vmem:[#allocation20 + $0x42c] ss:$16 sps:$4 sm:$0xff]  }
0x10a5   : > { %10294 = vmatprep.subr.bf16.mxu1 %v20785_v42  ;;  %v20846_v42 = vld [vmem:[#allocation20 + $0xc20] ss:$16 sps:$4 sm:$0xff]  }
0x10a7   : > { %12180 = vmatpush1.bf16.msra.mxu0 %v20786_v63  ;;  %v20849_v63 = vld [vmem:[#allocation20 + $0x428] ss:$16 sps:$4 sm:$0xff]  }
0x10a8   : > { %10295 = vmatpush1.bf16.msra.mxu1 %v20783_v22  ;;  %12181 = vmatprep.subr.bf16.mxu0 %v20794_v8  ;;  %v20854_v22 = vld [vmem:[#allocation20 + $0xc44] ss:$16 sps:$4 sm:$0xff]   ;;  %v20857_v8 = vld [vmem:[#allocation20 + $0x44c] ss:$16 sps:$4 sm:$0xff]  }
0x10a9   : > { %10296 = vmatprep.subr.bf16.mxu1 %v20791_v24  ;;  %v20852_v24 = vld [vmem:[#allocation20 + $0xc40] ss:$16 sps:$4 sm:$0xff]  }
0x10ab   : > { %12182 = vmatpush1.bf16.msra.mxu0 %v20792_v23  ;;  %v20855_v23 = vld [vmem:[#allocation20 + $0x448] ss:$16 sps:$4 sm:$0xff]  }
0x10ac   : > { %10297 = vmatpush1.bf16.msra.mxu1 %v20789_v10  ;;  %12183 = vmatprep.subr.bf16.mxu0 %v20800_v53  ;;  %v20860_v10 = vld [vmem:[#allocation20 + $0xc64] ss:$16 sps:$4 sm:$0xff]   ;;  %v20863_v53 = vld [vmem:[#allocation20 + $0x46c] ss:$16 sps:$4 sm:$0xff]  }
0x10ad   : > { %10298 = vmatprep.subr.bf16.mxu1 %v20797_v30  ;;  %v20858_v30 = vld [vmem:[#allocation20 + $0xc60] ss:$16 sps:$4 sm:$0xff]  }
0x10af   : > { %12184 = vmatpush1.bf16.msra.mxu0 %v20798_v25  ;;  %v20872_v25 = vld [vmem:[#allocation20 + $0xca4] ss:$16 sps:$4 sm:$0xff]  }
0x10b0   : > { %10299 = vmatpush1.bf16.msra.mxu1 %v20795_v38  ;;  %12185 = vmatprep.subr.bf16.mxu0 %v20806_v48  ;;  %v20866_v38 = vld [vmem:[#allocation20 + $0xc84] ss:$16 sps:$4 sm:$0xff]   ;;  %v20870_v48 = vld [vmem:[#allocation20 + $0xca0] ss:$16 sps:$4 sm:$0xff]  }
0x10b1   : > { %10300 = vmatprep.subr.bf16.mxu1 %v20803_v34  ;;  %v20867_v34 = vld [vmem:[#allocation20 + $0x488] ss:$16 sps:$4 sm:$0xff]  }
0x10b3   : > { %12186 = vmatpush1.bf16.msra.mxu0 %v20804_v20  ;;  %v20878_v20 = vld [vmem:[#allocation20 + $0xcc4] ss:$16 sps:$4 sm:$0xff]  }
0x10b4   : > { %10301 = vmatpush1.bf16.msra.mxu1 %v20801_v11  ;;  %12187 = vmatprep.subr.bf16.mxu0 %v20812_v49  ;;  %v20875_v11 = vld [vmem:[#allocation20 + $0x4ac] ss:$16 sps:$4 sm:$0xff]  }
0x10b5   : > { %10302 = vmatprep.subr.bf16.mxu1 %v20809_v37 }
0x10b7   : > { %12188 = vmatpush1.bf16.msra.mxu0 %v20810_v45 }
0x10b8   : > { %10303 = vmatpush1.bf16.msra.mxu1 %v20807_v16  ;;  %12189 = vmatprep.subr.bf16.mxu0 %v20818_v61  ;;  %v20873_v16 = vld [vmem:[#allocation20 + $0x4a8] ss:$16 sps:$4 sm:$0xff]   ;;  %v20881_v61 = vld [vmem:[#allocation20 + $0x4cc] ss:$16 sps:$4 sm:$0xff]  }
0x10b9   : > { %10304 = vmatprep.subr.bf16.mxu1 %v20815_v4  ;;  %v20876_v4 = vld [vmem:[#allocation20 + $0xcc0] ss:$16 sps:$4 sm:$0xff]  }
0x10bb   : > { %12190 = vmatpush1.bf16.msra.mxu0 %v20816_v2  ;;  %v20884_v2 = vld [vmem:[#allocation20 + $0xce4] ss:$16 sps:$4 sm:$0xff]  }
0x10bc   : > { %10305 = vmatpush1.bf16.msra.mxu1 %v20813_v15  ;;  %12191 = vmatprep.subr.bf16.mxu0 %v20824_v41 }
0x10bd   : > { %10306 = vmatprep.subr.bf16.mxu1 %v20821_v56 }
0x10bf   : > { %12192 = vmatpush1.bf16.msra.mxu0 %v20822_v6 }
0x10c0   : > { %10307 = vmatpush1.bf16.msra.mxu1 %v20819_v47  ;;  %12193 = vmatprep.subr.bf16.mxu0 %v20830_v36  ;;  %v20879_v47 = vld [vmem:[#allocation20 + $0x4c8] ss:$16 sps:$4 sm:$0xff]   ;;  %v20887_v36 = vld [vmem:[#allocation20 + $0x4ec] ss:$16 sps:$4 sm:$0xff]  }
0x10c1   : > { %10308 = vmatprep.subr.bf16.mxu1 %v20827_v59  ;;  %v20882_v59 = vld [vmem:[#allocation20 + $0xce0] ss:$16 sps:$4 sm:$0xff]  }
0x10c3   : > { %12194 = vmatpush1.bf16.msra.mxu0 %v20828_v44  ;;  %v20890_v44 = vld [vmem:[#allocation20 + $0xd04] ss:$16 sps:$4 sm:$0xff]  }
0x10c4   : > { %10309 = vmatpush1.bf16.msra.mxu1 %v20825_v39  ;;  %12195 = vmatprep.subr.bf16.mxu0 %v20836_v7  ;;  %v20888_v7 = vld [vmem:[#allocation20 + $0xd00] ss:$16 sps:$4 sm:$0xff]  }
0x10c5   : > { %10310 = vmatprep.subr.bf16.mxu1 %v20833_v26  ;;  %v20885_v26 = vld [vmem:[#allocation20 + $0x4e8] ss:$16 sps:$4 sm:$0xff]  }
0x10c7   : > { %12196 = vmatpush1.bf16.msra.mxu0 %v20834_v5  ;;  %v20896_v5 = vld [vmem:[#allocation20 + $0xd24] ss:$16 sps:$4 sm:$0xff]  }
0x10c8   : > { %10311 = vmatpush1.bf16.msra.mxu1 %v20831_v55  ;;  %12644 = vmatprep.subr.bf16.mxu0 %v20842_v62  ;;  %v20893_v55 = vld [vmem:[#allocation20 + $0x50c] ss:$16 sps:$4 sm:$0xff]   ;;  %v20894_v62 = vld [vmem:[#allocation20 + $0xd20] ss:$16 sps:$4 sm:$0xff]  }
0x10c9   : > { %10312 = vmatprep.subr.bf16.mxu1 %v20839_v52  ;;  %v20891_v52 = vld [vmem:[#allocation20 + $0x508] ss:$16 sps:$4 sm:$0xff]  }
0x10ca   : > { %12198 = vmatmul.mubr.bf16.vlgmr.msra.gmra.mrb[100].mxu0 %v11841_v28 }
0x10cb   : > { %12645 = vmatpush1.bf16.msra.mxu0 %v20840_v1  ;;  %12676 = vmatprep.mubr.bf16.mxu0 %v12321_v17  ;;  %v20902_v1 = vld [vmem:[#allocation20 + $0xd44] ss:$16 sps:$4 sm:$0xff]  }
0x10cc   : > { %10313 = vmatpush1.bf16.msra.mxu1 %v20837_v54  ;;  %12646 = vmatprep.subr.bf16.mxu0 %v20848_v58  ;;  %v20899_v54 = vld [vmem:[#allocation20 + $0x52c] ss:$16 sps:$4 sm:$0xff]   ;;  %v20900_v58 = vld [vmem:[#allocation20 + $0xd40] ss:$16 sps:$4 sm:$0xff]  }
0x10cd   : > { %10757 = vmatprep.subr.bf16.mxu1 %v20845_v35  ;;  %v20897_v35 = vld [vmem:[#allocation20 + $0x528] ss:$16 sps:$4 sm:$0xff]  }
0x10cf   : > { %10315 = vmatmul.mubr.bf16.vlgmr.msra.gmra.mrb[96].mxu1 %v24457_v13  ;;  %12647 = vmatpush1.bf16.msra.mxu0 %v20846_v42  ;;  %v20861_v13 = vld [vmem:[#allocation20 + $0x468] ss:$16 sps:$4 sm:$0xff]   ;;  %v20908_v42 = vld [vmem:[#allocation20 + $0xd64] ss:$16 sps:$4 sm:$0xff]  }
0x10d0   : > { %10758 = vmatpush1.bf16.msra.mxu1 %v20843_v60  ;;  %10789 = vmatprep.mubr.bf16.mxu1 %v10393_v57  ;;  %v20869_v57 = vld [vmem:[#allocation20 + $0x48c] ss:$16 sps:$4 sm:$0xff]  }
0x10d1   : > { %10759 = vmatprep.subr.bf16.mxu1 %v20851_v0  ;;  %12648 = vmatprep.subr.bf16.mxu0 %v20854_v22  ;;  %v20905_v60 = vld [vmem:[#allocation20 + $0x54c] ss:$16 sps:$4 sm:$0xff]   ;;  %v20903_v0 = vld [vmem:[#allocation20 + $0x548] ss:$16 sps:$4 sm:$0xff]   ;;  %v20906_v22 = vld [vmem:[#allocation20 + $0xd60] ss:$16 sps:$4 sm:$0xff]  }
0x10d3   : > { %12649 = vmatpush1.bf16.msra.mxu0 %v20852_v24  ;;  %v20914_v24 = vld [vmem:[#allocation20 + $0xd84] ss:$16 sps:$4 sm:$0xff]  }
0x10d4   : > { %10760 = vmatpush1.bf16.msra.mxu1 %v20849_v63  ;;  %12650 = vmatprep.subr.bf16.mxu0 %v20860_v10  ;;  %v20911_v63 = vld [vmem:[#allocation20 + $0x56c] ss:$16 sps:$4 sm:$0xff]   ;;  %v20912_v10 = vld [vmem:[#allocation20 + $0xd80] ss:$16 sps:$4 sm:$0xff]  }
0x10d5   : > { %10761 = vmatprep.subr.bf16.mxu1 %v20857_v8  ;;  %v20909_v8 = vld [vmem:[#allocation20 + $0x568] ss:$16 sps:$4 sm:$0xff]  }
0x10d7   : > { %12651 = vmatpush1.bf16.msra.mxu0 %v20858_v30  ;;  %v20920_v30 = vld [vmem:[#allocation20 + $0xda4] ss:$16 sps:$4 sm:$0xff]  }
0x10d8   : > { %10762 = vmatpush1.bf16.msra.mxu1 %v20855_v23  ;;  %12652 = vmatprep.subr.bf16.mxu0 %v20866_v38  ;;  %v20917_v23 = vld [vmem:[#allocation20 + $0x58c] ss:$16 sps:$4 sm:$0xff]   ;;  %v20918_v38 = vld [vmem:[#allocation20 + $0xda0] ss:$16 sps:$4 sm:$0xff]  }
0x10d9   : > { %10763 = vmatprep.subr.bf16.mxu1 %v20863_v53  ;;  %v20915_v53 = vld [vmem:[#allocation20 + $0x588] ss:$16 sps:$4 sm:$0xff]  }
0x10db   : > { %12653 = vmatpush1.bf16.msra.mxu0 %v20864_v50  ;;  %v20926_v50 = vld [vmem:[#allocation20 + $0xdc4] ss:$16 sps:$4 sm:$0xff]  }
0x10dc   : > { %10764 = vmatpush1.bf16.msra.mxu1 %v20861_v13  ;;  %12654 = vmatprep.subr.bf16.mxu0 %v20872_v25  ;;  %v20923_v13 = vld [vmem:[#allocation20 + $0x5ac] ss:$16 sps:$4 sm:$0xff]  }
0x10dd   : > { %10765 = vmatprep.subr.bf16.mxu1 %v20869_v57  ;;  %v24474_v37 = vpop.f32.mrb[88].mxu0  ;;  %v20921_v57 = vld [vmem:[#allocation20 + $0x5a8] ss:$16 sps:$4 sm:$0xff]   ;;  %v12731_v25 = vld [vmem:[#allocation4 + $0x8] sm:$0xf0] }
0x10de   : > { %v24476_v49 = vpop.f32.mrb[89].mxu0 }
0x10df   : > { %v10754_v45 = vpop.f32.mrb[90].mxu0  ;;  %12655 = vmatpush1.bf16.msra.mxu0 %v20870_v48  ;;  %v20929_v48 = vld [vmem:[#allocation20 + $0x5cc] ss:$16 sps:$4 sm:$0xff]  }
0x10e0   : > { %10766 = vmatpush1.bf16.msra.mxu1 %v20867_v34  ;;  %v10755_v15 = vpop.f32.mrb[91].mxu0  ;;  %12656 = vmatprep.subr.bf16.mxu0 %v20878_v20  ;;  %v20924_v34 = vld [vmem:[#allocation20 + $0xdc0] ss:$16 sps:$4 sm:$0xff]   ;;  %v12806_v20 = vshrl.u32 %v12731_v25, 16  ;;  %v20927_v45 = vld [vmem:[#allocation20 + $0x5c8] ss:$16 sps:$4 sm:$0xff]  }
0x10e1   : > { %10767 = vmatprep.subr.bf16.mxu1 %v20875_v11  ;;  %v20932_v11 = vld [vmem:[#allocation20 + $0xde4] ss:$16 sps:$4 sm:$0xff]  }
0x10e2   : > { %v24478_v56 = vpop.f32.mrb[84].mxu1  ;;  %v20938_v15 = vld [vmem:[#allocation20 + $0xe04] ss:$16 sps:$4 sm:$0xff]  }
0x10e3   : > { %v24480_v41 = vpop.f32.mrb[85].mxu1  ;;  %12657 = vmatpush1.bf16.msra.mxu0 %v20876_v4  ;;  %v20930_v4 = vld [vmem:[#allocation20 + $0xde0] ss:$16 sps:$4 sm:$0xff]  }
0x10e4   : > { %10768 = vmatpush1.bf16.msra.mxu1 %v20873_v16  ;;  %v9877_v6 = vpop.f32.mrb[86].mxu1  ;;  %12658 = vmatprep.subr.bf16.mxu0 %v20884_v2  ;;  %v12809_v16 = vshll.u32 %v12731_v25, 16  ;;  %v24482_v2 = vld [vmem:[#allocation4] sm:$0x70] }
0x10e5   : > { %10769 = vmatprep.subr.bf16.mxu1 %v20881_v61  ;;  %v9878_v39 = vpop.f32.mrb[87].mxu1  ;;  %v20935_v61 = vld [vmem:[#allocation20 + $0x5ec] ss:$16 sps:$4 sm:$0xff]  }
0x10e6   : > { %v12811_v6 = vrot.slane %v12809_v16, 5  ;;  %v12320_v39 = vrot.slane %v24482_v2, 4 }
0x10e7   : > { %12659 = vmatpush1.bf16.msra.mxu0 %v20882_v59  ;;  %v20933_v59 = vld [vmem:[#allocation20 + $0x5e8] ss:$16 sps:$4 sm:$0xff]  }
0x10e8   : > { %10770 = vmatpush1.bf16.msra.mxu1 %v20879_v47  ;;  %12660 = vmatprep.subr.bf16.mxu0 %v20890_v44  ;;  %v12808_v47 = vrot.slane %v12806_v20, 4  ;;  %v20941_v44 = vld [vmem:[#allocation20 + $0x60c] ss:$16 sps:$4 sm:$0xff]   ;;  %v20975_v20 = vld [vmem:[#allocation20 + $0x6c8] ss:$16 sps:$4 sm:$0xff]  }
0x10e9   : > { %10771 = vmatprep.subr.bf16.mxu1 %v20887_v36  ;;  %v20936_v36 = vld [vmem:[#allocation20 + $0xe00] ss:$16 sps:$4 sm:$0xff]  }
0x10eb   : > { %12661 = vmatpush1.bf16.msra.mxu0 %v20888_v7  ;;  %v24485_v7 = vor.u32 %v12811_v6, %v12808_v47  ;;  %v20984_v47 = vld [vmem:[#allocation20 + $0xf00] ss:$16 sps:$4 sm:$0xff]   ;;  %v20989_v6 = vld [vmem:[#allocation20 + $0x70c] ss:$16 sps:$4 sm:$0xff]  }
0x10ec   : > { %10772 = vmatpush1.bf16.msra.mxu1 %v20885_v26  ;;  %12662 = vmatprep.subr.bf16.mxu0 %v20896_v5  ;;  %v20944_v26 = vld [vmem:[#allocation20 + $0xe24] ss:$16 sps:$4 sm:$0xff]   ;;  %v20942_v5 = vld [vmem:[#allocation20 + $0xe20] ss:$16 sps:$4 sm:$0xff]  }
0x10ed   : > { %10773 = vmatprep.subr.bf16.mxu1 %v20893_v55  ;;  %v20939_v55 = vld [vmem:[#allocation20 + $0x608] ss:$16 sps:$4 sm:$0xff]  }
0x10ef   : > { %12663 = vmatpush1.bf16.msra.mxu0 %v20894_v62  ;;  %v20950_v62 = vld [vmem:[#allocation20 + $0xe44] ss:$16 sps:$4 sm:$0xff]  }
0x10f0   : > { %10774 = vmatpush1.bf16.msra.mxu1 %v20891_v52  ;;  %12664 = vmatprep.subr.bf16.mxu0 %v20902_v1  ;;  %v20947_v52 = vld [vmem:[#allocation20 + $0x62c] ss:$16 sps:$4 sm:$0xff]   ;;  %v20948_v1 = vld [vmem:[#allocation20 + $0xe40] ss:$16 sps:$4 sm:$0xff]  }
0x10f1   : > { %10775 = vmatprep.subr.bf16.mxu1 %v20899_v54  ;;  %v20945_v54 = vld [vmem:[#allocation20 + $0x628] ss:$16 sps:$4 sm:$0xff]  }
0x10f3   : > { %12665 = vmatpush1.bf16.msra.mxu0 %v20900_v58  ;;  %v20956_v58 = vld [vmem:[#allocation20 + $0xe64] ss:$16 sps:$4 sm:$0xff]  }
0x10f4   : > { %10776 = vmatpush1.bf16.msra.mxu1 %v20897_v35  ;;  %12666 = vmatprep.subr.bf16.mxu0 %v20908_v42  ;;  %v20953_v35 = vld [vmem:[#allocation20 + $0x64c] ss:$16 sps:$4 sm:$0xff]   ;;  %v20954_v42 = vld [vmem:[#allocation20 + $0xe60] ss:$16 sps:$4 sm:$0xff]  }
0x10f5   : > { %10777 = vmatprep.subr.bf16.mxu1 %v20905_v60  ;;  %v20951_v60 = vld [vmem:[#allocation20 + $0x648] ss:$16 sps:$4 sm:$0xff]  }
0x10f7   : > { %12667 = vmatpush1.bf16.msra.mxu0 %v20906_v22  ;;  %v20968_v22 = vld [vmem:[#allocation20 + $0xea4] ss:$16 sps:$4 sm:$0xff]  }
0x10f8   : > { %10778 = vmatpush1.bf16.msra.mxu1 %v20903_v0  ;;  %12668 = vmatprep.subr.bf16.mxu0 %v20914_v24  ;;  %v20959_v0 = vld [vmem:[#allocation20 + $0x66c] ss:$16 sps:$4 sm:$0xff]   ;;  %v20966_v24 = vld [vmem:[#allocation20 + $0xea0] ss:$16 sps:$4 sm:$0xff]  }
0x10f9   : > { %10779 = vmatprep.subr.bf16.mxu1 %v20911_v63  ;;  %v20963_v63 = vld [vmem:[#allocation20 + $0x688] ss:$16 sps:$4 sm:$0xff]  }
0x10fb   : > { %12669 = vmatpush1.bf16.msra.mxu0 %v20912_v10 }
0x10fc   : > { %10780 = vmatpush1.bf16.msra.mxu1 %v20909_v8  ;;  %12670 = vmatprep.subr.bf16.mxu0 %v20920_v30  ;;  %v20971_v8 = vld [vmem:[#allocation20 + $0x6ac] ss:$16 sps:$4 sm:$0xff]  }
0x10fd   : > { %10781 = vmatprep.subr.bf16.mxu1 %v20917_v23  ;;  %v20974_v23 = vld [vmem:[#allocation20 + $0xec4] ss:$16 sps:$4 sm:$0xff]  }
0x10ff   : > { %12671 = vmatpush1.bf16.msra.mxu0 %v20918_v38  ;;  %v20969_v38 = vld [vmem:[#allocation20 + $0x6a8] ss:$16 sps:$4 sm:$0xff]  }
0x1100   : > { %10782 = vmatpush1.bf16.msra.mxu1 %v20915_v53  ;;  %12672 = vmatprep.subr.bf16.mxu0 %v20926_v50  ;;  %v20972_v50 = vld [vmem:[#allocation20 + $0xec0] ss:$16 sps:$4 sm:$0xff]  }
0x1101   : > { %10783 = vmatprep.subr.bf16.mxu1 %v20923_v13 }
0x1103   : > { %12673 = vmatpush1.bf16.msra.mxu0 %v20924_v34  ;;  %v20980_v34 = vld [vmem:[#allocation20 + $0xee4] ss:$16 sps:$4 sm:$0xff]  }
0x1104   : > { %10784 = vmatpush1.bf16.msra.mxu1 %v20921_v57  ;;  %12674 = vmatprep.subr.bf16.mxu0 %v20932_v11  ;;  %v20977_v57 = vld [vmem:[#allocation20 + $0x6cc] ss:$16 sps:$4 sm:$0xff]  }
0x1105   : > { %10785 = vmatprep.subr.bf16.mxu1 %v20929_v48 }
0x1107   : > { %12675 = vmatpush1.bf16.msra.mxu0 %v20930_v4  ;;  %v20983_v4 = vld [vmem:[#allocation20 + $0x6ec] ss:$16 sps:$4 sm:$0xff]  }
0x1108   : > { %10786 = vmatpush1.bf16.msra.mxu1 %v20927_v45  ;;  %13135 = vmatprep.subr.bf16.mxu0 %v20938_v15  ;;  %v20978_v45 = vld [vmem:[#allocation20 + $0xee0] ss:$16 sps:$4 sm:$0xff]   ;;  %v20981_v15 = vld [vmem:[#allocation20 + $0x6e8] ss:$16 sps:$4 sm:$0xff]  }
0x1109   : > { %10787 = vmatprep.subr.bf16.mxu1 %v20935_v61  ;;  %v20986_v61 = vld [vmem:[#allocation20 + $0xf04] ss:$16 sps:$4 sm:$0xff]  }
0x110a   : > { %12677 = vmatmul.mubr.bf16.vlgmr.msra.gmra.mrb[104].mxu0 %v12320_v39 }
0x110b   : > { %13136 = vmatpush1.bf16.msra.mxu0 %v20936_v36  ;;  %13167 = vmatprep.mubr.bf16.mxu0 %v24485_v7  ;;  %v20987_v36 = vld [vmem:[#allocation20 + $0x708] ss:$16 sps:$4 sm:$0xff]  }
0x110c   : > { %10788 = vmatpush1.bf16.msra.mxu1 %v20933_v59  ;;  %13137 = vmatprep.subr.bf16.mxu0 %v20944_v26  ;;  %v20992_v59 = vld [vmem:[#allocation20 + $0xf24] ss:$16 sps:$4 sm:$0xff]   ;;  %v20995_v26 = vld [vmem:[#allocation20 + $0x72c] ss:$16 sps:$4 sm:$0xff]  }
0x110d   : > { %11236 = vmatprep.subr.bf16.mxu1 %v20941_v44  ;;  %v20990_v44 = vld [vmem:[#allocation20 + $0xf20] ss:$16 sps:$4 sm:$0xff]  }
0x110f   : > { %10790 = vmatmul.mubr.bf16.vlgmr.msra.gmra.mrb[100].mxu1 %v10392_v3  ;;  %13138 = vmatpush1.bf16.msra.mxu0 %v20942_v5  ;;  %v20957_v3 = vld [vmem:[#allocation20 + $0x668] ss:$16 sps:$4 sm:$0xff]  }
0x1110   : > { %11237 = vmatpush1.bf16.msra.mxu1 %v20939_v55  ;;  %11268 = vmatprep.mubr.bf16.mxu1 %v10872_v51  ;;  %v20965_v51 = vld [vmem:[#allocation20 + $0x68c] ss:$16 sps:$4 sm:$0xff]   ;;  %v20998_v55 = vld [vmem:[#allocation20 + $0xf44] ss:$16 sps:$4 sm:$0xff]   ;;  %v20993_v5 = vld [vmem:[#allocation20 + $0x728] ss:$16 sps:$4 sm:$0xff]  }
0x1111   : > { %11238 = vmatprep.subr.bf16.mxu1 %v20947_v52  ;;  %13139 = vmatprep.subr.bf16.mxu0 %v20950_v62  ;;  %v20996_v52 = vld [vmem:[#allocation20 + $0xf40] ss:$16 sps:$4 sm:$0xff]   ;;  %v21001_v62 = vld [vmem:[#allocation20 + $0x74c] ss:$16 sps:$4 sm:$0xff]  }
0x1113   : > { %13140 = vmatpush1.bf16.msra.mxu0 %v20948_v1  ;;  %v20999_v1 = vld [vmem:[#allocation20 + $0x748] ss:$16 sps:$4 sm:$0xff]  }
0x1114   : > { %11239 = vmatpush1.bf16.msra.mxu1 %v20945_v54  ;;  %13141 = vmatprep.subr.bf16.mxu0 %v20956_v58  ;;  %v21004_v54 = vld [vmem:[#allocation20 + $0xf64] ss:$16 sps:$4 sm:$0xff]   ;;  %v21007_v58 = vld [vmem:[#allocation20 + $0x76c] ss:$16 sps:$4 sm:$0xff]  }
0x1115   : > { %11240 = vmatprep.subr.bf16.mxu1 %v20953_v35  ;;  %v21002_v35 = vld [vmem:[#allocation20 + $0xf60] ss:$16 sps:$4 sm:$0xff]  }
0x1117   : > { %13142 = vmatpush1.bf16.msra.mxu0 %v20954_v42  ;;  %v21005_v42 = vld [vmem:[#allocation20 + $0x768] ss:$16 sps:$4 sm:$0xff]  }
0x1118   : > { %11241 = vmatpush1.bf16.msra.mxu1 %v20951_v60  ;;  %13143 = vmatprep.subr.bf16.mxu0 %v20962_v19  ;;  %v21010_v60 = vld [vmem:[#allocation20 + $0xf84] ss:$16 sps:$4 sm:$0xff]   ;;  %v21013_v19 = vld [vmem:[#allocation20 + $0x78c] ss:$16 sps:$4 sm:$0xff]  }
0x1119   : > { %11242 = vmatprep.subr.bf16.mxu1 %v20959_v0  ;;  %v21008_v0 = vld [vmem:[#allocation20 + $0xf80] ss:$16 sps:$4 sm:$0xff]  }
0x111b   : > { %13144 = vmatpush1.bf16.msra.mxu0 %v20960_v40  ;;  %v21011_v40 = vld [vmem:[#allocation20 + $0x788] ss:$16 sps:$4 sm:$0xff]  }
0x111c   : > { %11243 = vmatpush1.bf16.msra.mxu1 %v20957_v3  ;;  %13145 = vmatprep.subr.bf16.mxu0 %v20968_v22  ;;  %v21016_v3 = vld [vmem:[#allocation20 + $0xfa4] ss:$16 sps:$4 sm:$0xff]   ;;  %v21019_v22 = vld [vmem:[#allocation20 + $0x7ac] ss:$16 sps:$4 sm:$0xff]  }
0x111d   : > { %11244 = vmatprep.subr.bf16.mxu1 %v20965_v51  ;;  %v24494_v10 = vpop.f32.mrb[92].mxu0  ;;  %v21014_v51 = vld [vmem:[#allocation20 + $0xfa0] ss:$16 sps:$4 sm:$0xff]  }
0x111e   : > { %v24496_v30 = vpop.f32.mrb[93].mxu0 }
0x111f   : > { %v11233_v53 = vpop.f32.mrb[94].mxu0  ;;  %13146 = vmatpush1.bf16.msra.mxu0 %v20966_v24  ;;  %v12730_v24 = vld [vmem:[#allocation4] sm:$0xf0] }
0x1120   : > { %11245 = vmatpush1.bf16.msra.mxu1 %v20963_v63  ;;  %v11234_v13 = vpop.f32.mrb[95].mxu0  ;;  %13147 = vmatprep.subr.bf16.mxu0 %v20974_v23  ;;  %v21022_v63 = vld [vmem:[#allocation20 + $0xfc4] ss:$16 sps:$4 sm:$0xff]   ;;  %v21020_v23 = vld [vmem:[#allocation20 + $0xfc0] ss:$16 sps:$4 sm:$0xff]  }
0x1121   : > { %11246 = vmatprep.subr.bf16.mxu1 %v20971_v8  ;;  %v21017_v8 = vld [vmem:[#allocation20 + $0x7a8] ss:$16 sps:$4 sm:$0xff]   ;;  %v21025_v53 = vld [vmem:[#allocation20 + $0x7cc] ss:$16 sps:$4 sm:$0xff]   ;;  %v12798_v13 = vshrl.u32 %v12730_v24, 16 }
0x1122   : > { %v24498_v25 = vpop.f32.mrb[88].mxu1 }
0x1123   : > { %v24500_v48 = vpop.f32.mrb[89].mxu1  ;;  %13148 = vmatpush1.bf16.msra.mxu0 %v20972_v50  ;;  %v12801_v50 = vshll.u32 %v12730_v24, 16  ;;  %v21065_v24 = vld [vmem:[#allocation20 + $0x8a8] ss:$16 sps:$4 sm:$0xff]  }
0x1124   : > { %v9918_v11 = vpop.f32.mrb[90].mxu1  ;;  %11247 = vmatpush1.bf16.msra.mxu1 %v20969_v38  ;;  %13149 = vmatprep.subr.bf16.mxu0 %v20980_v34  ;;  %v21028_v38 = vld [vmem:[#allocation20 + $0xfe4] ss:$16 sps:$4 sm:$0xff]   ;;  %v21026_v34 = vld [vmem:[#allocation20 + $0xfe0] ss:$16 sps:$4 sm:$0xff]  }
0x1125   : > { %v9919_v16 = vpop.f32.mrb[91].mxu1  ;;  %11248 = vmatprep.subr.bf16.mxu1 %v20977_v57  ;;  %v21023_v57 = vld [vmem:[#allocation20 + $0x7c8] ss:$16 sps:$4 sm:$0xff]   ;;  %v21031_v11 = vld [vmem:[#allocation20 + $0x7ec] ss:$16 sps:$4 sm:$0xff]  }
0x1126   : > { %v12803_v16 = vrot.slane %v12801_v50, 5  ;;  %v21076_v50 = vld [vmem:[#allocation20 + $0x10e4] ss:$16 sps:$4 sm:$0xff]  }
0x1127   : > { %13150 = vmatpush1.bf16.msra.mxu0 %v20978_v45  ;;  %v21034_v45 = vld [vmem:[#allocation20 + $0x1004] ss:$16 sps:$4 sm:$0xff]  }
0x1128   : > { %11249 = vmatpush1.bf16.msra.mxu1 %v20975_v20  ;;  %13151 = vmatprep.subr.bf16.mxu0 %v20986_v61  ;;  %v12800_v20 = vrot.slane %v12798_v13, 4  ;;  %v24502_v61 = vld [vmem:[#allocation4 + $0x8] sm:$0xe0] }
0x1129   : > { %11250 = vmatprep.subr.bf16.mxu1 %v20983_v4  ;;  %v21029_v4 = vld [vmem:[#allocation20 + $0x7e8] ss:$16 sps:$4 sm:$0xff]  }
0x112b   : > { %13152 = vmatpush1.bf16.msra.mxu0 %v20984_v47  ;;  %v24504_v47 = vor.u32 %v12803_v16, %v12800_v20  ;;  %v21071_v16 = vld [vmem:[#allocation20 + $0x8c8] ss:$16 sps:$4 sm:$0xff]  }
0x112c   : > { %11251 = vmatpush1.bf16.msra.mxu1 %v20981_v15  ;;  %13153 = vmatprep.subr.bf16.mxu0 %v20992_v59  ;;  %v21032_v15 = vld [vmem:[#allocation20 + $0x1000] ss:$16 sps:$4 sm:$0xff]   ;;  %v21040_v59 = vld [vmem:[#allocation20 + $0x1024] ss:$16 sps:$4 sm:$0xff]  }
0x112d   : > { %11252 = vmatprep.subr.bf16.mxu1 %v20989_v6  ;;  %v21037_v6 = vld [vmem:[#allocation20 + $0x80c] ss:$16 sps:$4 sm:$0xff]  }
0x112f   : > { %13154 = vmatpush1.bf16.msra.mxu0 %v20990_v44  ;;  %v21035_v44 = vld [vmem:[#allocation20 + $0x808] ss:$16 sps:$4 sm:$0xff]  }
0x1130   : > { %11253 = vmatpush1.bf16.msra.mxu1 %v20987_v36  ;;  %13155 = vmatprep.subr.bf16.mxu0 %v20998_v55  ;;  %v13291_v36 = vrot.slane %v24502_v61, 5  ;;  %v21043_v55 = vld [vmem:[#allocation20 + $0x82c] ss:$16 sps:$4 sm:$0xff]  }
0x1131   : > { %11254 = vmatprep.subr.bf16.mxu1 %v20995_v26  ;;  %v21038_v26 = vld [vmem:[#allocation20 + $0x1020] ss:$16 sps:$4 sm:$0xff]  }
0x1133   : > { %13156 = vmatpush1.bf16.msra.mxu0 %v20996_v52  ;;  %v21041_v52 = vld [vmem:[#allocation20 + $0x828] ss:$16 sps:$4 sm:$0xff]  }
0x1134   : > { %11255 = vmatpush1.bf16.msra.mxu1 %v20993_v5  ;;  %13157 = vmatprep.subr.bf16.mxu0 %v21004_v54  ;;  %v21046_v5 = vld [vmem:[#allocation20 + $0x1044] ss:$16 sps:$4 sm:$0xff]   ;;  %v21049_v54 = vld [vmem:[#allocation20 + $0x84c] ss:$16 sps:$4 sm:$0xff]  }
0x1135   : > { %11256 = vmatprep.subr.bf16.mxu1 %v21001_v62  ;;  %v21044_v62 = vld [vmem:[#allocation20 + $0x1040] ss:$16 sps:$4 sm:$0xff]  }
0x1137   : > { %13158 = vmatpush1.bf16.msra.mxu0 %v21002_v35  ;;  %v21047_v35 = vld [vmem:[#allocation20 + $0x848] ss:$16 sps:$4 sm:$0xff]  }
0x1138   : > { %11257 = vmatpush1.bf16.msra.mxu1 %v20999_v1  ;;  %13159 = vmatprep.subr.bf16.mxu0 %v21010_v60  ;;  %v21052_v1 = vld [vmem:[#allocation20 + $0x1064] ss:$16 sps:$4 sm:$0xff]   ;;  %v21055_v60 = vld [vmem:[#allocation20 + $0x86c] ss:$16 sps:$4 sm:$0xff]  }
0x1139   : > { %11258 = vmatprep.subr.bf16.mxu1 %v21007_v58  ;;  %v21050_v58 = vld [vmem:[#allocation20 + $0x1060] ss:$16 sps:$4 sm:$0xff]  }
0x113b   : > { %13160 = vmatpush1.bf16.msra.mxu0 %v21008_v0  ;;  %v21064_v0 = vld [vmem:[#allocation20 + $0x10a4] ss:$16 sps:$4 sm:$0xff]  }
0x113c   : > { %11259 = vmatpush1.bf16.msra.mxu1 %v21005_v42  ;;  %13161 = vmatprep.subr.bf16.mxu0 %v21016_v3  ;;  %v21058_v42 = vld [vmem:[#allocation20 + $0x1084] ss:$16 sps:$4 sm:$0xff]   ;;  %v21062_v3 = vld [vmem:[#allocation20 + $0x10a0] ss:$16 sps:$4 sm:$0xff]  }
0x113d   : > { %11260 = vmatprep.subr.bf16.mxu1 %v21013_v19  ;;  %v21059_v19 = vld [vmem:[#allocation20 + $0x888] ss:$16 sps:$4 sm:$0xff]  }
0x113f   : > { %13162 = vmatpush1.bf16.msra.mxu0 %v21014_v51  ;;  %v21070_v51 = vld [vmem:[#allocation20 + $0x10c4] ss:$16 sps:$4 sm:$0xff]  }
0x1140   : > { %11261 = vmatpush1.bf16.msra.mxu1 %v21011_v40  ;;  %13163 = vmatprep.subr.bf16.mxu0 %v21022_v63  ;;  %v21067_v40 = vld [vmem:[#allocation20 + $0x8ac] ss:$16 sps:$4 sm:$0xff]  }
0x1141   : > { %11262 = vmatprep.subr.bf16.mxu1 %v21019_v22 }
0x1143   : > { %13164 = vmatpush1.bf16.msra.mxu0 %v21020_v23  ;;  %v21068_v23 = vld [vmem:[#allocation20 + $0x10c0] ss:$16 sps:$4 sm:$0xff]  }
0x1144   : > { %11263 = vmatpush1.bf16.msra.mxu1 %v21017_v8  ;;  %13165 = vmatprep.subr.bf16.mxu0 %v21028_v38 }
0x1145   : > { %11264 = vmatprep.subr.bf16.mxu1 %v21025_v53  ;;  %v21073_v53 = vld [vmem:[#allocation20 + $0x8cc] ss:$16 sps:$4 sm:$0xff]  }
0x1147   : > { %13166 = vmatpush1.bf16.msra.mxu0 %v21026_v34 }
0x1148   : > { %11265 = vmatpush1.bf16.msra.mxu1 %v21023_v57  ;;  %13614 = vmatprep.subr.bf16.mxu0 %v21034_v45 }
0x1149   : > { %11266 = vmatprep.subr.bf16.mxu1 %v21031_v11 }
0x114a   : > { %13168 = vmatmul.mubr.bf16.vlgmr.msra.gmra.mrb[108].mxu0 %v24504_v47 }
0x114b   : > { %13615 = vmatpush1.bf16.msra.mxu0 %v21032_v15  ;;  %13646 = vmatprep.mubr.bf16.mxu0 %v13291_v36  ;;  %v21074_v15 = vld [vmem:[#allocation20 + $0x10e0] ss:$16 sps:$4 sm:$0xff]  }
0x114c   : > { %11267 = vmatpush1.bf16.msra.mxu1 %v21029_v4  ;;  %13616 = vmatprep.subr.bf16.mxu0 %v21040_v59 }
0x114d   : > { %11727 = vmatprep.subr.bf16.mxu1 %v21037_v6  ;;  %v21079_v6 = vld [vmem:[#allocation20 + $0x8ec] ss:$16 sps:$4 sm:$0xff]  }
0x114f   : > { %11269 = vmatmul.mubr.bf16.vlgmr.msra.gmra.mrb[104].mxu1 %v10871_v9  ;;  %13617 = vmatpush1.bf16.msra.mxu0 %v21038_v26  ;;  %v21056_v9 = vld [vmem:[#allocation20 + $0x1080] ss:$16 sps:$4 sm:$0xff]  }
0x1150   : > { %11728 = vmatpush1.bf16.msra.mxu1 %v21035_v44  ;;  %11759 = vmatprep.mubr.bf16.mxu1 %v24442_v29  ;;  %v21061_v29 = vld [vmem:[#allocation20 + $0x88c] ss:$16 sps:$4 sm:$0xff]   ;;  %v21082_v44 = vld [vmem:[#allocation20 + $0x1104] ss:$16 sps:$4 sm:$0xff]  }
0x1151   : > { %11729 = vmatprep.subr.bf16.mxu1 %v21043_v55  ;;  %13618 = vmatprep.subr.bf16.mxu0 %v21046_v5  ;;  %v21080_v55 = vld [vmem:[#allocation20 + $0x1100] ss:$16 sps:$4 sm:$0xff]   ;;  %v21085_v5 = vld [vmem:[#allocation20 + $0x90c] ss:$16 sps:$4 sm:$0xff]  }
0x1153   : > { %13619 = vmatpush1.bf16.msra.mxu0 %v21044_v62 }
0x1154   : > { %11730 = vmatpush1.bf16.msra.mxu1 %v21041_v52  ;;  %13620 = vmatprep.subr.bf16.mxu0 %v21052_v1  ;;  %v21088_v52 = vld [vmem:[#allocation20 + $0x1124] ss:$16 sps:$4 sm:$0xff]  }
0x1155   : > { %11731 = vmatprep.subr.bf16.mxu1 %v21049_v54  ;;  %v21086_v54 = vld [vmem:[#allocation20 + $0x1120] ss:$16 sps:$4 sm:$0xff]   ;;  %v21094_v1 = vld [vmem:[#allocation20 + $0x1144] ss:$16 sps:$4 sm:$0xff]  }
0x1157   : > { %13621 = vmatpush1.bf16.msra.mxu0 %v21050_v58  ;;  %v21097_v58 = vld [vmem:[#allocation20 + $0x94c] ss:$16 sps:$4 sm:$0xff]  }
0x1158   : > { %11732 = vmatpush1.bf16.msra.mxu1 %v21047_v35  ;;  %13622 = vmatprep.subr.bf16.mxu0 %v21058_v42  ;;  %v21092_v35 = vld [vmem:[#allocation20 + $0x1140] ss:$16 sps:$4 sm:$0xff]   ;;  %v21095_v42 = vld [vmem:[#allocation20 + $0x948] ss:$16 sps:$4 sm:$0xff]  }
0x1159   : > { %11733 = vmatprep.subr.bf16.mxu1 %v21055_v60  ;;  %v21100_v60 = vld [vmem:[#allocation20 + $0x1164] ss:$16 sps:$4 sm:$0xff]  }
0x115b   : > { %13623 = vmatpush1.bf16.msra.mxu0 %v21056_v9  ;;  %v21103_v9 = vld [vmem:[#allocation20 + $0x96c] ss:$16 sps:$4 sm:$0xff]  }
0x115c   : > { %11734 = vmatpush1.bf16.msra.mxu1 %v21053_v14  ;;  %13624 = vmatprep.subr.bf16.mxu0 %v21064_v0  ;;  %v21098_v14 = vld [vmem:[#allocation20 + $0x1160] ss:$16 sps:$4 sm:$0xff]   ;;  %v21101_v0 = vld [vmem:[#allocation20 + $0x968] ss:$16 sps:$4 sm:$0xff]  }
0x115d   : > { %11735 = vmatprep.subr.bf16.mxu1 %v21061_v29  ;;  %v11720_v22 = vpop.f32.mrb[96].mxu0  ;;  %v21106_v29 = vld [vmem:[#allocation20 + $0x1184] ss:$16 sps:$4 sm:$0xff]  }
0x115e   : > { %v11722_v63 = vpop.f32.mrb[97].mxu0 }
0x115f   : > { %v11724_v8 = vpop.f32.mrb[98].mxu0  ;;  %13625 = vmatpush1.bf16.msra.mxu0 %v21062_v3  ;;  %v21109_v3 = vld [vmem:[#allocation20 + $0x98c] ss:$16 sps:$4 sm:$0xff]  }
0x1160   : > { %11736 = vmatpush1.bf16.msra.mxu1 %v21059_v19  ;;  %v11725_v38 = vpop.f32.mrb[99].mxu0  ;;  %13626 = vmatprep.subr.bf16.mxu0 %v21070_v51  ;;  %v21104_v19 = vld [vmem:[#allocation20 + $0x1180] ss:$16 sps:$4 sm:$0xff]   ;;  %v21107_v51 = vld [vmem:[#allocation20 + $0x988] ss:$16 sps:$4 sm:$0xff]  }
0x1161   : > { %11737 = vmatprep.subr.bf16.mxu1 %v21067_v40  ;;  %v21112_v40 = vld [vmem:[#allocation20 + $0x11a4] ss:$16 sps:$4 sm:$0xff]   ;;  %v21113_v8 = vld [vmem:[#allocation20 + $0x9a8] ss:$16 sps:$4 sm:$0xff]  }
0x1162   : > { %v10275_v13 = vpop.f32.mrb[92].mxu1  ;;  %v21124_v38 = vld [vmem:[#allocation20 + $0x11e4] ss:$16 sps:$4 sm:$0xff]  }
0x1163   : > { %v10276_v57 = vadd.f32 %v10275_v13, %v24478_v56  ;;  %v10277_v34 = vpop.f32.mrb[93].mxu1  ;;  %13627 = vmatpush1.bf16.msra.mxu0 %v21068_v23  ;;  %v21077_v56 = vld [vmem:[#allocation20 + $0x8e8] ss:$16 sps:$4 sm:$0xff]   ;;  %v21116_v23 = vld [vmem:[#allocation20 + $0x11c0] ss:$16 sps:$4 sm:$0xff]  }
0x1164   : > { %v10278_v11 = vadd.f32 %v10277_v34, %v24480_v41  ;;  %v10279_v20 = vpop.f32.mrb[94].mxu1  ;;  %11738 = vmatpush1.bf16.msra.mxu1 %v21065_v24  ;;  %13628 = vmatprep.subr.bf16.mxu0 %v21076_v50  ;;  %v21118_v24 = vld [vmem:[#allocation20 + $0x11c4] ss:$16 sps:$4 sm:$0xff]   ;;  %v21119_v13 = vld [vmem:[#allocation20 + $0x9c8] ss:$16 sps:$4 sm:$0xff]  }
0x1165   : > { %v10798_v45 = vadd.f32 %v24474_v37, %v10276_v57  ;;  %v10280_v4 = vpop.f32.mrb[95].mxu1  ;;  %11739 = vmatprep.subr.bf16.mxu1 %v21073_v53  ;;  %v21121_v53 = vld [vmem:[#allocation20 + $0x9cc] ss:$16 sps:$4 sm:$0xff]   ;;  %v21122_v50 = vld [vmem:[#allocation20 + $0x11e0] ss:$16 sps:$4 sm:$0xff]  }
0x1166   : > { %v10799_v59 = vadd.f32 %v24476_v49, %v10278_v11  ;;  %v21083_v49 = vld [vmem:[#allocation20 + $0x908] ss:$16 sps:$4 sm:$0xff]   ;;  %v21127_v57 = vld [vmem:[#allocation20 + $0x9ec] ss:$16 sps:$4 sm:$0xff]   ;;  %v24523_v34 = vld [vmem:[#allocation4] sm:$0xe0] }
0x1167   : > { %v11277_v26 = vadd.f32 %v24494_v10, %v10798_v45  ;;  %13629 = vmatpush1.bf16.msra.mxu0 %v21074_v15  ;;  %v21091_v10 = vld [vmem:[#allocation20 + $0x92c] ss:$16 sps:$4 sm:$0xff]   ;;  %v21125_v11 = vld [vmem:[#allocation20 + $0x9e8] ss:$16 sps:$4 sm:$0xff]  }
0x1168   : > { %11740 = vmatpush1.bf16.msra.mxu1 %v21071_v16  ;;  %v11278_v41 = vadd.f32 %v24496_v30, %v10799_v59  ;;  %13630 = vmatprep.subr.bf16.mxu0 %v21082_v44  ;;  %v21089_v30 = vld [vmem:[#allocation20 + $0x928] ss:$16 sps:$4 sm:$0xff]   ;;  %v21130_v20 = vld [vmem:[#allocation20 + $0xa0c] ss:$16 sps:$4 sm:$0xff]   ;;  %v13290_v16 = vrot.slane %v24523_v34, 5 }
0x1169   : > { %11741 = vmatprep.subr.bf16.mxu1 %v21079_v6  ;;  %v24519_v37 = vadd.f32 %v11720_v22, %v11277_v26  ;;  %v21110_v22 = vld [vmem:[#allocation20 + $0x11a0] ss:$16 sps:$4 sm:$0xff]   ;;  %v21128_v45 = vld [vmem:[#allocation20 + $0xa08] ss:$16 sps:$4 sm:$0xff]   ;;  %v21133_v4 = vld [vmem:[#allocation20 + $0xa2c] ss:$16 sps:$4 sm:$0xff]  }
0x116a   : > { %v24521_v62 = vadd.f32 %v11722_v63, %v11278_v41  ;;  %v21115_v63 = vld [vmem:[#allocation20 + $0x9ac] ss:$16 sps:$4 sm:$0xff]   ;;  %v21131_v15 = vld [vmem:[#allocation20 + $0xa28] ss:$16 sps:$4 sm:$0xff]  }
0x116b   : > { %13631 = vmatpush1.bf16.msra.mxu0 %v21080_v55  ;;  %v21136_v6 = vld [vmem:[#allocation20 + $0xa4c] ss:$16 sps:$4 sm:$0xff]   ;;  %v21134_v59 = vld [vmem:[#allocation20 + $0xa48] ss:$16 sps:$4 sm:$0xff]  }
0x116c   : > { %11742 = vmatpush1.bf16.msra.mxu1 %v21077_v56  ;;  %13632 = vmatprep.subr.bf16.mxu0 %v21088_v52  ;;  %v21139_v44 = vld [vmem:[#allocation20 + $0xa6c] ss:$16 sps:$4 sm:$0xff]   ;;  %v21137_v26 = vld [vmem:[#allocation20 + $0xa68] ss:$16 sps:$4 sm:$0xff]  }
0x116d   : > { %11743 = vmatprep.subr.bf16.mxu1 %v21085_v5  ;;  %v21142_v56 = vld [vmem:[#allocation20 + $0xa8c] ss:$16 sps:$4 sm:$0xff]   ;;  %v21140_v41 = vld [vmem:[#allocation20 + $0xa88] ss:$16 sps:$4 sm:$0xff]  }
0x116e   : > { %v21145_v55 = vld [vmem:[#allocation20 + $0xaac] ss:$16 sps:$4 sm:$0xff]  }
0x116f   : > { %13633 = vmatpush1.bf16.msra.mxu0 %v21086_v54  ;;  %v21148_v54 = vld [vmem:[#allocation20 + $0xacc] ss:$16 sps:$4 sm:$0xff]  }
0x1170   : > { %11744 = vmatpush1.bf16.msra.mxu1 %v21083_v49  ;;  %13634 = vmatprep.subr.bf16.mxu0 %v21094_v1 }
0x1171   : > { %11745 = vmatprep.subr.bf16.mxu1 %v21091_v10 }
0x1173   : > { %13635 = vmatpush1.bf16.msra.mxu0 %v21092_v35 }
0x1174   : > { %11746 = vmatpush1.bf16.msra.mxu1 %v21089_v30  ;;  %13636 = vmatprep.subr.bf16.mxu0 %v21100_v60  ;;  %v21146_v60 = vld [vmem:[#allocation20 + $0xac8] ss:$16 sps:$4 sm:$0xff]  }
0x1175   : > { %11747 = vmatprep.subr.bf16.mxu1 %v21097_v58 }
0x1177   : > { %13637 = vmatpush1.bf16.msra.mxu0 %v21098_v14  ;;  %v21151_v14 = vld [vmem:[#allocation20 + $0xaec] ss:$16 sps:$4 sm:$0xff]  }
0x1178   : > { %11748 = vmatpush1.bf16.msra.mxu1 %v21095_v42  ;;  %13638 = vmatprep.subr.bf16.mxu0 %v21106_v29  ;;  %v21152_v29 = vld [vmem:[#allocation20 + $0xb08] ss:$16 sps:$4 sm:$0xff]  }
0x1179   : > { %11749 = vmatprep.subr.bf16.mxu1 %v21103_v9  ;;  %v21154_v9 = vld [vmem:[#allocation20 + $0xb0c] ss:$16 sps:$4 sm:$0xff]  }
0x117b   : > { %13639 = vmatpush1.bf16.msra.mxu0 %v21104_v19  ;;  %v21160_v19 = vld [vmem:[#allocation20 + $0xb4c] ss:$16 sps:$4 sm:$0xff]  }
0x117c   : > { %11750 = vmatpush1.bf16.msra.mxu1 %v21101_v0  ;;  %13640 = vmatprep.subr.bf16.mxu0 %v21112_v40  ;;  %v21157_v0 = vld [vmem:[#allocation20 + $0xb2c] ss:$16 sps:$4 sm:$0xff]   ;;  %v21161_v40 = vld [vmem:[#allocation20 + $0xb68] ss:$16 sps:$4 sm:$0xff]  }
0x117d   : > { %11751 = vmatprep.subr.bf16.mxu1 %v21109_v3  ;;  %v21163_v3 = vld [vmem:[#allocation20 + $0xb6c] ss:$16 sps:$4 sm:$0xff]  }
0x117f   : > { %13641 = vmatpush1.bf16.msra.mxu0 %v21110_v22  ;;  %v21164_v22 = vld [vmem:[#allocation20 + $0xb88] ss:$16 sps:$4 sm:$0xff]  }
0x1180   : > { %11752 = vmatpush1.bf16.msra.mxu1 %v21107_v51  ;;  %13642 = vmatprep.subr.bf16.mxu0 %v21118_v24  ;;  %v21166_v51 = vld [vmem:[#allocation20 + $0xb8c] ss:$16 sps:$4 sm:$0xff]   ;;  %v21167_v24 = vld [vmem:[#allocation20 + $0xba8] ss:$16 sps:$4 sm:$0xff]  }
0x1181   : > { %11753 = vmatprep.subr.bf16.mxu1 %v21115_v63  ;;  %v21169_v63 = vld [vmem:[#allocation20 + $0xbac] ss:$16 sps:$4 sm:$0xff]  }
0x1183   : > { %13643 = vmatpush1.bf16.msra.mxu0 %v21116_v23  ;;  %v21170_v23 = vld [vmem:[#allocation20 + $0xbc8] ss:$16 sps:$4 sm:$0xff]  }
0x1184   : > { %11754 = vmatpush1.bf16.msra.mxu1 %v21113_v8  ;;  %13644 = vmatprep.subr.bf16.mxu0 %v21124_v38  ;;  %v21172_v8 = vld [vmem:[#allocation20 + $0xbcc] ss:$16 sps:$4 sm:$0xff]   ;;  %v21173_v38 = vld [vmem:[#allocation20 + $0xbe8] ss:$16 sps:$4 sm:$0xff]  }
0x1185   : > { %11755 = vmatprep.subr.bf16.mxu1 %v21121_v53  ;;  %v21175_v53 = vld [vmem:[#allocation20 + $0xbec] ss:$16 sps:$4 sm:$0xff]  }
0x1187   : > { %13645 = vmatpush1.bf16.msra.mxu0 %v21122_v50  ;;  %v21176_v50 = vld [vmem:[#allocation20 + $0xc08] ss:$16 sps:$4 sm:$0xff]  }
0x1188   : > { %11756 = vmatpush1.bf16.msra.mxu1 %v21119_v13  ;;  %v21178_v13 = vld [vmem:[#allocation20 + $0xc0c] ss:$16 sps:$4 sm:$0xff]  }
0x1189   : > { %11757 = vmatprep.subr.bf16.mxu1 %v21127_v57  ;;  %v21181_v57 = vld [vmem:[#allocation20 + $0xc2c] ss:$16 sps:$4 sm:$0xff]  }
0x118a   : > { %13647 = vmatmul.mubr.bf16.vlgmr.msra.gmra.mrb[112].mxu0 %v13290_v16 }
0x118b   : > { %13783 = vmatprep.mubr.bf16.mxu0 %v22329_v12 }
0x118c   : > { %11758 = vmatpush1.bf16.msra.mxu1 %v21125_v11  ;;  %v21179_v11 = vld [vmem:[#allocation20 + $0xc28] ss:$16 sps:$4 sm:$0xff]  }
0x118d   : > { %12206 = vmatprep.subr.bf16.mxu1 %v21130_v20  ;;  %v21184_v20 = vld [vmem:[#allocation20 + $0xc4c] ss:$16 sps:$4 sm:$0xff]  }
0x118f   : > { %11760 = vmatmul.mubr.bf16.vlgmr.msra.gmra.mrb[108].mxu1 %v24451_v46 }
0x1190   : > { %12207 = vmatpush1.bf16.msra.mxu1 %v21128_v45  ;;  %12238 = vmatprep.mubr.bf16.mxu1 %v11842_v43  ;;  %v21143_v43 = vld [vmem:[#allocation20 + $0xaa8] ss:$16 sps:$4 sm:$0xff]  }
0x1191   : > { %12208 = vmatprep.subr.bf16.mxu1 %v21133_v4  ;;  %v21182_v45 = vld [vmem:[#allocation20 + $0xc48] ss:$16 sps:$4 sm:$0xff]   ;;  %v21187_v4 = vld [vmem:[#allocation20 + $0xc6c] ss:$16 sps:$4 sm:$0xff]  }
0x1194   : > { %12209 = vmatpush1.bf16.msra.mxu1 %v21131_v15  ;;  %v21185_v15 = vld [vmem:[#allocation20 + $0xc68] ss:$16 sps:$4 sm:$0xff]  }
0x1195   : > { %12210 = vmatprep.subr.bf16.mxu1 %v21136_v6  ;;  %v21190_v6 = vld [vmem:[#allocation20 + $0xc8c] ss:$16 sps:$4 sm:$0xff]  }
0x1198   : > { %12211 = vmatpush1.bf16.msra.mxu1 %v21134_v59  ;;  %v21188_v59 = vld [vmem:[#allocation20 + $0xc88] ss:$16 sps:$4 sm:$0xff]  }
0x1199   : > { %12212 = vmatprep.subr.bf16.mxu1 %v21139_v44 }
0x119c   : > { %12213 = vmatpush1.bf16.msra.mxu1 %v21137_v26 }
0x119d   : > { %12214 = vmatprep.subr.bf16.mxu1 %v21142_v56  ;;  %v12199_v46 = vpop.f32.mrb[100].mxu0 }
0x119e   : > { %v24533_v5 = vadd.f32 %v12199_v46, %v24519_v37  ;;  %v12201_v27 = vpop.f32.mrb[101].mxu0 }
0x119f   : > { %v24536_v52 = vadd.f32 %v12201_v27, %v24521_v62  ;;  %v12203_v49 = vpop.f32.mrb[102].mxu0  ;;  %v21149_v62 = vld [vmem:[#allocation20 + $0xae8] ss:$16 sps:$4 sm:$0xff]  }
0x11a0   : > { %12215 = vmatpush1.bf16.msra.mxu1 %v21140_v41  ;;  %v12204_v10 = vpop.f32.mrb[103].mxu0  ;;  %v21196_v41 = vld [vmem:[#allocation20 + $0xccc] ss:$16 sps:$4 sm:$0xff]  }
0x11a1   : > { %12216 = vmatprep.subr.bf16.mxu1 %v21145_v55 }
0x11a2   : > { %v10316_v1 = vpop.f32.mrb[96].mxu1 }
0x11a3   : > { %v24539_v30 = vadd.f32 %v10316_v1, %v24498_v25  ;;  %v10318_v35 = vpop.f32.mrb[97].mxu1  ;;  %v21155_v25 = vld [vmem:[#allocation20 + $0xb28] ss:$16 sps:$4 sm:$0xff]   ;;  %v21199_v1 = vld [vmem:[#allocation20 + $0xcec] ss:$16 sps:$4 sm:$0xff]  }
0x11a4   : > { %v24542_v58 = vadd.f32 %v10318_v35, %v24500_v48  ;;  %v10320_v37 = vpop.f32.mrb[98].mxu1  ;;  %12217 = vmatpush1.bf16.msra.mxu1 %v21143_v43  ;;  %v21158_v48 = vld [vmem:[#allocation20 + $0xb48] ss:$16 sps:$4 sm:$0xff]   ;;  %v21202_v35 = vld [vmem:[#allocation20 + $0xd0c] ss:$16 sps:$4 sm:$0xff]  }
0x11a5   : > { %v10321_v42 = vpop.f32.mrb[99].mxu1  ;;  %12218 = vmatprep.subr.bf16.mxu1 %v21148_v54  ;;  %v21194_v54 = vld [vmem:[#allocation20 + $0xcc8] ss:$16 sps:$4 sm:$0xff]  }
0x11a6   : > { %v21200_v37 = vld [vmem:[#allocation20 + $0xd08] ss:$16 sps:$4 sm:$0xff]   ;;  %v21208_v42 = vld [vmem:[#allocation20 + $0xd4c] ss:$16 sps:$4 sm:$0xff]  }
0x11a8   : > { %12219 = vmatpush1.bf16.msra.mxu1 %v21146_v60  ;;  %v21205_v60 = vld [vmem:[#allocation20 + $0xd2c] ss:$16 sps:$4 sm:$0xff]  }
0x11a9   : > { %12220 = vmatprep.subr.bf16.mxu1 %v21151_v14  ;;  %v21211_v14 = vld [vmem:[#allocation20 + $0xd6c] ss:$16 sps:$4 sm:$0xff]  }
0x11ac   : > { %12221 = vmatpush1.bf16.msra.mxu1 %v21149_v62  ;;  %v21209_v62 = vld [vmem:[#allocation20 + $0xd68] ss:$16 sps:$4 sm:$0xff]  }
0x11ad   : > { %12222 = vmatprep.subr.bf16.mxu1 %v21154_v9  ;;  %v21214_v9 = vld [vmem:[#allocation20 + $0xd8c] ss:$16 sps:$4 sm:$0xff]  }
0x11b0   : > { %12223 = vmatpush1.bf16.msra.mxu1 %v21152_v29  ;;  %v21212_v29 = vld [vmem:[#allocation20 + $0xd88] ss:$16 sps:$4 sm:$0xff]  }
0x11b1   : > { %12224 = vmatprep.subr.bf16.mxu1 %v21157_v0  ;;  %v21217_v0 = vld [vmem:[#allocation20 + $0xdac] ss:$16 sps:$4 sm:$0xff]  }
0x11b4   : > { %12225 = vmatpush1.bf16.msra.mxu1 %v21155_v25  ;;  %v21215_v25 = vld [vmem:[#allocation20 + $0xda8] ss:$16 sps:$4 sm:$0xff]  }
0x11b5   : > { %12226 = vmatprep.subr.bf16.mxu1 %v21160_v19  ;;  %v21220_v19 = vld [vmem:[#allocation20 + $0xdcc] ss:$16 sps:$4 sm:$0xff]  }
0x11b8   : > { %12227 = vmatpush1.bf16.msra.mxu1 %v21158_v48  ;;  %v21218_v48 = vld [vmem:[#allocation20 + $0xdc8] ss:$16 sps:$4 sm:$0xff]  }
0x11b9   : > { %12228 = vmatprep.subr.bf16.mxu1 %v21163_v3  ;;  %v21223_v3 = vld [vmem:[#allocation20 + $0xdec] ss:$16 sps:$4 sm:$0xff]  }
0x11bc   : > { %12229 = vmatpush1.bf16.msra.mxu1 %v21161_v40  ;;  %v21221_v40 = vld [vmem:[#allocation20 + $0xde8] ss:$16 sps:$4 sm:$0xff]  }
0x11bd   : > { %12230 = vmatprep.subr.bf16.mxu1 %v21166_v51  ;;  %v21226_v51 = vld [vmem:[#allocation20 + $0xe0c] ss:$16 sps:$4 sm:$0xff]  }
0x11c0   : > { %12231 = vmatpush1.bf16.msra.mxu1 %v21164_v22  ;;  %v21224_v22 = vld [vmem:[#allocation20 + $0xe08] ss:$16 sps:$4 sm:$0xff]  }
0x11c1   : > { %12232 = vmatprep.subr.bf16.mxu1 %v21169_v63  ;;  %v21229_v63 = vld [vmem:[#allocation20 + $0xe2c] ss:$16 sps:$4 sm:$0xff]  }
0x11c4   : > { %12233 = vmatpush1.bf16.msra.mxu1 %v21167_v24  ;;  %v21227_v24 = vld [vmem:[#allocation20 + $0xe28] ss:$16 sps:$4 sm:$0xff]  }
0x11c5   : > { %12234 = vmatprep.subr.bf16.mxu1 %v21172_v8  ;;  %v21232_v8 = vld [vmem:[#allocation20 + $0xe4c] ss:$16 sps:$4 sm:$0xff]  }
0x11c8   : > { %12235 = vmatpush1.bf16.msra.mxu1 %v21170_v23  ;;  %v21230_v23 = vld [vmem:[#allocation20 + $0xe48] ss:$16 sps:$4 sm:$0xff]  }
0x11c9   : > { %12236 = vmatprep.subr.bf16.mxu1 %v21175_v53  ;;  %v21235_v53 = vld [vmem:[#allocation20 + $0xe6c] ss:$16 sps:$4 sm:$0xff]  }
0x11cc   : > { %12237 = vmatpush1.bf16.msra.mxu1 %v21173_v38  ;;  %v21233_v38 = vld [vmem:[#allocation20 + $0xe68] ss:$16 sps:$4 sm:$0xff]  }
0x11cd   : > { %12685 = vmatprep.subr.bf16.mxu1 %v21178_v13  ;;  %v21238_v13 = vld [vmem:[#allocation20 + $0xe8c] ss:$16 sps:$4 sm:$0xff]  }
0x11cf   : > { %12239 = vmatmul.mubr.bf16.vlgmr.msra.gmra.mrb[112].mxu1 %v11841_v28 }
0x11d0   : > { %12686 = vmatpush1.bf16.msra.mxu1 %v21176_v50  ;;  %12717 = vmatprep.mubr.bf16.mxu1 %v12321_v17  ;;  %v21191_v17 = vld [vmem:[#allocation20 + $0xca8] ss:$16 sps:$4 sm:$0xff]  }
0x11d1   : > { %12687 = vmatprep.subr.bf16.mxu1 %v21181_v57  ;;  %v21236_v50 = vld [vmem:[#allocation20 + $0xe88] ss:$16 sps:$4 sm:$0xff]   ;;  %v21241_v57 = vld [vmem:[#allocation20 + $0xeac] ss:$16 sps:$4 sm:$0xff]  }
0x11d4   : > { %12688 = vmatpush1.bf16.msra.mxu1 %v21179_v11  ;;  %v21239_v11 = vld [vmem:[#allocation20 + $0xea8] ss:$16 sps:$4 sm:$0xff]  }
0x11d5   : > { %12689 = vmatprep.subr.bf16.mxu1 %v21184_v20 }
0x11d8   : > { %12690 = vmatpush1.bf16.msra.mxu1 %v21182_v45 }
0x11d9   : > { %12691 = vmatprep.subr.bf16.mxu1 %v21187_v4  ;;  %v21244_v4 = vld [vmem:[#allocation20 + $0xecc] ss:$16 sps:$4 sm:$0xff]  }
0x11dc   : > { %12692 = vmatpush1.bf16.msra.mxu1 %v21185_v15 }
0x11dd   : > { %12693 = vmatprep.subr.bf16.mxu1 %v21190_v6  ;;  %v12678_v28 = vpop.f32.mrb[104].mxu0 }
0x11de   : > { %v24549_v44 = vadd.f32 %v12678_v28, %v24533_v5  ;;  %v12680_v18 = vpop.f32.mrb[105].mxu0 }
0x11df   : > { %v24552_v26 = vadd.f32 %v12680_v18, %v24536_v52  ;;  %v12682_v56 = vpop.f32.mrb[106].mxu0  ;;  %v21197_v52 = vld [vmem:[#allocation20 + $0xce8] ss:$16 sps:$4 sm:$0xff]  }
0x11e0   : > { %12694 = vmatpush1.bf16.msra.mxu1 %v21188_v59  ;;  %v12683_v55 = vpop.f32.mrb[107].mxu0  ;;  %v21242_v18 = vld [vmem:[#allocation20 + $0xec8] ss:$16 sps:$4 sm:$0xff]   ;;  %v21247_v56 = vld [vmem:[#allocation20 + $0xeec] ss:$16 sps:$4 sm:$0xff]  }
0x11e1   : > { %12695 = vmatprep.subr.bf16.mxu1 %v21193_v33  ;;  %v21248_v55 = vld [vmem:[#allocation20 + $0xf08] ss:$16 sps:$4 sm:$0xff]  }
0x11e2   : > { %v10791_v46 = vpop.f32.mrb[100].mxu1 }
0x11e3   : > { %v24555_v27 = vadd.f32 %v10791_v46, %v24539_v30  ;;  %v10793_v43 = vpop.f32.mrb[101].mxu1  ;;  %v21203_v30 = vld [vmem:[#allocation20 + $0xd28] ss:$16 sps:$4 sm:$0xff]   ;;  %v21253_v46 = vld [vmem:[#allocation20 + $0xf2c] ss:$16 sps:$4 sm:$0xff]  }
0x11e4   : > { %v24558_v49 = vadd.f32 %v10793_v43, %v24542_v58  ;;  %v10795_v5 = vpop.f32.mrb[102].mxu1  ;;  %12696 = vmatpush1.bf16.msra.mxu1 %v21191_v17  ;;  %v21206_v58 = vld [vmem:[#allocation20 + $0xd48] ss:$16 sps:$4 sm:$0xff]   ;;  %v21256_v43 = vld [vmem:[#allocation20 + $0xf4c] ss:$16 sps:$4 sm:$0xff]  }
0x11e5   : > { %v10796_v10 = vpop.f32.mrb[103].mxu1  ;;  %12697 = vmatprep.subr.bf16.mxu1 %v21196_v41  ;;  %v21250_v41 = vld [vmem:[#allocation20 + $0xf0c] ss:$16 sps:$4 sm:$0xff]  }
0x11e6   : > { %v21259_v5 = vld [vmem:[#allocation20 + $0xf6c] ss:$16 sps:$4 sm:$0xff]  }
0x11e7   : > { %v21262_v10 = vld [vmem:[#allocation20 + $0xf8c] ss:$16 sps:$4 sm:$0xff]  }
0x11e8   : > { %12698 = vmatpush1.bf16.msra.mxu1 %v21194_v54  ;;  %v21257_v54 = vld [vmem:[#allocation20 + $0xf68] ss:$16 sps:$4 sm:$0xff]  }
0x11e9   : > { %12699 = vmatprep.subr.bf16.mxu1 %v21199_v1  ;;  %v21260_v1 = vld [vmem:[#allocation20 + $0xf88] ss:$16 sps:$4 sm:$0xff]  }
0x11ec   : > { %12700 = vmatpush1.bf16.msra.mxu1 %v21197_v52  ;;  %v21265_v52 = vld [vmem:[#allocation20 + $0xfac] ss:$16 sps:$4 sm:$0xff]  }
0x11ed   : > { %12701 = vmatprep.subr.bf16.mxu1 %v21202_v35  ;;  %v21263_v35 = vld [vmem:[#allocation20 + $0xfa8] ss:$16 sps:$4 sm:$0xff]  }
0x11f0   : > { %12702 = vmatpush1.bf16.msra.mxu1 %v21200_v37  ;;  %v21268_v37 = vld [vmem:[#allocation20 + $0xfcc] ss:$16 sps:$4 sm:$0xff]  }
0x11f1   : > { %12703 = vmatprep.subr.bf16.mxu1 %v21205_v60  ;;  %v21266_v60 = vld [vmem:[#allocation20 + $0xfc8] ss:$16 sps:$4 sm:$0xff]  }
0x11f4   : > { %12704 = vmatpush1.bf16.msra.mxu1 %v21203_v30  ;;  %v21271_v30 = vld [vmem:[#allocation20 + $0xfec] ss:$16 sps:$4 sm:$0xff]  }
0x11f5   : > { %12705 = vmatprep.subr.bf16.mxu1 %v21208_v42  ;;  %v21269_v42 = vld [vmem:[#allocation20 + $0xfe8] ss:$16 sps:$4 sm:$0xff]  }
0x11f8   : > { %12706 = vmatpush1.bf16.msra.mxu1 %v21206_v58  ;;  %v21274_v58 = vld [vmem:[#allocation20 + $0x100c] ss:$16 sps:$4 sm:$0xff]  }
0x11f9   : > { %12707 = vmatprep.subr.bf16.mxu1 %v21211_v14  ;;  %v21272_v14 = vld [vmem:[#allocation20 + $0x1008] ss:$16 sps:$4 sm:$0xff]  }
0x11fc   : > { %12708 = vmatpush1.bf16.msra.mxu1 %v21209_v62  ;;  %v21277_v62 = vld [vmem:[#allocation20 + $0x102c] ss:$16 sps:$4 sm:$0xff]  }
0x11fd   : > { %12709 = vmatprep.subr.bf16.mxu1 %v21214_v9  ;;  %v21275_v9 = vld [vmem:[#allocation20 + $0x1028] ss:$16 sps:$4 sm:$0xff]  }
0x1200   : > { %12710 = vmatpush1.bf16.msra.mxu1 %v21212_v29  ;;  %v21280_v29 = vld [vmem:[#allocation20 + $0x104c] ss:$16 sps:$4 sm:$0xff]  }
0x1201   : > { %12711 = vmatprep.subr.bf16.mxu1 %v21217_v0  ;;  %v21278_v0 = vld [vmem:[#allocation20 + $0x1048] ss:$16 sps:$4 sm:$0xff]  }
0x1204   : > { %12712 = vmatpush1.bf16.msra.mxu1 %v21215_v25  ;;  %v21283_v25 = vld [vmem:[#allocation20 + $0x106c] ss:$16 sps:$4 sm:$0xff]  }
0x1205   : > { %12713 = vmatprep.subr.bf16.mxu1 %v21220_v19  ;;  %v21281_v19 = vld [vmem:[#allocation20 + $0x1068] ss:$16 sps:$4 sm:$0xff]  }
0x1208   : > { %12714 = vmatpush1.bf16.msra.mxu1 %v21218_v48  ;;  %v21286_v48 = vld [vmem:[#allocation20 + $0x108c] ss:$16 sps:$4 sm:$0xff]  }
0x1209   : > { %12715 = vmatprep.subr.bf16.mxu1 %v21223_v3  ;;  %v24578_v3 = vld [vmem:[#allocation22] sm:$0xf] }
0x120a   : > { %v13705_v61 = vrot.slane %v24578_v3, %v24394_v31 }
0x120c   : > { %12716 = vmatpush1.bf16.msra.mxu1 %v21221_v40  ;;  %v21284_v40 = vld [vmem:[#allocation20 + $0x1088] ss:$16 sps:$4 sm:$0xff]  }
0x120d   : > { %13176 = vmatprep.subr.bf16.mxu1 %v21226_v51  ;;  %v13709_v51 = vrot.slane %v24578_v3, %v24397_v21 }
0x120f   : > { %12718 = vmatmul.mubr.bf16.vlgmr.msra.gmra.mrb[116].mxu1 %v12320_v39 }
0x1210   : > { %13177 = vmatpush1.bf16.msra.mxu1 %v21224_v22  ;;  %13208 = vmatprep.mubr.bf16.mxu1 %v24485_v7 }
0x1211   : > { %13178 = vmatprep.subr.bf16.mxu1 %v21229_v63 }
0x1214   : > { %13179 = vmatpush1.bf16.msra.mxu1 %v21227_v24  ;;  %v21287_v24 = vld [vmem:[#allocation20 + $0x10a8] ss:$16 sps:$4 sm:$0xff]  }
0x1215   : > { %13180 = vmatprep.subr.bf16.mxu1 %v21232_v8 }
0x1218   : > { %13181 = vmatpush1.bf16.msra.mxu1 %v21230_v23 }
0x1219   : > { %13182 = vmatprep.subr.bf16.mxu1 %v21235_v53  ;;  %v21292_v53 = vld [vmem:[#allocation20 + $0x10cc] ss:$16 sps:$4 sm:$0xff]  }
0x121c   : > { %13183 = vmatpush1.bf16.msra.mxu1 %v21233_v38 }
0x121d   : > { %13184 = vmatprep.subr.bf16.mxu1 %v21238_v13  ;;  %v13169_v2 = vpop.f32.mrb[108].mxu0 }
0x121e   : > { %v24564_v39 = vadd.f32 %v13169_v2, %v24549_v44  ;;  %v13171_v7 = vpop.f32.mrb[109].mxu0 }
0x121f   : > { %v24567_v20 = vadd.f32 %v13171_v7, %v24552_v26  ;;  %v13173_v45 = vpop.f32.mrb[110].mxu0  ;;  %v21245_v26 = vld [vmem:[#allocation20 + $0xee8] ss:$16 sps:$4 sm:$0xff]  }
0x1220   : > { %13185 = vmatpush1.bf16.msra.mxu1 %v21236_v50  ;;  %v13174_v15 = vpop.f32.mrb[111].mxu0 }
0x1221   : > { %13186 = vmatprep.subr.bf16.mxu1 %v21241_v57 }
0x1222   : > { %v11270_v6 = vpop.f32.mrb[104].mxu1 }
0x1223   : > { %v24570_v59 = vadd.f32 %v11270_v6, %v24555_v27  ;;  %v11272_v33 = vpop.f32.mrb[105].mxu1  ;;  %v21251_v27 = vld [vmem:[#allocation20 + $0xf28] ss:$16 sps:$4 sm:$0xff]  }
0x1224   : > { %v24573_v28 = vadd.f32 %v11272_v33, %v24558_v49  ;;  %v11274_v44 = vpop.f32.mrb[106].mxu1  ;;  %13187 = vmatpush1.bf16.msra.mxu1 %v21239_v11  ;;  %v21254_v49 = vld [vmem:[#allocation20 + $0xf48] ss:$16 sps:$4 sm:$0xff]  }
0x1225   : > { %v11275_v17 = vpop.f32.mrb[107].mxu1  ;;  %13188 = vmatprep.subr.bf16.mxu1 %v21244_v4  ;;  %v21290_v4 = vld [vmem:[#allocation20 + $0x10c8] ss:$16 sps:$4 sm:$0xff]  }
0x1226   : > { %v21296_v17 = vld [vmem:[#allocation20 + $0x1108] ss:$16 sps:$4 sm:$0xff]  }
0x1228   : > { %13189 = vmatpush1.bf16.msra.mxu1 %v21242_v18 }
0x1229   : > { %13190 = vmatprep.subr.bf16.mxu1 %v21247_v56  ;;  %v21301_v56 = vld [vmem:[#allocation20 + $0x112c] ss:$16 sps:$4 sm:$0xff]  }
0x122c   : > { %13191 = vmatpush1.bf16.msra.mxu1 %v21245_v26  ;;  %v21299_v26 = vld [vmem:[#allocation20 + $0x1128] ss:$16 sps:$4 sm:$0xff]  }
0x122d   : > { %13192 = vmatprep.subr.bf16.mxu1 %v21250_v41  ;;  %v21304_v41 = vld [vmem:[#allocation20 + $0x114c] ss:$16 sps:$4 sm:$0xff]  }
0x1230   : > { %13193 = vmatpush1.bf16.msra.mxu1 %v21248_v55  ;;  %v21302_v55 = vld [vmem:[#allocation20 + $0x1148] ss:$16 sps:$4 sm:$0xff]  }
0x1231   : > { %13194 = vmatprep.subr.bf16.mxu1 %v21253_v46  ;;  %v21307_v46 = vld [vmem:[#allocation20 + $0x116c] ss:$16 sps:$4 sm:$0xff]  }
0x1234   : > { %13195 = vmatpush1.bf16.msra.mxu1 %v21251_v27  ;;  %v21305_v27 = vld [vmem:[#allocation20 + $0x1168] ss:$16 sps:$4 sm:$0xff]  }
0x1235   : > { %13196 = vmatprep.subr.bf16.mxu1 %v21256_v43  ;;  %v21310_v43 = vld [vmem:[#allocation20 + $0x118c] ss:$16 sps:$4 sm:$0xff]  }
0x1238   : > { %13197 = vmatpush1.bf16.msra.mxu1 %v21254_v49  ;;  %v21308_v49 = vld [vmem:[#allocation20 + $0x1188] ss:$16 sps:$4 sm:$0xff]  }
0x1239   : > { %13198 = vmatprep.subr.bf16.mxu1 %v21259_v5  ;;  %v21313_v5 = vld [vmem:[#allocation20 + $0x11ac] ss:$16 sps:$4 sm:$0xff]  }
0x123c   : > { %13199 = vmatpush1.bf16.msra.mxu1 %v21257_v54  ;;  %v21311_v54 = vld [vmem:[#allocation20 + $0x11a8] ss:$16 sps:$4 sm:$0xff]  }
0x123d   : > { %13200 = vmatprep.subr.bf16.mxu1 %v21262_v10  ;;  %v21316_v10 = vld [vmem:[#allocation20 + $0x11cc] ss:$16 sps:$4 sm:$0xff]  }
0x1240   : > { %13201 = vmatpush1.bf16.msra.mxu1 %v21260_v1  ;;  %v21314_v1 = vld [vmem:[#allocation20 + $0x11c8] ss:$16 sps:$4 sm:$0xff]  }
0x1241   : > { %13202 = vmatprep.subr.bf16.mxu1 %v21265_v52  ;;  %v21319_v52 = vld [vmem:[#allocation20 + $0x11ec] ss:$16 sps:$4 sm:$0xff]  }
0x1244   : > { %13203 = vmatpush1.bf16.msra.mxu1 %v21263_v35  ;;  %v21317_v35 = vld [vmem:[#allocation20 + $0x11e8] ss:$16 sps:$4 sm:$0xff]  }
0x1245   : > { %13204 = vmatprep.subr.bf16.mxu1 %v21268_v37  ;;  %v24609_v37 = vld [vmem:[%s24939_s28 + $0x2] sm:$0x1]  ;;  %s24786_s28 = scalar_lea.hbm %s24944_s15, %s18145_s27 }
0x1248   : > { %13205 = vmatpush1.bf16.msra.mxu1 %v21266_v60 }
0x1249   : > { %13206 = vmatprep.subr.bf16.mxu1 %v21271_v30 }
0x124c   : > { %13207 = vmatpush1.bf16.msra.mxu1 %v21269_v42 }
0x124d   : > { %13655 = vmatprep.subr.bf16.mxu1 %v21274_v58 }
0x124f   : > { %13209 = vmatmul.mubr.bf16.vlgmr.msra.gmra.mrb[120].mxu1 %v24504_v47  ;;  %v21289_v47 = vld [vmem:[#allocation20 + $0x10ac] ss:$16 sps:$4 sm:$0xff]  }
0x1250   : > { %13656 = vmatpush1.bf16.msra.mxu1 %v21272_v14  ;;  %13687 = vmatprep.mubr.bf16.mxu1 %v13291_v36 }
0x1251   : > { %13657 = vmatprep.subr.bf16.mxu1 %v21277_v62 }
0x1254   : > { %13658 = vmatpush1.bf16.msra.mxu1 %v21275_v9 }
0x1255   : > { %13659 = vmatprep.subr.bf16.mxu1 %v21280_v29 }
0x1258   : > { %13660 = vmatpush1.bf16.msra.mxu1 %v21278_v0 }
0x1259   : > { %13661 = vmatprep.subr.bf16.mxu1 %v21283_v25 }
0x125c   : > { %13662 = vmatpush1.bf16.msra.mxu1 %v21281_v19  ;;  %v24619_v19 = vld [vmem:[%s24940_s22] sm:$0x1] }
0x125d   : > { %13663 = vmatprep.subr.bf16.mxu1 %v21286_v48  ;;  %v13648_v36 = vpop.f32.mrb[112].mxu0  ;;  %v24627_v48 = vld [vmem:[%s24940_s22 + $0x3] sm:$0x1] }
0x125e   : > { %v13696_v22 = vadd.f32 %v13648_v36, %v24564_v39  ;;  %v13650_v63 = vpop.f32.mrb[113].mxu0  ;;  %v21326_v36 = vld [vmem:[#allocation23 + $0x20] ss:$16 sps:$4 sm:$0xff]  }
0x125f   : > { %v13697_v8 = vadd.f32 %v13650_v63, %v24567_v20  ;;  %v13652_v23 = vpop.f32.mrb[114].mxu0  ;;  %v21295_v20 = vld [vmem:[#allocation20 + $0x10ec] ss:$16 sps:$4 sm:$0xff]   ;;  %v21340_v63 = vld [vmem:[#allocation23 + $0x64] ss:$16 sps:$4 sm:$0xff]  }
0x1260   : > { %13664 = vmatpush1.bf16.msra.mxu1 %v21284_v40  ;;  %v13722_v38 = vadd.f32 %v13705_v61, %v13696_v22  ;;  %v13653_v13 = vpop.f32.mrb[115].mxu0  ;;  %v21320_v40 = vld [vmem:[#allocation23] ss:$16 sps:$4 sm:$0xff]   ;;  %v21328_v61 = vld [vmem:[#allocation23 + $0x24] ss:$16 sps:$4 sm:$0xff]  }
0x1261   : > { %13665 = vmatprep.subr.bf16.mxu1 %v21289_v47  ;;  %v13723_v57 = vadd.f32 %v13709_v51, %v13697_v8  ;;  %v21322_v47 = vld [vmem:[#allocation23 + $0x4] ss:$16 sps:$4 sm:$0xff]   ;;  %v21332_v22 = vld [vmem:[#allocation23 + $0x40] ss:$16 sps:$4 sm:$0xff]  }
0x1262   : > { %v11761_v50 = vpop.f32.mrb[108].mxu1  ;;  %v13726_v11 = vmax.f32 %v13722_v38, 0.0  ;;  %v21334_v51 = vld [vmem:[#allocation23 + $0x44] ss:$16 sps:$4 sm:$0xff]   ;;  %v21344_v23 = vld [vmem:[#allocation23 + $0x80] ss:$16 sps:$4 sm:$0xff]  }
0x1263   : > { %v24587_v2 = vadd.f32 %v11761_v50, %v24570_v59  ;;  %v11763_v7 = vpop.f32.mrb[109].mxu1  ;;  %v13727_v15 = vmax.f32 %v13723_v57, 0.0  ;;  %v21293_v59 = vld [vmem:[#allocation20 + $0x10e8] ss:$16 sps:$4 sm:$0xff]   ;;  %v21350_v57 = vld [vmem:[#allocation23 + $0xa0] ss:$16 sps:$4 sm:$0xff]  }
0x1264   : > { %v11771_v45 = vadd.f32 %v11763_v7, %v24573_v28  ;;  %v11765_v39 = vpop.f32.mrb[110].mxu1  ;;  %13666 = vmatpush1.bf16.msra.mxu1 %v21287_v24  ;;  %v13730_v33 = vpack.c.bf16 %v13726_v11, %v13726_v11  ;;  %v21298_v28 = vld [vmem:[#allocation20 + $0x110c] ss:$16 sps:$4 sm:$0xff]   ;;  %v21338_v24 = vld [vmem:[#allocation23 + $0x60] ss:$16 sps:$4 sm:$0xff]  }
0x1265   : > { %v11766_v6 = vpop.f32.mrb[111].mxu1  ;;  %13667 = vmatprep.subr.bf16.mxu1 %v21292_v53  ;;  %v24590_v44 = vpack.c.bf16 %v13727_v15, %v13727_v15  ;;  %v21346_v8 = vld [vmem:[#allocation23 + $0x84] ss:$16 sps:$4 sm:$0xff]   ;;  %v21356_v39 = vld [vmem:[#allocation23 + $0xc0] ss:$16 sps:$4 sm:$0xff]  }
0x1266   : > { %v24593_v18 = vsel %vm9112_vm2, %v13730_v33, 0  ;;  %v21352_v53 = vld [vmem:[#allocation23 + $0xa4] ss:$16 sps:$4 sm:$0xff]   ;;  %v21362_v15 = vld [vmem:[#allocation23 + $0xe0] ss:$16 sps:$4 sm:$0xff]  }
0x1267   : > { %17838 = vmatprep.subr.msk.bf16.mxu0 %vm9112_vm2, %v24590_v44  ;;  %v21370_v6 = vld [vmem:[#allocation23 + $0x104] ss:$16 sps:$4 sm:$0xff]  }
0x1268   : > { %13668 = vmatpush1.bf16.msra.mxu1 %v21290_v4  ;;  %13752 = vmatpush1.bf16.msra.mxu0 %v24593_v18  ;;  %v21364_v4 = vld [vmem:[#allocation23 + $0xe4] ss:$16 sps:$4 sm:$0xff]  }
0x1269   : > { %13669 = vmatprep.subr.bf16.mxu1 %v21295_v20  ;;  %v21368_v20 = vld [vmem:[#allocation23 + $0x100] ss:$16 sps:$4 sm:$0xff]   ;;  %v21376_v33 = vld [vmem:[#allocation23 + $0x124] ss:$16 sps:$4 sm:$0xff]  }
0x126b   : > { %17839 = vmatmul.mubr.msk.bf16.vlgmr.msra.gmra.mrb[116].mxu0 %vm13735_vm1, %v24619_v19 }
0x126c   : > { %13670 = vmatpush1.bf16.msra.mxu1 %v21293_v59  ;;  %13824 = vmatprep.mubr.bf16.mxu0 %v22329_v12  ;;  %v21374_v59 = vld [vmem:[#allocation23 + $0x120] ss:$16 sps:$4 sm:$0xff]  }
0x126d   : > { %13671 = vmatprep.subr.bf16.mxu1 %v21298_v28  ;;  %v21382_v28 = vld [vmem:[#allocation23 + $0x144] ss:$16 sps:$4 sm:$0xff]  }
0x1270   : > { %13672 = vmatpush1.bf16.msra.mxu1 %v21296_v17  ;;  %v21380_v17 = vld [vmem:[#allocation23 + $0x140] ss:$16 sps:$4 sm:$0xff]  }
0x1271   : > { %13673 = vmatprep.subr.bf16.mxu1 %v21301_v56  ;;  %v21388_v56 = vld [vmem:[#allocation23 + $0x164] ss:$16 sps:$4 sm:$0xff]  }
0x1274   : > { %13674 = vmatpush1.bf16.msra.mxu1 %v21299_v26  ;;  %v21386_v26 = vld [vmem:[#allocation23 + $0x160] ss:$16 sps:$4 sm:$0xff]  }
0x1275   : > { %13675 = vmatprep.subr.bf16.mxu1 %v21304_v41  ;;  %v21392_v41 = vld [vmem:[#allocation23 + $0x180] ss:$16 sps:$4 sm:$0xff]  }
0x1278   : > { %13676 = vmatpush1.bf16.msra.mxu1 %v21302_v55  ;;  %v21394_v55 = vld [vmem:[#allocation23 + $0x184] ss:$16 sps:$4 sm:$0xff]  }
0x1279   : > { %13677 = vmatprep.subr.bf16.mxu1 %v21307_v46  ;;  %v24632_v46 = vsub.s32 2, %v24391_v32 }
0x127c   : > { %13678 = vmatpush1.bf16.msra.mxu1 %v21305_v27  ;;  %v24635_v27 = vsub.s32 3, %v24391_v32 }
0x127d   : > { %13679 = vmatprep.subr.bf16.mxu1 %v21310_v43  ;;  %v13713_v43 = vrot.slane %v24578_v3, %v24632_v46 }
0x1280   : > { %13680 = vmatpush1.bf16.msra.mxu1 %v21308_v49 }
0x1281   : > { %13681 = vmatprep.subr.bf16.mxu1 %v21313_v5  ;;  %v13717_v5 = vrot.slane %v24578_v3, %v24635_v27  ;;  %v17842_v3 = vld [vmem:[%s24940_s22 + $0x1] sm:$0x1] }
0x1284   : > { %13682 = vmatpush1.bf16.msra.mxu1 %v21311_v54 }
0x1285   : > { %13683 = vmatprep.subr.bf16.mxu1 %v21316_v10 }
0x1288   : > { %13684 = vmatpush1.bf16.msra.mxu1 %v21314_v1 }
0x1289   : > { %13685 = vmatprep.subr.bf16.mxu1 %v21319_v52 }
0x128c   : > { %13686 = vmatpush1.bf16.msra.mxu1 %v21317_v35 }
0x128d   : > { %17848 = vmatprep.subr.msk.bf16.mxu1 %vm9112_vm2, %v24590_v44 }
0x128f   : > { %13688 = vmatmul.mubr.bf16.vlgmr.msra.gmra.mrb[124].mxu1 %v13290_v16 }
0x1290   : > { %13930 = vmatpush1.bf16.msra.mxu1 %v24593_v18  ;;  %13961 = vmatprep.mubr.bf16.mxu1 %v22329_v12 }
0x1291   : > { %17853 = vmatprep.subr.msk.bf16.mxu1 %vm9112_vm2, %v24590_v44 }
0x1297   : > { %17849 = vmatmul.mubr.msk.bf16.vlgmr.msra.gmra.mrb[128].mxu1 %vm13735_vm1, %v24609_v37 }
0x1298   : > { %14021 = vmatpush1.bf16.msra.mxu1 %v24593_v18  ;;  %14052 = vmatprep.mubr.bf16.mxu1 %v22329_v12 }
0x1299   : > { %14900 = vmatprep.subr.bf16.mxu1 %v21322_v47  ;;  %v21359_v47 = vld [vmem:[#allocation23 + $0xc8] ss:$16 sps:$4 sm:$0xff]  }
0x129f   : > { %17854 = vmatmul.mubr.msk.bf16.vlgmr.msra.gmra.mrb[132].mxu1 %vm13735_vm1, %v24627_v48 }
0x12a0   : > { %14901 = vmatpush1.bf16.msra.mxu1 %v21320_v40  ;;  %v21353_v40 = vld [vmem:[#allocation23 + $0xa8] ss:$16 sps:$4 sm:$0xff]  }
0x12a1   : > { %14902 = vmatprep.subr.bf16.mxu1 %v21328_v61  ;;  %v21367_v61 = vld [vmem:[#allocation23 + $0xec] ss:$16 sps:$4 sm:$0xff]  }
0x12a2   : > { %v12240_v34 = vpop.f32.mrb[112].mxu1 }
0x12a3   : > { %v12249_v16 = vadd.f32 %v12240_v34, %v24587_v2  ;;  %v12242_v60 = vpop.f32.mrb[113].mxu1 }
0x12a4   : > { %v12250_v30 = vadd.f32 %v12242_v60, %v11771_v45  ;;  %v12244_v42 = vpop.f32.mrb[114].mxu1  ;;  %14903 = vmatpush1.bf16.msra.mxu1 %v21326_v36  ;;  %v21358_v45 = vld [vmem:[#allocation23 + $0xc4] ss:$16 sps:$4 sm:$0xff]   ;;  %v21365_v36 = vld [vmem:[#allocation23 + $0xe8] ss:$16 sps:$4 sm:$0xff]  }
0x12a5   : > { %v12245_v58 = vpop.f32.mrb[115].mxu1  ;;  %14904 = vmatprep.subr.bf16.mxu1 %v21334_v51  ;;  %v21373_v51 = vld [vmem:[#allocation23 + $0x10c] ss:$16 sps:$4 sm:$0xff]  }
0x12a8   : > { %14905 = vmatpush1.bf16.msra.mxu1 %v21332_v22  ;;  %v21371_v22 = vld [vmem:[#allocation23 + $0x108] ss:$16 sps:$4 sm:$0xff]  }
0x12a9   : > { %14906 = vmatprep.subr.bf16.mxu1 %v21340_v63  ;;  %v21379_v63 = vld [vmem:[#allocation23 + $0x12c] ss:$16 sps:$4 sm:$0xff]  }
0x12ac   : > { %14907 = vmatpush1.bf16.msra.mxu1 %v21338_v24  ;;  %v21377_v24 = vld [vmem:[#allocation23 + $0x128] ss:$16 sps:$4 sm:$0xff]  }
0x12ad   : > { %14908 = vmatprep.subr.bf16.mxu1 %v21346_v8  ;;  %v21385_v8 = vld [vmem:[#allocation23 + $0x14c] ss:$16 sps:$4 sm:$0xff]  }
0x12b0   : > { %14909 = vmatpush1.bf16.msra.mxu1 %v21344_v23  ;;  %v21383_v23 = vld [vmem:[#allocation23 + $0x148] ss:$16 sps:$4 sm:$0xff]  }
0x12b1   : > { %14910 = vmatprep.subr.bf16.mxu1 %v21352_v53  ;;  %v21391_v53 = vld [vmem:[#allocation23 + $0x16c] ss:$16 sps:$4 sm:$0xff]  }
0x12b4   : > { %14911 = vmatpush1.bf16.msra.mxu1 %v21350_v57 }
0x12b5   : > { %14912 = vmatprep.subr.bf16.mxu1 %v21358_v45  ;;  %v21398_v45 = vld [vmem:[#allocation23 + $0x1a0] ss:$16 sps:$4 sm:$0xff]  }
0x12b8   : > { %14913 = vmatpush1.bf16.msra.mxu1 %v21356_v39  ;;  %v21400_v39 = vld [vmem:[#allocation23 + $0x1a4] ss:$16 sps:$4 sm:$0xff]  }
0x12b9   : > { %14914 = vmatprep.subr.bf16.mxu1 %v21364_v4  ;;  %v21401_v4 = vld [vmem:[#allocation23 + $0x1a8] ss:$16 sps:$4 sm:$0xff]  }
0x12bc   : > { %14915 = vmatpush1.bf16.msra.mxu1 %v21362_v15  ;;  %v21403_v15 = vld [vmem:[#allocation23 + $0x1ac] ss:$16 sps:$4 sm:$0xff]  }
0x12bd   : > { %14916 = vmatprep.subr.bf16.mxu1 %v21370_v6 }
0x12c0   : > { %14917 = vmatpush1.bf16.msra.mxu1 %v21368_v20 }
0x12c1   : > { %14918 = vmatprep.subr.bf16.mxu1 %v21376_v33 }
0x12c4   : > { %14919 = vmatpush1.bf16.msra.mxu1 %v21374_v59  ;;  %v21404_v59 = vld [vmem:[#allocation23 + $0x1c0] ss:$16 sps:$4 sm:$0xff]  }
0x12c5   : > { %14920 = vmatprep.subr.bf16.mxu1 %v21382_v28  ;;  %v21406_v28 = vld [vmem:[#allocation23 + $0x1c4] ss:$16 sps:$4 sm:$0xff]  }
0x12c8   : > { %14921 = vmatpush1.bf16.msra.mxu1 %v21380_v17  ;;  %v21407_v17 = vld [vmem:[#allocation23 + $0x1c8] ss:$16 sps:$4 sm:$0xff]  }
0x12c9   : > { %14922 = vmatprep.subr.bf16.mxu1 %v21388_v56  ;;  %v21409_v56 = vld [vmem:[#allocation23 + $0x1cc] ss:$16 sps:$4 sm:$0xff]  }
0x12cc   : > { %14923 = vmatpush1.bf16.msra.mxu1 %v21386_v26 }
0x12cd   : > { %14924 = vmatprep.subr.bf16.mxu1 %v21394_v55 }
0x12d0   : > { %14925 = vmatpush1.bf16.msra.mxu1 %v21392_v41 }
0x12d1   : > { %14926 = vmatprep.subr.bf16.mxu1 %v21400_v39 }
0x12d4   : > { %14927 = vmatpush1.bf16.msra.mxu1 %v21398_v45 }
0x12d5   : > { %14928 = vmatprep.subr.bf16.mxu1 %v21406_v28 }
0x12d8   : > { %14929 = vmatpush1.bf16.msra.mxu1 %v21404_v59  ;;  %v21443_v59 = vld [vmem:[#allocation23 + $0x288] ss:$16 sps:$4 sm:$0xff]  }
0x12e2   : > { %v12719_v14 = vpop.f32.mrb[116].mxu1 }
0x12e3   : > { %v12728_v62 = vadd.f32 %v12719_v14, %v12249_v16  ;;  %v12721_v9 = vpop.f32.mrb[117].mxu1  ;;  %v21331_v14 = vld [vmem:[#allocation23 + $0x2c] ss:$16 sps:$4 sm:$0xff]  }
0x12e4   : > { %v12729_v29 = vadd.f32 %v12721_v9, %v12250_v30  ;;  %v12723_v0 = vpop.f32.mrb[118].mxu1  ;;  %v21337_v9 = vld [vmem:[#allocation23 + $0x4c] ss:$16 sps:$4 sm:$0xff]  }
0x12e5   : > { %v12724_v25 = vpop.f32.mrb[119].mxu1  ;;  %v21343_v0 = vld [vmem:[#allocation23 + $0x6c] ss:$16 sps:$4 sm:$0xff]  }
0x12e6   : > { %v21341_v25 = vld [vmem:[#allocation23 + $0x68] ss:$16 sps:$4 sm:$0xff]  }
0x1322   : > { %v13210_v38 = vpop.f32.mrb[120].mxu1 }
0x1323   : > { %v13219_v13 = vadd.f32 %v13210_v38, %v12728_v62  ;;  %v13212_v50 = vpop.f32.mrb[121].mxu1  ;;  %v21329_v62 = vld [vmem:[#allocation23 + $0x28] ss:$16 sps:$4 sm:$0xff]  }
0x1324   : > { %v13220_v2 = vadd.f32 %v13212_v50, %v12729_v29  ;;  %v13214_v7 = vpop.f32.mrb[122].mxu1  ;;  %v21335_v29 = vld [vmem:[#allocation23 + $0x48] ss:$16 sps:$4 sm:$0xff]  }
0x1325   : > { %v13215_v11 = vpop.f32.mrb[123].mxu1  ;;  %v21389_v38 = vld [vmem:[#allocation23 + $0x168] ss:$16 sps:$4 sm:$0xff]  }
0x1326   : > { %v21395_v50 = vld [vmem:[#allocation23 + $0x188] ss:$16 sps:$4 sm:$0xff]  }
0x133e   : > { %v13785_v57 = vpop.f32.mrb[116].mxu0 }
0x1362   : > { %v13689_v49 = vpop.f32.mrb[124].mxu1 }
0x1363   : > { %v13698_v54 = vadd.f32 %v13689_v49, %v13219_v13  ;;  %v13691_v10 = vpop.f32.mrb[125].mxu1  ;;  %v21397_v13 = vld [vmem:[#allocation23 + $0x18c] ss:$16 sps:$4 sm:$0xff]   ;;  %v21412_v49 = vld [vmem:[#allocation23 + $0x1e4] ss:$16 sps:$4 sm:$0xff]  }
0x1364   : > { %v13699_v1 = vadd.f32 %v13691_v10, %v13220_v2  ;;  %v13693_v52 = vpop.f32.mrb[126].mxu1  ;;  %v13787_v2 = vpop.f32.mrb[117].mxu0  ;;  %14930 = vmatprep.subr.bf16.mxu1 %v21412_v49 }
0x1365   : > { %v13724_v35 = vadd.f32 %v13713_v43, %v13698_v54  ;;  %v13694_v34 = vpop.f32.mrb[127].mxu1  ;;  %v13789_v7 = vpop.f32.mrb[118].mxu0  ;;  %v21410_v43 = vld [vmem:[#allocation23 + $0x1e0] ss:$16 sps:$4 sm:$0xff]   ;;  %v21415_v54 = vld [vmem:[#allocation23 + $0x1ec] ss:$16 sps:$4 sm:$0xff]  }
0x1366   : > { %v13725_v16 = vadd.f32 %v13717_v5, %v13699_v1  ;;  %v13790_v11 = vpop.f32.mrb[119].mxu0  ;;  %v21413_v5 = vld [vmem:[#allocation23 + $0x1e8] ss:$16 sps:$4 sm:$0xff]   ;;  %v21418_v1 = vld [vmem:[#allocation23 + $0x204] ss:$16 sps:$4 sm:$0xff]   ;;  %14931 = vmatpush1.bf16.msra.mxu1 %v21410_v43 }
0x1367   : > { %v13728_v60 = vmax.f32 %v13724_v35, 0.0  ;;  %v21421_v52 = vld [vmem:[#allocation23 + $0x20c] ss:$16 sps:$4 sm:$0xff]   ;;  %14941 = vmatprep.subr.bf16.mxu1 %v21418_v1  ;;  %v21454_v1 = vld [vmem:[#allocation23 + $0x2c4] ss:$16 sps:$4 sm:$0xff]  }
0x1368   : > { %v13729_v30 = vmax.f32 %v13725_v16, 0.0 }
0x1369   : > { %v13732_v42 = vpack.c.bf16 %v13728_v60, %v13728_v60 }
0x136a   : > { %v13733_v58 = vpack.c.bf16 %v13729_v30, %v13729_v30  ;;  %v13963_v6 = vpop.f32.mrb[128].mxu1 }
0x136b   : > { %v13746_v32 = vsel %vm9112_vm2, %v13732_v42, 0  ;;  %v13965_v20 = vpop.f32.mrb[129].mxu1 }
0x136c   : > { %17840 = vmatprep.subr.msk.bf16.mxu0 %vm9112_vm2, %v13733_v58  ;;  %v13967_v33 = vpop.f32.mrb[130].mxu1 }
0x136d   : > { %13793 = vmatpush1.bf16.msra.mxu0 %v13746_v32  ;;  %v13968_v26 = vpop.f32.mrb[131].mxu1  ;;  %v21440_v33 = vld [vmem:[#allocation23 + $0x280] ss:$16 sps:$4 sm:$0xff]  }
0x136e   : > { %17843 = vmatprep.subr.msk.bf16.mxu0 %vm9112_vm2, %v24590_v44  ;;  %v21325_v44 = vld [vmem:[#allocation23 + $0xc] ss:$16 sps:$4 sm:$0xff]  }
0x136f   : > { %v21451_v26 = vld [vmem:[#allocation23 + $0x2ac] ss:$16 sps:$4 sm:$0xff]  }
0x1370   : > { %17841 = vmatmul.mubr.msk.bf16.vlgmr.msra.gmra.mrb[120].mxu0 %vm13735_vm1, %v24619_v19  ;;  %v21355_v19 = vld [vmem:[#allocation23 + $0xac] ss:$16 sps:$4 sm:$0xff]  }
0x1371   : > { %13839 = vmatpush1.bf16.msra.mxu0 %v24593_v18  ;;  %13870 = vmatprep.mubr.bf16.mxu0 %v22329_v12  ;;  %v21323_v18 = vld [vmem:[#allocation23 + $0x8] ss:$16 sps:$4 sm:$0xff]  }
0x1372   : > { %17845 = vmatprep.subr.msk.bf16.mxu0 %vm9112_vm2, %v13733_v58  ;;  %v14054_v41 = vpop.f32.mrb[132].mxu1 }
0x1373   : > { %v14056_v55 = vpop.f32.mrb[133].mxu1 }
0x1374   : > { %v14058_v10 = vpop.f32.mrb[134].mxu1 }
0x1375   : > { %v14059_v35 = vpop.f32.mrb[135].mxu1 }
0x1376   : > { %v21452_v35 = vld [vmem:[#allocation23 + $0x2c0] ss:$16 sps:$4 sm:$0xff]  }
0x1378   : > { %17844 = vmatmul.mubr.msk.bf16.vlgmr.msra.gmra.mrb[124].mxu0 %vm13735_vm1, %v17842_v3 }
0x1379   : > { %13880 = vmatpush1.bf16.msra.mxu0 %v13746_v32  ;;  %13911 = vmatprep.mubr.bf16.mxu0 %v22329_v12 }
0x137a   : > { %17850 = vmatprep.subr.msk.bf16.mxu0 %vm9112_vm2, %v13733_v58 }
0x1380   : > { %17846 = vmatmul.mubr.msk.bf16.vlgmr.msra.gmra.mrb[128].mxu0 %vm13735_vm1, %v17842_v3 }
0x1381   : > { %13971 = vmatpush1.bf16.msra.mxu0 %v13746_v32  ;;  %14002 = vmatprep.mubr.bf16.mxu0 %v22329_v12 }
0x1382   : > { %17855 = vmatprep.subr.msk.bf16.mxu0 %vm9112_vm2, %v13733_v58 }
0x1388   : > { %17851 = vmatmul.mubr.msk.bf16.vlgmr.msra.gmra.mrb[132].mxu0 %vm13735_vm1, %v24609_v37  ;;  %v21349_v37 = vld [vmem:[#allocation23 + $0x8c] ss:$16 sps:$4 sm:$0xff]  }
0x1389   : > { %14062 = vmatpush1.bf16.msra.mxu0 %v13746_v32  ;;  %14093 = vmatprep.mubr.bf16.mxu0 %v22329_v12  ;;  %v21347_v12 = vld [vmem:[#allocation23 + $0x88] ss:$16 sps:$4 sm:$0xff]  }
0x138a   : > { %14982 = vmatprep.subr.bf16.mxu0 %v21325_v44 }
0x1390   : > { %17856 = vmatmul.mubr.msk.bf16.vlgmr.msra.gmra.mrb[136].mxu0 %vm13735_vm1, %v24627_v48  ;;  %v21361_v48 = vld [vmem:[#allocation23 + $0xcc] ss:$16 sps:$4 sm:$0xff]  }
0x1391   : > { %14983 = vmatpush1.bf16.msra.mxu0 %v21323_v18 }
0x1392   : > { %14984 = vmatprep.subr.bf16.mxu0 %v21331_v14 }
0x1395   : > { %14985 = vmatpush1.bf16.msra.mxu0 %v21329_v62 }
0x1396   : > { %14986 = vmatprep.subr.bf16.mxu0 %v21337_v9 }
0x1399   : > { %14987 = vmatpush1.bf16.msra.mxu0 %v21335_v29 }
0x139a   : > { %14988 = vmatprep.subr.bf16.mxu0 %v21343_v0 }
0x139d   : > { %14989 = vmatpush1.bf16.msra.mxu0 %v21341_v25  ;;  %v21416_v25 = vld [vmem:[#allocation23 + $0x200] ss:$16 sps:$4 sm:$0xff]  }
0x139e   : > { %14990 = vmatprep.subr.bf16.mxu0 %v21349_v37  ;;  %v21419_v37 = vld [vmem:[#allocation23 + $0x208] ss:$16 sps:$4 sm:$0xff]  }
0x13a1   : > { %14991 = vmatpush1.bf16.msra.mxu0 %v21347_v12 }
0x13a2   : > { %14992 = vmatprep.subr.bf16.mxu0 %v21355_v19 }
0x13a5   : > { %14993 = vmatpush1.bf16.msra.mxu0 %v21353_v40  ;;  %v21424_v40 = vld [vmem:[#allocation23 + $0x224] ss:$16 sps:$4 sm:$0xff]  }
0x13a6   : > { %14994 = vmatprep.subr.bf16.mxu0 %v21361_v48  ;;  %v21427_v48 = vld [vmem:[#allocation23 + $0x22c] ss:$16 sps:$4 sm:$0xff]  }
0x13a9   : > { %14995 = vmatpush1.bf16.msra.mxu0 %v21359_v47 }
0x13aa   : > { %14996 = vmatprep.subr.bf16.mxu0 %v21367_v61 }
0x13ad   : > { %14997 = vmatpush1.bf16.msra.mxu0 %v21365_v36 }
0x13ae   : > { %14998 = vmatprep.subr.bf16.mxu0 %v21373_v51 }
0x13b1   : > { %14999 = vmatpush1.bf16.msra.mxu0 %v21371_v22 }
0x13b2   : > { %15000 = vmatprep.subr.bf16.mxu0 %v21379_v63  ;;  %v21422_v63 = vld [vmem:[#allocation23 + $0x220] ss:$16 sps:$4 sm:$0xff]  }
0x13b5   : > { %15001 = vmatpush1.bf16.msra.mxu0 %v21377_v24  ;;  %v21425_v24 = vld [vmem:[#allocation23 + $0x228] ss:$16 sps:$4 sm:$0xff]  }
0x13b6   : > { %15002 = vmatprep.subr.bf16.mxu0 %v21385_v8  ;;  %v21430_v8 = vld [vmem:[#allocation23 + $0x244] ss:$16 sps:$4 sm:$0xff]  }
0x13b9   : > { %15003 = vmatpush1.bf16.msra.mxu0 %v21383_v23  ;;  %v21433_v23 = vld [vmem:[#allocation23 + $0x24c] ss:$16 sps:$4 sm:$0xff]  }
0x13ba   : > { %15004 = vmatprep.subr.bf16.mxu0 %v21391_v53  ;;  %v21428_v53 = vld [vmem:[#allocation23 + $0x240] ss:$16 sps:$4 sm:$0xff]  }
0x13bd   : > { %15005 = vmatpush1.bf16.msra.mxu0 %v21389_v38  ;;  %v21431_v38 = vld [vmem:[#allocation23 + $0x248] ss:$16 sps:$4 sm:$0xff]  }
0x13be   : > { %15006 = vmatprep.subr.bf16.mxu0 %v21397_v13 }
0x13c1   : > { %15007 = vmatpush1.bf16.msra.mxu0 %v21395_v50  ;;  %v21436_v50 = vld [vmem:[#allocation23 + $0x264] ss:$16 sps:$4 sm:$0xff]  }
0x13c2   : > { %15008 = vmatprep.subr.bf16.mxu0 %v21403_v15  ;;  %v21437_v15 = vld [vmem:[#allocation23 + $0x268] ss:$16 sps:$4 sm:$0xff]  }
0x13c5   : > { %15009 = vmatpush1.bf16.msra.mxu0 %v21401_v4  ;;  %v21434_v4 = vld [vmem:[#allocation23 + $0x260] ss:$16 sps:$4 sm:$0xff]  }
0x13c6   : > { %15010 = vmatprep.subr.bf16.mxu0 %v21409_v56  ;;  %v21448_v56 = vld [vmem:[#allocation23 + $0x2a4] ss:$16 sps:$4 sm:$0xff]  }
0x13c9   : > { %15011 = vmatpush1.bf16.msra.mxu0 %v21407_v17 }
0x13ca   : > { %15012 = vmatprep.subr.bf16.mxu0 %v21415_v54  ;;  %v21449_v54 = vld [vmem:[#allocation23 + $0x2a8] ss:$16 sps:$4 sm:$0xff]  }
0x13cd   : > { %15013 = vmatpush1.bf16.msra.mxu0 %v21413_v5  ;;  %v21446_v5 = vld [vmem:[#allocation23 + $0x2a0] ss:$16 sps:$4 sm:$0xff]  }
0x13ce   : > { %15023 = vmatprep.subr.bf16.mxu0 %v21421_v52  ;;  %v21457_v52 = vld [vmem:[#allocation23 + $0x2cc] ss:$16 sps:$4 sm:$0xff]  }
0x1443   : > { %v13826_v34 = vpop.f32.mrb[120].mxu0 }
0x1444   : > { %v13828_v16 = vpop.f32.mrb[121].mxu0 }
0x1445   : > { %v13830_v60 = vpop.f32.mrb[122].mxu0 }
0x1446   : > { %v13831_v30 = vpop.f32.mrb[123].mxu0  ;;  %v21463_v60 = vld [vmem:[#allocation23 + $0x2ec] ss:$16 sps:$4 sm:$0xff]  }
0x1447   : > { %v21458_v30 = vld [vmem:[#allocation23 + $0x2e0] ss:$16 sps:$4 sm:$0xff]  }
0x144b   : > { %v13872_v42 = vpop.f32.mrb[124].mxu0 }
0x144c   : > { %v13920_v58 = vmax.f32 %v13785_v57, %v13872_v42  ;;  %v13874_v32 = vpop.f32.mrb[125].mxu0  ;;  %v21439_v57 = vld [vmem:[#allocation23 + $0x26c] ss:$16 sps:$4 sm:$0xff]   ;;  %v21461_v42 = vld [vmem:[#allocation23 + $0x2e8] ss:$16 sps:$4 sm:$0xff]  }
0x144d   : > { %v13921_v3 = vmax.f32 %v13787_v2, %v13874_v32  ;;  %v13876_v44 = vpop.f32.mrb[126].mxu0  ;;  %v21469_v32 = vld [vmem:[#allocation23 + $0x30c] ss:$16 sps:$4 sm:$0xff]  }
0x144e   : > { %v14011_v18 = vmax.f32 %v13920_v58, %v13963_v6  ;;  %v13877_v14 = vpop.f32.mrb[127].mxu0  ;;  %v21442_v6 = vld [vmem:[#allocation23 + $0x284] ss:$16 sps:$4 sm:$0xff]   ;;  %v21467_v44 = vld [vmem:[#allocation23 + $0x308] ss:$16 sps:$4 sm:$0xff]  }
0x144f   : > { %v14012_v62 = vmax.f32 %v13921_v3, %v13965_v20  ;;  %v21445_v20 = vld [vmem:[#allocation23 + $0x28c] ss:$16 sps:$4 sm:$0xff]   ;;  %v21466_v58 = vld [vmem:[#allocation23 + $0x304] ss:$16 sps:$4 sm:$0xff]   ;;  %v21464_v3 = vld [vmem:[#allocation23 + $0x300] ss:$16 sps:$4 sm:$0xff]  }
0x1450   : > { %v14102_v9 = vmax.f32 %v14011_v18, %v14054_v41  ;;  %v21472_v18 = vld [vmem:[#allocation23 + $0x324] ss:$16 sps:$4 sm:$0xff]   ;;  %v21475_v14 = vld [vmem:[#allocation23 + $0x32c] ss:$16 sps:$4 sm:$0xff]  }
0x1451   : > { %v14103_v29 = vmax.f32 %v14012_v62, %v14056_v55  ;;  %v21470_v62 = vld [vmem:[#allocation23 + $0x320] ss:$16 sps:$4 sm:$0xff]  }
0x1452   : > { %v14106_v19 = vpack.c.bf16 %v14102_v9, %v14102_v9  ;;  %v21473_v9 = vld [vmem:[#allocation23 + $0x328] ss:$16 sps:$4 sm:$0xff]  }
0x1453   : > { %v14107_v0 = vpack.c.bf16 %v14103_v29, %v14103_v29  ;;  %v13913_v12 = vpop.f32.mrb[128].mxu0  ;;  %v21478_v29 = vld [vmem:[#allocation23 + $0x344] ss:$16 sps:$4 sm:$0xff]  }
0x1454   : > { %v13922_v47 = vmax.f32 %v13826_v34, %v13913_v12  ;;  %v13915_v61 = vpop.f32.mrb[129].mxu0  ;;  %v21455_v34 = vld [vmem:[#allocation23 + $0x2c8] ss:$16 sps:$4 sm:$0xff]   ;;  %v21484_v12 = vld [vmem:[#allocation23 + $0x364] ss:$16 sps:$4 sm:$0xff]  }
0x1455   : > { %14932 = vmatprep.mubr.bf16.mxu1 %v14107_v0  ;;  %15014 = vmatprep.mubr.bf16.mxu0 %v14107_v0  ;;  %v13923_v36 = vmax.f32 %v13828_v16, %v13915_v61  ;;  %v13917_v51 = vpop.f32.mrb[130].mxu0  ;;  %v21460_v16 = vld [vmem:[#allocation23 + $0x2e4] ss:$16 sps:$4 sm:$0xff]   ;;  %v21481_v0 = vld [vmem:[#allocation23 + $0x34c] ss:$16 sps:$4 sm:$0xff]  }
0x1456   : > { %14933 = vmatmul.mubr.bf16.vlgmr.msra.gmra.mrb[136].mxu1 %v14106_v19  ;;  %15015 = vmatmul.mubr.bf16.vlgmr.msra.gmra.mrb[140].mxu0 %v14106_v19  ;;  %v13918_v22 = vpop.f32.mrb[131].mxu0  ;;  %v21487_v19 = vld [vmem:[#allocation23 + $0x36c] ss:$16 sps:$4 sm:$0xff]   ;;  %v21491_v51 = vld [vmem:[#allocation23 + $0x388] ss:$16 sps:$4 sm:$0xff]  }
0x1457   : > { %14942 = vmatpush1.bf16.msra.mxu1 %v21416_v25  ;;  %15024 = vmatpush1.bf16.msra.mxu0 %v21419_v37  ;;  %v21476_v25 = vld [vmem:[#allocation23 + $0x340] ss:$16 sps:$4 sm:$0xff]   ;;  %v21479_v37 = vld [vmem:[#allocation23 + $0x348] ss:$16 sps:$4 sm:$0xff]   ;;  %v21493_v61 = vld [vmem:[#allocation23 + $0x38c] ss:$16 sps:$4 sm:$0xff]  }
0x1458   : > { %14943 = vmatprep.subr.bf16.mxu1 %v21424_v40  ;;  %15025 = vmatprep.subr.bf16.mxu0 %v21427_v48  ;;  %v21482_v40 = vld [vmem:[#allocation23 + $0x360] ss:$16 sps:$4 sm:$0xff]   ;;  %v21485_v48 = vld [vmem:[#allocation23 + $0x368] ss:$16 sps:$4 sm:$0xff]   ;;  %v21496_v22 = vld [vmem:[#allocation23 + $0x3a4] ss:$16 sps:$4 sm:$0xff]  }
0x145b   : > { %14944 = vmatpush1.bf16.msra.mxu1 %v21422_v63  ;;  %15026 = vmatpush1.bf16.msra.mxu0 %v21425_v24  ;;  %v14004_v13 = vpop.f32.mrb[132].mxu0  ;;  %v21499_v63 = vld [vmem:[#allocation23 + $0x3ac] ss:$16 sps:$4 sm:$0xff]   ;;  %v21494_v24 = vld [vmem:[#allocation23 + $0x3a0] ss:$16 sps:$4 sm:$0xff]  }
0x145c   : > { %14945 = vmatprep.subr.bf16.mxu1 %v21430_v8  ;;  %15027 = vmatprep.subr.bf16.mxu0 %v21433_v23  ;;  %v14013_v2 = vmax.f32 %v13922_v47, %v14004_v13  ;;  %v14006_v7 = vpop.f32.mrb[133].mxu0  ;;  %v21490_v47 = vld [vmem:[#allocation23 + $0x384] ss:$16 sps:$4 sm:$0xff]   ;;  %v21497_v8 = vld [vmem:[#allocation23 + $0x3a8] ss:$16 sps:$4 sm:$0xff]  }
0x145d   : > { %v14014_v11 = vmax.f32 %v13923_v36, %v14006_v7  ;;  %v14008_v45 = vpop.f32.mrb[134].mxu0  ;;  %v21488_v36 = vld [vmem:[#allocation23 + $0x380] ss:$16 sps:$4 sm:$0xff]   ;;  %v21502_v23 = vld [vmem:[#allocation23 + $0x3c4] ss:$16 sps:$4 sm:$0xff]  }
0x145e   : > { %v14009_v39 = vpop.f32.mrb[135].mxu0  ;;  %v21503_v13 = vld [vmem:[#allocation23 + $0x3c8] ss:$16 sps:$4 sm:$0xff]   ;;  %v21517_v45 = vld [vmem:[#allocation26 + $0xc] ss:$16 sps:$4 sm:$0xff]  }
0x145f   : > { %14946 = vmatpush1.bf16.msra.mxu1 %v21428_v53  ;;  %15028 = vmatpush1.bf16.msra.mxu0 %v21431_v38  ;;  %v21505_v53 = vld [vmem:[#allocation23 + $0x3cc] ss:$16 sps:$4 sm:$0xff]   ;;  %v21500_v38 = vld [vmem:[#allocation23 + $0x3c0] ss:$16 sps:$4 sm:$0xff]   ;;  %v21509_v7 = vld [vmem:[#allocation23 + $0x3e8] ss:$16 sps:$4 sm:$0xff]  }
0x1460   : > { %14947 = vmatprep.subr.bf16.mxu1 %v21436_v50  ;;  %15029 = vmatprep.subr.bf16.mxu0 %v21439_v57  ;;  %v21508_v50 = vld [vmem:[#allocation23 + $0x3e4] ss:$16 sps:$4 sm:$0xff]   ;;  %v21511_v57 = vld [vmem:[#allocation23 + $0x3ec] ss:$16 sps:$4 sm:$0xff]  }
0x1461   : > { %v21512_v39 = vld [vmem:[#allocation26] ss:$16 sps:$4 sm:$0xff]  }
0x1463   : > { %14948 = vmatpush1.bf16.msra.mxu1 %v21434_v4  ;;  %15030 = vmatpush1.bf16.msra.mxu0 %v21437_v15  ;;  %v14095_v28 = vpop.f32.mrb[136].mxu0  ;;  %v21515_v4 = vld [vmem:[#allocation26 + $0x8] ss:$16 sps:$4 sm:$0xff]  }
0x1464   : > { %14949 = vmatprep.subr.bf16.mxu1 %v21442_v6  ;;  %15031 = vmatprep.subr.bf16.mxu0 %v21445_v20  ;;  %v24664_v17 = vmax.f32 %v14013_v2, %v14095_v28  ;;  %v14097_v41 = vpop.f32.mrb[137].mxu0  ;;  %v21506_v2 = vld [vmem:[#allocation23 + $0x3e0] ss:$16 sps:$4 sm:$0xff]   ;;  %v21520_v6 = vld [vmem:[#allocation26 + $0x24] ss:$16 sps:$4 sm:$0xff]  }
0x1465   : > { %v14105_v55 = vmax.f32 %v14014_v11, %v14097_v41  ;;  %v14099_v43 = vpop.f32.mrb[138].mxu0  ;;  %v21514_v11 = vld [vmem:[#allocation26 + $0x4] ss:$16 sps:$4 sm:$0xff]   ;;  %v21523_v20 = vld [vmem:[#allocation26 + $0x2c] ss:$16 sps:$4 sm:$0xff]  }
0x1466   : > { %v14100_v49 = vpop.f32.mrb[139].mxu0  ;;  %v14108_v15 = vpack.c.bf16 %v24664_v17, %v24664_v17  ;;  %v21526_v28 = vld [vmem:[#allocation26 + $0x44] ss:$16 sps:$4 sm:$0xff]   ;;  %v21527_v41 = vld [vmem:[#allocation26 + $0x48] ss:$16 sps:$4 sm:$0xff]  }
0x1467   : > { %14950 = vmatpush1.bf16.msra.mxu1 %v21440_v33  ;;  %15032 = vmatpush1.bf16.msra.mxu0 %v21443_v59  ;;  %v14109_v10 = vpack.c.bf16 %v14105_v55, %v14105_v55  ;;  %v21518_v33 = vld [vmem:[#allocation26 + $0x20] ss:$16 sps:$4 sm:$0xff]   ;;  %v21521_v59 = vld [vmem:[#allocation26 + $0x28] ss:$16 sps:$4 sm:$0xff]   ;;  %v21532_v17 = vld [vmem:[#allocation26 + $0x64] ss:$16 sps:$4 sm:$0xff]  }
0x1468   : > { %14951 = vmatprep.subr.bf16.mxu1 %v21448_v56  ;;  %15033 = vmatprep.subr.bf16.mxu0 %v21451_v26  ;;  %v21529_v56 = vld [vmem:[#allocation26 + $0x4c] ss:$16 sps:$4 sm:$0xff]   ;;  %v21524_v26 = vld [vmem:[#allocation26 + $0x40] ss:$16 sps:$4 sm:$0xff]   ;;  %v21533_v49 = vld [vmem:[#allocation26 + $0x68] ss:$16 sps:$4 sm:$0xff]  }
0x1469   : > { %14973 = vmatprep.mubr.bf16.mxu1 %v14109_v10  ;;  %15055 = vmatprep.mubr.bf16.mxu0 %v14109_v10  ;;  %v21535_v55 = vld [vmem:[#allocation26 + $0x6c] ss:$16 sps:$4 sm:$0xff]   ;;  %v21530_v43 = vld [vmem:[#allocation26 + $0x60] ss:$16 sps:$4 sm:$0xff]  }
0x146a   : > { %v21536_v10 = vld [vmem:[#allocation26 + $0x80] ss:$16 sps:$4 sm:$0xff]  }
0x146b   : > { %14952 = vmatpush1.bf16.msra.mxu1 %v21446_v5  ;;  %15034 = vmatpush1.bf16.msra.mxu0 %v21449_v54  ;;  %v21538_v5 = vld [vmem:[#allocation26 + $0x84] ss:$16 sps:$4 sm:$0xff]   ;;  %v21541_v54 = vld [vmem:[#allocation26 + $0x8c] ss:$16 sps:$4 sm:$0xff]  }
0x146c   : > { %14953 = vmatprep.subr.bf16.mxu1 %v21454_v1  ;;  %15035 = vmatprep.subr.bf16.mxu0 %v21457_v52  ;;  %v21539_v1 = vld [vmem:[#allocation26 + $0x88] ss:$16 sps:$4 sm:$0xff]   ;;  %v21544_v52 = vld [vmem:[#allocation26 + $0xa4] ss:$16 sps:$4 sm:$0xff]  }
0x146f   : > { %14954 = vmatpush1.bf16.msra.mxu1 %v21452_v35  ;;  %15036 = vmatpush1.bf16.msra.mxu0 %v21455_v34  ;;  %v21547_v35 = vld [vmem:[#allocation26 + $0xac] ss:$16 sps:$4 sm:$0xff]   ;;  %v21542_v34 = vld [vmem:[#allocation26 + $0xa0] ss:$16 sps:$4 sm:$0xff]  }
0x1470   : > { %14955 = vmatprep.subr.bf16.mxu1 %v21460_v16  ;;  %15037 = vmatprep.subr.bf16.mxu0 %v21463_v60  ;;  %v21545_v16 = vld [vmem:[#allocation26 + $0xa8] ss:$16 sps:$4 sm:$0xff]   ;;  %v21550_v60 = vld [vmem:[#allocation26 + $0xc4] ss:$16 sps:$4 sm:$0xff]  }
0x1473   : > { %14956 = vmatpush1.bf16.msra.mxu1 %v21458_v30  ;;  %15038 = vmatpush1.bf16.msra.mxu0 %v21461_v42  ;;  %v21553_v30 = vld [vmem:[#allocation26 + $0xcc] ss:$16 sps:$4 sm:$0xff]   ;;  %v21548_v42 = vld [vmem:[#allocation26 + $0xc0] ss:$16 sps:$4 sm:$0xff]  }
0x1474   : > { %14957 = vmatprep.subr.bf16.mxu1 %v21466_v58  ;;  %15039 = vmatprep.subr.bf16.mxu0 %v21469_v32  ;;  %v21551_v58 = vld [vmem:[#allocation26 + $0xc8] ss:$16 sps:$4 sm:$0xff]   ;;  %v21556_v32 = vld [vmem:[#allocation26 + $0xe4] ss:$16 sps:$4 sm:$0xff]  }
0x1477   : > { %14958 = vmatpush1.bf16.msra.mxu1 %v21464_v3  ;;  %15040 = vmatpush1.bf16.msra.mxu0 %v21467_v44  ;;  %v21559_v3 = vld [vmem:[#allocation26 + $0xec] ss:$16 sps:$4 sm:$0xff]   ;;  %v21554_v44 = vld [vmem:[#allocation26 + $0xe0] ss:$16 sps:$4 sm:$0xff]  }
0x1478   : > { %14959 = vmatprep.subr.bf16.mxu1 %v21472_v18  ;;  %15041 = vmatprep.subr.bf16.mxu0 %v21475_v14  ;;  %v21557_v18 = vld [vmem:[#allocation26 + $0xe8] ss:$16 sps:$4 sm:$0xff]   ;;  %v21562_v14 = vld [vmem:[#allocation26 + $0x104] ss:$16 sps:$4 sm:$0xff]  }
0x147b   : > { %14960 = vmatpush1.bf16.msra.mxu1 %v21470_v62  ;;  %15042 = vmatpush1.bf16.msra.mxu0 %v21473_v9  ;;  %v21565_v62 = vld [vmem:[#allocation26 + $0x10c] ss:$16 sps:$4 sm:$0xff]   ;;  %v21560_v9 = vld [vmem:[#allocation26 + $0x100] ss:$16 sps:$4 sm:$0xff]  }
0x147c   : > { %14961 = vmatprep.subr.bf16.mxu1 %v21478_v29  ;;  %15043 = vmatprep.subr.bf16.mxu0 %v21481_v0  ;;  %v21563_v29 = vld [vmem:[#allocation26 + $0x108] ss:$16 sps:$4 sm:$0xff]   ;;  %v21568_v0 = vld [vmem:[#allocation26 + $0x124] ss:$16 sps:$4 sm:$0xff]  }
0x147f   : > { %14962 = vmatpush1.bf16.msra.mxu1 %v21476_v25  ;;  %15044 = vmatpush1.bf16.msra.mxu0 %v21479_v37  ;;  %v21571_v25 = vld [vmem:[#allocation26 + $0x12c] ss:$16 sps:$4 sm:$0xff]   ;;  %v21566_v37 = vld [vmem:[#allocation26 + $0x120] ss:$16 sps:$4 sm:$0xff]  }
0x1480   : > { %14963 = vmatprep.subr.bf16.mxu1 %v21484_v12  ;;  %15045 = vmatprep.subr.bf16.mxu0 %v21487_v19  ;;  %v21569_v12 = vld [vmem:[#allocation26 + $0x128] ss:$16 sps:$4 sm:$0xff]   ;;  %v21574_v19 = vld [vmem:[#allocation26 + $0x144] ss:$16 sps:$4 sm:$0xff]  }
0x1483   : > { %14964 = vmatpush1.bf16.msra.mxu1 %v21482_v40  ;;  %15046 = vmatpush1.bf16.msra.mxu0 %v21485_v48  ;;  %v21577_v40 = vld [vmem:[#allocation26 + $0x14c] ss:$16 sps:$4 sm:$0xff]   ;;  %v21572_v48 = vld [vmem:[#allocation26 + $0x140] ss:$16 sps:$4 sm:$0xff]  }
0x1484   : > { %14965 = vmatprep.subr.bf16.mxu1 %v21490_v47  ;;  %15047 = vmatprep.subr.bf16.mxu0 %v21493_v61  ;;  %v21575_v47 = vld [vmem:[#allocation26 + $0x148] ss:$16 sps:$4 sm:$0xff]   ;;  %v21580_v61 = vld [vmem:[#allocation26 + $0x164] ss:$16 sps:$4 sm:$0xff]  }
0x1487   : > { %14966 = vmatpush1.bf16.msra.mxu1 %v21488_v36  ;;  %15048 = vmatpush1.bf16.msra.mxu0 %v21491_v51  ;;  %v21583_v36 = vld [vmem:[#allocation26 + $0x16c] ss:$16 sps:$4 sm:$0xff]   ;;  %v21578_v51 = vld [vmem:[#allocation26 + $0x160] ss:$16 sps:$4 sm:$0xff]  }
0x1488   : > { %14967 = vmatprep.subr.bf16.mxu1 %v21496_v22  ;;  %15049 = vmatprep.subr.bf16.mxu0 %v21499_v63  ;;  %v21581_v22 = vld [vmem:[#allocation26 + $0x168] ss:$16 sps:$4 sm:$0xff]   ;;  %v21586_v63 = vld [vmem:[#allocation26 + $0x184] ss:$16 sps:$4 sm:$0xff]  }
0x148b   : > { %14968 = vmatpush1.bf16.msra.mxu1 %v21494_v24  ;;  %15050 = vmatpush1.bf16.msra.mxu0 %v21497_v8  ;;  %v21589_v24 = vld [vmem:[#allocation26 + $0x18c] ss:$16 sps:$4 sm:$0xff]   ;;  %v21584_v8 = vld [vmem:[#allocation26 + $0x180] ss:$16 sps:$4 sm:$0xff]  }
0x148c   : > { %14969 = vmatprep.subr.bf16.mxu1 %v21502_v23  ;;  %15051 = vmatprep.subr.bf16.mxu0 %v21505_v53  ;;  %v21587_v23 = vld [vmem:[#allocation26 + $0x188] ss:$16 sps:$4 sm:$0xff]   ;;  %v21592_v53 = vld [vmem:[#allocation26 + $0x1a4] ss:$16 sps:$4 sm:$0xff]  }
0x148f   : > { %14970 = vmatpush1.bf16.msra.mxu1 %v21500_v38  ;;  %15052 = vmatpush1.bf16.msra.mxu0 %v21503_v13  ;;  %v21595_v38 = vld [vmem:[#allocation26 + $0x1ac] ss:$16 sps:$4 sm:$0xff]   ;;  %v21590_v13 = vld [vmem:[#allocation26 + $0x1a0] ss:$16 sps:$4 sm:$0xff]  }
0x1490   : > { %14971 = vmatprep.subr.bf16.mxu1 %v21508_v50  ;;  %15053 = vmatprep.subr.bf16.mxu0 %v21511_v57  ;;  %v21593_v50 = vld [vmem:[#allocation26 + $0x1a8] ss:$16 sps:$4 sm:$0xff]   ;;  %v21596_v57 = vld [vmem:[#allocation26 + $0x1c0] ss:$16 sps:$4 sm:$0xff]  }
0x1493   : > { %14972 = vmatpush1.bf16.msra.mxu1 %v21506_v2  ;;  %15054 = vmatpush1.bf16.msra.mxu0 %v21509_v7  ;;  %v21598_v2 = vld [vmem:[#allocation26 + $0x1c4] ss:$16 sps:$4 sm:$0xff]   ;;  %v21599_v7 = vld [vmem:[#allocation26 + $0x1c8] ss:$16 sps:$4 sm:$0xff]  }
0x1494   : > { %15862 = vmatprep.subr.bf16.mxu1 %v21514_v11  ;;  %15944 = vmatprep.subr.bf16.mxu0 %v21517_v45  ;;  %v21601_v11 = vld [vmem:[#allocation26 + $0x1cc] ss:$16 sps:$4 sm:$0xff]   ;;  %v21604_v45 = vld [vmem:[#allocation26 + $0x1e4] ss:$16 sps:$4 sm:$0xff]  }
0x1496   : > { %14974 = vmatmul.mubr.bf16.vlgmr.msra.gmra.mrb[136].mxu1 %v14108_v15  ;;  %15056 = vmatmul.mubr.bf16.vlgmr.msra.gmra.mrb[140].mxu0 %v14108_v15  ;;  %v21605_v15 = vld [vmem:[#allocation26 + $0x1e8] ss:$16 sps:$4 sm:$0xff]  }
0x1497   : > { %15863 = vmatpush1.bf16.msra.mxu1 %v21512_v39  ;;  %15945 = vmatpush1.bf16.msra.mxu0 %v21515_v4  ;;  %v21607_v39 = vld [vmem:[#allocation26 + $0x1ec] ss:$16 sps:$4 sm:$0xff]   ;;  %v21602_v4 = vld [vmem:[#allocation26 + $0x1e0] ss:$16 sps:$4 sm:$0xff]  }
0x1498   : > { %15864 = vmatprep.subr.bf16.mxu1 %v21520_v6  ;;  %15946 = vmatprep.subr.bf16.mxu0 %v21523_v20  ;;  %v21610_v6 = vld [vmem:[#allocation26 + $0x204] ss:$16 sps:$4 sm:$0xff]   ;;  %v21613_v20 = vld [vmem:[#allocation26 + $0x20c] ss:$16 sps:$4 sm:$0xff]  }
0x149b   : > { %15865 = vmatpush1.bf16.msra.mxu1 %v21518_v33  ;;  %15947 = vmatpush1.bf16.msra.mxu0 %v21521_v59  ;;  %v24668_v33 = vld [vmem:[#allocation25] sm:$0xf] }
0x149c   : > { %15866 = vmatprep.subr.bf16.mxu1 %v21526_v28  ;;  %15948 = vmatprep.subr.bf16.mxu0 %v21529_v56  ;;  %v14883_v59 = vrot.slane %v24668_v33, %v24394_v31  ;;  %v14887_v28 = vrot.slane %v24668_v33, %v24397_v21  ;;  %v14895_v56 = vrot.slane %v24668_v33, %v24635_v27 }
0x149f   : > { %15867 = vmatpush1.bf16.msra.mxu1 %v21524_v26  ;;  %15949 = vmatpush1.bf16.msra.mxu0 %v21527_v41 }
0x14a0   : > { %15868 = vmatprep.subr.bf16.mxu1 %v21532_v17  ;;  %15950 = vmatprep.subr.bf16.mxu0 %v21535_v55 }
0x14a3   : > { %15869 = vmatpush1.bf16.msra.mxu1 %v21530_v43  ;;  %15951 = vmatpush1.bf16.msra.mxu0 %v21533_v49 }
0x14a4   : > { %15870 = vmatprep.subr.bf16.mxu1 %v21538_v5  ;;  %15952 = vmatprep.subr.bf16.mxu0 %v21541_v54 }
0x14a7   : > { %15871 = vmatpush1.bf16.msra.mxu1 %v21536_v10  ;;  %15953 = vmatpush1.bf16.msra.mxu0 %v21539_v1 }
0x14a8   : > { %15872 = vmatprep.subr.bf16.mxu1 %v21544_v52  ;;  %15954 = vmatprep.subr.bf16.mxu0 %v21547_v35 }
0x14ab   : > { %15873 = vmatpush1.bf16.msra.mxu1 %v21542_v34  ;;  %15955 = vmatpush1.bf16.msra.mxu0 %v21545_v16 }
0x14ac   : > { %15874 = vmatprep.subr.bf16.mxu1 %v21550_v60  ;;  %15956 = vmatprep.subr.bf16.mxu0 %v21553_v30  ;;  %v21608_v30 = vld [vmem:[#allocation26 + $0x200] ss:$16 sps:$4 sm:$0xff]  }
0x14af   : > { %15875 = vmatpush1.bf16.msra.mxu1 %v21548_v42  ;;  %15957 = vmatpush1.bf16.msra.mxu0 %v21551_v58  ;;  %v21611_v42 = vld [vmem:[#allocation26 + $0x208] ss:$16 sps:$4 sm:$0xff]  }
0x14b0   : > { %15876 = vmatprep.subr.bf16.mxu1 %v21556_v32  ;;  %15958 = vmatprep.subr.bf16.mxu0 %v21559_v3  ;;  %v21616_v32 = vld [vmem:[#allocation26 + $0x224] ss:$16 sps:$4 sm:$0xff]   ;;  %v21619_v3 = vld [vmem:[#allocation26 + $0x22c] ss:$16 sps:$4 sm:$0xff]  }
0x14b3   : > { %15877 = vmatpush1.bf16.msra.mxu1 %v21554_v44  ;;  %15959 = vmatpush1.bf16.msra.mxu0 %v21557_v18  ;;  %v21614_v18 = vld [vmem:[#allocation26 + $0x220] ss:$16 sps:$4 sm:$0xff]  }
0x14b4   : > { %15878 = vmatprep.subr.bf16.mxu1 %v21562_v14  ;;  %15960 = vmatprep.subr.bf16.mxu0 %v21565_v62  ;;  %v21617_v14 = vld [vmem:[#allocation26 + $0x228] ss:$16 sps:$4 sm:$0xff]   ;;  %v21622_v62 = vld [vmem:[#allocation26 + $0x244] ss:$16 sps:$4 sm:$0xff]  }
0x14b7   : > { %15879 = vmatpush1.bf16.msra.mxu1 %v21560_v9  ;;  %15961 = vmatpush1.bf16.msra.mxu0 %v21563_v29  ;;  %v21625_v9 = vld [vmem:[#allocation26 + $0x24c] ss:$16 sps:$4 sm:$0xff]   ;;  %v21620_v29 = vld [vmem:[#allocation26 + $0x240] ss:$16 sps:$4 sm:$0xff]  }
0x14b8   : > { %15880 = vmatprep.subr.bf16.mxu1 %v21568_v0  ;;  %15962 = vmatprep.subr.bf16.mxu0 %v21571_v25  ;;  %v21623_v0 = vld [vmem:[#allocation26 + $0x248] ss:$16 sps:$4 sm:$0xff]   ;;  %v21628_v25 = vld [vmem:[#allocation26 + $0x264] ss:$16 sps:$4 sm:$0xff]  }
0x14bb   : > { %15881 = vmatpush1.bf16.msra.mxu1 %v21566_v37  ;;  %15963 = vmatpush1.bf16.msra.mxu0 %v21569_v12  ;;  %v21631_v37 = vld [vmem:[#allocation26 + $0x26c] ss:$16 sps:$4 sm:$0xff]   ;;  %v21626_v12 = vld [vmem:[#allocation26 + $0x260] ss:$16 sps:$4 sm:$0xff]  }
0x14bc   : > { %15882 = vmatprep.subr.bf16.mxu1 %v21574_v19  ;;  %15964 = vmatprep.subr.bf16.mxu0 %v21577_v40  ;;  %v21629_v19 = vld [vmem:[#allocation26 + $0x268] ss:$16 sps:$4 sm:$0xff]   ;;  %v21634_v40 = vld [vmem:[#allocation26 + $0x284] ss:$16 sps:$4 sm:$0xff]  }
0x14bf   : > { %15883 = vmatpush1.bf16.msra.mxu1 %v21572_v48  ;;  %15965 = vmatpush1.bf16.msra.mxu0 %v21575_v47  ;;  %v21637_v48 = vld [vmem:[#allocation26 + $0x28c] ss:$16 sps:$4 sm:$0xff]   ;;  %v21632_v47 = vld [vmem:[#allocation26 + $0x280] ss:$16 sps:$4 sm:$0xff]  }
0x14c0   : > { %15884 = vmatprep.subr.bf16.mxu1 %v21580_v61  ;;  %15966 = vmatprep.subr.bf16.mxu0 %v21583_v36  ;;  %v21635_v61 = vld [vmem:[#allocation26 + $0x288] ss:$16 sps:$4 sm:$0xff]   ;;  %v21640_v36 = vld [vmem:[#allocation26 + $0x2a4] ss:$16 sps:$4 sm:$0xff]  }
0x14c3   : > { %15885 = vmatpush1.bf16.msra.mxu1 %v21578_v51  ;;  %15967 = vmatpush1.bf16.msra.mxu0 %v21581_v22  ;;  %v21643_v51 = vld [vmem:[#allocation26 + $0x2ac] ss:$16 sps:$4 sm:$0xff]   ;;  %v21638_v22 = vld [vmem:[#allocation26 + $0x2a0] ss:$16 sps:$4 sm:$0xff]  }
0x14c4   : > { %15886 = vmatprep.subr.bf16.mxu1 %v21586_v63  ;;  %15968 = vmatprep.subr.bf16.mxu0 %v21589_v24  ;;  %v21641_v63 = vld [vmem:[#allocation26 + $0x2a8] ss:$16 sps:$4 sm:$0xff]   ;;  %v21646_v24 = vld [vmem:[#allocation26 + $0x2c4] ss:$16 sps:$4 sm:$0xff]  }
0x14c7   : > { %15887 = vmatpush1.bf16.msra.mxu1 %v21584_v8  ;;  %15969 = vmatpush1.bf16.msra.mxu0 %v21587_v23  ;;  %v21649_v8 = vld [vmem:[#allocation26 + $0x2cc] ss:$16 sps:$4 sm:$0xff]   ;;  %v21644_v23 = vld [vmem:[#allocation26 + $0x2c0] ss:$16 sps:$4 sm:$0xff]  }
0x14c8   : > { %15888 = vmatprep.subr.bf16.mxu1 %v21592_v53  ;;  %15970 = vmatprep.subr.bf16.mxu0 %v21595_v38  ;;  %v21647_v53 = vld [vmem:[#allocation26 + $0x2c8] ss:$16 sps:$4 sm:$0xff]   ;;  %v21652_v38 = vld [vmem:[#allocation26 + $0x2e4] ss:$16 sps:$4 sm:$0xff]  }
0x14cb   : > { %15889 = vmatpush1.bf16.msra.mxu1 %v21590_v13  ;;  %15971 = vmatpush1.bf16.msra.mxu0 %v21593_v50  ;;  %v21655_v13 = vld [vmem:[#allocation26 + $0x2ec] ss:$16 sps:$4 sm:$0xff]   ;;  %v21650_v50 = vld [vmem:[#allocation26 + $0x2e0] ss:$16 sps:$4 sm:$0xff]  }
0x14cc   : > { %15890 = vmatprep.subr.bf16.mxu1 %v21598_v2  ;;  %15972 = vmatprep.subr.bf16.mxu0 %v21601_v11  ;;  %v21658_v2 = vld [vmem:[#allocation26 + $0x304] ss:$16 sps:$4 sm:$0xff]   ;;  %v21656_v11 = vld [vmem:[#allocation26 + $0x300] ss:$16 sps:$4 sm:$0xff]  }
0x14cf   : > { %15891 = vmatpush1.bf16.msra.mxu1 %v21596_v57  ;;  %15973 = vmatpush1.bf16.msra.mxu0 %v21599_v7  ;;  %v21653_v57 = vld [vmem:[#allocation26 + $0x2e8] ss:$16 sps:$4 sm:$0xff]   ;;  %v21661_v7 = vld [vmem:[#allocation26 + $0x30c] ss:$16 sps:$4 sm:$0xff]  }
0x14d0   : > { %15892 = vmatprep.subr.bf16.mxu1 %v21604_v45  ;;  %15974 = vmatprep.subr.bf16.mxu0 %v21607_v39  ;;  %v21659_v45 = vld [vmem:[#allocation26 + $0x308] ss:$16 sps:$4 sm:$0xff]   ;;  %v21664_v39 = vld [vmem:[#allocation26 + $0x324] ss:$16 sps:$4 sm:$0xff]  }
0x14d3   : > { %15893 = vmatpush1.bf16.msra.mxu1 %v21602_v4  ;;  %15975 = vmatpush1.bf16.msra.mxu0 %v21605_v15  ;;  %v21667_v4 = vld [vmem:[#allocation26 + $0x32c] ss:$16 sps:$4 sm:$0xff]   ;;  %v21662_v15 = vld [vmem:[#allocation26 + $0x320] ss:$16 sps:$4 sm:$0xff]  }
0x14d4   : > { %15903 = vmatprep.subr.bf16.mxu1 %v21610_v6  ;;  %15985 = vmatprep.subr.bf16.mxu0 %v21613_v20  ;;  %v21665_v6 = vld [vmem:[#allocation26 + $0x328] ss:$16 sps:$4 sm:$0xff]   ;;  %v21670_v20 = vld [vmem:[#allocation26 + $0x344] ss:$16 sps:$4 sm:$0xff]  }
0x1569   : > { %v14975_v26 = vpop.f32.mrb[136].mxu1  ;;  %v24676_v41 = vpop.f32.mrb[140].mxu0 }
0x156a   : > { %v19444_v17 = vadd.f32 %v14975_v26, %v14883_v59  ;;  %v14977_v55 = vpop.f32.mrb[137].mxu1  ;;  %v15059_v43 = vpop.f32.mrb[141].mxu0  ;;  %v21673_v59 = vld [vmem:[#allocation26 + $0x34c] ss:$16 sps:$4 sm:$0xff]   ;;  %v21676_v26 = vld [vmem:[#allocation26 + $0x364] ss:$16 sps:$4 sm:$0xff]  }
0x156b   : > { %v19445_v49 = vadd.f32 %v14977_v55, %v14887_v28  ;;  %v19447_v5 = vadd.f32 %v15059_v43, %v14895_v56  ;;  %v14979_v54 = vpop.f32.mrb[138].mxu1  ;;  %v15061_v10 = vpop.f32.mrb[142].mxu0  ;;  %v21668_v28 = vld [vmem:[#allocation26 + $0x340] ss:$16 sps:$4 sm:$0xff]   ;;  %v21671_v56 = vld [vmem:[#allocation26 + $0x348] ss:$16 sps:$4 sm:$0xff]  }
0x156c   : > { %v15064_v1 = vmax.f32 %v19444_v17, 0.0  ;;  %v14980_v52 = vpop.f32.mrb[139].mxu1  ;;  %v15062_v35 = vpop.f32.mrb[143].mxu0  ;;  %v21679_v17 = vld [vmem:[#allocation26 + $0x36c] ss:$16 sps:$4 sm:$0xff]  }
0x156d   : > { %v15065_v34 = vmax.f32 %v19445_v49, 0.0  ;;  %v15067_v16 = vmax.f32 %v19447_v5, 0.0  ;;  %v21674_v55 = vld [vmem:[#allocation26 + $0x360] ss:$16 sps:$4 sm:$0xff]   ;;  %v21677_v43 = vld [vmem:[#allocation26 + $0x368] ss:$16 sps:$4 sm:$0xff]  }
0x156e   : > { %v15068_v58 = vpack.c.bf16 %v15064_v1, %v15064_v1  ;;  %v21682_v49 = vld [vmem:[#allocation26 + $0x384] ss:$16 sps:$4 sm:$0xff]   ;;  %v21685_v5 = vld [vmem:[#allocation26 + $0x38c] ss:$16 sps:$4 sm:$0xff]   ;;  %v21680_v54 = vld [vmem:[#allocation26 + $0x380] ss:$16 sps:$4 sm:$0xff]  }
0x156f   : > { %v15069_v60 = vpack.c.bf16 %v15065_v34, %v15065_v34  ;;  %v15071_v44 = vpack.c.bf16 %v15067_v16, %v15067_v16  ;;  %v21683_v10 = vld [vmem:[#allocation26 + $0x388] ss:$16 sps:$4 sm:$0xff]   ;;  %v21688_v1 = vld [vmem:[#allocation26 + $0x3a4] ss:$16 sps:$4 sm:$0xff]   ;;  %v21691_v52 = vld [vmem:[#allocation26 + $0x3ac] ss:$16 sps:$4 sm:$0xff]   ;;  %v14891_v16 = vrot.slane %v24668_v33, %v24632_v46 }
0x1570   : > { %v21686_v35 = vld [vmem:[#allocation26 + $0x3a0] ss:$16 sps:$4 sm:$0xff]   ;;  %v21689_v34 = vld [vmem:[#allocation26 + $0x3a8] ss:$16 sps:$4 sm:$0xff]  }
0x1571   : > { %15894 = vmatprep.mubr.bf16.mxu1 %v15069_v60  ;;  %15976 = vmatprep.mubr.bf16.mxu0 %v15069_v60  ;;  %v21694_v60 = vld [vmem:[#allocation26 + $0x3c4] ss:$16 sps:$4 sm:$0xff]  }
0x1572   : > { %15895 = vmatmul.mubr.bf16.vlgmr.msra.gmra.mrb[140].mxu1 %v15068_v58  ;;  %15977 = vmatmul.mubr.bf16.vlgmr.msra.gmra.mrb[144].mxu0 %v15068_v58  ;;  %v21695_v58 = vld [vmem:[#allocation26 + $0x3c8] ss:$16 sps:$4 sm:$0xff]   ;;  %v21704_v33 = vld [vmem:[%s24941_s23 + $0x40] sm:$0xff]  }
0x1573   : > { %15904 = vmatpush1.bf16.msra.mxu1 %v21608_v30  ;;  %15986 = vmatpush1.bf16.msra.mxu0 %v21611_v42  ;;  %v21697_v30 = vld [vmem:[#allocation26 + $0x3cc] ss:$16 sps:$4 sm:$0xff]   ;;  %v21692_v42 = vld [vmem:[#allocation26 + $0x3c0] ss:$16 sps:$4 sm:$0xff]  }
0x1574   : > { %15935 = vmatprep.mubr.bf16.mxu1 %v15071_v44  ;;  %16017 = vmatprep.mubr.bf16.mxu0 %v15071_v44  ;;  %v21703_v44 = vld [vmem:[#allocation26 + $0x3ec] ss:$16 sps:$4 sm:$0xff]  }
0x1575   : > { %15905 = vmatprep.subr.bf16.mxu1 %v21616_v32  ;;  %15987 = vmatprep.subr.bf16.mxu0 %v21619_v3  ;;  %v19446_v32 = vadd.f32 %v24676_v41, %v14891_v16  ;;  %v21700_v3 = vld [vmem:[#allocation26 + $0x3e4] ss:$16 sps:$4 sm:$0xff]  }
0x1576   : > { %v21706_v41 = vld [vmem:[%s24941_s23] sm:$0xff]  }
0x1577   : > { %15906 = vmatpush1.bf16.msra.mxu1 %v21614_v18  ;;  %15988 = vmatpush1.bf16.msra.mxu0 %v21617_v14  ;;  %v21698_v18 = vld [vmem:[#allocation26 + $0x3e0] ss:$16 sps:$4 sm:$0xff]   ;;  %v21701_v14 = vld [vmem:[#allocation26 + $0x3e8] ss:$16 sps:$4 sm:$0xff]  }
0x1578   : > { %15907 = vmatprep.subr.bf16.mxu1 %v21622_v62  ;;  %15989 = vmatprep.subr.bf16.mxu0 %v21625_v9  ;;  %v15066_v62 = vmax.f32 %v19446_v32, 0.0  ;;  %v21705_v9 = vld [vmem:[%s24941_s23 + $0xc0] sm:$0xff]  }
0x157b   : > { %15908 = vmatpush1.bf16.msra.mxu1 %v21620_v29  ;;  %15990 = vmatpush1.bf16.msra.mxu0 %v21623_v0  ;;  %v21707_v29 = vld [vmem:[%s24941_s23 + $0x80] sm:$0xff]   ;;  %v15070_v0 = vpack.c.bf16 %v15066_v62, %v15066_v62 }
0x157c   : > { %15909 = vmatprep.subr.bf16.mxu1 %v21628_v25  ;;  %15991 = vmatprep.subr.bf16.mxu0 %v21631_v37  ;;  %v21708_v25 = vld [vmem:[%s24941_s23 + $0x48] sm:$0xff]  }
0x157d   : > { %v21709_v37 = vld [vmem:[%s24941_s23 + $0xc8] sm:$0xff]  }
0x157f   : > { %15910 = vmatpush1.bf16.msra.mxu1 %v21626_v12  ;;  %15992 = vmatpush1.bf16.msra.mxu0 %v21629_v19  ;;  %v21710_v12 = vld [vmem:[%s24941_s23 + $0x8] sm:$0xff]  }
0x1580   : > { %15911 = vmatprep.subr.bf16.mxu1 %v21634_v40  ;;  %15993 = vmatprep.subr.bf16.mxu0 %v21637_v48  ;;  %v21711_v19 = vld [vmem:[%s24941_s23 + $0x88] sm:$0xff]   ;;  %v21712_v40 = vld [vmem:[%s24941_s23 + $0x50] sm:$0xff]  }
0x1581   : > { %v21713_v48 = vld [vmem:[%s24941_s23 + $0xd0] sm:$0xff]  }
0x1583   : > { %15912 = vmatpush1.bf16.msra.mxu1 %v21632_v47  ;;  %15994 = vmatpush1.bf16.msra.mxu0 %v21635_v61  ;;  %v21714_v47 = vld [vmem:[%s24941_s23 + $0x10] sm:$0xff]  }
0x1584   : > { %15913 = vmatprep.subr.bf16.mxu1 %v21640_v36  ;;  %15995 = vmatprep.subr.bf16.mxu0 %v21643_v51  ;;  %v21715_v61 = vld [vmem:[%s24941_s23 + $0x90] sm:$0xff]   ;;  %v21716_v36 = vld [vmem:[%s24941_s23 + $0x58] sm:$0xff]  }
0x1585   : > { %v21717_v51 = vld [vmem:[%s24941_s23 + $0xd8] sm:$0xff]  }
0x1587   : > { %15914 = vmatpush1.bf16.msra.mxu1 %v21638_v22  ;;  %15996 = vmatpush1.bf16.msra.mxu0 %v21641_v63  ;;  %v21718_v22 = vld [vmem:[%s24941_s23 + $0x18] sm:$0xff]  }
0x1588   : > { %15915 = vmatprep.subr.bf16.mxu1 %v21646_v24  ;;  %15997 = vmatprep.subr.bf16.mxu0 %v21649_v8  ;;  %v21719_v63 = vld [vmem:[%s24941_s23 + $0x98] sm:$0xff]   ;;  %v21720_v24 = vld [vmem:[%s24941_s23 + $0x60] sm:$0xff]  }
0x1589   : > { %v21721_v8 = vld [vmem:[%s24941_s23 + $0xe0] sm:$0xff]  }
0x158b   : > { %15916 = vmatpush1.bf16.msra.mxu1 %v21644_v23  ;;  %15998 = vmatpush1.bf16.msra.mxu0 %v21647_v53  ;;  %v21722_v23 = vld [vmem:[%s24941_s23 + $0x20] sm:$0xff]  }
0x158c   : > { %15917 = vmatprep.subr.bf16.mxu1 %v21652_v38  ;;  %15999 = vmatprep.subr.bf16.mxu0 %v21655_v13  ;;  %v21723_v53 = vld [vmem:[%s24941_s23 + $0xa0] sm:$0xff]   ;;  %v21724_v38 = vld [vmem:[%s24941_s23 + $0x68] sm:$0xff]  }
0x158d   : > { %v21725_v13 = vld [vmem:[%s24941_s23 + $0xe8] sm:$0xff]  }
0x158f   : > { %15918 = vmatpush1.bf16.msra.mxu1 %v21650_v50  ;;  %16000 = vmatpush1.bf16.msra.mxu0 %v21653_v57  ;;  %v21726_v50 = vld [vmem:[%s24941_s23 + $0x28] sm:$0xff]  }
0x1590   : > { %15919 = vmatprep.subr.bf16.mxu1 %v21658_v2  ;;  %16001 = vmatprep.subr.bf16.mxu0 %v21661_v7  ;;  %v21727_v57 = vld [vmem:[%s24941_s23 + $0xa8] sm:$0xff]   ;;  %v21728_v2 = vld [vmem:[%s24941_s23 + $0x70] sm:$0xff]  }
0x1591   : > { %v21729_v7 = vld [vmem:[%s24941_s23 + $0xf0] sm:$0xff]  }
0x1593   : > { %15920 = vmatpush1.bf16.msra.mxu1 %v21656_v11  ;;  %16002 = vmatpush1.bf16.msra.mxu0 %v21659_v45  ;;  %v21730_v11 = vld [vmem:[%s24941_s23 + $0x30] sm:$0xff]  }
0x1594   : > { %15921 = vmatprep.subr.bf16.mxu1 %v21664_v39  ;;  %16003 = vmatprep.subr.bf16.mxu0 %v21667_v4  ;;  %v21731_v45 = vld [vmem:[%s24941_s23 + $0xb0] sm:$0xff]   ;;  %v21732_v39 = vld [vmem:[%s24941_s23 + $0x78] sm:$0xff]  }
0x1595   : > { %v21733_v4 = vld [vmem:[%s24941_s23 + $0xf8] sm:$0xff]  }
0x1597   : > { %15922 = vmatpush1.bf16.msra.mxu1 %v21662_v15  ;;  %16004 = vmatpush1.bf16.msra.mxu0 %v21665_v6  ;;  %v21734_v15 = vld [vmem:[%s24941_s23 + $0x38] sm:$0xff]  }
0x1598   : > { %15923 = vmatprep.subr.bf16.mxu1 %v21670_v20  ;;  %16005 = vmatprep.subr.bf16.mxu0 %v21673_v59  ;;  %v21735_v6 = vld [vmem:[%s24941_s23 + $0xb8] sm:$0xff]   ;;  %v15200_v20 = vld [vmem:[#allocation28] sm:$0xf] }
0x1599   : > { %v15845_v59 = vrot.slane %v15200_v20, %v24394_v31 }
0x159b   : > { %15924 = vmatpush1.bf16.msra.mxu1 %v21668_v28  ;;  %16006 = vmatpush1.bf16.msra.mxu0 %v21671_v56  ;;  %v15853_v28 = vrot.slane %v15200_v20, %v24632_v46  ;;  %v15849_v56 = vrot.slane %v15200_v20, %v24397_v21 }
0x159c   : > { %15925 = vmatprep.subr.bf16.mxu1 %v21676_v26  ;;  %16007 = vmatprep.subr.bf16.mxu0 %v21679_v17  ;;  %v15857_v26 = vrot.slane %v15200_v20, %v24635_v27 }
0x159f   : > { %15926 = vmatpush1.bf16.msra.mxu1 %v21674_v55  ;;  %16008 = vmatpush1.bf16.msra.mxu0 %v21677_v43 }
0x15a0   : > { %15927 = vmatprep.subr.bf16.mxu1 %v21682_v49  ;;  %16009 = vmatprep.subr.bf16.mxu0 %v21685_v5 }
0x15a3   : > { %15928 = vmatpush1.bf16.msra.mxu1 %v21680_v54  ;;  %16010 = vmatpush1.bf16.msra.mxu0 %v21683_v10 }
0x15a4   : > { %15929 = vmatprep.subr.bf16.mxu1 %v21688_v1  ;;  %16011 = vmatprep.subr.bf16.mxu0 %v21691_v52 }
0x15a7   : > { %15930 = vmatpush1.bf16.msra.mxu1 %v21686_v35  ;;  %16012 = vmatpush1.bf16.msra.mxu0 %v21689_v34 }
0x15a8   : > { %15931 = vmatprep.subr.bf16.mxu1 %v21694_v60  ;;  %16013 = vmatprep.subr.bf16.mxu0 %v21697_v30 }
0x15ab   : > { %15932 = vmatpush1.bf16.msra.mxu1 %v21692_v42  ;;  %16014 = vmatpush1.bf16.msra.mxu0 %v21695_v58 }
0x15ac   : > { %15933 = vmatprep.subr.bf16.mxu1 %v21700_v3  ;;  %16015 = vmatprep.subr.bf16.mxu0 %v21703_v44  ;;  %v16098_v44 = vld [vmem:[#allocation29] sm:$0x1] }
0x15af   : > { %15934 = vmatpush1.bf16.msra.mxu1 %v21698_v18  ;;  %16016 = vmatpush1.bf16.msra.mxu0 %v21701_v14 }
0x15b0   : > { %18652 = vmatprep.subr.bf16.mxu1 %v21704_v33  ;;  %18674 = vmatprep.subr.bf16.mxu0 %v21705_v9 }
0x15b2   : > { %15936 = vmatmul.mubr.bf16.vlgmr.msra.gmra.mrb[140].mxu1 %v15070_v0  ;;  %16018 = vmatmul.mubr.bf16.vlgmr.msra.gmra.mrb[144].mxu0 %v15070_v0 }
0x15b3   : > { %18653 = vmatpush3.bf16.msra.mxu1 %v21706_v41  ;;  %18675 = vmatpush3.bf16.msra.mxu0 %v21707_v29 }
0x15b4   : > { %18654 = vmatprep.subr.bf16.mxu1 %v21708_v25  ;;  %18676 = vmatprep.subr.bf16.mxu0 %v21709_v37 }
0x15b7   : > { %18655 = vmatpush3.bf16.msra.mxu1 %v21710_v12  ;;  %18677 = vmatpush3.bf16.msra.mxu0 %v21711_v19 }
0x15b8   : > { %18656 = vmatprep.subr.bf16.mxu1 %v21712_v40  ;;  %18678 = vmatprep.subr.bf16.mxu0 %v21713_v48 }
0x15bb   : > { %18657 = vmatpush3.bf16.msra.mxu1 %v21714_v47  ;;  %18679 = vmatpush3.bf16.msra.mxu0 %v21715_v61 }
0x15bc   : > { %18658 = vmatprep.subr.bf16.mxu1 %v21716_v36  ;;  %18680 = vmatprep.subr.bf16.mxu0 %v21717_v51 }
0x15bf   : > { %18659 = vmatpush3.bf16.msra.mxu1 %v21718_v22  ;;  %18681 = vmatpush3.bf16.msra.mxu0 %v21719_v63 }
0x15c0   : > { %18660 = vmatprep.subr.bf16.mxu1 %v21720_v24  ;;  %18682 = vmatprep.subr.bf16.mxu0 %v21721_v8 }
0x15c3   : > { %18661 = vmatpush3.bf16.msra.mxu1 %v21722_v23  ;;  %18683 = vmatpush3.bf16.msra.mxu0 %v21723_v53 }
0x15c4   : > { %18662 = vmatprep.subr.bf16.mxu1 %v21724_v38  ;;  %18684 = vmatprep.subr.bf16.mxu0 %v21725_v13 }
0x15c7   : > { %18663 = vmatpush3.bf16.msra.mxu1 %v21726_v50  ;;  %18685 = vmatpush3.bf16.msra.mxu0 %v21727_v57 }
0x15c8   : > { %18664 = vmatprep.subr.bf16.mxu1 %v21728_v2  ;;  %18686 = vmatprep.subr.bf16.mxu0 %v21729_v7 }
0x15cb   : > { %18665 = vmatpush3.bf16.msra.mxu1 %v21730_v11  ;;  %18687 = vmatpush3.bf16.msra.mxu0 %v21731_v45 }
0x15cc   : > { %18666 = vmatprep.subr.bf16.mxu1 %v21732_v39  ;;  %18688 = vmatprep.subr.bf16.mxu0 %v21733_v4 }
0x15cf   : > { %18667 = vmatpush3.bf16.msra.mxu1 %v21734_v15  ;;  %18689 = vmatpush3.bf16.msra.mxu0 %v21735_v6 }
0x1685   : > { %v15937_v17 = vpop.f32.mrb[140].mxu1  ;;  %v16019_v55 = vpop.f32.mrb[144].mxu0 }
0x1686   : > { %v19448_v43 = vadd.f32 %v15937_v17, %v15845_v59  ;;  %v19450_v49 = vadd.f32 %v16019_v55, %v15853_v28  ;;  %v15939_v5 = vpop.f32.mrb[141].mxu1  ;;  %v16021_v54 = vpop.f32.mrb[145].mxu0 }
0x1687   : > { %v19449_v10 = vadd.f32 %v15939_v5, %v15849_v56  ;;  %v19451_v1 = vadd.f32 %v16021_v54, %v15857_v26  ;;  %v15941_v52 = vpop.f32.mrb[142].mxu1  ;;  %v16023_v35 = vpop.f32.mrb[146].mxu0 }
0x1688   : > { %v16026_v34 = vmax.f32 %v19448_v43, 0.0  ;;  %v16028_v16 = vmax.f32 %v19450_v49, 0.0  ;;  %v15942_v31 = vpop.f32.mrb[143].mxu1  ;;  %v16024_v60 = vpop.f32.mrb[147].mxu0 }
0x1689   : > { %v16027_v46 = vmax.f32 %v19449_v10, 0.0  ;;  %v16029_v30 = vmax.f32 %v19451_v1, 0.0 }
0x168a   : > { %v16030_v27 = vpack.c.bf16 %v16026_v34, %v16026_v34  ;;  %v16032_v58 = vpack.c.bf16 %v16028_v16, %v16028_v16 }
0x168b   : > { %v16031_v21 = vpack.c.bf16 %v16027_v46, %v16027_v46  ;;  %v16033_v42 = vpack.c.bf16 %v16029_v30, %v16029_v30 }
0x168d   : > { %16323 = vmatprep.mubr.bf16.mxu1 %v16031_v21  ;;  %16363 = vmatprep.mubr.bf16.mxu0 %v16033_v42 }
0x168e   : > { %16324 = vmatmul.mubr.bf16.vlgmr.msra.gmra.mrb[144].mxu1 %v16030_v27  ;;  %16364 = vmatmul.mubr.bf16.vlgmr.msra.gmra.mrb[148].mxu0 %v16032_v58 }
0x1761   : > { %v18668_v32 = vpop.f32.mrb[144].mxu1  ;;  %v18690_v3 = vpop.f32.mrb[148].mxu0 }
0x1762   : > { %v18669_v18 = vpop.f32.mrb[145].mxu1  ;;  %v18691_v14 = vpop.f32.mrb[149].mxu0 }
0x1763   : > { %v18670_v62 = vadd.f32 %v18669_v18, %v18668_v32  ;;  %v18692_v33 = vadd.f32 %v18691_v14, %v18690_v3  ;;  %v18671_v9 = vpop.f32.mrb[146].mxu1  ;;  %v18693_v41 = vpop.f32.mrb[150].mxu0 }
0x1764   : > { %v18672_v29 = vpop.f32.mrb[147].mxu1  ;;  %v18694_v0 = vpop.f32.mrb[151].mxu0 }
0x1765   : > { %v16326_v25 = vadd.f32 %v18670_v62, %v16098_v44 }
0x1767   : > { %v16366_v37 = vadd.f32 %v18692_v33, %v16326_v25 }
0x1769   : > { %16372 = vst.msk [vmem:[%s894_s10] sm:$0x1] %vm16371_vm5, %v16366_v37 }
0x176a   : > { %22213 = shalt.err (!%p22210_p11)
}
0x176b   : > { %s22214_s26 = scalar_lea.hbm %s24786_s28, 16  ;;  %s22218_s6 = scalar_lea.hbm %s24944_s15, 32 }
0x176c   : > { %p22215_p13 = scmp.ne.s32.totalorder %s24786_s28, %s22214_s26  ;;  %p22219_p6 = scmp.lt.u32.totalorder %s24786_s28, %s24944_s15 }
0x176d   : > { %p22220_p5 = scmp.lt.u32.totalorder %s22218_s6, %s22214_s26  ;;  %p22222_p12 = scmp.lt.u32.totalorder %s22214_s26, %s24786_s28 }
0x176e   : > { %p22216_p1 = pnand %p22215_p13, %p24945_p10 }
0x176f   : > { %p22221_p9 = por %p22220_p5, %p22219_p6 }
0x1770   : > { %p22217_p0 = pneg %p22216_p1 }
0x1771   : > { %p22223_p2 = por %p22222_p12, %p22221_p9 }
0x1773   : > { %p22224_p3 = pnand %p22223_p2, %p22217_p0 }
0x1775   : > { %22227 = shalt.err (!%p22224_p3)
}
0x1776   : > { %19857 = dma.vmem_to_hbm [thread:$0]  (%p24945_p10), %s24788_s1, 16, %s24786_s28, %s16374_s3  }
0x1777 PF: > { %s24946_s29 = sld [smem:[#allocation45_spill]]  ;;  %s24947_s2 = sld [smem:[#allocation42_spill]] }
0x1778   : > { %s24948_s25 = sld [smem:[#allocation49_spill]] }
0x177d   : > { %p19944_p4 = scmp.ge.s32.totalorder %s24946_s29, 2  ;;  %s16398_s4 = sand.u32 1, %s24947_s2  }
0x177e   : > { %p24949_p7 = scmp.ne.s32.totalorder %s24948_s25, 0  ;;  %s16399_s30 = scalar_lea.sflag [#allocation7], %s16398_s4 }
0x1780   : > { %p19909_p8 = pnand %p19944_p4, %p24949_p7 }
0x1782   : > { %22281 = dma.done.wait (!%p19909_p8), %s16399_s30, 16  }
0x1783   : > { %22283 = vsyncadd (!%p19909_p8), %s16399_s30, 4294967280  ;;  %s24950_s30 = sld [smem:[#allocation46_spill]]  ;;  %s24951_s3 = sld [smem:[#allocation43_spill]] }
0x1784   : > { %s24952_s28 = sld [smem:[#allocation44_spill]]  ;;  %s24953_s29 = sld [smem:[#allocation47_spill]] }
0x1789   : > { %p41_p11 = scmp.ge.s32.totalorder %s24950_s30, 4  }
0x178b   :  { %43 = sbr.rel (!%p41_p11) target bundleno = 28 (0x1c), region = 252 }
0x1792   :  { %16403 = vsyncpa [#allocation6], 1 }
0x1793   :  { %16405 = vsyncpa [#allocation6 + $0x1], 1 }
0x1794   :  { %16406 = vsyncpa [#allocation9], 1 }
0x1795   :  { %16407 = vsyncpa [#allocation12], 1 }
0x1796   :  { %16408 = vsyncpa [#allocation15], 1 }
0x1797   :  { %16409 = vsyncpa [#allocation18], 1 }
0x1798   :  { %16410 = vsyncpa [#allocation21], 1 }
0x1799   :  { %16411 = vsyncpa [#allocation24], 1 }
0x179a   :  { %16412 = vsyncpa [#allocation27], 1 }
0x179b   :  { %16413 = vsyncpa [#allocation30], 1 }
0x179c   :  { %16414 = vsyncpa [#allocation7], 1 }
0x179d   :  { %16416 = vsyncpa [#allocation7 + $0x1], 1 }

</bundles_post_ra>
